<compile_context>
chip_gen: v7x
topology: tpu7x:2x2x1
jax: 0.10.0
libtpu: 0.0.40
codegen_flags: <defaults>
</compile_context>

<pallas_src>
import math
import functools

import jax
import jax.numpy as jnp
from jax import lax
from jax.experimental import pallas as pl
from jax.experimental.pallas import tpu as pltpu

DILATIONS = (1, 3, 9)   # the three ResidualUnits
HALO = 128              # per-side window halo: covers 3*(1+3+9)=39 columns of stacked
                        #   ResidualUnit receptive field + final-conv reach, lane-aligned
GUARD = 128             # zero-guard columns in the staging scratch (only 27 needed,
                        #   128 keeps every staging store lane-aligned / unmasked)
GAP = 128               # zero gap between folded batch segments (>= receptive field)


# ----------------------------------- kernel -----------------------------------

def encoder_block_kernel(x_ref, mask_ref,
                         s1a_ref, s1c_ref, w1_ref, b1_ref,
                         s2a_ref, s2c_ref, w2_ref, b2_ref,
                         sfa_ref, sfc_ref, wf_ref, bf_ref,
                         o_ref, buf_ref, *, stride):
    C, W = x_ref.shape[1], x_ref.shape[2]       # channels, window width (= T + 2*HALO)
    T = o_ref.shape[-1]                         # lane-dense output tile width
    kf = 2 * stride
    pf = math.ceil(stride / 2)
    cd = buf_ref.dtype                          # compute dtype for MXU operands

    # Zero ONLY the guard columns (review item: not the whole scratch).  Done every
    # grid step so megacore sharding can never see a stale / un-zeroed guard.
    buf_ref[:, :GUARD] = jnp.zeros((C, GUARD), cd)
    buf_ref[:, GUARD + W:] = jnp.zeros((C, GUARD), cd)

    x = x_ref[0].astype(jnp.float32)                                   # (C, W), f32 math
    # Validity mask: 1 inside some batch's [0, L), 0 in halos / gaps / lane padding.
    # Broadcast hoisted once (JAX does not CSE broadcast_in_dim inside the loop).
    mask = jnp.broadcast_to(mask_ref[0].astype(jnp.float32), (C, W))

    def snake(v, a2, c0):
        # x + (alpha+1e-9)^-1 sin(alpha x)^2  ==  x + c0 - c0*cos(2*alpha*x)
        return v + c0 - c0 * jnp.cos(a2 * v)

    def conv_taps(w, offsets, width):
        # One fused MXU matmul over sublane-stacked shifted windows of buf_ref.
        taps = [buf_ref[:, off:off + width] for off in offsets]
        if C >= 128:
            # Large-channel path: contraction K=C already saturates the MXU, so skip
            # the (K*C, width) concat temp and accumulate per-tap dots instead.
            acc = jnp.zeros((w.shape[0], width), jnp.float32)
            for k, tap in enumerate(taps):
                acc = acc + jnp.dot(w[:, k * C:(k + 1) * C], tap,
                                    preferred_element_type=jnp.float32)
            return acc
        return jnp.dot(w, jnp.concatenate(taps, axis=0),
                       preferred_element_type=jnp.float32)

    # ----- three ResidualUnits (dilation 1, 3, 9) -----
    for u, dil in enumerate(DILATIONS):
        y = snake(x, s1a_ref[u], s1c_ref[u])
        # Snake(0) = 0, so the zero guard / zero halo is exactly the conv's zero padding.
        buf_ref[:, GUARD:GUARD + W] = y.astype(cd)
        offs = [GUARD + (k - 3) * dil for k in range(7)]               # 7 dilated taps
        y = conv_taps(w1_ref[u], offs, W) + b1_ref[u]
        y = snake(y, s2a_ref[u], s2c_ref[u])
        y = jnp.dot(w2_ref[u], y.astype(cd),
                    preferred_element_type=jnp.float32) + b2_ref[u]    # pointwise k=1 conv
        # Re-impose zero padding outside the valid columns (PyTorch conv padding
        # semantics at sequence edges / batch gaps).  Cheap vs. the Snake EUP work.
        x = (x + y) * mask

    # ----- final Snake + dense (stride-1) output conv; wrapper decimates by `stride` -----
    y = snake(x, sfa_ref[...], sfc_ref[...])
    buf_ref[:, GUARD:GUARD + W] = y.astype(cd)
    offs = [GUARD + HALO - pf + k for k in range(kf)]
    out = conv_taps(wf_ref[...], offs, T) + bf_ref[...]
    o_ref[...] = out.astype(o_ref.dtype)


# ----------------------------------- wrapper -----------------------------------

def _round_up(x, m):
    return ((x + m - 1) // m) * m


def _vmem_capacity_bytes():
    try:
        return int(pltpu.get_tpu_info().vmem_capacity_bytes)
    except Exception:
        return 64 << 20            # conservative fallback = v7x (64 MiB / TensorCore)


def _choose_tile(C, dim, total_cols, io_b, cd_b, out_b, budget_bytes, t_max=8192):
    """Largest lane tile (multiple of 128) whose per-step footprint fits the budget."""
    per_col = (2 * C * io_b        # input window, double-buffered
               + 2 * 4             # mask, double-buffered
               + C * cd_b          # staging scratch
               + 7 * C * cd_b      # fused-tap concat temp
               + 4 * C * 4         # running activation / snake / matmul temps (f32)
               + 2 * dim * out_b)  # output tile, double-buffered
    fixed = (2 * HALO + 2 * GUARD) * (10 * C * 4 + 8) + (1 << 20)   # halos, params, slack
    t = (budget_bytes - fixed) // max(per_col, 1)
    # t_max: per-step overhead (~0.35 us) is already <<1% at 8192 columns of this much
    # compute; capping avoids single giant ops without hurting the roofline.
    t = max(128, min(int(t), t_max, _round_up(total_cols, 128)))
    return t // 128 * 128


def encoder_block(x, params, *, stride=1, io_dtype=None, tile_cols=None):
    """Run EncoderBlock on x of shape (B, dim//2, L) -> (B, dim, L_out)."""
    B, C, L = x.shape
    dim, kcf = params["wf"].shape
    kf = 2 * stride
    pf = math.ceil(stride / 2)
    assert kcf == kf * C, "params do not match this stride / channel count"
    assert 3 * sum(DILATIONS) + max(pf, kf - 1 - pf) <= HALO, "stride too large for HALO"
    lout = (L + 2 * pf - kf) // stride + 1

    compute_dtype = params["w1"].dtype          # MXU operand dtype (f32 or bf16)
    io_dtype = x.dtype if io_dtype is None else io_dtype
    out_dtype = x.dtype

    # --- fold the batch into the time/lane axis with zero gaps (review: amortize
    #     per-step overhead at small dims); each batch occupies one S-column segment.
    Lw = _round_up(L, 128)
    S = Lw + GAP
    F = B * S

    # --- tile the folded axis; tile size from an explicit VMEM budget
    #     (v7x has 64 MiB per TensorCore = half of v5e/v6e).
    cap = _vmem_capacity_bytes()
    budget = (cap * 3) // 4
    if tile_cols is None:
        T = _choose_tile(C, dim, F,
                         jnp.dtype(io_dtype).itemsize,
                         jnp.dtype(compute_dtype).itemsize,
                         jnp.dtype(out_dtype).itemsize,
                         budget)
    else:
        T = tile_cols
    F_pad = _round_up(F, T)
    nb = F_pad // T
    W = T + 2 * HALO
    vmem_limit = int(min(cap - (4 << 20), budget + (16 << 20)))

    # --- build overlapped per-tile windows (wrapper-side layout plumbing only; the
    #     duplication is just the 2*HALO halo columns per tile) and validity masks.
    xf = jnp.transpose(x, (1, 0, 2))                                    # (C, B, L)
    xf = jnp.pad(xf, ((0, 0), (0, 0), (0, S - L))).reshape(C, F)        # folded axis
    xf = jnp.pad(xf, ((0, 0), (HALO, (F_pad - F) + HALO))).astype(io_dtype)
    x_win = jnp.stack([xf[:, i * T:i * T + W] for i in range(nb)], axis=0)   # (nb, C, W)

    col_idx = jnp.arange(F_pad)
    valid = (((col_idx % S) < L) & (col_idx < F)).astype(jnp.float32)[None, :]
    vf = jnp.pad(valid, ((0, 0), (HALO, HALO)))
    mask_win = jnp.stack([vf[:, i * T:i * T + W] for i in range(nb)], axis=0)  # (nb, 1, W)

    kernel = functools.partial(encoder_block_kernel, stride=stride)

    def full_spec(a):
        nd = a.ndim
        return pl.BlockSpec(a.shape, lambda i, _nd=nd: (0,) * _nd)

    p = params
    param_args = (p["s1a"], p["s1c"], p["w1"], p["b1"],
                  p["s2a"], p["s2c"], p["w2"], p["b2"],
                  p["sfa"], p["sfc"], p["wf"], p["bf"])

    # TODO(synk): on v7x with VMEM-budget-sized tiles, single-buffer these tiny
    # parameter/mask inputs via pipeline_mode=pl.Buffered(1) to free double-buffer space.
    out_dense = pl.pallas_call(
        kernel,
        out_shape=jax.ShapeDtypeStruct((dim, F_pad), out_dtype),
        grid=(nb,),
        in_specs=[pl.BlockSpec((1, C, W), lambda i: (i, 0, 0)),
                  pl.BlockSpec((1, 1, W), lambda i: (i, 0, 0))]
                 + [full_spec(a) for a in param_args],
        out_specs=pl.BlockSpec((dim, T), lambda i: (0, i)),
        scratch_shapes=[pltpu.VMEM((C, W + 2 * GUARD), compute_dtype)],
        compiler_params=pltpu.CompilerParams(
            dimension_semantics=("parallel",),   # independent tiles -> both v7x TCs fed for nb >= 2
            vmem_limit_bytes=vmem_limit),
    )(x_win, mask_win, *param_args)

    # Un-fold the batch, decimate the dense final conv by `stride`, crop to lout.
    out = out_dense[:, :F].reshape(dim, B, S)
    out = jnp.transpose(out, (1, 0, 2))
    return out[:, :, :(lout - 1) * stride + 1:stride]


# ------------------------------ parameter creation -----------------------------

def _weight_norm(v, g):
    # PyTorch weight_norm(dim=0): w = g * v / ||v||, norm over (in, k) per out-channel
    norm = jnp.sqrt(jnp.sum(v * v, axis=(1, 2), keepdims=True))
    return g[:, None, None] * v / norm


def init_params(key, dim=16, stride=1):
    """PyTorch-layout effective weights (used by the pure-JAX reference)."""
    half = dim // 2
    keys = iter(jax.random.split(key, 32))

    def nrm(shape, scale=0.1):
        return scale * jax.random.normal(next(keys), shape, jnp.float32)

    w1, b1, w2, b2 = [], [], [], []
    for _ in range(3):
        v1 = nrm((half, half, 7)); g1 = 1.0 + nrm((half,))
        w1.append(_weight_norm(v1, g1)); b1.append(nrm((half,)))
        v2 = nrm((half, half, 1)); g2 = 1.0 + nrm((half,))
        w2.append(_weight_norm(v2, g2)); b2.append(nrm((half,)))
    vf = nrm((dim, half, 2 * stride)); gf = 1.0 + nrm((dim,))
    wf = _weight_norm(vf, gf); bf = nrm((dim,))
    a1 = jnp.ones((3, half)); a2 = jnp.ones((3, half)); af = jnp.ones((half,))
    return dict(a1=a1, a2=a2, af=af,
                w1=jnp.stack(w1), b1=jnp.stack(b1),
                w2=jnp.stack(w2), b2=jnp.stack(b2),
                wf=wf, bf=bf)


def pack_params(ref, compute_dtype=jnp.float32):
    """PyTorch layout -> kernel layout.

    Conv weights are fused per layer into one lane-contiguous slab (Cout, K*Cin) so
    each conv is a single MXU matmul against the sublane-stacked shifted-tap matrix.
    Snake coefficients are precomputed for the cos form (a2 = 2*alpha,
    c0 = 0.5/(alpha+1e-9)).  compute_dtype=bfloat16 makes the MXU operand slabs and
    the in-kernel staging scratch bf16 (f32 accumulation and Snake math preserved).
    """
    def fuse(w):                                   # (Cout, Cin, K) -> (Cout, K*Cin)
        co, ci, k = w.shape
        return jnp.transpose(w, (0, 2, 1)).reshape(co, k * ci).astype(compute_dtype)

    def col(v):                                    # (..., C) -> (..., C, 1), f32
        return v[..., None].astype(jnp.float32)

    def snake_coeffs(a):
        a = a.astype(jnp.float32)
        return col(2.0 * a), col(0.5 / (a + 1e-9))

    s1a, s1c = snake_coeffs(ref["a1"])
    s2a, s2c = snake_coeffs(ref["a2"])
    sfa, sfc = snake_coeffs(ref["af"])
    return dict(
        s1a=s1a, s1c=s1c, s2a=s2a, s2c=s2c, sfa=sfa, sfc=sfc,
        w1=jnp.stack([fuse(ref["w1"][u]) for u in range(3)]),   # (3, C, 7C)
        b1=col(ref["b1"]),                                      # (3, C, 1)
        w2=jnp.stack([fuse(ref["w2"][u]) for u in range(3)]),   # (3, C, C)
        b2=col(ref["b2"]),
        wf=fuse(ref["wf"]),                                     # (dim, 2*stride*C)
        bf=col(ref["bf"]),
    )


# ------------------------------- pure-JAX reference ----------------------------

def encoder_block_ref(x, p, *, stride=1):
    def snake(x, a):
        a = a.reshape(1, -1, 1)
        return x + (1.0 / (a + 1e-9)) * jnp.sin(a * x) ** 2

    def conv(x, w, b, stride=1, pad=0, dil=1):
        y = lax.conv_general_dilated(x, w, (stride,), [(pad, pad)],
                                     rhs_dilation=(dil,),
                                     dimension_numbers=("NCH", "OIH", "NCH"))
        return y + b.reshape(1, -1, 1)

    for u, dil in enumerate(DILATIONS):
        y = snake(x, p["a1"][u])
        y = conv(y, p["w1"][u], p["b1"][u], pad=3 * dil, dil=dil)
        y = snake(y, p["a2"][u])
        y = conv(y, p["w2"][u], p["b2"][u])
        x = x + y
    y = snake(x, p["af"])
    return conv(y, p["wf"], p["bf"], stride=stride, pad=math.ceil(stride / 2))


# ------------------------------------- main -------------------------------------

if __name__ == "__main__":
    key = jax.random.PRNGKey(0)
    k_x, k_p, k_p2 = jax.random.split(key, 3)

    dim = 16
    B, L = 2, 16
    x = jax.random.normal(k_x, (B, dim // 2, L), jnp.float32)   # (B, dim//2, L), NCL

    # --- test 1: stride=1, f32 end-to-end (tight tolerance) ---
    ref_p = init_params(k_p, dim=dim, stride=1)
    out = jax.block_until_ready(encoder_block(x, pack_params(ref_p), stride=1))
    exp = encoder_block_ref(x, ref_p, stride=1)
    assert out.shape == exp.shape, (out.shape, exp.shape)
    assert jnp.allclose(out, exp, rtol=2e-3, atol=2e-3), (
        float(jnp.max(jnp.abs(out - exp))))

    # --- test 2: stride=2 (exercises the dense final conv + wrapper decimation) ---
    ref_p2 = init_params(k_p2, dim=dim, stride=2)
    out2 = jax.block_until_ready(encoder_block(x, pack_params(ref_p2), stride=2))
    exp2 = encoder_block_ref(x, ref_p2, stride=2)
    assert out2.shape == exp2.shape, (out2.shape, exp2.shape)
    assert jnp.allclose(out2, exp2, rtol=2e-3, atol=2e-3), (
        float(jnp.max(jnp.abs(out2 - exp2))))

    # --- test 3: bf16 MXU operands + bf16 staging / IO (loose tolerance) ---
    out_bf = jax.block_until_ready(encoder_block(
        x, pack_params(ref_p, compute_dtype=jnp.bfloat16),
        stride=1, io_dtype=jnp.bfloat16))
    assert out_bf.shape == exp.shape, (out_bf.shape, exp.shape)
    assert jnp.allclose(out_bf.astype(jnp.float32), exp, rtol=1e-1, atol=1e-1), (
        float(jnp.max(jnp.abs(out_bf.astype(jnp.float32) - exp))))

    print("KERNEL_OK")
</pallas_src>

<mosaic_0001>
module attributes {stable_mosaic.version = 11 : i64} {
  func.func @encoder_block_kernel(%arg0: i32, %arg1: memref<1x8x768xf32, #tpu.memory_space<vmem>>, %arg2: memref<1x1x768xf32, #tpu.memory_space<vmem>>, %arg3: memref<3x8x1xf32, #tpu.memory_space<vmem>>, %arg4: memref<3x8x1xf32, #tpu.memory_space<vmem>>, %arg5: memref<3x8x56xf32, #tpu.memory_space<vmem>>, %arg6: memref<3x8x1xf32, #tpu.memory_space<vmem>>, %arg7: memref<3x8x1xf32, #tpu.memory_space<vmem>>, %arg8: memref<3x8x1xf32, #tpu.memory_space<vmem>>, %arg9: memref<3x8x8xf32, #tpu.memory_space<vmem>>, %arg10: memref<3x8x1xf32, #tpu.memory_space<vmem>>, %arg11: memref<8x1xf32, #tpu.memory_space<vmem>>, %arg12: memref<8x1xf32, #tpu.memory_space<vmem>>, %arg13: memref<16x16xf32, #tpu.memory_space<vmem>>, %arg14: memref<16x1xf32, #tpu.memory_space<vmem>>, %arg15: memref<16x512xf32, #tpu.memory_space<vmem>>, %arg16: memref<8x1024xf32, #tpu.memory_space<vmem>>) attributes {dimension_semantics = [#tpu.dimension_semantics<parallel>], iteration_bounds = array<i64: 1>, scalar_prefetch = 0 : i64, scratch_operands = 1 : i64, tpu.core_type = #tpu.core_type<tc>, window_params = [{transform_indices = @transform_0, window_bounds = array<i64: 1, 8, 768>}, {transform_indices = @transform_1, window_bounds = array<i64: 1, 1, 768>}, {pipeline_mode = #tpu.pipeline_mode<synchronous>, transform_indices = @transform_2, window_bounds = array<i64: 3, 8, 1>}, {pipeline_mode = #tpu.pipeline_mode<synchronous>, transform_indices = @transform_3, window_bounds = array<i64: 3, 8, 1>}, {pipeline_mode = #tpu.pipeline_mode<synchronous>, transform_indices = @transform_4, window_bounds = array<i64: 3, 8, 56>}, {pipeline_mode = #tpu.pipeline_mode<synchronous>, transform_indices = @transform_5, window_bounds = array<i64: 3, 8, 1>}, {pipeline_mode = #tpu.pipeline_mode<synchronous>, transform_indices = @transform_6, window_bounds = array<i64: 3, 8, 1>}, {pipeline_mode = #tpu.pipeline_mode<synchronous>, transform_indices = @transform_7, window_bounds = array<i64: 3, 8, 1>}, {pipeline_mode = #tpu.pipeline_mode<synchronous>, transform_indices = @transform_8, window_bounds = array<i64: 3, 8, 8>}, {pipeline_mode = #tpu.pipeline_mode<synchronous>, transform_indices = @transform_9, window_bounds = array<i64: 3, 8, 1>}, {pipeline_mode = #tpu.pipeline_mode<synchronous>, transform_indices = @transform_10, window_bounds = array<i64: 8, 1>}, {pipeline_mode = #tpu.pipeline_mode<synchronous>, transform_indices = @transform_11, window_bounds = array<i64: 8, 1>}, {pipeline_mode = #tpu.pipeline_mode<synchronous>, transform_indices = @transform_12, window_bounds = array<i64: 16, 16>}, {pipeline_mode = #tpu.pipeline_mode<synchronous>, transform_indices = @transform_13, window_bounds = array<i64: 16, 1>}, {transform_indices = @transform_14, window_bounds = array<i64: 16, 512>}]} {
    %cst = arith.constant 0.000000e+00 : f32
    %0 = vector.broadcast %cst : f32 to vector<8x128xf32>
    %c0 = arith.constant 0 : index
    %c0_0 = arith.constant 0 : index
    %1 = vector.load %arg16[%c0, %c0_0] : memref<8x1024xf32, #tpu.memory_space<vmem>>, vector<8x128xf32>
    tpu.vector_store %arg16[%c0, %c0_0], %0 {strides = array<i32>} : memref<8x1024xf32, #tpu.memory_space<vmem>>, vector<8x128xf32>,
    %cst_1 = arith.constant 0.000000e+00 : f32
    %2 = vector.broadcast %cst_1 : f32 to vector<8x128xf32>
    %c0_2 = arith.constant 0 : index
    %c896 = arith.constant 896 : index
    %3 = vector.load %arg16[%c0_2, %c896] : memref<8x1024xf32, #tpu.memory_space<vmem>>, vector<8x128xf32>
    tpu.vector_store %arg16[%c0_2, %c896], %2 {strides = array<i32>} : memref<8x1024xf32, #tpu.memory_space<vmem>>, vector<8x128xf32>,
    %c0_3 = arith.constant 0 : index
    %c0_4 = arith.constant 0 : index
    %c0_5 = arith.constant 0 : index
    %4 = vector.load %arg1[%c0_3, %c0_4, %c0_5] : memref<1x8x768xf32, #tpu.memory_space<vmem>>, vector<1x8x768xf32>
    %5 = vector.shape_cast %4 : vector<1x8x768xf32> to vector<8x768xf32>
    %c0_6 = arith.constant 0 : index
    %c0_7 = arith.constant 0 : index
    %c0_8 = arith.constant 0 : index
    %6 = vector.load %arg2[%c0_6, %c0_7, %c0_8] : memref<1x1x768xf32, #tpu.memory_space<vmem>>, vector<1x1x768xf32>
    %7 = vector.shape_cast %6 : vector<1x1x768xf32> to vector<1x768xf32>
    %8 = vector.shape_cast %7 : vector<1x768xf32> to vector<1x768xf32>
    %9 = vector.broadcast %8 : vector<1x768xf32> to vector<8x768xf32>
    %c0_9 = arith.constant 0 : index
    %c0_10 = arith.constant 0 : index
    %c0_11 = arith.constant 0 : index
    %10 = vector.load %arg3[%c0_9, %c0_10, %c0_11] : memref<3x8x1xf32, #tpu.memory_space<vmem>>, vector<1x8x1xf32>
    %11 = vector.shape_cast %10 : vector<1x8x1xf32> to vector<8x1xf32>
    %c0_12 = arith.constant 0 : index
    %c0_13 = arith.constant 0 : index
    %c0_14 = arith.constant 0 : index
    %12 = vector.load %arg4[%c0_12, %c0_13, %c0_14] : memref<3x8x1xf32, #tpu.memory_space<vmem>>, vector<1x8x1xf32>
    %13 = vector.shape_cast %12 : vector<1x8x1xf32> to vector<8x1xf32>
    %14 = vector.broadcast %13 : vector<8x1xf32> to vector<8x768xf32>
    %15 = arith.addf %5, %14 : vector<8x768xf32>
    %16 = vector.broadcast %11 : vector<8x1xf32> to vector<8x768xf32>
    %17 = arith.mulf %16, %5 : vector<8x768xf32>
    %18 = math.cos %17 : vector<8x768xf32>
    %19 = vector.broadcast %13 : vector<8x1xf32> to vector<8x768xf32>
    %20 = arith.mulf %19, %18 : vector<8x768xf32>
    %21 = arith.subf %15, %20 : vector<8x768xf32>
    %c0_15 = arith.constant 0 : index
    %c128 = arith.constant 128 : index
    %22 = vector.load %arg16[%c0_15, %c128] : memref<8x1024xf32, #tpu.memory_space<vmem>>, vector<8x768xf32>
    tpu.vector_store %arg16[%c0_15, %c128], %21 {strides = array<i32>} : memref<8x1024xf32, #tpu.memory_space<vmem>>, vector<8x768xf32>,
    %c0_16 = arith.constant 0 : index
    %c0_17 = arith.constant 0 : index
    %c0_18 = arith.constant 0 : index
    %23 = vector.load %arg5[%c0_16, %c0_17, %c0_18] : memref<3x8x56xf32, #tpu.memory_space<vmem>>, vector<1x8x56xf32>
    %24 = vector.shape_cast %23 : vector<1x8x56xf32> to vector<8x56xf32>
    %c0_19 = arith.constant 0 : index
    %c125 = arith.constant 125 : index
    %25 = vector.load %arg16[%c0_19, %c125] : memref<8x1024xf32, #tpu.memory_space<vmem>>, vector<8x768xf32>
    %c0_20 = arith.constant 0 : index
    %c126 = arith.constant 126 : index
    %26 = vector.load %arg16[%c0_20, %c126] : memref<8x1024xf32, #tpu.memory_space<vmem>>, vector<8x768xf32>
    %c0_21 = arith.constant 0 : index
    %c127 = arith.constant 127 : index
    %27 = vector.load %arg16[%c0_21, %c127] : memref<8x1024xf32, #tpu.memory_space<vmem>>, vector<8x768xf32>
    %c0_22 = arith.constant 0 : index
    %c128_23 = arith.constant 128 : index
    %28 = vector.load %arg16[%c0_22, %c128_23] : memref<8x1024xf32, #tpu.memory_space<vmem>>, vector<8x768xf32>
    %c0_24 = arith.constant 0 : index
    %c129 = arith.constant 129 : index
    %29 = vector.load %arg16[%c0_24, %c129] : memref<8x1024xf32, #tpu.memory_space<vmem>>, vector<8x768xf32>
    %c0_25 = arith.constant 0 : index
    %c130 = arith.constant 130 : index
    %30 = vector.load %arg16[%c0_25, %c130] : memref<8x1024xf32, #tpu.memory_space<vmem>>, vector<8x768xf32>
    %c0_26 = arith.constant 0 : index
    %c131 = arith.constant 131 : index
    %31 = vector.load %arg16[%c0_26, %c131] : memref<8x1024xf32, #tpu.memory_space<vmem>>, vector<8x768xf32>
    %32 = tpu.concatenate %25, %26, %27, %28, %29, %30, %31 in 0 : vector<8x768xf32>, vector<8x768xf32>, vector<8x768xf32>, vector<8x768xf32>, vector<8x768xf32>, vector<8x768xf32>, vector<8x768xf32> -> vector<56x768xf32>
    %cst_27 = arith.constant dense<0.000000e+00> : vector<8x768xf32>
    %33 = tpu.matmul %24, %32, %cst_27 {dimension_numbers = #tpu.dot_dimension_numbers<[1], [0], [0], [1], [0, 0, 1, 1], [], []>} : vector<8x56xf32>, vector<56x768xf32>, vector<8x768xf32> -> vector<8x768xf32>
    %c0_28 = arith.constant 0 : index
    %c0_29 = arith.constant 0 : index
    %c0_30 = arith.constant 0 : index
    %34 = vector.load %arg6[%c0_28, %c0_29, %c0_30] : memref<3x8x1xf32, #tpu.memory_space<vmem>>, vector<1x8x1xf32>
    %35 = vector.shape_cast %34 : vector<1x8x1xf32> to vector<8x1xf32>
    %36 = vector.broadcast %35 : vector<8x1xf32> to vector<8x768xf32>
    %37 = arith.addf %33, %36 : vector<8x768xf32>
    %c0_31 = arith.constant 0 : index
    %c0_32 = arith.constant 0 : index
    %c0_33 = arith.constant 0 : index
    %38 = vector.load %arg7[%c0_31, %c0_32, %c0_33] : memref<3x8x1xf32, #tpu.memory_space<vmem>>, vector<1x8x1xf32>
    %39 = vector.shape_cast %38 : vector<1x8x1xf32> to vector<8x1xf32>
    %c0_34 = arith.constant 0 : index
    %c0_35 = arith.constant 0 : index
    %c0_36 = arith.constant 0 : index
    %40 = vector.load %arg8[%c0_34, %c0_35, %c0_36] : memref<3x8x1xf32, #tpu.memory_space<vmem>>, vector<1x8x1xf32>
    %41 = vector.shape_cast %40 : vector<1x8x1xf32> to vector<8x1xf32>
    %42 = vector.broadcast %41 : vector<8x1xf32> to vector<8x768xf32>
    %43 = arith.addf %37, %42 : vector<8x768xf32>
    %44 = vector.broadcast %39 : vector<8x1xf32> to vector<8x768xf32>
    %45 = arith.mulf %44, %37 : vector<8x768xf32>
    %46 = math.cos %45 : vector<8x768xf32>
    %47 = vector.broadcast %41 : vector<8x1xf32> to vector<8x768xf32>
    %48 = arith.mulf %47, %46 : vector<8x768xf32>
    %49 = arith.subf %43, %48 : vector<8x768xf32>
    %c0_37 = arith.constant 0 : index
    %c0_38 = arith.constant 0 : index
    %c0_39 = arith.constant 0 : index
    %50 = vector.load %arg9[%c0_37, %c0_38, %c0_39] : memref<3x8x8xf32, #tpu.memory_space<vmem>>, vector<1x8x8xf32>
    %51 = vector.shape_cast %50 : vector<1x8x8xf32> to vector<8x8xf32>
    %cst_40 = arith.constant dense<0.000000e+00> : vector<8x768xf32>
    %52 = tpu.matmul %51, %49, %cst_40 {dimension_numbers = #tpu.dot_dimension_numbers<[1], [0], [0], [1], [0, 0, 1, 1], [], []>} : vector<8x8xf32>, vector<8x768xf32>, vector<8x768xf32> -> vector<8x768xf32>
    %c0_41 = arith.constant 0 : index
    %c0_42 = arith.constant 0 : index
    %c0_43 = arith.constant 0 : index
    %53 = vector.load %arg10[%c0_41, %c0_42, %c0_43] : memref<3x8x1xf32, #tpu.memory_space<vmem>>, vector<1x8x1xf32>
    %54 = vector.shape_cast %53 : vector<1x8x1xf32> to vector<8x1xf32>
    %55 = vector.broadcast %54 : vector<8x1xf32> to vector<8x768xf32>
    %56 = arith.addf %52, %55 : vector<8x768xf32>
    %57 = arith.addf %5, %56 : vector<8x768xf32>
    %58 = arith.mulf %57, %9 : vector<8x768xf32>
    %c1 = arith.constant 1 : index
    %c0_44 = arith.constant 0 : index
    %c0_45 = arith.constant 0 : index
    %59 = vector.load %arg3[%c1, %c0_44, %c0_45] : memref<3x8x1xf32, #tpu.memory_space<vmem>>, vector<1x8x1xf32>
    %60 = vector.shape_cast %59 : vector<1x8x1xf32> to vector<8x1xf32>
    %c1_46 = arith.constant 1 : index
    %c0_47 = arith.constant 0 : index
    %c0_48 = arith.constant 0 : index
    %61 = vector.load %arg4[%c1_46, %c0_47, %c0_48] : memref<3x8x1xf32, #tpu.memory_space<vmem>>, vector<1x8x1xf32>
    %62 = vector.shape_cast %61 : vector<1x8x1xf32> to vector<8x1xf32>
    %63 = vector.broadcast %62 : vector<8x1xf32> to vector<8x768xf32>
    %64 = arith.addf %58, %63 : vector<8x768xf32>
    %65 = vector.broadcast %60 : vector<8x1xf32> to vector<8x768xf32>
    %66 = arith.mulf %65, %58 : vector<8x768xf32>
    %67 = math.cos %66 : vector<8x768xf32>
    %68 = vector.broadcast %62 : vector<8x1xf32> to vector<8x768xf32>
    %69 = arith.mulf %68, %67 : vector<8x768xf32>
    %70 = arith.subf %64, %69 : vector<8x768xf32>
    %c0_49 = arith.constant 0 : index
    %c128_50 = arith.constant 128 : index
    %71 = vector.load %arg16[%c0_49, %c128_50] : memref<8x1024xf32, #tpu.memory_space<vmem>>, vector<8x768xf32>
    tpu.vector_store %arg16[%c0_49, %c128_50], %70 {strides = array<i32>} : memref<8x1024xf32, #tpu.memory_space<vmem>>, vector<8x768xf32>,
    %c1_51 = arith.constant 1 : index
    %c0_52 = arith.constant 0 : index
    %c0_53 = arith.constant 0 : index
    %72 = vector.load %arg5[%c1_51, %c0_52, %c0_53] : memref<3x8x56xf32, #tpu.memory_space<vmem>>, vector<1x8x56xf32>
    %73 = vector.shape_cast %72 : vector<1x8x56xf32> to vector<8x56xf32>
    %c0_54 = arith.constant 0 : index
    %c119 = arith.constant 119 : index
    %74 = vector.load %arg16[%c0_54, %c119] : memref<8x1024xf32, #tpu.memory_space<vmem>>, vector<8x768xf32>
    %c0_55 = arith.constant 0 : index
    %c122 = arith.constant 122 : index
    %75 = vector.load %arg16[%c0_55, %c122] : memref<8x1024xf32, #tpu.memory_space<vmem>>, vector<8x768xf32>
    %c0_56 = arith.constant 0 : index
    %c125_57 = arith.constant 125 : index
    %76 = vector.load %arg16[%c0_56, %c125_57] : memref<8x1024xf32, #tpu.memory_space<vmem>>, vector<8x768xf32>
    %c0_58 = arith.constant 0 : index
    %c128_59 = arith.constant 128 : index
    %77 = vector.load %arg16[%c0_58, %c128_59] : memref<8x1024xf32, #tpu.memory_space<vmem>>, vector<8x768xf32>
    %c0_60 = arith.constant 0 : index
    %c131_61 = arith.constant 131 : index
    %78 = vector.load %arg16[%c0_60, %c131_61] : memref<8x1024xf32, #tpu.memory_space<vmem>>, vector<8x768xf32>
    %c0_62 = arith.constant 0 : index
    %c134 = arith.constant 134 : index
    %79 = vector.load %arg16[%c0_62, %c134] : memref<8x1024xf32, #tpu.memory_space<vmem>>, vector<8x768xf32>
    %c0_63 = arith.constant 0 : index
    %c137 = arith.constant 137 : index
    %80 = vector.load %arg16[%c0_63, %c137] : memref<8x1024xf32, #tpu.memory_space<vmem>>, vector<8x768xf32>
    %81 = tpu.concatenate %74, %75, %76, %77, %78, %79, %80 in 0 : vector<8x768xf32>, vector<8x768xf32>, vector<8x768xf32>, vector<8x768xf32>, vector<8x768xf32>, vector<8x768xf32>, vector<8x768xf32> -> vector<56x768xf32>
    %cst_64 = arith.constant dense<0.000000e+00> : vector<8x768xf32>
    %82 = tpu.matmul %73, %81, %cst_64 {dimension_numbers = #tpu.dot_dimension_numbers<[1], [0], [0], [1], [0, 0, 1, 1], [], []>} : vector<8x56xf32>, vector<56x768xf32>, vector<8x768xf32> -> vector<8x768xf32>
    %c1_65 = arith.constant 1 : index
    %c0_66 = arith.constant 0 : index
    %c0_67 = arith.constant 0 : index
    %83 = vector.load %arg6[%c1_65, %c0_66, %c0_67] : memref<3x8x1xf32, #tpu.memory_space<vmem>>, vector<1x8x1xf32>
    %84 = vector.shape_cast %83 : vector<1x8x1xf32> to vector<8x1xf32>
    %85 = vector.broadcast %84 : vector<8x1xf32> to vector<8x768xf32>
    %86 = arith.addf %82, %85 : vector<8x768xf32>
    %c1_68 = arith.constant 1 : index
    %c0_69 = arith.constant 0 : index
    %c0_70 = arith.constant 0 : index
    %87 = vector.load %arg7[%c1_68, %c0_69, %c0_70] : memref<3x8x1xf32, #tpu.memory_space<vmem>>, vector<1x8x1xf32>
    %88 = vector.shape_cast %87 : vector<1x8x1xf32> to vector<8x1xf32>
    %c1_71 = arith.constant 1 : index
    %c0_72 = arith.constant 0 : index
    %c0_73 = arith.constant 0 : index
    %89 = vector.load %arg8[%c1_71, %c0_72, %c0_73] : memref<3x8x1xf32, #tpu.memory_space<vmem>>, vector<1x8x1xf32>
    %90 = vector.shape_cast %89 : vector<1x8x1xf32> to vector<8x1xf32>
    %91 = vector.broadcast %90 : vector<8x1xf32> to vector<8x768xf32>
    %92 = arith.addf %86, %91 : vector<8x768xf32>
    %93 = vector.broadcast %88 : vector<8x1xf32> to vector<8x768xf32>
    %94 = arith.mulf %93, %86 : vector<8x768xf32>
    %95 = math.cos %94 : vector<8x768xf32>
    %96 = vector.broadcast %90 : vector<8x1xf32> to vector<8x768xf32>
    %97 = arith.mulf %96, %95 : vector<8x768xf32>
    %98 = arith.subf %92, %97 : vector<8x768xf32>
    %c1_74 = arith.constant 1 : index
    %c0_75 = arith.constant 0 : index
    %c0_76 = arith.constant 0 : index
    %99 = vector.load %arg9[%c1_74, %c0_75, %c0_76] : memref<3x8x8xf32, #tpu.memory_space<vmem>>, vector<1x8x8xf32>
    %100 = vector.shape_cast %99 : vector<1x8x8xf32> to vector<8x8xf32>
    %cst_77 = arith.constant dense<0.000000e+00> : vector<8x768xf32>
    %101 = tpu.matmul %100, %98, %cst_77 {dimension_numbers = #tpu.dot_dimension_numbers<[1], [0], [0], [1], [0, 0, 1, 1], [], []>} : vector<8x8xf32>, vector<8x768xf32>, vector<8x768xf32> -> vector<8x768xf32>
    %c1_78 = arith.constant 1 : index
    %c0_79 = arith.constant 0 : index
    %c0_80 = arith.constant 0 : index
    %102 = vector.load %arg10[%c1_78, %c0_79, %c0_80] : memref<3x8x1xf32, #tpu.memory_space<vmem>>, vector<1x8x1xf32>
    %103 = vector.shape_cast %102 : vector<1x8x1xf32> to vector<8x1xf32>
    %104 = vector.broadcast %103 : vector<8x1xf32> to vector<8x768xf32>
    %105 = arith.addf %101, %104 : vector<8x768xf32>
    %106 = arith.addf %58, %105 : vector<8x768xf32>
    %107 = arith.mulf %106, %9 : vector<8x768xf32>
    %c2 = arith.constant 2 : index
    %c0_81 = arith.constant 0 : index
    %c0_82 = arith.constant 0 : index
    %108 = vector.load %arg3[%c2, %c0_81, %c0_82] : memref<3x8x1xf32, #tpu.memory_space<vmem>>, vector<1x8x1xf32>
    %109 = vector.shape_cast %108 : vector<1x8x1xf32> to vector<8x1xf32>
    %c2_83 = arith.constant 2 : index
    %c0_84 = arith.constant 0 : index
    %c0_85 = arith.constant 0 : index
    %110 = vector.load %arg4[%c2_83, %c0_84, %c0_85] : memref<3x8x1xf32, #tpu.memory_space<vmem>>, vector<1x8x1xf32>
    %111 = vector.shape_cast %110 : vector<1x8x1xf32> to vector<8x1xf32>
    %112 = vector.broadcast %111 : vector<8x1xf32> to vector<8x768xf32>
    %113 = arith.addf %107, %112 : vector<8x768xf32>
    %114 = vector.broadcast %109 : vector<8x1xf32> to vector<8x768xf32>
    %115 = arith.mulf %114, %107 : vector<8x768xf32>
    %116 = math.cos %115 : vector<8x768xf32>
    %117 = vector.broadcast %111 : vector<8x1xf32> to vector<8x768xf32>
    %118 = arith.mulf %117, %116 : vector<8x768xf32>
    %119 = arith.subf %113, %118 : vector<8x768xf32>
    %c0_86 = arith.constant 0 : index
    %c128_87 = arith.constant 128 : index
    %120 = vector.load %arg16[%c0_86, %c128_87] : memref<8x1024xf32, #tpu.memory_space<vmem>>, vector<8x768xf32>
    tpu.vector_store %arg16[%c0_86, %c128_87], %119 {strides = array<i32>} : memref<8x1024xf32, #tpu.memory_space<vmem>>, vector<8x768xf32>,
    %c2_88 = arith.constant 2 : index
    %c0_89 = arith.constant 0 : index
    %c0_90 = arith.constant 0 : index
    %121 = vector.load %arg5[%c2_88, %c0_89, %c0_90] : memref<3x8x56xf32, #tpu.memory_space<vmem>>, vector<1x8x56xf32>
    %122 = vector.shape_cast %121 : vector<1x8x56xf32> to vector<8x56xf32>
    %c0_91 = arith.constant 0 : index
    %c101 = arith.constant 101 : index
    %123 = vector.load %arg16[%c0_91, %c101] : memref<8x1024xf32, #tpu.memory_space<vmem>>, vector<8x768xf32>
    %c0_92 = arith.constant 0 : index
    %c110 = arith.constant 110 : index
    %124 = vector.load %arg16[%c0_92, %c110] : memref<8x1024xf32, #tpu.memory_space<vmem>>, vector<8x768xf32>
    %c0_93 = arith.constant 0 : index
    %c119_94 = arith.constant 119 : index
    %125 = vector.load %arg16[%c0_93, %c119_94] : memref<8x1024xf32, #tpu.memory_space<vmem>>, vector<8x768xf32>
    %c0_95 = arith.constant 0 : index
    %c128_96 = arith.constant 128 : index
    %126 = vector.load %arg16[%c0_95, %c128_96] : memref<8x1024xf32, #tpu.memory_space<vmem>>, vector<8x768xf32>
    %c0_97 = arith.constant 0 : index
    %c137_98 = arith.constant 137 : index
    %127 = vector.load %arg16[%c0_97, %c137_98] : memref<8x1024xf32, #tpu.memory_space<vmem>>, vector<8x768xf32>
    %c0_99 = arith.constant 0 : index
    %c146 = arith.constant 146 : index
    %128 = vector.load %arg16[%c0_99, %c146] : memref<8x1024xf32, #tpu.memory_space<vmem>>, vector<8x768xf32>
    %c0_100 = arith.constant 0 : index
    %c155 = arith.constant 155 : index
    %129 = vector.load %arg16[%c0_100, %c155] : memref<8x1024xf32, #tpu.memory_space<vmem>>, vector<8x768xf32>
    %130 = tpu.concatenate %123, %124, %125, %126, %127, %128, %129 in 0 : vector<8x768xf32>, vector<8x768xf32>, vector<8x768xf32>, vector<8x768xf32>, vector<8x768xf32>, vector<8x768xf32>, vector<8x768xf32> -> vector<56x768xf32>
    %cst_101 = arith.constant dense<0.000000e+00> : vector<8x768xf32>
    %131 = tpu.matmul %122, %130, %cst_101 {dimension_numbers = #tpu.dot_dimension_numbers<[1], [0], [0], [1], [0, 0, 1, 1], [], []>} : vector<8x56xf32>, vector<56x768xf32>, vector<8x768xf32> -> vector<8x768xf32>
    %c2_102 = arith.constant 2 : index
    %c0_103 = arith.constant 0 : index
    %c0_104 = arith.constant 0 : index
    %132 = vector.load %arg6[%c2_102, %c0_103, %c0_104] : memref<3x8x1xf32, #tpu.memory_space<vmem>>, vector<1x8x1xf32>
    %133 = vector.shape_cast %132 : vector<1x8x1xf32> to vector<8x1xf32>
    %134 = vector.broadcast %133 : vector<8x1xf32> to vector<8x768xf32>
    %135 = arith.addf %131, %134 : vector<8x768xf32>
    %c2_105 = arith.constant 2 : index
    %c0_106 = arith.constant 0 : index
    %c0_107 = arith.constant 0 : index
    %136 = vector.load %arg7[%c2_105, %c0_106, %c0_107] : memref<3x8x1xf32, #tpu.memory_space<vmem>>, vector<1x8x1xf32>
    %137 = vector.shape_cast %136 : vector<1x8x1xf32> to vector<8x1xf32>
    %c2_108 = arith.constant 2 : index
    %c0_109 = arith.constant 0 : index
    %c0_110 = arith.constant 0 : index
    %138 = vector.load %arg8[%c2_108, %c0_109, %c0_110] : memref<3x8x1xf32, #tpu.memory_space<vmem>>, vector<1x8x1xf32>
    %139 = vector.shape_cast %138 : vector<1x8x1xf32> to vector<8x1xf32>
    %140 = vector.broadcast %139 : vector<8x1xf32> to vector<8x768xf32>
    %141 = arith.addf %135, %140 : vector<8x768xf32>
    %142 = vector.broadcast %137 : vector<8x1xf32> to vector<8x768xf32>
    %143 = arith.mulf %142, %135 : vector<8x768xf32>
    %144 = math.cos %143 : vector<8x768xf32>
    %145 = vector.broadcast %139 : vector<8x1xf32> to vector<8x768xf32>
    %146 = arith.mulf %145, %144 : vector<8x768xf32>
    %147 = arith.subf %141, %146 : vector<8x768xf32>
    %c2_111 = arith.constant 2 : index
    %c0_112 = arith.constant 0 : index
    %c0_113 = arith.constant 0 : index
    %148 = vector.load %arg9[%c2_111, %c0_112, %c0_113] : memref<3x8x8xf32, #tpu.memory_space<vmem>>, vector<1x8x8xf32>
    %149 = vector.shape_cast %148 : vector<1x8x8xf32> to vector<8x8xf32>
    %cst_114 = arith.constant dense<0.000000e+00> : vector<8x768xf32>
    %150 = tpu.matmul %149, %147, %cst_114 {dimension_numbers = #tpu.dot_dimension_numbers<[1], [0], [0], [1], [0, 0, 1, 1], [], []>} : vector<8x8xf32>, vector<8x768xf32>, vector<8x768xf32> -> vector<8x768xf32>
    %c2_115 = arith.constant 2 : index
    %c0_116 = arith.constant 0 : index
    %c0_117 = arith.constant 0 : index
    %151 = vector.load %arg10[%c2_115, %c0_116, %c0_117] : memref<3x8x1xf32, #tpu.memory_space<vmem>>, vector<1x8x1xf32>
    %152 = vector.shape_cast %151 : vector<1x8x1xf32> to vector<8x1xf32>
    %153 = vector.broadcast %152 : vector<8x1xf32> to vector<8x768xf32>
    %154 = arith.addf %150, %153 : vector<8x768xf32>
    %155 = arith.addf %107, %154 : vector<8x768xf32>
    %156 = arith.mulf %155, %9 : vector<8x768xf32>
    %c0_118 = arith.constant 0 : index
    %c0_119 = arith.constant 0 : index
    %157 = vector.load %arg11[%c0_118, %c0_119] : memref<8x1xf32, #tpu.memory_space<vmem>>, vector<8x1xf32>
    %c0_120 = arith.constant 0 : index
    %c0_121 = arith.constant 0 : index
    %158 = vector.load %arg12[%c0_120, %c0_121] : memref<8x1xf32, #tpu.memory_space<vmem>>, vector<8x1xf32>
    %159 = vector.broadcast %158 : vector<8x1xf32> to vector<8x768xf32>
    %160 = arith.addf %156, %159 : vector<8x768xf32>
    %161 = vector.broadcast %157 : vector<8x1xf32> to vector<8x768xf32>
    %162 = arith.mulf %161, %156 : vector<8x768xf32>
    %163 = math.cos %162 : vector<8x768xf32>
    %164 = vector.broadcast %158 : vector<8x1xf32> to vector<8x768xf32>
    %165 = arith.mulf %164, %163 : vector<8x768xf32>
    %166 = arith.subf %160, %165 : vector<8x768xf32>
    %c0_122 = arith.constant 0 : index
    %c128_123 = arith.constant 128 : index
    %167 = vector.load %arg16[%c0_122, %c128_123] : memref<8x1024xf32, #tpu.memory_space<vmem>>, vector<8x768xf32>
    tpu.vector_store %arg16[%c0_122, %c128_123], %166 {strides = array<i32>} : memref<8x1024xf32, #tpu.memory_space<vmem>>, vector<8x768xf32>,
    %c0_124 = arith.constant 0 : index
    %c0_125 = arith.constant 0 : index
    %168 = vector.load %arg13[%c0_124, %c0_125] : memref<16x16xf32, #tpu.memory_space<vmem>>, vector<16x16xf32>
    %c0_126 = arith.constant 0 : index
    %c255 = arith.constant 255 : index
    %169 = vector.load %arg16[%c0_126, %c255] : memref<8x1024xf32, #tpu.memory_space<vmem>>, vector<8x512xf32>
    %c0_127 = arith.constant 0 : index
    %c256 = arith.constant 256 : index
    %170 = vector.load %arg16[%c0_127, %c256] : memref<8x1024xf32, #tpu.memory_space<vmem>>, vector<8x512xf32>
    %171 = tpu.concatenate %169, %170 in 0 : vector<8x512xf32>, vector<8x512xf32> -> vector<16x512xf32>
    %cst_128 = arith.constant dense<0.000000e+00> : vector<16x512xf32>
    %172 = tpu.matmul %168, %171, %cst_128 {dimension_numbers = #tpu.dot_dimension_numbers<[1], [0], [0], [1], [0, 0, 1, 1], [], []>} : vector<16x16xf32>, vector<16x512xf32>, vector<16x512xf32> -> vector<16x512xf32>
    %c0_129 = arith.constant 0 : index
    %c0_130 = arith.constant 0 : index
    %173 = vector.load %arg14[%c0_129, %c0_130] : memref<16x1xf32, #tpu.memory_space<vmem>>, vector<16x1xf32>
    %174 = vector.broadcast %173 : vector<16x1xf32> to vector<16x512xf32>
    %175 = arith.addf %172, %174 : vector<16x512xf32>
    %c0_131 = arith.constant 0 : index
    %c0_132 = arith.constant 0 : index
    %176 = vector.load %arg15[%c0_131, %c0_132] : memref<16x512xf32, #tpu.memory_space<vmem>>, vector<16x512xf32>
    tpu.vector_store %arg15[%c0_131, %c0_132], %175 {strides = array<i32>} : memref<16x512xf32, #tpu.memory_space<vmem>>, vector<16x512xf32>,
    return
  }
  func.func @transform_0(%arg0: i32) -> (i32, i32, i32) {
    %c0_i32 = arith.constant 0 : i32
    %c0_i32_0 = arith.constant 0 : i32
    %c0_i32_1 = arith.constant 0 : i32
    return %arg0, %c0_i32, %c0_i32_0 : i32, i32, i32
  }
  func.func @transform_1(%arg0: i32) -> (i32, i32, i32) {
    %c0_i32 = arith.constant 0 : i32
    %c0_i32_0 = arith.constant 0 : i32
    %c0_i32_1 = arith.constant 0 : i32
    return %arg0, %c0_i32, %c0_i32_0 : i32, i32, i32
  }
  func.func @transform_2(%arg0: i32) -> (i32, i32, i32) {
    %c0_i32 = arith.constant 0 : i32
    %c0_i32_0 = arith.constant 0 : i32
    %c0_i32_1 = arith.constant 0 : i32
    %c0_i32_2 = arith.constant 0 : i32
    return %c0_i32, %c0_i32_0, %c0_i32_1 : i32, i32, i32
  }
  func.func @transform_3(%arg0: i32) -> (i32, i32, i32) {
    %c0_i32 = arith.constant 0 : i32
    %c0_i32_0 = arith.constant 0 : i32
    %c0_i32_1 = arith.constant 0 : i32
    %c0_i32_2 = arith.constant 0 : i32
    return %c0_i32, %c0_i32_0, %c0_i32_1 : i32, i32, i32
  }
  func.func @transform_4(%arg0: i32) -> (i32, i32, i32) {
    %c0_i32 = arith.constant 0 : i32
    %c0_i32_0 = arith.constant 0 : i32
    %c0_i32_1 = arith.constant 0 : i32
    %c0_i32_2 = arith.constant 0 : i32
    return %c0_i32, %c0_i32_0, %c0_i32_1 : i32, i32, i32
  }
  func.func @transform_5(%arg0: i32) -> (i32, i32, i32) {
    %c0_i32 = arith.constant 0 : i32
    %c0_i32_0 = arith.constant 0 : i32
    %c0_i32_1 = arith.constant 0 : i32
    %c0_i32_2 = arith.constant 0 : i32
    return %c0_i32, %c0_i32_0, %c0_i32_1 : i32, i32, i32
  }
  func.func @transform_6(%arg0: i32) -> (i32, i32, i32) {
    %c0_i32 = arith.constant 0 : i32
    %c0_i32_0 = arith.constant 0 : i32
    %c0_i32_1 = arith.constant 0 : i32
    %c0_i32_2 = arith.constant 0 : i32
    return %c0_i32, %c0_i32_0, %c0_i32_1 : i32, i32, i32
  }
  func.func @transform_7(%arg0: i32) -> (i32, i32, i32) {
    %c0_i32 = arith.constant 0 : i32
    %c0_i32_0 = arith.constant 0 : i32
    %c0_i32_1 = arith.constant 0 : i32
    %c0_i32_2 = arith.constant 0 : i32
    return %c0_i32, %c0_i32_0, %c0_i32_1 : i32, i32, i32
  }
  func.func @transform_8(%arg0: i32) -> (i32, i32, i32) {
    %c0_i32 = arith.constant 0 : i32
    %c0_i32_0 = arith.constant 0 : i32
    %c0_i32_1 = arith.constant 0 : i32
    %c0_i32_2 = arith.constant 0 : i32
    return %c0_i32, %c0_i32_0, %c0_i32_1 : i32, i32, i32
  }
  func.func @transform_9(%arg0: i32) -> (i32, i32, i32) {
    %c0_i32 = arith.constant 0 : i32
    %c0_i32_0 = arith.constant 0 : i32
    %c0_i32_1 = arith.constant 0 : i32
    %c0_i32_2 = arith.constant 0 : i32
    return %c0_i32, %c0_i32_0, %c0_i32_1 : i32, i32, i32
  }
  func.func @transform_10(%arg0: i32) -> (i32, i32) {
    %c0_i32 = arith.constant 0 : i32
    %c0_i32_0 = arith.constant 0 : i32
    %c0_i32_1 = arith.constant 0 : i32
    return %c0_i32, %c0_i32_0 : i32, i32
  }
  func.func @transform_11(%arg0: i32) -> (i32, i32) {
    %c0_i32 = arith.constant 0 : i32
    %c0_i32_0 = arith.constant 0 : i32
    %c0_i32_1 = arith.constant 0 : i32
    return %c0_i32, %c0_i32_0 : i32, i32
  }
  func.func @transform_12(%arg0: i32) -> (i32, i32) {
    %c0_i32 = arith.constant 0 : i32
    %c0_i32_0 = arith.constant 0 : i32
    %c0_i32_1 = arith.constant 0 : i32
    return %c0_i32, %c0_i32_0 : i32, i32
  }
  func.func @transform_13(%arg0: i32) -> (i32, i32) {
    %c0_i32 = arith.constant 0 : i32
    %c0_i32_0 = arith.constant 0 : i32
    %c0_i32_1 = arith.constant 0 : i32
    return %c0_i32, %c0_i32_0 : i32, i32
  }
  func.func @transform_14(%arg0: i32) -> (i32, i32) {
    %c0_i32 = arith.constant 0 : i32
    %c0_i32_0 = arith.constant 0 : i32
    return %c0_i32, %arg0 : i32, i32
  }
}

</mosaic_0001>

<bundles_post_ra>
// kernel: tpu_custom_call.1
= control target key start
LH: loop header
LB: loop body
LE: loop exit
PB: predicated region body
PF: predicated region fallthrough
CT: control target
= control target key end

     0   :  { %v8625_v1 = vmov 0   ;;  %s13450_s0 = inlined_call_operand.vmem [shape: f32[1,8,768], index: 0, kind: input, shape index: {}]   ;;  %s13451_s1 = inlined_call_operand.vmem [shape: f32[1,1,768], index: 1, kind: input, shape index: {}]   ;;  %s13452_s2 = inlined_call_operand.vmem [shape: f32[3,8,1], index: 2, kind: input, shape index: {}]   ;;  %s13453_s3 = inlined_call_operand.vmem [shape: f32[3,8,1], index: 3, kind: input, shape index: {}]   ;;  %s13454_s4 = inlined_call_operand.vmem [shape: f32[3,8,56], index: 4, kind: input, shape index: {}]   ;;  %s13455_s5 = inlined_call_operand.vmem [shape: f32[3,8,1], index: 5, kind: input, shape index: {}]   ;;  %s13456_s6 = inlined_call_operand.vmem [shape: f32[3,8,1], index: 6, kind: input, shape index: {}]   ;;  %s13457_s7 = inlined_call_operand.vmem [shape: f32[3,8,1], index: 7, kind: input, shape index: {}]   ;;  %s13458_s8 = inlined_call_operand.vmem [shape: f32[3,8,8], index: 8, kind: input, shape index: {}]   ;;  %s13459_s9 = inlined_call_operand.vmem [shape: f32[3,8,1], index: 9, kind: input, shape index: {}]   ;;  %s13460_s10 = inlined_call_operand.vmem [shape: f32[8,1], index: 10, kind: input, shape index: {}]   ;;  %s13461_s11 = inlined_call_operand.vmem [shape: f32[8,1], index: 11, kind: input, shape index: {}]   ;;  %s13462_s12 = inlined_call_operand.vmem [shape: f32[16,16], index: 12, kind: input, shape index: {}]   ;;  %s13463_s13 = inlined_call_operand.vmem [shape: f32[16,1], index: 13, kind: input, shape index: {}]   ;;  %s13464_s14 = inlined_call_operand.hbm [shape: f32[16,512], index: 14, kind: output, shape index: {}]  }
   0x1   :  { %v88_v0 = vld [vmem:[%s13452_s2] sm:$0xff]  ;;  %7852 = vset.pattern.permute.xlu0 %v8625_v1  ;;  %8033 = vset.pattern.permute.xlu1 %v8625_v1 }
   0x2   :  { %103 = vperm.xlu0 %7852, %v88_v0   ;;  %v89_v2 = vld [vmem:[%s13453_s3] sm:$0xff] }
   0x3   :  { %19 = vsyncpa [#allocation4], 0  ;;  %v8738_v3 = vld [vmem:[%s13450_s0] sm:$0xff]  ;;  %v8743_v4 = vld [vmem:[%s13450_s0 + $0x8] sm:$0xff]  ;;  %v13476_v37 = vmov 683565275  }
   0x4   :  { %v52_v5 = vld [vmem:[%s13450_s0 + $0x10] sm:$0xff]  ;;  %v13474_v41 = vmov 2475754826   ;;  %v13472_v43 = vmov 2131351028   ;;  %s8633_s15 = smov 126  }
   0x5   :  { %v13478_v45 = vmov 2102212464   ;;  %v13483_v47 = vmov 920167782   ;;  %v13481_v54 = vmov 1326507024  }
   0x6   :  { %92 = vperm.xlu0 %7852, %v89_v2   ;;  %s8634_s16 = smov 127   ;;  %s8635_s17 = smov 125  }
   0x7   :  { %s8636_s18 = smov 124   ;;  %s8637_s19 = smov 123  }
   0x8   :  { %s8638_s20 = smov 122   ;;  %s8639_s23 = smov 3  }
   0x9   :  { %s8640_s27 = smov 110   ;;  %s8642_s28 = smov 116  }
   0xa   :  { %s8643_s29 = smov 113   ;;  %s8647_s30 = smov 92  }
  0x81   :  { %v8748_v6 = vpop.permute.xlu0 %103 }
  0x82   :  { %v8752_v7 = vmul.f32 %v8748_v6, %v8738_v3  ;;  %v8756_v8 = vmul.f32 %v8748_v6, %v8743_v4  ;;  %v8759_v9 = vmul.f32 %v8748_v6, %v52_v5 }
  0x84   :  { %v112_v10 = vand.u32 2147483647, %v8752_v7  ;;  %v115_v11 = vand.u32 2139095040, %v8752_v7  ;;  %v215_v12 = vand.u32 2147483647, %v8756_v8  ;;  %v218_v13 = vand.u32 2139095040, %v8756_v8 }
  0x85   :  { %v321_v18 = vand.u32 2139095040, %v8759_v9  ;;  %v318_v26 = vand.u32 2147483647, %v8759_v9 }
  0x86   :  { %v116_v14 = vshrl.u32 %v115_v11, 23  ;;  %v119_v15 = vand.u32 8388607, %v112_v10  ;;  %v219_v16 = vshrl.u32 %v218_v13, 23  ;;  %v222_v17 = vand.u32 8388607, %v215_v12 }
  0x87   :  { %v322_v21 = vshrl.u32 %v321_v18, 23  ;;  %v8777_v34 = vand.u32 8388607, %v318_v26 }
  0x88   :  { %v7337_v19 = vadd.s32 4294967169, %v116_v14  ;;  %v7341_v20 = vadd.s32 4294967169, %v219_v16  ;;  %v120_v22 = vor.u32 8388608, %v119_v15  ;;  %v223_v24 = vor.u32 8388608, %v222_v17 }
  0x89   :  { %v7345_v27 = vadd.s32 4294967169, %v322_v21 }
  0x8a   :  { %v122_v23 = vadd.s32 1, %v7337_v19  ;;  %v225_v25 = vadd.s32 1, %v7341_v20  ;;  %v8771_v32 = vshll.u32 %v120_v22, 8  ;;  %v8773_v33 = vshll.u32 %v223_v24, 8 }
  0x8b   :  { %v8779_v35 = vadd.s32 1, %v7345_v27 }
  0x8c   :  { %vm123_vm0 = vcmp.gt.s32.totalorder %v122_v23, 0  ;;  %vm226_vm1 = vcmp.gt.s32.totalorder %v225_v25, 0 }
  0x8d   :  { %v124_v28 = vsel %vm123_vm0, %v122_v23, 0  ;;  %v227_v31 = vsel %vm226_vm1, %v225_v25, 0  ;;  %vm329_vm6 = vcmp.gt.s32.totalorder %v8779_v35, 0  ;;  %vm114_vm0 = vcmp.lt.s32.totalorder %v8752_v7, 0 }
  0x8e   :  { %v125_v29 = vshrl.u32 %v124_v28, 5  ;;  %v126_v30 = vand.u32 31, %v124_v28  ;;  %v8782_v39 = vshrl.u32 %v227_v31, 5  ;;  %v229_v40 = vand.u32 31, %v227_v31 }
  0x90   :  { %v127_v36 = vsub.s32 32, %v126_v30  ;;  %v129_v38 = vshll.u32 %v13476_v37, %v126_v30  ;;  %v132_v42 = vshll.u32 %v13474_v41, %v126_v30  ;;  %v135_v44 = vshll.u32 %v13472_v43, %v126_v30 }
  0x91   :  { %v138_v46 = vshll.u32 %v13478_v45, %v126_v30  ;;  %v141_v48 = vshll.u32 %v13483_v47, %v126_v30  ;;  %vm144_vm2 = vcmp.lt.s32.totalorder %v125_v29, 1  ;;  %vm145_vm3 = vcmp.lt.s32.totalorder %v125_v29, 2 }
  0x92   :  { %v130_v49 = vshrl.u32 %v13474_v41, %v127_v36  ;;  %v133_v50 = vshrl.u32 %v13472_v43, %v127_v36  ;;  %v136_v51 = vshrl.u32 %v13478_v45, %v127_v36  ;;  %v128_v52 = vshrl.u32 %v13476_v37, %v127_v36 }
  0x93   :  { %v139_v53 = vshrl.u32 %v13483_v47, %v127_v36  ;;  %v142_v55 = vshrl.u32 %v13481_v54, %v127_v36  ;;  %v230_v59 = vsub.s32 32, %v229_v40  ;;  %vm146_vm4 = vcmp.lt.s32.totalorder %v125_v29, 3 }
  0x94   :  { %v131_v56 = vor.u32 %v130_v49, %v129_v38  ;;  %v134_v57 = vor.u32 %v133_v50, %v132_v42  ;;  %v137_v58 = vor.u32 %v136_v51, %v135_v44  ;;  %vm147_vm5 = vcmp.lt.s32.totalorder %v125_v29, 4 }
  0x95   :  { %v140_v60 = vor.u32 %v139_v53, %v138_v46  ;;  %v143_v61 = vor.u32 %v142_v55, %v141_v48  ;;  %v232_v13 = vshll.u32 %v13476_v37, %v229_v40  ;;  %v233_v16 = vshrl.u32 %v13474_v41, %v230_v59 }
  0x96   :  { %v148_v62 = vsel %vm144_vm2, %v128_v52, %v131_v56  ;;  %v149_v63 = vsel %vm147_vm5, %v137_v58, 2102212464  ;;  %v152_v0 = vsel %vm144_vm2, %v131_v56, %v134_v57  ;;  %v156_v1 = vsel %vm144_vm2, %v134_v57, %v137_v58  ;;  %v8833_v56 = vld [vmem:[%s13450_s0 + $0x18] sm:$0xff] }
  0x97   :  { %v150_v2 = vsel %vm146_vm4, %v134_v57, %v149_v63  ;;  %v153_v5 = vsel %vm147_vm5, %v140_v60, 920167782  ;;  %v157_v11 = vsel %vm147_vm5, %v143_v61, 1326507024  ;;  %v235_v17 = vshll.u32 %v13474_v41, %v229_v40 }
  0x98   :  { %v154_v14 = vsel %vm146_vm4, %v137_v58, %v153_v5  ;;  %v158_v15 = vsel %vm146_vm4, %v140_v60, %v157_v11  ;;  %v151_v18 = vsel %vm145_vm3, %v148_v62, %v150_v2  ;;  %v236_v21 = vshrl.u32 %v13472_v43, %v230_v59 }
  0x99   :  { %v155_v19 = vsel %vm145_vm3, %v152_v0, %v154_v14  ;;  %v159_v20 = vsel %vm145_vm3, %v156_v1, %v158_v15  ;;  %v234_v27 = vor.u32 %v233_v16, %v232_v13  ;;  %v238_v30 = vshll.u32 %v13472_v43, %v229_v40 }
  0x9a   :  { %v8806_v22 = vmul.u32.u64.low %v8771_v32, %v159_v20  ;;  %v8807_v23 = vmul.u32.u64.high %v8771_v32, %v159_v20, %v8806_v22  ;;  %v8810_v24 = vmul.u32.u64.low %v8771_v32, %v155_v19  ;;  %v8811_v25 = vmul.u32.u64.high %v8771_v32, %v155_v19, %v8810_v24  ;;  %v55_v19 = vld [vmem:[%s13450_s0 + $0x28] sm:$0xff] }
  0x9b   :  { %v237_v28 = vor.u32 %v236_v21, %v235_v17  ;;  %v239_v31 = vshrl.u32 %v13478_v45, %v230_v59  ;;  %v231_v29 = vshrl.u32 %v13476_v37, %v230_v59  ;;  %v241_v36 = vshll.u32 %v13478_v45, %v229_v40 }
  0x9c   :  { %v242_v38 = vshrl.u32 %v13483_v47, %v230_v59  ;;  %v245_v42 = vshrl.u32 %v13481_v54, %v230_v59  ;;  %v167_v44 = vmul.u32 %v8771_v32, %v151_v18  ;;  %v244_v48 = vshll.u32 %v13483_v47, %v229_v40  ;;  %v8862_v18 = vld [vmem:[%s13450_s0 + $0x20] sm:$0xff] }
  0x9d   :  { %v240_v46 = vor.u32 %v239_v31, %v238_v30  ;;  %vm247_vm7 = vcmp.lt.s32.totalorder %v8782_v39, 1  ;;  %vm169_vm8 = vc.u32 %v8807_v23, %v8810_v24  ;;  %v170_v49 = vadd.s32 1, %v8811_v25 }
  0x9e   :  { %v243_v50 = vor.u32 %v242_v38, %v241_v36  ;;  %vm248_vm9 = vcmp.lt.s32.totalorder %v8782_v39, 2  ;;  %v246_v51 = vor.u32 %v245_v42, %v244_v48  ;;  %vm249_vm10 = vcmp.lt.s32.totalorder %v8782_v39, 3 }
  0x9f   :  { %vm250_vm11 = vcmp.lt.s32.totalorder %v8782_v39, 4  ;;  %v255_v52 = vsel %vm247_vm7, %v234_v27, %v237_v28  ;;  %v171_v32 = vsel %vm169_vm8, %v170_v49, %v8811_v25  ;;  %v259_v55 = vsel %vm247_vm7, %v237_v28, %v240_v46 }
  0xa0   :  { %v252_v53 = vsel %vm250_vm11, %v240_v46, 2102212464  ;;  %v256_v40 = vsel %vm250_vm11, %v243_v50, 920167782  ;;  %v172_v57 = vadd.s32 %v171_v32, %v167_v44  ;;  %v251_v58 = vsel %vm247_vm7, %v231_v29, %v234_v27 }
  0xa1   :  { %v257_v59 = vsel %vm249_vm10, %v240_v46, %v256_v40  ;;  %v260_v60 = vsel %vm250_vm11, %v246_v51, 1326507024  ;;  %v253_v61 = vsel %vm249_vm10, %v237_v28, %v252_v53  ;;  %v330_v0 = vsel %vm329_vm6, %v8779_v35, 0 }
  0xa2   :  { %v258_v62 = vsel %vm248_vm9, %v255_v52, %v257_v59  ;;  %v261_v63 = vsel %vm249_vm10, %v243_v50, %v260_v60  ;;  %v173_v1 = vadd.s32 536870912, %v172_v57  ;;  %v8849_v13 = vmul.f32 %v8748_v6, %v8833_v56 }
  0xa3   :  { %v262_v2 = vsel %vm248_vm9, %v259_v55, %v261_v63  ;;  %v8843_v5 = vmul.u32.u64.low %v8773_v33, %v258_v62  ;;  %v8844_v11 = vmul.u32.u64.high %v8773_v33, %v258_v62, %v8843_v5  ;;  %v254_v35 = vsel %vm248_vm9, %v251_v58, %v253_v61 }
  0xa4   :  { %v8852_v14 = vmul.u32.u64.low %v8773_v33, %v262_v2  ;;  %v8853_v15 = vmul.u32.u64.high %v8773_v33, %v262_v2, %v8852_v14  ;;  %v8855_v16 = vshrl.u32 %v173_v1, 30  ;;  %v332_v17 = vand.u32 31, %v330_v0 }
  0xa5   :  { %v273_v21 = vadd.s32 1, %v8844_v11  ;;  %v326_v22 = vor.u32 8388608, %v8777_v34  ;;  %v270_v39 = vmul.u32 %v8773_v33, %v254_v35  ;;  %v424_v27 = vand.u32 2139095040, %v8849_v13 }
  0xa6   :  { %v175_v20 = vshll.u32 %v8855_v16, 30  ;;  %v333_v25 = vsub.s32 32, %v332_v17  ;;  %vm272_vm12 = vc.u32 %v8853_v15, %v8843_v5  ;;  %v8876_v28 = vmul.f32 %v8748_v6, %v8862_v18 }
  0xa7   :  { %v8879_v30 = vmul.f32 %v8748_v6, %v55_v19  ;;  %v274_v29 = vsel %vm272_vm12, %v273_v21, %v8844_v11  ;;  %v421_v38 = vand.u32 2147483647, %v8849_v13  ;;  %v335_v44 = vshll.u32 %v13476_v37, %v332_v17 }
  0xa8   :  { %v8881_v31 = vsub.s32 %v172_v57, %v175_v20  ;;  %v275_v34 = vadd.s32 %v274_v29, %v270_v39  ;;  %v336_v36 = vshrl.u32 %v13474_v41, %v333_v25  ;;  %v339_v33 = vshrl.u32 %v13472_v43, %v333_v25 }
  0xa9   :  { %v342_v46 = vshrl.u32 %v13478_v45, %v333_v25  ;;  %v8890_v48 = vshll.u32 %v326_v22, 8  ;;  %v8892_v49 = vshrl.u32 %v330_v0, 5  ;;  %v338_v50 = vshll.u32 %v13474_v41, %v332_v17 }
  0xaa   :  { %v178_v42 = vsub.s32 0, %v8881_v31  ;;  %v276_v6 = vadd.s32 536870912, %v275_v34  ;;  %v425_v51 = vshrl.u32 %v424_v27, 23  ;;  %v168_v52 = vadd.s32 %v8810_v24, %v8807_v23 }
  0xab   :  { %v337_v53 = vor.u32 %v336_v36, %v335_v44  ;;  %v341_v40 = vshll.u32 %v13472_v43, %v332_v17  ;;  %v340_v57 = vor.u32 %v339_v33, %v338_v50  ;;  %v344_v58 = vshll.u32 %v13478_v45, %v332_v17 }
  0xac   :  { %v7338_v32 = vmin.u32 %v178_v42, %v8881_v31  ;;  %v8899_v55 = vshrl.u32 %v276_v6, 30  ;;  %v345_v59 = vshrl.u32 %v13483_v47, %v333_v25  ;;  %v347_v62 = vshll.u32 %v13483_v47, %v332_v17 }
  0xad   :  { %v343_v61 = vor.u32 %v342_v46, %v341_v40  ;;  %v348_v63 = vshrl.u32 %v13481_v54, %v333_v25  ;;  %vm350_vm13 = vcmp.lt.s32.totalorder %v8892_v49, 1  ;;  %v7349_v0 = vadd.s32 4294967169, %v425_v51 }
  0xae   :  { %v180_v60 = vclz %v7338_v32  ;;  %v278_v23 = vshll.u32 %v8899_v55, 30  ;;  %v346_v24 = vor.u32 %v345_v59, %v344_v58  ;;  %vm351_vm14 = vcmp.lt.s32.totalorder %v8892_v49, 2 }
  0xaf   :  { %v349_v2 = vor.u32 %v348_v63, %v347_v62  ;;  %vm353_vm15 = vcmp.lt.s32.totalorder %v8892_v49, 4  ;;  %vm352_vm1 = vcmp.lt.s32.totalorder %v8892_v49, 3  ;;  %v358_v14 = vsel %vm350_vm13, %v337_v53, %v340_v57 }
  0xb0   :  { %v7339_v1 = vadd.s32 4294967294, %v180_v60  ;;  %v8910_v11 = vsub.s32 %v275_v34, %v278_v23  ;;  %v359_v35 = vsel %vm353_vm15, %v346_v24, 920167782  ;;  %v355_v17 = vsel %vm353_vm15, %v343_v61, 2102212464 }
  0xb1   :  { %v360_v19 = vsel %vm352_vm1, %v343_v61, %v359_v35  ;;  %v363_v20 = vsel %vm353_vm15, %v349_v2, 1326507024  ;;  %v334_v39 = vshrl.u32 %v13476_v37, %v333_v25  ;;  %v362_v27 = vsel %vm350_vm13, %v340_v57, %v343_v61 }
  0xb2   :  { %vm7340_vm2 = vcmp.lt.s32.totalorder %v7339_v1, 0  ;;  %v281_v22 = vsub.s32 0, %v8910_v11  ;;  %vm8923_vm3 = vcmp.le.f32.partialorder %v112_v10, 0.7853982  ;;  %v198_v33 = vsub.s32 4, %v8855_v16 }
  0xb3   :  { %v183_v21 = vsel %vm7340_vm2, 0, %v7339_v1  ;;  %v364_v42 = vsel %vm352_vm1, %v346_v24, %v363_v20  ;;  %v354_v25 = vsel %vm350_vm13, %v334_v39, %v337_v53  ;;  %v356_v46 = vsel %vm352_vm1, %v340_v57, %v355_v17 }
  0xb4   :  { %v184_v34 = vsub.s32 32, %v183_v21  ;;  %v188_v36 = vsub.s32 4294967266, %v183_v21  ;;  %v7342_v44 = vmin.u32 %v281_v22, %v8910_v11  ;;  %v361_v10 = vsel %vm351_vm14, %v358_v14, %v360_v19 }
  0xb5   :  { %v185_v6 = vshll.u32 %v8881_v31, %v183_v21  ;;  %v365_v32 = vsel %vm351_vm14, %v362_v27, %v364_v42  ;;  %v431_v60 = vadd.s32 1, %v7349_v0  ;;  %v271_v31 = vadd.s32 %v8843_v5, %v8853_v15 }
  0xb6   :  { %v186_v50 = vshrl.u32 %v168_v52, %v184_v34  ;;  %v189_v51 = vadd.s32 127, %v188_v36  ;;  %v283_v40 = vclz %v7342_v44  ;;  %v8953_v63 = vand.u32 8388607, %v421_v38 }
  0xb7   :  { %v8941_v58 = vmul.u32.u64.low %v8890_v48, %v365_v32  ;;  %v8942_v59 = vmul.u32.u64.high %v8890_v48, %v365_v32, %v8941_v58  ;;  %v8945_v57 = vmul.u32.u64.low %v8890_v48, %v361_v10  ;;  %v8946_v62 = vmul.u32.u64.high %v8890_v48, %v361_v10, %v8945_v57 }
  0xb8   :  { %v187_v53 = vor.u32 %v186_v50, %v185_v6  ;;  %v190_v61 = vshll.u32 %v189_v51, 23  ;;  %v7343_v52 = vadd.s32 4294967294, %v283_v40  ;;  %vm432_vm4 = vcmp.gt.s32.totalorder %v431_v60, 0 }
  0xb9   :  { %v199_v24 = vsel %vm114_vm0, %v198_v33, %v8855_v16  ;;  %v357_v0 = vsel %vm351_vm14, %v354_v25, %v356_v46  ;;  %v433_v1 = vsel %vm432_vm4, %v431_v60, 0  ;;  %v301_v14 = vsub.s32 4, %v8899_v55 }
  0xba   :  { %v191_v23 = vor.u32 4788187, %v190_v61  ;;  %v194_v2 = vcvt.s32.f32 %v187_v53  ;;  %vm7344_vm5 = vcmp.lt.s32.totalorder %v7343_v52, 0  ;;  %vm375_vm6 = vc.u32 %v8942_v59, %v8945_v57 }
  0xbb   :  { %v286_v15 = vsel %vm7344_vm5, 0, %v7343_v52  ;;  %v376_v35 = vadd.s32 1, %v8946_v62  ;;  %v435_v17 = vand.u32 31, %v433_v1  ;;  %v201_v19 = vsel %vm8923_vm3, 0, %v199_v24 }
  0xbc   :  { %v192_v5 = vand.u32 2147483647, %v191_v23  ;;  %v287_v16 = vsub.s32 32, %v286_v15  ;;  %v291_v20 = vsub.s32 4294967266, %v286_v15  ;;  %v373_v49 = vmul.u32 %v8890_v48, %v357_v0 }
  0xbd   :  { %vm217_vm7 = vcmp.lt.s32.totalorder %v8756_v8, 0  ;;  %v377_v22 = vsel %vm375_vm6, %v376_v35, %v8946_v62  ;;  %v436_v39 = vsub.s32 32, %v435_v17  ;;  %v288_v27 = vshll.u32 %v8910_v11, %v286_v15 }
  0xbe   :  { %v195_v21 = vmul.f32 %v194_v2, %v192_v5  ;;  %v289_v34 = vshrl.u32 %v271_v31, %v287_v16  ;;  %v292_v36 = vadd.s32 127, %v291_v20  ;;  %v378_v33 = vadd.s32 %v377_v22, %v373_v49 }
  0xbf   :  { %v8970_v44 = vand.u32 3, %v201_v19  ;;  %v8975_v25 = vsel %vm217_vm7, %v301_v14, %v8899_v55  ;;  %v429_v48 = vor.u32 8388608, %v8953_v63  ;;  %v8978_v50 = vshrl.u32 %v433_v1, 5 }
  0xc0   :  { %v196_v42 = vxor.u32 2147483648, %v195_v21  ;;  %v290_v46 = vor.u32 %v289_v34, %v288_v27  ;;  %v293_v10 = vshll.u32 %v292_v36, 23  ;;  %v379_v6 = vadd.s32 536870912, %v378_v33 }
  0xc1   :  { %v439_v51 = vshrl.u32 %v13474_v41, %v436_v39  ;;  %v442_v32 = vshrl.u32 %v13472_v43, %v436_v39  ;;  %v445_v40 = vshrl.u32 %v13478_v45, %v436_v39  ;;  %vm8987_vm8 = vcmp.le.f32.partialorder %v215_v12, 0.7853982 }
  0xc2   :  { %v197_v11 = vsel %vm114_vm0, %v196_v42, %v195_v21  ;;  %v294_v58 = vor.u32 4788187, %v293_v10  ;;  %v8991_v60 = vshrl.u32 %v379_v6, 30  ;;  %v438_v53 = vshll.u32 %v13476_v37, %v435_v17 }
  0xc3   :  { %v444_v61 = vshll.u32 %v13472_v43, %v435_v17  ;;  %v200_v62 = vsel %vm8923_vm3, %v8752_v7, %v197_v11  ;;  %v441_v31 = vshll.u32 %v13474_v41, %v435_v17  ;;  %v447_v52 = vshll.u32 %v13478_v45, %v435_v17 }
  0xc4   :  { %v448_v12 = vshrl.u32 %v13483_v47, %v436_v39  ;;  %v295_v63 = vand.u32 2147483647, %v294_v58  ;;  %v297_v23 = vcvt.s32.f32 %v290_v46  ;;  %v381_v24 = vshll.u32 %v8991_v60, 30 }
  0xc5   :  { %v446_v0 = vor.u32 %v445_v40, %v444_v61  ;;  %v440_v1 = vor.u32 %v439_v51, %v438_v53  ;;  %v443_v2 = vor.u32 %v442_v32, %v441_v31  ;;  %v451_v5 = vshrl.u32 %v13481_v54, %v436_v39 }
  0xc6   :  { %v449_v14 = vor.u32 %v448_v12, %v447_v52  ;;  %8429 = vcosq.f32 %v200_v62  ;;  %v298_v15 = vmul.f32 %v297_v23, %v295_v63  ;;  %v9003_v29 = vsub.s32 %v378_v33, %v381_v24 }
  0xc7   :  { %v450_v35 = vshll.u32 %v13483_v47, %v435_v17  ;;  %8431 = vsinq.f32 %v200_v62  ;;  %v437_v19 = vshrl.u32 %v13476_v37, %v436_v39  ;;  %vm453_vm9 = vcmp.lt.s32.totalorder %v8978_v50, 1 }
  0xc8   :  { %vm456_vm10 = vcmp.lt.s32.totalorder %v8978_v50, 4  ;;  %v299_v16 = vxor.u32 2147483648, %v298_v15  ;;  %v384_v20 = vsub.s32 0, %v9003_v29  ;;  %vm454_vm11 = vcmp.lt.s32.totalorder %v8978_v50, 2 }
  0xc9   :  { %v452_v49 = vor.u32 %v451_v5, %v450_v35  ;;  %v458_v21 = vsel %vm456_vm10, %v446_v0, 2102212464  ;;  %v461_v22 = vsel %vm453_vm9, %v440_v1, %v443_v2  ;;  %v462_v17 = vsel %vm456_vm10, %v449_v14, 920167782 }
  0xca   :  { %v469_v39 = vshll.u32 %v429_v48, 8  ;;  %v300_v27 = vsel %vm217_vm7, %v299_v16, %v298_v15  ;;  %v7346_v34 = vmin.u32 %v384_v20, %v9003_v29  ;;  %vm455_vm12 = vcmp.lt.s32.totalorder %v8978_v50, 3 }
  0xcb   :  { %v457_v36 = vsel %vm453_vm9, %v437_v19, %v440_v1  ;;  %v303_v33 = vsel %vm8987_vm8, %v8756_v8, %v300_v27  ;;  %v459_v42 = vsel %vm455_vm12, %v443_v2, %v458_v21  ;;  %v463_v46 = vsel %vm455_vm12, %v446_v0, %v462_v17 }
  0xcc   :  { %v465_v10 = vsel %vm453_vm9, %v443_v2, %v446_v0  ;;  %8433 = vcosq.f32 %v303_v33  ;;  %v386_v48 = vclz %v7346_v34  ;;  %v464_v6 = vsel %vm454_vm11, %v461_v22, %v463_v46 }
  0xcd   :  { %v466_v11 = vsel %vm456_vm10, %v452_v49, 1326507024  ;;  %8435 = vsinq.f32 %v303_v33  ;;  %v9032_v32 = vmul.u32.u64.low %v469_v39, %v464_v6  ;;  %v9033_v40 = vmul.u32.u64.high %v469_v39, %v464_v6, %v9032_v32 }
  0xce   :  { %v467_v51 = vsel %vm455_vm12, %v449_v14, %v466_v11  ;;  %v304_v58 = vsel %vm8987_vm8, 0, %v8975_v25  ;;  %vm320_vm13 = vcmp.lt.s32.totalorder %v8759_v9, 0  ;;  %v7347_v53 = vadd.s32 4294967294, %v386_v48 }
  0xcf   :  { %v468_v61 = vsel %vm454_vm11, %v465_v10, %v467_v51  ;;  %vm9044_vm14 = vcmp.le.f32.partialorder %v318_v26, 0.7853982  ;;  %v404_v31 = vsub.s32 4, %v8991_v60  ;;  %vm207_vm15 = vcmp.eq.s32.totalorder %v8970_v44, 0 }
  0xd0   :  { %v9049_v52 = vmul.u32.u64.low %v469_v39, %v468_v61  ;;  %v9050_v12 = vmul.u32.u64.high %v469_v39, %v468_v61, %v9049_v52  ;;  %v8430_v63 = vpop.eup %8429  ;;  %vm7348_vm0 = vcmp.lt.s32.totalorder %v7347_v53, 0  ;;  %v460_v25 = vsel %vm454_vm11, %v457_v36, %v459_v42 }
  0xd1   :  { %v527_v55 = vand.u32 2139095040, %v8876_v28  ;;  %v8432_v23 = vpop.eup %8431  ;;  %vm210_vm1 = vcmp.eq.s32.totalorder %v8970_v44, 2  ;;  %v9057_v26 = vand.u32 3, %v304_v58  ;;  %v389_v24 = vsel %vm7348_vm0, 0, %v7347_v53 }
  0xd2   :  { %v479_v0 = vadd.s32 1, %v9033_v40  ;;  %v374_v1 = vadd.s32 %v8945_v57, %v8942_v59  ;;  %v390_v2 = vsub.s32 32, %v389_v24  ;;  %v394_v14 = vsub.s32 4294967266, %v389_v24 }
  0xd3   :  { %v524_v5 = vand.u32 2147483647, %v8876_v28  ;;  %v405_v50 = vsel %vm320_vm13, %v404_v31, %v8991_v60  ;;  %v476_v15 = vmul.u32 %v469_v39, %v460_v25  ;;  %vm478_vm2 = vc.u32 %v9050_v12, %v9032_v32 }
  0xd4   :  { %v528_v35 = vshrl.u32 %v527_v55, 23  ;;  %vm206_vm3 = vcmp.lt.s32.totalorder %v8970_v44, 2  ;;  %v391_v19 = vshll.u32 %v9003_v29, %v389_v24  ;;  %v392_v16 = vshrl.u32 %v374_v1, %v390_v2 }
  0xd5   :  { %v395_v20 = vadd.s32 127, %v394_v14  ;;  %v480_v59 = vsel %vm478_vm2, %v479_v0, %v9033_v40  ;;  %v208_v57 = vxor.u32 2147483648, %v8432_v23  ;;  %v211_v49 = vxor.u32 2147483648, %v8430_v63 }
  0xd6   :  { %v481_v21 = vadd.s32 %v480_v59, %v476_v15  ;;  %v7353_v22 = vadd.s32 4294967169, %v528_v35  ;;  %v8434_v17 = vpop.eup %8433  ;;  %vm309_vm4 = vcmp.lt.s32.totalorder %v9057_v26, 2  ;;  %vm310_vm5 = vcmp.eq.s32.totalorder %v9057_v26, 0 }
  0xd7   :  { %v393_v60 = vor.u32 %v392_v16, %v391_v19  ;;  %v396_v39 = vshll.u32 %v395_v20, 23  ;;  %vm423_vm6 = vcmp.lt.s32.totalorder %v8849_v13, 0  ;;  %v531_v29 = vand.u32 8388607, %v524_v5  ;;  %v8436_v27 = vpop.eup %8435 }
  0xd8   :  { %vm313_vm7 = vcmp.eq.s32.totalorder %v9057_v26, 2  ;;  %v314_v34 = vxor.u32 2147483648, %v8434_v17  ;;  %v482_v36 = vadd.s32 536870912, %v481_v21  ;;  %v534_v33 = vadd.s32 1, %v7353_v22 }
  0xd9   :  { %v311_v42 = vxor.u32 2147483648, %v8436_v27  ;;  %v397_v46 = vor.u32 4788187, %v396_v39  ;;  %v407_v10 = vsel %vm9044_vm14, 0, %v405_v50  ;;  %v630_v48 = vand.u32 2139095040, %v8879_v30 }
  0xda   :  { %v209_v6 = vsel %vm207_vm15, %v8430_v63, %v208_v57  ;;  %v212_v11 = vsel %vm210_vm1, %v211_v49, %v8432_v23  ;;  %vm9086_vm8 = vcmp.le.f32.partialorder %v421_v38, 0.7853982  ;;  %v483_v40 = vshrl.u32 %v482_v36, 30 }
  0xdb   :  { %vm535_vm9 = vcmp.gt.s32.totalorder %v534_v33, 0  ;;  %v398_v58 = vand.u32 2147483647, %v397_v46  ;;  %v400_v53 = vcvt.s32.f32 %v393_v60  ;;  %v532_v61 = vor.u32 8388608, %v531_v29 }
  0xdc   :  { %v536_v31 = vsel %vm535_vm9, %v534_v33, 0  ;;  %v315_v52 = vsel %vm313_vm7, %v314_v34, %v8436_v27  ;;  %v484_v25 = vshll.u32 %v483_v40, 30  ;;  %v507_v63 = vsub.s32 4, %v483_v40 }
  0xdd   :  { %v631_v55 = vshrl.u32 %v630_v48, 23  ;;  %v312_v23 = vsel %vm310_vm5, %v8434_v17, %v311_v42  ;;  %v401_v24 = vmul.f32 %v400_v53, %v398_v58  ;;  %v9094_v38 = vshrl.u32 %v536_v31, 5 }
  0xde   :  { %v538_v0 = vand.u32 31, %v536_v31  ;;  %v9098_v1 = vsel %vm206_vm3, %v209_v6, %v212_v11  ;;  %v9100_v2 = vand.u32 3, %v407_v10  ;;  %v477_v14 = vadd.s32 %v9032_v32, %v9050_v12 }
  0xdf   :  { %v485_v50 = vsub.s32 %v481_v21, %v484_v25  ;;  %v402_v15 = vxor.u32 2147483648, %v401_v24  ;;  %v9104_v19 = vshll.u32 %v532_v61, 8  ;;  %v627_v16 = vand.u32 2147483647, %v8879_v30 }
  0xe0   :  { %v539_v35 = vsub.s32 32, %v538_v0  ;;  %v9109_v20 = vsel %vm309_vm4, %v312_v23, %v315_v52  ;;  %v9113_v44 = vsel %vm423_vm6, %v507_v63, %v483_v40  ;;  %v7357_v57 = vadd.s32 4294967169, %v631_v55 }
  0xe1   :  { %v487_v59 = vsub.s32 0, %v485_v50  ;;  %v403_v32 = vsel %vm320_vm13, %v402_v15, %v401_v24  ;;  %vm556_vm10 = vcmp.lt.s32.totalorder %v9094_v38, 1  ;;  %v541_v22 = vshll.u32 %v13476_v37, %v538_v0 }
  0xe2   :  { %v542_v12 = vshrl.u32 %v13474_v41, %v539_v35  ;;  %v545_v49 = vshrl.u32 %v13472_v43, %v539_v35  ;;  %v406_v26 = vsel %vm9044_vm14, %v8759_v9, %v403_v32  ;;  %v544_v17 = vshll.u32 %v13474_v41, %v538_v0 }
  0xe3   :  { %v7350_v21 = vmin.u32 %v487_v59, %v485_v50  ;;  %8437 = vcosq.f32 %v406_v26  ;;  %v510_v60 = vsel %vm9086_vm8, 0, %v9113_v44  ;;  %v547_v39 = vshll.u32 %v13472_v43, %v538_v0 }
  0xe4   :  { %vm557_vm11 = vcmp.lt.s32.totalorder %v9094_v38, 2  ;;  %v543_v27 = vor.u32 %v542_v12, %v541_v22  ;;  %v546_v34 = vor.u32 %v545_v49, %v544_v17  ;;  %v548_v62 = vshrl.u32 %v13478_v45, %v539_v35 }
  0xe5   :  { %v489_v29 = vclz %v7350_v21  ;;  %v550_v36 = vshll.u32 %v13478_v45, %v538_v0  ;;  %v551_v33 = vshrl.u32 %v13483_v47, %v539_v35  ;;  %v553_v42 = vshll.u32 %v13483_v47, %v538_v0 }
  0xe6   :  { %v554_v46 = vshrl.u32 %v13481_v54, %v539_v35  ;;  %8439 = vsinq.f32 %v406_v26  ;;  %v540_v48 = vshrl.u32 %v13476_v37, %v539_v35  ;;  %v549_v6 = vor.u32 %v548_v62, %v547_v39 }
  0xe7   :  { %v7351_v10 = vadd.s32 4294967294, %v489_v29  ;;  %v552_v11 = vor.u32 %v551_v33, %v550_v36  ;;  %vm558_vm12 = vcmp.lt.s32.totalorder %v9094_v38, 3  ;;  %vm559_vm13 = vcmp.lt.s32.totalorder %v9094_v38, 4 }
  0xe8   :  { %v555_v40 = vor.u32 %v554_v46, %v553_v42  ;;  %v561_v58 = vsel %vm559_vm13, %v549_v6, 2102212464  ;;  %v564_v53 = vsel %vm556_vm10, %v543_v27, %v546_v34  ;;  %v637_v61 = vadd.s32 1, %v7357_v57 }
  0xe9   :  { %vm7352_vm14 = vcmp.lt.s32.totalorder %v7351_v10, 0  ;;  %v565_v52 = vsel %vm559_vm13, %v552_v11, 920167782  ;;  %v568_v25 = vsel %vm556_vm10, %v546_v34, %v549_v6  ;;  %v560_v24 = vsel %vm556_vm10, %v540_v48, %v543_v27 }
  0xea   :  { %v492_v31 = vsel %vm7352_vm14, 0, %v7351_v10  ;;  %v569_v63 = vsel %vm559_vm13, %v555_v40, 1326507024  ;;  %v562_v0 = vsel %vm558_vm12, %v546_v34, %v561_v58  ;;  %v566_v35 = vsel %vm558_vm12, %v549_v6, %v565_v52 }
  0xeb   :  { %v493_v55 = vsub.s32 32, %v492_v31  ;;  %v497_v23 = vsub.s32 4294967266, %v492_v31  ;;  %v494_v15 = vshll.u32 %v485_v50, %v492_v31  ;;  %v570_v59 = vsel %vm558_vm12, %v552_v11, %v569_v63 }
  0xec   :  { %vm638_vm15 = vcmp.gt.s32.totalorder %v637_v61, 0  ;;  %v567_v32 = vsel %vm557_vm11, %v564_v53, %v566_v35  ;;  %v571_v12 = vsel %vm557_vm11, %v568_v25, %v570_v59  ;;  %vm204_vm0 = vweird.f32 %v8752_v7 }
  0xed   :  { %v495_v44 = vshrl.u32 %v477_v14, %v493_v55  ;;  %v498_v57 = vadd.s32 127, %v497_v23  ;;  %v8438_v49 = vpop.eup %8437  ;;  %v9155_v26 = vmul.u32.u64.low %v9104_v19, %v571_v12  ;;  %v9156_v21 = vmul.u32.u64.high %v9104_v19, %v571_v12, %v9155_v26 }
  0xee   :  { %v9159_v50 = vmul.u32.u64.low %v9104_v19, %v567_v32  ;;  %v9160_v22 = vmul.u32.u64.high %v9104_v19, %v567_v32, %v9159_v50  ;;  %v563_v14 = vsel %vm557_vm11, %v560_v24, %v562_v0  ;;  %v639_v29 = vsel %vm638_vm15, %v637_v61, 0 }
  0xef   :  { %v496_v17 = vor.u32 %v495_v44, %v494_v15  ;;  %v499_v39 = vshll.u32 %v498_v57, 23  ;;  %vm307_vm1 = vweird.f32 %v8756_v8  ;;  %v641_v27 = vand.u32 31, %v639_v29 }
  0xf0   :  { %v8440_v34 = vpop.eup %8439  ;;  %v9168_v62 = vsel %vm204_vm0, nan, %v9098_v1  ;;  %v9171_v36 = vsel %vm307_vm1, nan, %v9109_v20  ;;  %vm413_vm2 = vcmp.eq.s32.totalorder %v9100_v2, 0  ;;  %vm416_vm3 = vcmp.eq.s32.totalorder %v9100_v2, 2 }
  0xf1   :  { %v500_v33 = vor.u32 4788187, %v499_v39  ;;  %v634_v38 = vand.u32 8388607, %v627_v16  ;;  %v9177_v42 = vand.u32 3, %v510_v60  ;;  %v579_v7 = vmul.u32 %v9104_v19, %v563_v14 }
  0xf2   :  { %vm581_vm4 = vc.u32 %v9156_v21, %v9159_v50  ;;  %v582_v8 = vadd.s32 1, %v9160_v22  ;;  %v417_v1 = vxor.u32 2147483648, %v8438_v49  ;;  %v503_v46 = vcvt.s32.f32 %v496_v17 }
  0xf3   :  { %v501_v20 = vand.u32 2147483647, %v500_v33  ;;  %v642_v10 = vsub.s32 32, %v641_v27  ;;  %vm412_vm5 = vcmp.lt.s32.totalorder %v9100_v2, 2  ;;  %v414_v48 = vxor.u32 2147483648, %v8440_v34 }
  0xf4   :  { %v583_v6 = vsel %vm581_vm4, %v582_v8, %v9160_v22  ;;  %v9185_v11 = vshrl.u32 %v639_v29, 5  ;;  %v644_v60 = vshll.u32 %v13476_v37, %v641_v27  ;;  %v647_v53 = vshll.u32 %v13474_v41, %v641_v27  ;;  %v9212_v29 = vpop.permute.xlu0 %92 }
  0xf5   :  { %v504_v40 = vmul.f32 %v503_v46, %v501_v20  ;;  %v584_v19 = vadd.s32 %v583_v6, %v579_v7  ;;  %v645_v58 = vshrl.u32 %v13474_v41, %v642_v10  ;;  %v648_v61 = vshrl.u32 %v13472_v43, %v642_v10 }
  0xf6   :  { %v651_v31 = vshrl.u32 %v13478_v45, %v642_v10  ;;  %v653_v52 = vshll.u32 %v13478_v45, %v641_v27  ;;  %v654_v25 = vshrl.u32 %v13483_v47, %v642_v10  ;;  %vm410_vm7 = vweird.f32 %v8759_v9 }
  0xf7   :  { %v505_v63 = vxor.u32 2147483648, %v504_v40  ;;  %v585_v55 = vadd.s32 536870912, %v584_v19  ;;  %v635_v23 = vor.u32 8388608, %v634_v38  ;;  %v650_v24 = vshll.u32 %v13472_v43, %v641_v27 }
  0xf8   :  { %v646_v0 = vor.u32 %v645_v58, %v644_v60  ;;  %v649_v15 = vor.u32 %v648_v61, %v647_v53  ;;  %v655_v35 = vor.u32 %v654_v25, %v653_v52  ;;  %v657_v59 = vshrl.u32 %v13481_v54, %v642_v10  ;;  %v8593_v52 = vld [vmem:[%s13450_s0 + $0x10] sm:$0xff] }
  0xf9   :  { %v506_v44 = vsel %vm423_vm6, %v505_v63, %v504_v40  ;;  %v9199_v57 = vshrl.u32 %v585_v55, 30  ;;  %v652_v32 = vor.u32 %v651_v31, %v650_v24  ;;  %v656_v12 = vshll.u32 %v13483_v47, %v641_v27 }
  0xfa   :  { %v415_v26 = vsel %vm413_vm2, %v8438_v49, %v414_v48  ;;  %v418_v22 = vsel %vm416_vm3, %v417_v1, %v8440_v34  ;;  %v509_v17 = vsel %vm9086_vm8, %v8849_v13, %v506_v44  ;;  %vm659_vm9 = vcmp.lt.s32.totalorder %v9185_v11, 1 }
  0xfb   :  { %8441 = vcosq.f32 %v509_v17  ;;  %v587_v39 = vshll.u32 %v9199_v57, 30  ;;  %v658_v14 = vor.u32 %v657_v59, %v656_v12  ;;  %vm662_vm6 = vcmp.lt.s32.totalorder %v9185_v11, 4 }
  0xfc   :  { %8443 = vsinq.f32 %v509_v17  ;;  %vm661_vm10 = vcmp.lt.s32.totalorder %v9185_v11, 3  ;;  %v667_v49 = vsel %vm659_vm9, %v646_v0, %v649_v15  ;;  %v668_v51 = vsel %vm662_vm6, %v655_v35, 920167782 }
  0xfd   :  { %v419_v27 = vsel %vm412_vm5, %v415_v26, %v418_v22  ;;  %v9221_v34 = vsub.s32 %v584_v19, %v587_v39  ;;  %vm660_vm8 = vcmp.lt.s32.totalorder %v9185_v11, 2  ;;  %v669_v33 = vsel %vm661_vm10, %v652_v32, %v668_v51 }
  0xfe   :  { %v664_v38 = vsel %vm662_vm6, %v652_v32, 2102212464  ;;  %v670_v7 = vsel %vm660_vm8, %v667_v49, %v669_v33  ;;  %v675_v8 = vshll.u32 %v635_v23, 8  ;;  %v95_v1 = vadd.f32 %v9212_v29, %v8738_v3 }
  0xff   :  { %v590_v2 = vsub.s32 0, %v9221_v34  ;;  %v643_v20 = vshrl.u32 %v13476_v37, %v642_v10  ;;  %v671_v46 = vsel %vm659_vm9, %v649_v15, %v652_v32  ;;  %v672_v48 = vsel %vm662_vm6, %v658_v14, 1326507024 }
 0x100   :  { %v420_v6 = vsel %vm410_vm7, nan, %v419_v27  ;;  %v673_v60 = vsel %vm661_vm10, %v655_v35, %v672_v48  ;;  %v9242_v40 = vmul.u32.u64.low %v675_v8, %v670_v7  ;;  %v9243_v19 = vmul.u32.u64.high %v675_v8, %v670_v7, %v9242_v40 }
 0x101   :  { %v7354_v3 = vmin.u32 %v590_v2, %v9221_v34  ;;  %v663_v10 = vsel %vm659_vm9, %v643_v20, %v646_v0  ;;  %v665_v58 = vsel %vm661_vm10, %v649_v15, %v664_v38  ;;  %v96_v53 = vadd.f32 %v9212_v29, %v8743_v4 }
 0x102   :  { %vm513_vm11 = vweird.f32 %v8849_v13  ;;  %v674_v9 = vsel %vm660_vm8, %v671_v46, %v673_v60  ;;  %v730_v61 = vmul.f32 %v9168_v62, %v9212_v29  ;;  %v731_v31 = vmul.f32 %v9171_v36, %v9212_v29 }
 0x103   :  { %v97_v25 = vadd.f32 %v8593_v52, %v9212_v29  ;;  %v592_v63 = vclz %v7354_v3  ;;  %v9264_v55 = vmul.u32.u64.low %v675_v8, %v674_v9  ;;  %v9265_v4 = vmul.u32.u64.high %v675_v8, %v674_v9, %v9264_v55  ;;  %v8594_v52 = vld [vmem:[%s13450_s0 + $0x28] sm:$0xff] }
 0x104   :  { %v732_v23 = vmul.f32 %v420_v6, %v9212_v29  ;;  %v685_v24 = vadd.s32 1, %v9243_v19  ;;  %v9269_v0 = vsub.f32 %v95_v1, %v730_v61  ;;  %v9271_v62 = vsub.f32 %v96_v53, %v731_v31 }
 0x105   :  { %v8442_v15 = vpop.eup %8441  ;;  %vm515_vm12 = vcmp.lt.s32.totalorder %v9177_v42, 2  ;;  %vm516_vm13 = vcmp.eq.s32.totalorder %v9177_v42, 0  ;;  %v7355_v36 = vadd.s32 4294967294, %v592_v63  ;;  %v666_v35 = vsel %vm660_vm8, %v663_v10, %v665_v58 }
 0x106   :  { %v13465_v59 = vmov 0.0   ;;  %v8444_v44 = vpop.eup %8443  ;;  %v520_v32 = vxor.u32 2147483648, %v8442_v15  ;;  %v9281_v12 = vpack.i.bf16 %v9271_v62, %v9269_v0  ;;  %v9283_v26 = vsub.f32 %v97_v25, %v732_v23 }
 0x107   :  { %1157 = vmatprep.mubr.f32.mxu0 %v13465_v59  ;;  %1228 = vmatprep.mubr.f32.mxu1 %v13465_v59  ;;  %v517_v22 = vxor.u32 2147483648, %v8444_v44  ;;  %vm519_vm14 = vcmp.eq.s32.totalorder %v9177_v42, 2  ;;  %vm7356_vm15 = vcmp.lt.s32.totalorder %v7355_v36, 0  ;;  %vm684_vm0 = vc.u32 %v9265_v4, %v9242_v40 }
 0x108   :  { %v521_v11 = vsel %vm519_vm14, %v520_v32, %v8444_v44  ;;  %v595_v17 = vsel %vm7356_vm15, 0, %v7355_v36  ;;  %v682_v39 = vmul.u32 %v675_v8, %v666_v35  ;;  %v686_v14 = vsel %vm684_vm0, %v685_v24, %v9243_v19  ;;  %7864 = vrot.lane.b32.xlu0 %v9281_v12, %s8633_s15  ;;  %7854 = vrot.lane.b32.xlu1 %v9281_v12, %s8634_s16 }
 0x109   :  { %v518_v49 = vsel %vm516_vm13, %v8442_v15, %v517_v22  ;;  %v580_v51 = vadd.s32 %v9159_v50, %v9156_v21  ;;  %v596_v27 = vsub.s32 32, %v595_v17  ;;  %v600_v33 = vsub.s32 4294967266, %v595_v17 }
 0x10a   :  { %v522_v38 = vsel %vm515_vm12, %v518_v49, %v521_v11  ;;  %v687_v7 = vadd.s32 %v686_v14, %v682_v39  ;;  %v7858_v8 = vpack.i.bf16 %v13465_v59, %v9283_v26  ;;  %v597_v2 = vshll.u32 %v9221_v34, %v595_v17 }
 0x10b   :  { %v523_v1 = vsel %vm513_vm11, nan, %v522_v38  ;;  %v598_v20 = vshrl.u32 %v580_v51, %v596_v27  ;;  %v601_v46 = vadd.s32 127, %v600_v33  ;;  %v98_v21 = vadd.f32 %v9212_v29, %v8833_v56 }
 0x10c   :  { %v688_v48 = vadd.s32 536870912, %v687_v7  ;;  %7874 = vrot.lane.b32.xlu0 %v9281_v12, %s8635_s17  ;;  %7859 = vrot.lane.b32.xlu1 %v7858_v8, %s8634_s16  ;;  %v733_v50 = vmul.f32 %v523_v1, %v9212_v29  ;;  %vm526_vm1 = vcmp.lt.s32.totalorder %v8876_v28, 0  ;;  %vm9329_vm2 = vcmp.le.f32.partialorder %v524_v5, 0.7853982 }
 0x10d   :  { %v599_v42 = vor.u32 %v598_v20, %v597_v2  ;;  %v602_v6 = vshll.u32 %v601_v46, 23  ;;  %v610_v63 = vsub.s32 4, %v9199_v57  ;;  %v683_v35 = vadd.s32 %v9242_v40, %v9265_v4 }
 0x10e   :  { %v9310_v13 = vshrl.u32 %v688_v48, 30  ;;  %v9312_v60 = vsub.f32 %v98_v21, %v733_v50  ;;  %vm616_vm9 = vweird.f32 %v8876_v28  ;;  %v99_v48 = vadd.f32 %v9212_v29, %v8862_v18 }
 0x10f   :  { %v603_v34 = vor.u32 4788187, %v602_v6  ;;  %v606_v10 = vcvt.s32.f32 %v599_v42  ;;  %v611_v15 = vsel %vm526_vm1, %v610_v63, %v9199_v57  ;;  %vm629_vm6 = vcmp.lt.s32.totalorder %v8879_v30, 0 }
 0x110   :  { %v690_v19 = vshll.u32 %v9310_v13, 30  ;;  %7884 = vrot.lane.b32.xlu0 %v9281_v12, %s8636_s18  ;;  %7869 = vrot.lane.b32.xlu1 %v7858_v8, %s8633_s15  ;;  %v9320_v56 = vpack.i.bf16 %v9312_v60, %v9283_v26  ;;  %v613_v36 = vsel %vm9329_vm2, 0, %v611_v15  ;;  %vm628_vm10 = vcmp.le.f32.partialorder %v627_v16, 0.7853982 }
 0x111   :  { %v604_v3 = vand.u32 2147483647, %v603_v34  ;;  %v617_v39 = vand.u32 3, %v613_v36  ;;  %v713_v42 = vsub.s32 4, %v9310_v13  ;;  %vm719_vm13 = vweird.f32 %v8879_v30 }
 0x112   :  { %v691_v58 = vsub.s32 %v687_v7, %v690_v19  ;;  %vm13496_vm14 = vcmask 1039360   ;;  %vm824_vm15 = vcmask 1022976   ;;  %vm851_vm0 = vcmask 1014784  }
 0x113   :  { %v607_v53 = vmul.f32 %v606_v10, %v604_v3  ;;  %vm622_vm4 = vcmp.eq.s32.totalorder %v617_v39, 2  ;;  %vm619_vm5 = vcmp.eq.s32.totalorder %v617_v39, 0  ;;  %vm618_vm7 = vcmp.lt.s32.totalorder %v617_v39, 2 }
 0x114   :  { %v693_v9 = vsub.s32 0, %v691_v58  ;;  %7894 = vrot.lane.b32.xlu0 %v9281_v12, %s8637_s19  ;;  %7879 = vrot.lane.b32.xlu1 %v9320_v56, %s8635_s17  ;;  %v714_v19 = vsel %vm629_vm6, %v713_v42, %v9310_v13 }
 0x115   :  { %v608_v61 = vxor.u32 2147483648, %v607_v53  ;;  %v716_v18 = vsel %vm628_vm10, 0, %v714_v19 }
 0x116   :  { %v7358_v31 = vmin.u32 %v693_v9, %v691_v58  ;;  %v720_v3 = vand.u32 3, %v716_v18 }
 0x117   :  { %v609_v25 = vsel %vm526_vm1, %v608_v61, %v607_v53  ;;  %vm805_vm1 = vcmask 1031168  }
 0x118   :  { %v612_v55 = vsel %vm9329_vm2, %v8876_v28, %v609_v25  ;;  %v695_v23 = vclz %v7358_v31  ;;  %7889 = vrot.lane.b32.xlu1 %v9320_v56, %s8636_s18  ;;  %vm725_vm8 = vcmp.eq.s32.totalorder %v720_v3, 2  ;;  %vm722_vm11 = vcmp.eq.s32.totalorder %v720_v3, 0 }
 0x119   :  { %8445 = vcosq.f32 %v612_v55  ;;  %vm721_vm12 = vcmp.lt.s32.totalorder %v720_v3, 2  ;;  %vm872_vm2 = vcmask 1006592  }
 0x11a   :  { %8447 = vsinq.f32 %v612_v55  ;;  %v7359_v24 = vadd.s32 4294967294, %v695_v23 }
 0x11c   :  { %vm7360_vm3 = vcmp.lt.s32.totalorder %v7359_v24, 0  ;;  %7899 = vrot.lane.b32.xlu1 %v9320_v56, %s8637_s19 }
 0x11d   :  { %v698_v5 = vsel %vm7360_vm3, 0, %v7359_v24  ;;  %vm893_vm3 = vcmask 998400  }
 0x11e   :  { %v699_v44 = vsub.s32 32, %v698_v5  ;;  %v703_v32 = vsub.s32 4294967266, %v698_v5  ;;  %v700_v22 = vshll.u32 %v691_v58, %v698_v5 }
 0x120   :  { %v701_v11 = vshrl.u32 %v683_v35, %v699_v44  ;;  %v704_v17 = vadd.s32 127, %v703_v32 }
 0x122   :  { %v702_v14 = vor.u32 %v701_v11, %v700_v22  ;;  %v705_v49 = vshll.u32 %v704_v17, 23 }
 0x123   :  { %v8446_v57 = vpop.eup %8445 }
 0x124   :  { %v8448_v51 = vpop.eup %8447  ;;  %v623_v27 = vxor.u32 2147483648, %v8446_v57  ;;  %v706_v33 = vor.u32 4788187, %v705_v49  ;;  %v709_v1 = vcvt.s32.f32 %v702_v14 }
 0x125   :  { %v620_v38 = vxor.u32 2147483648, %v8448_v51 }
 0x126   :  { %v624_v7 = vsel %vm622_vm4, %v623_v27, %v8448_v51  ;;  %v707_v8 = vand.u32 2147483647, %v706_v33  ;;  %vm1004_vm4 = vcmask 23552  }
 0x127   :  { %v621_v40 = vsel %vm619_vm5, %v8446_v57, %v620_v38  ;;  %vm13497_vm5 = vcmask 457728  }
 0x128   :  { %v625_v4 = vsel %vm618_vm7, %v621_v40, %v624_v7  ;;  %v710_v2 = vmul.f32 %v709_v1, %v707_v8 }
 0x129   :  { %v626_v20 = vsel %vm616_vm9, nan, %v625_v4 }
 0x12a   :  { %v711_v46 = vxor.u32 2147483648, %v710_v2  ;;  %v734_v21 = vmul.f32 %v626_v20, %v9212_v29 }
 0x12c   :  { %v712_v50 = vsel %vm629_vm6, %v711_v46, %v710_v2  ;;  %v740_v6 = vsub.f32 %v99_v48, %v734_v21 }
 0x12d   :  { %v715_v28 = vsel %vm628_vm10, %v8879_v30, %v712_v50 }
 0x12e   :  { %8449 = vcosq.f32 %v715_v28  ;;  %v7903_v34 = vpack.i.bf16 %v740_v6, %v9312_v60 }
 0x12f   :  { %8451 = vsinq.f32 %v715_v28 }
 0x130   :  { %7904 = vrot.lane.b32.xlu0 %v7903_v34, %s8634_s16 }
 0x134   :  { %7909 = vrot.lane.b32.xlu0 %v7903_v34, %s8633_s15 }
 0x138   :  { %v8450_v10 = vpop.eup %8449  ;;  %879 = vrot.lane.b32.xlu0 %v9269_v0, %s8638_s20  ;;  %v100_v0 = vadd.f32 %v8594_v52, %v9212_v29 }
 0x139   :  { %v8452_v16 = vpop.eup %8451  ;;  %v726_v58 = vxor.u32 2147483648, %v8450_v10 }
 0x13a   :  { %v723_v53 = vxor.u32 2147483648, %v8452_v16 }
 0x13b   :  { %v727_v9 = vsel %vm725_vm8, %v726_v58, %v8452_v16 }
 0x13c   :  { %v724_v61 = vsel %vm722_vm11, %v8450_v10, %v723_v53  ;;  %883 = vrot.lane.b32.xlu0 %v9283_v26, %s8638_s20 }
 0x13d   :  { %v728_v13 = vsel %vm721_vm12, %v724_v61, %v727_v9 }
 0x13e   :  { %v729_v31 = vsel %vm719_vm13, nan, %v728_v13 }
 0x13f   :  { %v735_v25 = vmul.f32 %v729_v31, %v9212_v29 }
 0x141   :  { %v741_v63 = vsub.f32 %v100_v0, %v735_v25 }
 0x143   :  { %782 = vrot.lane.b32.xlu1 %v741_v63, %s8634_s16  ;;  %v7918_v55 = vpack.i.bf16 %v741_v63, %v740_v6 }
 0x145   :  { %7919 = vrot.lane.b32.xlu0 %v7918_v55, %s8636_s18 }
 0x147   :  { %7914 = vrot.lane.b32.xlu1 %v7918_v55, %s8635_s17 }
 0x149   :  { %849 = vrot.lane.b32.xlu0 %v13465_v59, %s8636_s18 }
 0x14b   :  { %881 = vrot.lane.b32.xlu1 %v9271_v62, %s8638_s20 }
 0x14d   :  { %885 = vrot.lane.b32.xlu0 %v9312_v60, %s8638_s20 }
 0x14f   :  { %803 = vrot.lane.b32.xlu1 %v741_v63, %s8633_s15 }
 0x151   :  { %889 = vrot.lane.b32.xlu0 %v741_v63, %s8638_s20 }
 0x153   :  { %7924 = vrot.lane.b32.xlu1 %v7918_v55, %s8637_s19 }
 0x155   :  { %7929 = vrot.lane.b32.xlu0 %v9281_v12, %s8639_s23 }
 0x157   :  { %870 = vrot.lane.b32.xlu1 %v13465_v59, %s8637_s19 }
 0x15b   :  { %887 = vrot.lane.b32.xlu1 %v740_v6, %s8638_s20 }
 0x15f   :  { %891 = vrot.lane.b32.xlu1 %v13465_v59, %s8638_s20 }
 0x163   :  { %7934 = vrot.lane.b32.xlu1 %v9320_v56, %s8639_s23 }
 0x167   :  { %7939 = vrot.lane.b32.xlu1 %v7918_v55, %s8639_s23 }
 0x17a   :  { %v7865_v30 = vpop.permute.xlu0 %7864  ;;  %v7855_v29 = vpop.permute.xlu1 %7854 }
 0x17b   :  { %v7856_v35 = vunpack.i.l.bf16 %v7855_v29  ;;  %v7857_v21 = vunpack.i.h.bf16 %v7855_v29  ;;  %v7867_v28 = vunpack.i.h.bf16 %v7865_v30  ;;  %v7866_v34 = vunpack.i.l.bf16 %v7865_v30 }
 0x17d   :  { %v786_v19 = vsel %vm13496_vm14, %v7856_v35, %v7857_v21  ;;  %v807_v58 = vsel %vm805_vm1, %v7866_v34, %v7867_v28 }
 0x17e   :  { %v9391_v62 = vpop.permute.xlu0 %7874  ;;  %v7860_v26 = vpop.permute.xlu1 %7859 }
 0x17f   :  { %v7862_v23 = vunpack.i.h.bf16 %v7860_v26  ;;  %v7877_v11 = vunpack.i.h.bf16 %v9391_v62  ;;  %v7876_v17 = vunpack.i.l.bf16 %v9391_v62  ;;  %v7861_v1 = vunpack.i.l.bf16 %v7860_v26 }
 0x181   :  { %v785_v32 = vsel %vm13496_vm14, %v7862_v23, %v7856_v35  ;;  %v825_v51 = vsel %vm824_vm15, %v7876_v17, %v7877_v11  ;;  %v787_v6 = vsel %vm13496_vm14, %v7857_v21, %v7861_v1 }
 0x182   :  { %v7885_v60 = vpop.permute.xlu0 %7884  ;;  %v9393_v12 = vpop.permute.xlu1 %7869  ;;  %v7953_v39 = vpack.i.bf16 %v785_v32, %v13465_v59  ;;  %v7948_v18 = vpack.i.bf16 %v787_v6, %v786_v19 }
 0x183   :  { %v7886_v5 = vunpack.i.l.bf16 %v7885_v60  ;;  %v7887_v57 = vunpack.i.h.bf16 %v7885_v60  ;;  %v7871_v50 = vunpack.i.l.bf16 %v9393_v12  ;;  %v7872_v3 = vunpack.i.h.bf16 %v9393_v12 }
 0x185   :  { %v852_v38 = vsel %vm851_vm0, %v7886_v5, %v7887_v57  ;;  %v808_v10 = vsel %vm805_vm1, %v7867_v28, %v7871_v50  ;;  %v806_v61 = vsel %vm805_vm1, %v7872_v3, %v7866_v34 }
 0x186   :  { %v9395_v24 = vpop.permute.xlu0 %7894  ;;  %v9397_v15 = vpop.permute.xlu1 %7879  ;;  %v7958_v53 = vpack.i.bf16 %v808_v10, %v807_v58  ;;  %v7968_v52 = vpack.i.bf16 %v7876_v17, %v806_v61 }
 0x187   :  { %v7896_v36 = vunpack.i.l.bf16 %v9395_v24  ;;  %v7881_v44 = vunpack.i.l.bf16 %v9397_v15  ;;  %v7897_v13 = vunpack.i.h.bf16 %v9395_v24  ;;  %v7882_v29 = vunpack.i.h.bf16 %v9397_v15 }
 0x189   :  { %v7943_v56 = vpack.i.bf16 %v7896_v36, %v7886_v5  ;;  %v826_v49 = vsel %vm824_vm15, %v7877_v11, %v7881_v44  ;;  %v873_v26 = vsel %vm872_vm2, %v7896_v36, %v7897_v13 }
 0x18a   :  { %v9404_v22 = vpop.permute.xlu1 %7889  ;;  %v7963_v27 = vpack.i.bf16 %v826_v49, %v825_v51 }
 0x18b   :  { %7944 = vrot.lane.b32.xlu0 %v7943_v56, %s8639_s23  ;;  %v7891_v14 = vunpack.i.l.bf16 %v9404_v22  ;;  %v827_v56 = vsel %vm824_vm15, %v7881_v44, %v7882_v29 }
 0x18d   :  { %v853_v33 = vsel %vm851_vm0, %v7887_v57, %v7891_v14 }
 0x18e   :  { %v7973_v7 = vpack.i.bf16 %v853_v33, %v852_v38  ;;  %v7900_v16 = vpop.permute.xlu1 %7899  ;;  %v7892_v33 = vunpack.i.h.bf16 %v9404_v22 }
 0x18f   :  { %7954 = vrot.lane.b32.xlu0 %v7953_v39, %s8639_s23  ;;  %v7901_v9 = vunpack.i.l.bf16 %v7900_v16  ;;  %v7902_v38 = vunpack.i.h.bf16 %v7900_v16 }
 0x191   :  { %v874_v55 = vsel %vm872_vm2, %v7897_v13, %v7901_v9  ;;  %v875_v21 = vsel %vm872_vm2, %v7901_v9, %v7902_v38 }
 0x192   :  { %v7978_v12 = vpack.i.bf16 %v874_v55, %v873_v26  ;;  %v1961_v55 = vld [vmem:[%s13459_s9] sm:$0xff] }
 0x193   :  { %7964 = vrot.lane.b32.xlu0 %v7963_v27, %s8639_s23 }
 0x197   :  { %7974 = vrot.lane.b32.xlu0 %v7973_v7, %s8639_s23 }
 0x1a2   :  { %v7905_v8 = vpop.permute.xlu0 %7904 }
 0x1a3   :  { %v7907_v40 = vunpack.i.h.bf16 %v7905_v8  ;;  %v7906_v4 = vunpack.i.l.bf16 %v7905_v8 }
 0x1a5   :  { %v788_v2 = vsel %vm13496_vm14, %v7861_v1, %v7906_v4  ;;  %v789_v20 = vsel %vm13496_vm14, %v7906_v4, %v7907_v40 }
 0x1a6   :  { %v7910_v46 = vpop.permute.xlu0 %7909  ;;  %v7983_v48 = vpack.i.bf16 %v789_v20, %v788_v2  ;;  %v854_v20 = vsel %vm851_vm0, %v7891_v14, %v7892_v33 }
 0x1a7   :  { %v7912_v0 = vunpack.i.h.bf16 %v7910_v46  ;;  %v7911_v25 = vunpack.i.l.bf16 %v7910_v46 }
 0x1a8   :  { %7984 = vrot.lane.b32.xlu0 %v7983_v48, %s8639_s23 }
 0x1a9   :  { %v809_v5 = vsel %vm805_vm1, %v7871_v50, %v7911_v25  ;;  %v810_v35 = vsel %vm805_vm1, %v7911_v25, %v7912_v0  ;;  %v7391_v25 = vld [vmem:[%s13452_s2 + $0x8] sm:$0xff] }
 0x1aa   :  { %v880_v42 = vpop.permute.xlu0 %879  ;;  %v7993_v36 = vpack.i.bf16 %v810_v35, %v809_v5 }
 0x1ab   :  { %990 = vrot.lane.b32.xlu1 %v880_v42, %s8639_s23 }
 0x1ae   :  { %v884_v62 = vpop.permute.xlu0 %883 }
 0x1af   :  { %7949 = vrot.lane.b32.xlu1 %v7948_v18, %s8639_s23 }
 0x1b3   :  { %7959 = vrot.lane.b32.xlu1 %v7958_v53, %s8639_s23 }
 0x1b5   :  { %v783_v31 = vpop.permute.xlu1 %782 }
 0x1b6   :  { %v790_v63 = vsel %vm13496_vm14, %v7907_v40, %v783_v31 }
 0x1b7   :  { %v7988_v30 = vpack.i.bf16 %v783_v31, %v790_v63  ;;  %7969 = vrot.lane.b32.xlu1 %v7968_v52, %s8639_s23  ;;  %v7920_v39 = vpop.permute.xlu0 %7919  ;;  %v900_v52 = vld [vmem:[%s13455_s5] sm:$0xff] }
 0x1b8   :  { %v7921_v49 = vunpack.i.l.bf16 %v7920_v39  ;;  %v7922_v46 = vunpack.i.h.bf16 %v7920_v39  ;;  %v1306_v63 = vld [vmem:[%s13456_s6] sm:$0xff] }
 0x1b9   :  { %v7915_v60 = vpop.permute.xlu1 %7914  ;;  %7989 = vrot.lane.b32.xlu0 %v7988_v30, %s8639_s23  ;;  %v7392_v30 = vld [vmem:[%s13453_s3 + $0x8] sm:$0xff] }
 0x1ba   :  { %v7916_v23 = vunpack.i.l.bf16 %v7915_v60  ;;  %v7917_v17 = vunpack.i.h.bf16 %v7915_v60  ;;  %v855_v4 = vsel %vm851_vm0, %v7892_v33, %v7921_v49  ;;  %v856_v22 = vsel %vm851_vm0, %v7921_v49, %v7922_v46 }
 0x1bb   :  { %7979 = vrot.lane.b32.xlu1 %v7978_v12, %s8639_s23  ;;  %v850_v2 = vpop.permute.xlu0 %849  ;;  %v8013_v6 = vpack.i.bf16 %v855_v4, %v854_v20 }
 0x1bc   :  { %v828_v32 = vsel %vm824_vm15, %v7882_v29, %v7916_v23  ;;  %v829_v27 = vsel %vm824_vm15, %v7916_v23, %v7917_v17  ;;  %v857_v34 = vsel %vm851_vm0, %v7922_v46, %v850_v2 }
 0x1bd   :  { %v882_v24 = vpop.permute.xlu1 %881  ;;  %v7998_v11 = vpack.i.bf16 %v828_v32, %v827_v56  ;;  %v8008_v1 = vpack.i.bf16 %v7917_v17, %v829_v27  ;;  %v8023_v18 = vpack.i.bf16 %v857_v34, %v856_v22 }
 0x1be   :  { %v895_v15 = vsel %vm893_vm3, %v882_v24, %v884_v62  ;;  %v894_v44 = vsel %vm893_vm3, %v880_v42, %v882_v24 }
 0x1bf   :  { %7999 = vrot.lane.b32.xlu0 %v7998_v11, %s8639_s23  ;;  %7994 = vrot.lane.b32.xlu1 %v7993_v36, %s8639_s23  ;;  %v886_v16 = vpop.permute.xlu0 %885 }
 0x1c0   :  { %v896_v58 = vsel %vm893_vm3, %v884_v62, %v886_v16 }
 0x1c1   :  { %v804_v57 = vpop.permute.xlu1 %803 }
 0x1c2   :  { %v811_v51 = vsel %vm805_vm1, %v7912_v0, %v804_v57  ;;  %v1307_v0 = vld [vmem:[%s13457_s7] sm:$0xff] }
 0x1c3   :  { %994 = vrot.lane.b32.xlu0 %v895_v15, %s8639_s23  ;;  %992 = vrot.lane.b32.xlu1 %v894_v44, %s8639_s23  ;;  %v8003_v7 = vpack.i.bf16 %v804_v57, %v811_v51  ;;  %v890_v61 = vpop.permute.xlu0 %889 }
 0x1c5   :  { %v7925_v8 = vpop.permute.xlu1 %7924 }
 0x1c6   :  { %v7926_v40 = vunpack.i.l.bf16 %v7925_v8  ;;  %v7927_v48 = vunpack.i.h.bf16 %v7925_v8 }
 0x1c7   :  { %8004 = vrot.lane.b32.xlu0 %v8003_v7, %s8639_s23  ;;  %8009 = vrot.lane.b32.xlu1 %v8008_v1, %s8639_s23  ;;  %v7930_v29 = vpop.permute.xlu0 %7929 }
 0x1c8   :  { %v876_v50 = vsel %vm872_vm2, %v7902_v38, %v7926_v40  ;;  %v877_v14 = vsel %vm872_vm2, %v7926_v40, %v7927_v48  ;;  %v7932_v57 = vunpack.i.h.bf16 %v7930_v29  ;;  %v7931_v51 = vunpack.i.l.bf16 %v7930_v29 }
 0x1c9   :  { %v871_v42 = vpop.permute.xlu1 %870  ;;  %v8018_v28 = vpack.i.bf16 %v876_v50, %v875_v21 }
 0x1ca   :  { %v878_v19 = vsel %vm872_vm2, %v7927_v48, %v871_v42  ;;  %v1006_v8 = vsel %vm1004_vm4, %v7931_v51, %v7932_v57 }
 0x1cb   :  { %8014 = vrot.lane.b32.xlu0 %v8013_v6, %s8639_s23  ;;  %8019 = vrot.lane.b32.xlu1 %v8018_v28, %s8639_s23  ;;  %v8028_v3 = vpack.i.bf16 %v878_v19, %v877_v14 }
 0x1cd   :  { %v888_v10 = vpop.permute.xlu1 %887 }
 0x1ce   :  { %v897_v53 = vsel %vm893_vm3, %v886_v16, %v888_v10  ;;  %v898_v13 = vsel %vm893_vm3, %v888_v10, %v890_v61 }
 0x1cf   :  { %8024 = vrot.lane.b32.xlu0 %v8023_v18, %s8639_s23  ;;  %8029 = vrot.lane.b32.xlu1 %v8028_v3, %s8639_s23 }
 0x1d1   :  { %v892_v9 = vpop.permute.xlu1 %891 }
 0x1d2   :  { %v899_v31 = vsel %vm893_vm3, %v890_v61, %v892_v9 }
 0x1d3   :  { %996 = vrot.lane.b32.xlu0 %v896_v58, %s8639_s23  ;;  %998 = vrot.lane.b32.xlu1 %v897_v53, %s8639_s23 }
 0x1d5   :  { %v9506_v12 = vpop.permute.xlu1 %7934 }
 0x1d6   :  { %v7937_v5 = vunpack.i.h.bf16 %v9506_v12  ;;  %v7936_v35 = vunpack.i.l.bf16 %v9506_v12 }
 0x1d7   :  { %1000 = vrot.lane.b32.xlu0 %v898_v13, %s8639_s23  ;;  %1002 = vrot.lane.b32.xlu1 %v899_v31, %s8639_s23 }
 0x1d8   :  { %v1008_v17 = vsel %vm1004_vm4, %v7936_v35, %v7937_v5  ;;  %v1007_v40 = vsel %vm1004_vm4, %v7932_v57, %v7936_v35 }
 0x1d9   :  { %v9512_v56 = vpop.permute.xlu1 %7939 }
 0x1da   :  { %v7941_v35 = vunpack.i.l.bf16 %v9512_v56 }
 0x1db   :  { %903 = vperm.xlu0 %7852, %v900_v52   ;;  %1321 = vperm.xlu1 %8033, %v1306_v63  }
 0x1df   :  { %1310 = vperm.xlu0 %7852, %v1307_v0   ;;  %1964 = vperm.xlu1 %8033, %v1961_v55  }
 0x1e3   :  { %2213 = vperm.xlu0 %7852, %v7391_v25   ;;  %2202 = vperm.xlu1 %8033, %v7392_v30  }
 0x1fd   :  { %v9502_v62 = vpop.permute.xlu0 %7944 }
 0x1fe   :  { %v7947_v31 = vunpack.i.h.bf16 %v9502_v62  ;;  %v7946_v52 = vunpack.i.l.bf16 %v9502_v62  ;;  %v7942_v62 = vunpack.i.h.bf16 %v9512_v56 }
 0x201   :  { %v7955_v26 = vpop.permute.xlu0 %7954 }
 0x202   :  { %v7956_v15 = vunpack.i.l.bf16 %v7955_v26  ;;  %v7957_v27 = vunpack.i.h.bf16 %v7955_v26 }
 0x204   :  { %v1005_v1 = vsel %vm1004_vm4, %v7956_v15, %v7931_v51 }
 0x205   :  { %v9504_v60 = vpop.permute.xlu0 %7964 }
 0x206   :  { %v7967_v7 = vunpack.i.h.bf16 %v9504_v60  ;;  %v7966_v4 = vunpack.i.l.bf16 %v9504_v60 }
 0x208   :  { %v1024_v19 = vsel %vm1004_vm4, %v7966_v4, %v7967_v7 }
 0x209   :  { %v9508_v23 = vpop.permute.xlu0 %7974 }
 0x20a   :  { %v7977_v16 = vunpack.i.h.bf16 %v9508_v23  ;;  %v7976_v58 = vunpack.i.l.bf16 %v9508_v23 }
 0x20c   :  { %v1030_v30 = vsel %vm1004_vm4, %v7976_v58, %v7977_v16  ;;  %v1029_v26 = vsel %vm1004_vm4, %v7946_v52, %v7976_v58 }
 0x21a   :  { %v9514_v32 = vpop.permute.xlu0 %7984 }
 0x21b   :  { %v7987_v24 = vunpack.i.h.bf16 %v9514_v32  ;;  %v7986_v11 = vunpack.i.l.bf16 %v9514_v32  ;;  %v1010_v32 = vsel %vm1004_vm4, %v7941_v35, %v7942_v62 }
 0x21d   :  { %v9518_v36 = vpop.permute.xlu1 %990  ;;  %v1014_v39 = vsel %vm1004_vm4, %v7986_v11, %v7987_v24 }
 0x21e   :  { %v7555_v49 = vpack.c.bf16 %v1014_v39, %v1008_v17 }
 0x220   :  { %7556 = vmatprep.subr.bf16.mxu1 %v7555_v49 }
 0x221   :  { %v7950_v44 = vpop.permute.xlu1 %7949 }
 0x222   :  { %v7952_v33 = vunpack.i.h.bf16 %v7950_v44  ;;  %v7951_v38 = vunpack.i.l.bf16 %v7950_v44 }
 0x224   :  { %v1012_v2 = vsel %vm1004_vm4, %v7951_v38, %v7952_v33  ;;  %v1011_v20 = vsel %vm1004_vm4, %v7957_v27, %v7951_v38  ;;  %v1013_v46 = vsel %vm1004_vm4, %v7952_v33, %v7986_v11 }
 0x225   :  { %v7960_v48 = vpop.permute.xlu1 %7959  ;;  %v7543_v21 = vpack.c.bf16 %v1012_v2, %v1006_v8  ;;  %v7545_v50 = vpack.c.bf16 %v1011_v20, %v1005_v1  ;;  %v7557_v42 = vpack.c.bf16 %v1013_v46, %v1007_v40 }
 0x226   :  { %v7962_v6 = vunpack.i.h.bf16 %v7960_v48  ;;  %v7961_v28 = vunpack.i.l.bf16 %v7960_v48 }
 0x227   :  { %7544 = vmatprep.subr.bf16.mxu0 %v7543_v21  ;;  %7558 = vmatpush1.bf16.msra.mxu1 %v7557_v42  ;;  %v9573_v21 = vld [vmem:[%s13454_s4] sm:$0xff] }
 0x228   :  { %7546 = vmatpush1.bf16.msra.mxu0 %v7545_v50  ;;  %v1018_v34 = vsel %vm1004_vm4, %v7961_v28, %v7962_v6 }
 0x229   :  { %v7970_v22 = vpop.permute.xlu1 %7969  ;;  %v7547_v14 = vpack.c.bf16 %v1024_v19, %v1018_v34 }
 0x22a   :  { %v7972_v18 = vunpack.i.h.bf16 %v7970_v22  ;;  %v7971_v3 = vunpack.i.l.bf16 %v7970_v22 }
 0x22b   :  { %v7990_v10 = vpop.permute.xlu0 %7989  ;;  %7548 = vmatprep.subr.bf16.mxu0 %v7547_v14 }
 0x22c   :  { %v1017_v53 = vsel %vm1004_vm4, %v7971_v3, %v7961_v28  ;;  %v1023_v9 = vsel %vm1004_vm4, %v7972_v18, %v7966_v4  ;;  %v7992_v63 = vunpack.i.h.bf16 %v7990_v10  ;;  %v7991_v55 = vunpack.i.l.bf16 %v7990_v10 }
 0x22d   :  { %v9540_v61 = vpop.permute.xlu1 %7979  ;;  %v7549_v13 = vpack.c.bf16 %v1023_v9, %v1017_v53 }
 0x22e   :  { %v7982_v0 = vunpack.i.h.bf16 %v9540_v61  ;;  %v7981_v25 = vunpack.i.l.bf16 %v9540_v61  ;;  %v1016_v27 = vsel %vm1004_vm4, %v7991_v55, %v7992_v63  ;;  %v1015_v1 = vsel %vm1004_vm4, %v7987_v24, %v7991_v55 }
 0x22f   :  { %7550 = vmatpush1.bf16.msra.mxu0 %v7549_v13  ;;  %v1009_v24 = vsel %vm1004_vm4, %v7937_v5, %v7941_v35 }
 0x230   :  { %v1036_v29 = vsel %vm1004_vm4, %v7981_v25, %v7982_v0  ;;  %v1035_v60 = vsel %vm1004_vm4, %v7947_v31, %v7981_v25  ;;  %v7569_v50 = vpack.c.bf16 %v1015_v1, %v1009_v24 }
 0x231   :  { %v8000_v11 = vpop.permute.xlu0 %7999  ;;  %v7995_v17 = vpop.permute.xlu1 %7994  ;;  %v7551_v39 = vpack.c.bf16 %v1036_v29, %v1030_v30  ;;  %v7553_v49 = vpack.c.bf16 %v1035_v60, %v1029_v26 }
 0x232   :  { %v8002_v57 = vunpack.i.h.bf16 %v8000_v11  ;;  %v8001_v51 = vunpack.i.l.bf16 %v8000_v11  ;;  %v7997_v15 = vunpack.i.h.bf16 %v7995_v17  ;;  %v7996_v44 = vunpack.i.l.bf16 %v7995_v17 }
 0x233   :  { %7552 = vmatprep.subr.bf16.mxu0 %v7551_v39 }
 0x234   :  { %7554 = vmatpush1.bf16.msra.mxu0 %v7553_v49  ;;  %v1020_v33 = vsel %vm1004_vm4, %v7996_v44, %v7997_v15  ;;  %v1026_v38 = vsel %vm1004_vm4, %v8001_v51, %v8002_v57  ;;  %v1019_v8 = vsel %vm1004_vm4, %v7962_v6, %v7996_v44  ;;  %v1025_v56 = vsel %vm1004_vm4, %v7967_v7, %v8001_v51 }
 0x235   :  { %v9564_v40 = vpop.permute.xlu0 %994  ;;  %v993_v4 = vpop.permute.xlu1 %992  ;;  %v7559_v2 = vpack.c.bf16 %v1026_v38, %v1020_v33  ;;  %v7561_v20 = vpack.c.bf16 %v1025_v56, %v1019_v8  ;;  %v7567_v7 = vpack.c.bf16 %v1016_v27, %v1010_v32 }
 0x236   :  { %v1042_v46 = vsel %vm1004_vm4, %v993_v4, %v9564_v40  ;;  %v1041_v48 = vsel %vm1004_vm4, %v9518_v36, %v993_v4 }
 0x237   :  { %1105 = vmatprep.subr.mxu0 %v1042_v46  ;;  %7560 = vmatprep.subr.bf16.mxu1 %v7559_v2 }
 0x238   :  { %1106 = vmatpush1.msra.mxu0 %v1041_v48  ;;  %7562 = vmatpush1.bf16.msra.mxu1 %v7561_v20 }
 0x239   :  { %v8005_v42 = vpop.permute.xlu0 %8004  ;;  %v8010_v36 = vpop.permute.xlu1 %8009  ;;  %7361 = vmatmul.mubr.msk.f32.vlgmr.msra.gmra.mrb[0].mxu0 %vm13497_vm5, %v9573_v21  ;;  %7568 = vmatprep.subr.bf16.mxu0 %v7567_v7 }
 0x23a   :  { %v8007_v6 = vunpack.i.h.bf16 %v8005_v42  ;;  %v8006_v28 = vunpack.i.l.bf16 %v8005_v42  ;;  %v8012_v34 = vunpack.i.h.bf16 %v8010_v36  ;;  %v8011_v19 = vunpack.i.l.bf16 %v8010_v36  ;;  %7570 = vmatpush1.bf16.msra.mxu0 %v7569_v50  ;;  %1299 = vmatprep.mubr.f32.mxu0 %v13465_v59 }
 0x23c   :  { %v1021_v12 = vsel %vm1004_vm4, %v7997_v15, %v8006_v28  ;;  %v1027_v5 = vsel %vm1004_vm4, %v8002_v57, %v8011_v19  ;;  %v1022_v22 = vsel %vm1004_vm4, %v8006_v28, %v8007_v6  ;;  %v1028_v14 = vsel %vm1004_vm4, %v8011_v19, %v8012_v34 }
 0x23d   :  { %v8015_v18 = vpop.permute.xlu0 %8014  ;;  %v8020_v3 = vpop.permute.xlu1 %8019  ;;  %v7571_v10 = vpack.c.bf16 %v1028_v14, %v1022_v22  ;;  %v7573_v58 = vpack.c.bf16 %v1027_v5, %v1021_v12 }
 0x23e   :  { %v8017_v53 = vunpack.i.h.bf16 %v8015_v18  ;;  %v8016_v9 = vunpack.i.l.bf16 %v8015_v18  ;;  %v8022_v13 = vunpack.i.h.bf16 %v8020_v3  ;;  %v8021_v31 = vunpack.i.l.bf16 %v8020_v3 }
 0x23f   :  { %7572 = vmatprep.subr.bf16.mxu0 %v7571_v10 }
 0x240   :  { %7574 = vmatpush1.bf16.msra.mxu0 %v7573_v58  ;;  %v1032_v52 = vsel %vm1004_vm4, %v8016_v9, %v8017_v53  ;;  %v1038_v25 = vsel %vm1004_vm4, %v8021_v31, %v8022_v13  ;;  %v1031_v63 = vsel %vm1004_vm4, %v7977_v16, %v8016_v9  ;;  %v1037_v55 = vsel %vm1004_vm4, %v7982_v0, %v8021_v31 }
 0x241   :  { %v8025_v30 = vpop.permute.xlu0 %8024  ;;  %v8030_v29 = vpop.permute.xlu1 %8029  ;;  %v7563_v26 = vpack.c.bf16 %v1038_v25, %v1032_v52  ;;  %v7565_v60 = vpack.c.bf16 %v1037_v55, %v1031_v63 }
 0x242   :  { %v8027_v62 = vunpack.i.h.bf16 %v8025_v30  ;;  %v8026_v35 = vunpack.i.l.bf16 %v8025_v30  ;;  %v8032_v11 = vunpack.i.h.bf16 %v8030_v29  ;;  %v8031_v17 = vunpack.i.l.bf16 %v8030_v29 }
 0x243   :  { %7564 = vmatprep.subr.bf16.mxu1 %v7563_v26 }
 0x244   :  { %v1033_v39 = vsel %vm1004_vm4, %v8017_v53, %v8026_v35  ;;  %v1039_v49 = vsel %vm1004_vm4, %v8022_v13, %v8031_v17  ;;  %7566 = vmatpush1.bf16.msra.mxu1 %v7565_v60  ;;  %v1034_v23 = vsel %vm1004_vm4, %v8026_v35, %v8027_v62  ;;  %v1040_v16 = vsel %vm1004_vm4, %v8031_v17, %v8032_v11 }
 0x245   :  { %v997_v61 = vpop.permute.xlu0 %996  ;;  %v999_v0 = vpop.permute.xlu1 %998  ;;  %v7575_v57 = vpack.c.bf16 %v1040_v16, %v1034_v23  ;;  %v7577_v51 = vpack.c.bf16 %v1039_v49, %v1033_v39 }
 0x246   :  { %v1044_v15 = vsel %vm1004_vm4, %v997_v61, %v999_v0  ;;  %v1043_v44 = vsel %vm1004_vm4, %v9564_v40, %v997_v61 }
 0x247   :  { %1176 = vmatprep.subr.mxu1 %v1044_v15  ;;  %7576 = vmatprep.subr.bf16.mxu0 %v7575_v57 }
 0x248   :  { %1177 = vmatpush1.msra.mxu1 %v1043_v44  ;;  %7578 = vmatpush1.bf16.msra.mxu0 %v7577_v51 }
 0x249   :  { %v1001_v27 = vpop.permute.xlu0 %1000  ;;  %v1003_v33 = vpop.permute.xlu1 %1002  ;;  %7362 = vmatmul.mubr.msk.f32.vlgmr.msra.gmra.mrb[0].mxu1 %vm13497_vm5, %v9573_v21 }
 0x24a   :  { %v1046_v38 = vsel %vm1004_vm4, %v1001_v27, %v1003_v33  ;;  %2035 = vmatprep.mubr.f32.mxu1 %v13465_v59  ;;  %v1045_v8 = vsel %vm1004_vm4, %v999_v0, %v1001_v27 }
 0x24b   :  { %1247 = vmatprep.subr.mxu0 %v1046_v38 }
 0x24c   :  { %1248 = vmatpush1.msra.mxu0 %v1045_v8 }
 0x24d   :  { %7363 = vmatmul.mubr.msk.f32.vlgmr.msra.gmra.mrb[2].mxu0 %vm13497_vm5, %v9573_v21 }
 0x24e   :  { %3337 = vmatprep.mubr.f32.mxu0 %v13465_v59 }
 0x25a   :  { %v9609_v40 = vpop.permute.xlu0 %903  ;;  %v9614_v46 = vpop.permute.xlu1 %1321 }
 0x30c   :  { %v1159_v56 = vpop.f32.mrb[0].mxu0 }
 0x30d   :  { %v1161_v1 = vpop.f32.mrb[1].mxu0  ;;  %v9620_v32 = vadd.f32 %v1159_v56, %v9609_v40 }
 0x30e   :  { %v9627_v24 = vadd.f32 %v1161_v1, %v9609_v40 }
 0x30f   :  { %v9643_v19 = vmul.f32 %v9614_v46, %v9620_v32 }
 0x310   :  { %v9647_v5 = vmul.f32 %v9614_v46, %v9627_v24 }
 0x311   :  { %v1333_v58 = vand.u32 2139095040, %v9643_v19 }
 0x312   :  { %v1436_v9 = vand.u32 2139095040, %v9647_v5  ;;  %v13470_v26 = vand.u32 2147483647, %v9647_v5 }
 0x313   :  { %v9659_v55 = vshrl.u32 %v1333_v58, 23 }
 0x314   :  { %v9662_v60 = vshrl.u32 %v1436_v9, 23 }
 0x31c   :  { %v1230_v4 = vpop.f32.mrb[0].mxu1 }
 0x31d   :  { %v9612_v2 = vadd.f32 %v1230_v4, %v9609_v40  ;;  %v1232_v20 = vpop.f32.mrb[1].mxu1 }
 0x31e   :  { %v9617_v48 = vadd.f32 %v1232_v20, %v9609_v40 }
 0x31f   :  { %v9624_v21 = vmul.f32 %v9614_v46, %v9612_v2 }
 0x320   :  { %v9631_v7 = vmul.f32 %v9614_v46, %v9617_v48  ;;  %v1301_v50 = vpop.f32.mrb[2].mxu0 }
 0x321   :  { %v1536_v42 = vand.u32 2147483647, %v9624_v21  ;;  %v1539_v36 = vand.u32 2139095040, %v9624_v21  ;;  %v9635_v6 = vpop.f32.mrb[3].mxu0  ;;  %v9639_v34 = vadd.f32 %v1301_v50, %v9609_v40 }
 0x322   :  { %v1642_v28 = vand.u32 2139095040, %v9631_v7  ;;  %v13471_v31 = vand.u32 2147483647, %v9631_v7 }
 0x323   :  { %v1540_v12 = vshrl.u32 %v1539_v36, 23  ;;  %v1543_v22 = vand.u32 8388607, %v1536_v42  ;;  %v9653_v3 = vmul.f32 %v9614_v46, %v9639_v34 }
 0x324   :  { %v1643_v14 = vshrl.u32 %v1642_v28, 23  ;;  %v9668_v11 = vand.u32 8388607, %v13471_v31 }
 0x325   :  { %v7372_v18 = vadd.s32 4294967169, %v1540_v12  ;;  %v1544_v13 = vor.u32 8388608, %v1543_v22  ;;  %v1745_v25 = vand.u32 2139095040, %v9653_v3 }
 0x326   :  { %v7376_v10 = vadd.s32 4294967169, %v1643_v14 }
 0x327   :  { %v1546_v53 = vadd.s32 1, %v7372_v18  ;;  %v9664_v35 = vshll.u32 %v1544_v13, 8  ;;  %v1746_v23 = vshrl.u32 %v1745_v25, 23 }
 0x328   :  { %v1649_v52 = vadd.s32 1, %v7376_v10 }
 0x329   :  { %vm1547_vm7 = vcmp.gt.s32.totalorder %v1546_v53, 0 }
 0x32a   :  { %v1548_v63 = vsel %vm1547_vm7, %v1546_v53, 0  ;;  %vm1650_vm9 = vcmp.gt.s32.totalorder %v1649_v52, 0 }
 0x32b   :  { %v1550_v30 = vand.u32 31, %v1548_v63  ;;  %v1651_v29 = vsel %vm1650_vm9, %v1649_v52, 0  ;;  %v1549_v62 = vshrl.u32 %v1548_v63, 5 }
 0x32c   :  { %v9670_v39 = vshrl.u32 %v1651_v29, 5  ;;  %v1653_v49 = vand.u32 31, %v1651_v29 }
 0x32d   :  { %v1551_v17 = vsub.s32 32, %v1550_v30  ;;  %v1553_v16 = vshll.u32 %v13476_v37, %v1550_v30  ;;  %v1556_v61 = vshll.u32 %v13474_v41, %v1550_v30  ;;  %v1559_v0 = vshll.u32 %v13472_v43, %v1550_v30 }
 0x32e   :  { %v1562_v57 = vshll.u32 %v13478_v45, %v1550_v30  ;;  %v1565_v27 = vshll.u32 %v13483_v47, %v1550_v30  ;;  %vm1568_vm6 = vcmp.lt.s32.totalorder %v1549_v62, 1  ;;  %vm1569_vm10 = vcmp.lt.s32.totalorder %v1549_v62, 2 }
 0x32f   :  { %v1554_v51 = vshrl.u32 %v13474_v41, %v1551_v17  ;;  %v1557_v15 = vshrl.u32 %v13472_v43, %v1551_v17  ;;  %v1560_v44 = vshrl.u32 %v13478_v45, %v1551_v17  ;;  %v1563_v33 = vshrl.u32 %v13483_v47, %v1551_v17 }
 0x330   :  { %v1566_v38 = vshrl.u32 %v13481_v54, %v1551_v17  ;;  %v9682_v4 = vsub.s32 32, %v1653_v49  ;;  %v1552_v20 = vshrl.u32 %v13476_v37, %v1551_v17  ;;  %vm1571_vm8 = vcmp.lt.s32.totalorder %v1549_v62, 4 }
 0x331   :  { %v1555_v8 = vor.u32 %v1554_v51, %v1553_v16  ;;  %v1558_v56 = vor.u32 %v1557_v15, %v1556_v61  ;;  %v1561_v1 = vor.u32 %v1560_v44, %v1559_v0  ;;  %v1564_v50 = vor.u32 %v1563_v33, %v1562_v57 }
 0x332   :  { %v1567_v36 = vor.u32 %v1566_v38, %v1565_v27  ;;  %vm1570_vm11 = vcmp.lt.s32.totalorder %v1549_v62, 3  ;;  %v1656_v10 = vshll.u32 %v13476_v37, %v1653_v49  ;;  %v1659_v58 = vshll.u32 %v13474_v41, %v1653_v49 }
 0x333   :  { %v1573_v28 = vsel %vm1571_vm8, %v1561_v1, 2102212464  ;;  %v1576_v12 = vsel %vm1568_vm6, %v1555_v8, %v1558_v56  ;;  %v1580_v22 = vsel %vm1568_vm6, %v1558_v56, %v1561_v1  ;;  %v1577_v14 = vsel %vm1571_vm8, %v1564_v50, 920167782 }
 0x334   :  { %v1581_v18 = vsel %vm1571_vm8, %v1567_v36, 1326507024  ;;  %v1572_v53 = vsel %vm1568_vm6, %v1552_v20, %v1555_v8  ;;  %v1578_v9 = vsel %vm1570_vm11, %v1561_v1, %v1577_v14  ;;  %v1657_v52 = vshrl.u32 %v13474_v41, %v9682_v4 }
 0x335   :  { %v1582_v13 = vsel %vm1570_vm11, %v1564_v50, %v1581_v18  ;;  %v1574_v25 = vsel %vm1570_vm11, %v1558_v56, %v1573_v28  ;;  %v1579_v63 = vsel %vm1569_vm10, %v1576_v12, %v1578_v9  ;;  %v1660_v29 = vshrl.u32 %v13472_v43, %v9682_v4 }
 0x336   :  { %v1583_v30 = vsel %vm1569_vm10, %v1580_v22, %v1582_v13  ;;  %v9701_v61 = vmul.u32.u64.low %v9664_v35, %v1579_v63  ;;  %v9702_v0 = vmul.u32.u64.high %v9664_v35, %v1579_v63, %v9701_v61  ;;  %v1658_v57 = vor.u32 %v1657_v52, %v1656_v10 }
 0x337   :  { %v9697_v17 = vmul.u32.u64.low %v9664_v35, %v1583_v30  ;;  %v9698_v16 = vmul.u32.u64.high %v9664_v35, %v1583_v30, %v9697_v17  ;;  %v1661_v51 = vor.u32 %v1660_v29, %v1659_v58  ;;  %v1662_v15 = vshll.u32 %v13472_v43, %v1653_v49 }
 0x338   :  { %v1663_v44 = vshrl.u32 %v13478_v45, %v9682_v4  ;;  %v1575_v27 = vsel %vm1569_vm10, %v1572_v53, %v1574_v25  ;;  %v1665_v33 = vshll.u32 %v13478_v45, %v1653_v49  ;;  %v1666_v38 = vshrl.u32 %v13483_v47, %v9682_v4 }
 0x339   :  { %v1669_v8 = vshrl.u32 %v13481_v54, %v9682_v4  ;;  %v1647_v56 = vor.u32 8388608, %v9668_v11  ;;  %v1668_v20 = vshll.u32 %v13483_v47, %v1653_v49  ;;  %v7380_v50 = vadd.s32 4294967169, %v1746_v23 }
 0x33a   :  { %v1664_v1 = vor.u32 %v1663_v44, %v1662_v15  ;;  %vm1593_vm12 = vc.u32 %v9698_v16, %v9701_v61  ;;  %v1594_v62 = vadd.s32 1, %v9702_v0  ;;  %v1667_v36 = vor.u32 %v1666_v38, %v1665_v33 }
 0x33b   :  { %vm1671_vm13 = vcmp.lt.s32.totalorder %v9670_v39, 1  ;;  %v1591_v28 = vmul.u32 %v9664_v35, %v1575_v27  ;;  %v1670_v12 = vor.u32 %v1669_v8, %v1668_v20  ;;  %vm1674_vm0 = vcmp.lt.s32.totalorder %v9670_v39, 4 }
 0x33c   :  { %v1679_v11 = vsel %vm1671_vm13, %v1658_v57, %v1661_v51  ;;  %v1595_v22 = vsel %vm1593_vm12, %v1594_v62, %v9702_v0  ;;  %vm1673_vm1 = vcmp.lt.s32.totalorder %v9670_v39, 3  ;;  %v1680_v49 = vsel %vm1674_vm0, %v1667_v36, 920167782 }
 0x33d   :  { %v1683_v23 = vsel %vm1671_vm13, %v1661_v51, %v1664_v1  ;;  %v1596_v14 = vadd.s32 %v1595_v22, %v1591_v28  ;;  %vm1672_vm2 = vcmp.lt.s32.totalorder %v9670_v39, 2  ;;  %v1681_v35 = vsel %vm1673_vm1, %v1664_v1, %v1680_v49 }
 0x33e   :  { %v1684_v18 = vsel %vm1674_vm0, %v1670_v12, 1326507024  ;;  %v1682_v10 = vsel %vm1672_vm2, %v1679_v11, %v1681_v35  ;;  %v9739_v53 = vshll.u32 %v1647_v56, 8  ;;  %v1752_v9 = vadd.s32 1, %v7380_v50 }
 0x33f   :  { %v1685_v58 = vsel %vm1673_vm1, %v1667_v36, %v1684_v18  ;;  %v7364_v13 = vadd.s32 4294967169, %v9659_v55  ;;  %v1597_v52 = vadd.s32 536870912, %v1596_v14  ;;  %v13468_v63 = vand.u32 2147483647, %v9653_v3 }
 0x340   :  { %v1686_v25 = vsel %vm1672_vm2, %v1683_v23, %v1685_v58  ;;  %v1676_v30 = vsel %vm1674_vm0, %v1664_v1, 2102212464  ;;  %v9748_v29 = vmul.u32.u64.low %v9739_v53, %v1682_v10  ;;  %v9749_v17 = vmul.u32.u64.high %v9739_v53, %v1682_v10, %v9748_v29 }
 0x341   :  { %vm1753_vm4 = vcmp.gt.s32.totalorder %v1752_v9, 0  ;;  %v9752_v0 = vshrl.u32 %v1597_v52, 30  ;;  %v9755_v15 = vmul.u32.u64.low %v9739_v53, %v1686_v25  ;;  %v9756_v55 = vmul.u32.u64.high %v9739_v53, %v1686_v25, %v9755_v15 }
 0x342   :  { %v1754_v44 = vsel %vm1753_vm4, %v1752_v9, 0  ;;  %v7368_v27 = vadd.s32 4294967169, %v9662_v60  ;;  %v1655_v33 = vshrl.u32 %v13476_v37, %v9682_v4  ;;  %v9763_v8 = vadd.f32 %v9635_v6, %v9609_v40 }
 0x343   :  { %v1756_v38 = vand.u32 31, %v1754_v44  ;;  %v1599_v56 = vshll.u32 %v9752_v0, 30  ;;  %v1749_v1 = vand.u32 8388607, %v13468_v63  ;;  %v1677_v50 = vsel %vm1673_vm1, %v1661_v51, %v1676_v30 }
 0x344   :  { %v1675_v20 = vsel %vm1671_vm13, %v1655_v33, %v1658_v57  ;;  %v9778_v4 = vand.u32 8388607, %v13470_v26  ;;  %v13467_v40 = vand.u32 2147483647, %v9643_v19  ;;  %v9781_v6 = vadd.s32 1, %v7364_v13 }
 0x345   :  { %v9772_v60 = vsub.s32 32, %v1756_v38  ;;  %v9774_v62 = vsub.s32 %v1596_v14, %v1599_v56  ;;  %v1443_v36 = vadd.s32 1, %v7368_v27  ;;  %v9787_v57 = vmul.f32 %v9614_v46, %v9763_v8 }
 0x346   :  { %v1678_v12 = vsel %vm1672_vm2, %v1675_v20, %v1677_v50  ;;  %v1750_v11 = vor.u32 8388608, %v1749_v1  ;;  %v9794_v49 = vshrl.u32 %v1754_v44, 5  ;;  %v1759_v23 = vshll.u32 %v13476_v37, %v1756_v38 }
 0x347   :  { %v1760_v28 = vshrl.u32 %v13474_v41, %v9772_v60  ;;  %v1602_v51 = vsub.s32 0, %v9774_v62  ;;  %v1763_v22 = vshrl.u32 %v13472_v43, %v9772_v60  ;;  %v1762_v14 = vshll.u32 %v13474_v41, %v1756_v38 }
 0x348   :  { %v1766_v35 = vshrl.u32 %v13478_v45, %v9772_v60  ;;  %vm1696_vm7 = vc.u32 %v9756_v55, %v9748_v29  ;;  %v1697_v39 = vadd.s32 1, %v9749_v17  ;;  %v1765_v18 = vshll.u32 %v13472_v43, %v1756_v38 }
 0x349   :  { %v7373_v46 = vmin.u32 %v1602_v51, %v9774_v62  ;;  %vm1444_vm9 = vcmp.gt.s32.totalorder %v1443_v36, 0  ;;  %v1761_v10 = vor.u32 %v1760_v28, %v1759_v23  ;;  %v1764_v58 = vor.u32 %v1763_v22, %v1762_v14 }
 0x34a   :  { %v1768_v9 = vshll.u32 %v13478_v45, %v1756_v38  ;;  %v1769_v13 = vshrl.u32 %v13483_v47, %v9772_v60  ;;  %v1767_v25 = vor.u32 %v1766_v35, %v1765_v18  ;;  %v1771_v30 = vshll.u32 %v13483_v47, %v1756_v38 }
 0x34b   :  { %v1604_v52 = vclz %v7373_v46  ;;  %v1772_v15 = vshrl.u32 %v13481_v54, %v9772_v60  ;;  %vm1341_vm6 = vcmp.gt.s32.totalorder %v9781_v6, 0  ;;  %v1592_v44 = vadd.s32 %v9701_v61, %v9698_v16 }
 0x34c   :  { %v1694_v27 = vmul.u32 %v9739_v53, %v1678_v12  ;;  %v1770_v33 = vor.u32 %v1769_v13, %v1768_v9  ;;  %v1848_v56 = vand.u32 2139095040, %v9787_v57  ;;  %vm1774_vm10 = vcmp.lt.s32.totalorder %v9794_v49, 1 }
 0x34d   :  { %v7374_v1 = vadd.s32 4294967294, %v1604_v52  ;;  %v1773_v20 = vor.u32 %v1772_v15, %v1771_v30  ;;  %vm1777_vm8 = vcmp.lt.s32.totalorder %v9794_v49, 4  ;;  %v1698_v38 = vsel %vm1696_vm7, %v1697_v39, %v9749_v17 }
 0x34e   :  { %vm1776_vm11 = vcmp.lt.s32.totalorder %v9794_v49, 3  ;;  %v1782_v16 = vsel %vm1774_vm10, %v1761_v10, %v1764_v58  ;;  %v1783_v61 = vsel %vm1777_vm8, %v1770_v33, 920167782  ;;  %vm1775_vm13 = vcmp.lt.s32.totalorder %v9794_v49, 2 }
 0x34f   :  { %vm7375_vm12 = vcmp.lt.s32.totalorder %v7374_v1, 0  ;;  %v1784_v53 = vsel %vm1776_vm11, %v1767_v25, %v1783_v61  ;;  %v1790_v50 = vshll.u32 %v1750_v11, 8  ;;  %v1786_v17 = vsel %vm1774_vm10, %v1764_v58, %v1767_v25 }
 0x350   :  { %v1607_v28 = vsel %vm7375_vm12, 0, %v7374_v1  ;;  %v1785_v51 = vsel %vm1775_vm13, %v1782_v16, %v1784_v53  ;;  %v1849_v12 = vshrl.u32 %v1848_v56, 23  ;;  %v9834_v14 = vadd.s32 %v1698_v38, %v1694_v27 }
 0x351   :  { %v1608_v22 = vsub.s32 32, %v1607_v28  ;;  %v1612_v23 = vsub.s32 4294967266, %v1607_v28  ;;  %v1787_v35 = vsel %vm1777_vm8, %v1773_v20, 1326507024  ;;  %v1779_v46 = vsel %vm1777_vm8, %v1767_v25, 2102212464 }
 0x352   :  { %v1788_v11 = vsel %vm1776_vm11, %v1770_v33, %v1787_v35  ;;  %v9842_v39 = vmul.u32.u64.low %v1790_v50, %v1785_v51  ;;  %v9843_v18 = vmul.u32.u64.high %v1790_v50, %v1785_v51, %v9842_v39  ;;  %v1609_v9 = vshll.u32 %v9774_v62, %v1607_v28 }
 0x353   :  { %v1610_v13 = vshrl.u32 %v1592_v44, %v1608_v22  ;;  %v1613_v52 = vadd.s32 127, %v1612_v23  ;;  %v1789_v30 = vsel %vm1775_vm13, %v1786_v17, %v1788_v11  ;;  %v1758_v15 = vshrl.u32 %v13476_v37, %v9772_v60 }
 0x354   :  { %v9851_v27 = vmul.u32.u64.low %v1790_v50, %v1789_v30  ;;  %v9852_v56 = vmul.u32.u64.high %v1790_v50, %v1789_v30, %v9851_v27  ;;  %v7384_v25 = vadd.s32 4294967169, %v1849_v12  ;;  %v1445_v33 = vsel %vm1444_vm9, %v1443_v36, 0 }
 0x355   :  { %v1611_v1 = vor.u32 %v1610_v13, %v1609_v9  ;;  %v1614_v20 = vshll.u32 %v1613_v52, 23  ;;  %v9857_v38 = vand.u32 8388607, %v13467_v40  ;;  %v1700_v62 = vadd.s32 536870912, %v9834_v14 }
 0x356   :  { %v1778_v44 = vsel %vm1774_vm10, %v1758_v15, %v1761_v10  ;;  %v1780_v60 = vsel %vm1776_vm11, %v1764_v58, %v1779_v46  ;;  %v1855_v16 = vadd.s32 1, %v7384_v25  ;;  %v9867_v61 = vsel %vm1341_vm6, %v9781_v6, 0 }
 0x357   :  { %v1615_v36 = vor.u32 4788187, %v1614_v20  ;;  %v1622_v53 = vsub.s32 4, %v9752_v0  ;;  %v1800_v28 = vadd.s32 1, %v9843_v18  ;;  %v9871_v51 = vand.u32 31, %v1445_v33  ;;  %v9908_v20 = vpop.permute.xlu0 %1310 }
 0x358   :  { %vm1799_vm0 = vc.u32 %v9852_v56, %v9842_v39  ;;  %vm1856_vm1 = vcmp.gt.s32.totalorder %v1855_v16, 0  ;;  %v1441_v10 = vor.u32 8388608, %v9778_v4  ;;  %v1618_v17 = vcvt.s32.f32 %v1611_v1 }
 0x359   :  { %v1616_v58 = vand.u32 2147483647, %v1615_v36  ;;  %v1781_v12 = vsel %vm1775_vm13, %v1778_v44, %v1780_v60  ;;  %v1857_v6 = vsel %vm1856_vm1, %v1855_v16, 0  ;;  %v9879_v22 = vand.u32 31, %v9867_v61 }
 0x35a   :  { %vm1538_vm2 = vcmp.lt.s32.totalorder %v9624_v21, 0  ;;  %v9882_v23 = vshrl.u32 %v1700_v62, 30  ;;  %v1801_v4 = vsel %vm1799_vm0, %v1800_v28, %v9843_v18  ;;  %v1859_v11 = vand.u32 31, %v1857_v6 }
 0x35b   :  { %v1619_v35 = vmul.f32 %v1618_v17, %v1616_v58  ;;  %v1623_v46 = vsel %vm1538_vm2, %v1622_v53, %v9752_v0  ;;  %v9889_v9 = vsub.s32 32, %v9871_v51  ;;  %v1797_v49 = vmul.u32 %v1790_v50, %v1781_v12 }
 0x35c   :  { %v13469_v13 = vand.u32 2147483647, %v9787_v57  ;;  %vm9895_vm4 = vcmp.le.f32.partialorder %v1536_v42, 0.7853982  ;;  %v1860_v27 = vsub.s32 32, %v1859_v11  ;;  %v9899_v0 = vshll.u32 %v1441_v10, 8 }
 0x35d   :  { %v1620_v15 = vxor.u32 2147483648, %v1619_v35  ;;  %v9901_v18 = vshrl.u32 %v1445_v33, 5  ;;  %v1625_v25 = vsel %vm9895_vm4, 0, %v1623_v46  ;;  %v1702_v50 = vshll.u32 %v9882_v23, 30 }
 0x35e   :  { %v9906_v1 = vadd.s32 %v1801_v4, %v1797_v49  ;;  %v9911_v42 = vsub.s32 32, %v9879_v22  ;;  %v1450_v44 = vshll.u32 %v13476_v37, %v9871_v51  ;;  %v9919_v33 = vshll.u32 %v13474_v41, %v9871_v51 }
 0x35f   :  { %v1621_v62 = vsel %vm1538_vm2, %v1620_v15, %v1619_v35  ;;  %v9923_v60 = vadd.f32 %v9908_v20, %v9612_v2  ;;  %v1852_v36 = vand.u32 8388607, %v13469_v13  ;;  %v1451_v53 = vshrl.u32 %v13474_v41, %v9889_v9 }
 0x360   :  { %v1624_v16 = vsel %vm9895_vm4, %v9624_v21, %v1621_v62  ;;  %v9932_v28 = vand.u32 3, %v1625_v25  ;;  %v1863_v10 = vshrl.u32 %v13474_v41, %v1860_v27  ;;  %v1866_v58 = vshrl.u32 %v13472_v43, %v1860_v27 }
 0x361   :  { %8453 = vcosq.f32 %v1624_v16  ;;  %v9937_v2 = vsub.s32 %v9834_v14, %v1702_v50  ;;  %v1803_v17 = vadd.s32 536870912, %v9906_v1  ;;  %v1869_v12 = vshrl.u32 %v13478_v45, %v1860_v27 }
 0x362   :  { %8455 = vsinq.f32 %v1624_v16  ;;  %v1862_v35 = vshll.u32 %v13476_v37, %v1859_v11  ;;  %v1865_v46 = vshll.u32 %v13474_v41, %v1859_v11  ;;  %v1871_v4 = vshll.u32 %v13478_v45, %v1859_v11 }
 0x363   :  { %v1872_v49 = vshrl.u32 %v13483_v47, %v1860_v27  ;;  %v1858_v30 = vshrl.u32 %v1857_v6, 5  ;;  %v1868_v15 = vshll.u32 %v13472_v43, %v1859_v11  ;;  %v1456_v25 = vshll.u32 %v13472_v43, %v9871_v51 }
 0x364   :  { %v1459_v14 = vshll.u32 %v13478_v45, %v9871_v51  ;;  %v1864_v50 = vor.u32 %v1863_v10, %v1862_v35  ;;  %v1867_v62 = vor.u32 %v1866_v58, %v1865_v46  ;;  %v1875_v59 = vshrl.u32 %v13481_v54, %v1860_v27 }
 0x365   :  { %v1873_v16 = vor.u32 %v1872_v49, %v1871_v4  ;;  %v1705_v40 = vsub.s32 0, %v9937_v2  ;;  %v9952_v63 = vshrl.u32 %v1803_v17, 30  ;;  %v1870_v13 = vor.u32 %v1869_v12, %v1868_v15 }
 0x366   :  { %v1874_v6 = vshll.u32 %v13483_v47, %v1859_v11  ;;  %vm1630_vm7 = vcmp.lt.s32.totalorder %v9932_v28, 2  ;;  %v1853_v26 = vor.u32 8388608, %v1852_v36  ;;  %v9956_v31 = vor.u32 %v1451_v53, %v1450_v44 }
 0x367   :  { %v1454_v52 = vshrl.u32 %v13472_v43, %v9889_v9  ;;  %vm1628_vm9 = vweird.f32 %v9624_v21  ;;  %vm1631_vm6 = vcmp.eq.s32.totalorder %v9932_v28, 0  ;;  %vm1877_vm10 = vcmp.lt.s32.totalorder %v1858_v30, 1 }
 0x368   :  { %v1876_v10 = vor.u32 %v1875_v59, %v1874_v6  ;;  %vm1880_vm8 = vcmp.lt.s32.totalorder %v1858_v30, 4  ;;  %vm1634_vm11 = vcmp.eq.s32.totalorder %v9932_v28, 2  ;;  %vm1879_vm12 = vcmp.lt.s32.totalorder %v1858_v30, 3 }
 0x369   :  { %v1885_v11 = vsel %vm1877_vm10, %v1864_v50, %v1867_v62  ;;  %v1886_v58 = vsel %vm1880_vm8, %v1873_v16, 920167782  ;;  %v7377_v44 = vmin.u32 %v1705_v40, %v9937_v2  ;;  %v1805_v36 = vshll.u32 %v9952_v63, 30 }
 0x36a   :  { %v1882_v53 = vsel %vm1880_vm8, %v1870_v13, 2102212464  ;;  %v1887_v17 = vsel %vm1879_vm12, %v1870_v13, %v1886_v58  ;;  %v1861_v59 = vshrl.u32 %v13476_v37, %v1860_v27  ;;  %vm1878_vm13 = vcmp.lt.s32.totalorder %v1858_v30, 2 }
 0x36b   :  { %v8454_v12 = vpop.eup %8453  ;;  %v1893_v35 = vshll.u32 %v1853_v26, 8  ;;  %v1457_v46 = vshrl.u32 %v13478_v45, %v9889_v9  ;;  %v1888_v15 = vsel %vm1878_vm13, %v1885_v11, %v1887_v17  ;;  %v1889_v40 = vsel %vm1877_vm10, %v1867_v62, %v1870_v13 }
 0x36c   :  { %v8456_v4 = vpop.eup %8455  ;;  %v1635_v49 = vxor.u32 2147483648, %v8454_v12  ;;  %v1890_v6 = vsel %vm1880_vm8, %v1876_v10, 1326507024  ;;  %v1881_v41 = vsel %vm1877_vm10, %v1861_v59, %v1864_v50  ;;  %v1883_v58 = vsel %vm1879_vm12, %v1867_v62, %v1882_v53 }
 0x36d   :  { %v1632_v43 = vxor.u32 2147483648, %v8456_v4  ;;  %v1891_v27 = vsel %vm1879_vm12, %v1873_v16, %v1890_v6  ;;  %v1707_v37 = vclz %v7377_v44  ;;  %v9981_v45 = vsub.s32 %v9906_v1, %v1805_v36 }
 0x36e   :  { %v1636_v26 = vsel %vm1634_vm11, %v1635_v49, %v8456_v4  ;;  %v1460_v11 = vshrl.u32 %v13483_v47, %v9889_v9  ;;  %v1892_v10 = vsel %vm1878_vm13, %v1889_v40, %v1891_v27  ;;  %v1884_v16 = vsel %vm1878_vm13, %v1881_v41, %v1883_v58 }
 0x36f   :  { %v1633_v13 = vsel %vm1631_vm6, %v8454_v12, %v1632_v43  ;;  %v9988_v50 = vmul.u32.u64.low %v1893_v35, %v1888_v15  ;;  %v9989_v17 = vmul.u32.u64.high %v1893_v35, %v1888_v15, %v9988_v50  ;;  %v1455_v1 = vor.u32 %v1454_v52, %v9919_v33 }
 0x370   :  { %v1637_v62 = vsel %vm1630_vm7, %v1633_v13, %v1636_v26  ;;  %v1463_v44 = vshrl.u32 %v13481_v54, %v9889_v9  ;;  %v10000_v43 = vmul.u32.u64.low %v1893_v35, %v1892_v10  ;;  %v10001_v53 = vmul.u32.u64.high %v1893_v35, %v1892_v10, %v10000_v43 }
 0x371   :  { %v1638_v36 = vsel %vm1628_vm9, nan, %v1637_v62  ;;  %v1458_v12 = vor.u32 %v1457_v46, %v1456_v25  ;;  %v13519_v28 = vmov 683565275   ;;  %v1461_v30 = vor.u32 %v1460_v11, %v1459_v14 }
 0x372   :  { %v10004_v59 = vmul.f32 %v1638_v36, %v9908_v20  ;;  %v1449_v4 = vshrl.u32 %v13519_v28, %v9889_v9  ;;  %v1462_v41 = vshll.u32 %v13483_v47, %v9871_v51  ;;  %v7378_v52 = vadd.s32 4294967294, %v1707_v37 }
 0x373   :  { %v1808_v33 = vsub.s32 0, %v9981_v45  ;;  %v1900_v49 = vmul.u32 %v1893_v35, %v1884_v16  ;;  %v1903_v21 = vadd.s32 1, %v9989_v17  ;;  %vm1465_vm0 = vcmp.lt.s32.totalorder %v9901_v18, 1 }
 0x374   :  { %v1956_v15 = vsub.f32 %v9923_v60, %v10004_v59  ;;  %v1464_v25 = vor.u32 %v1463_v44, %v1462_v41  ;;  %vm1468_vm1 = vcmp.lt.s32.totalorder %v9901_v18, 4  ;;  %vm1902_vm2 = vc.u32 %v10001_v53, %v9988_v50  ;;  %v10278_v59 = vpop.permute.xlu1 %1964 }
 0x375   :  { %vm1466_vm4 = vcmp.lt.s32.totalorder %v9901_v18, 2  ;;  %v1470_v37 = vsel %vm1468_vm1, %v1458_v12, 2102212464  ;;  %v1473_v51 = vsel %vm1465_vm0, %v9956_v31, %v1455_v1  ;;  %v1904_v9 = vsel %vm1902_vm2, %v1903_v21, %v9989_v17 }
 0x376   :  { %vm1467_vm7 = vcmp.lt.s32.totalorder %v9901_v18, 3  ;;  %v1469_v14 = vsel %vm1465_vm0, %v1449_v4, %v9956_v31  ;;  %v1474_v35 = vsel %vm1468_vm1, %v1461_v30, 920167782  ;;  %v1905_v46 = vadd.s32 %v1904_v9, %v1900_v49 }
 0x377   :  { %v1471_v40 = vsel %vm1467_vm7, %v1455_v1, %v1470_v37  ;;  %v1475_v6 = vsel %vm1467_vm7, %v1458_v12, %v1474_v35  ;;  %v1477_v58 = vsel %vm1465_vm0, %v1455_v1, %v1458_v12  ;;  %vm7379_vm9 = vcmp.lt.s32.totalorder %v7378_v52, 0 }
 0x378   :  { %v7381_v27 = vmin.u32 %v1808_v33, %v9981_v45  ;;  %v1476_v26 = vsel %vm1466_vm4, %v1473_v51, %v1475_v6  ;;  %v1478_v11 = vsel %vm1468_vm1, %v1464_v25, 1326507024  ;;  %v1906_v13 = vadd.s32 536870912, %v1905_v46 }
 0x379   :  { %v1479_v10 = vsel %vm1467_vm7, %v1461_v30, %v1478_v11  ;;  %v10033_v31 = vmul.u32.u64.low %v9899_v0, %v1476_v26  ;;  %v10034_v17 = vmul.u32.u64.high %v9899_v0, %v1476_v26, %v10033_v31  ;;  %v10038_v62 = vshrl.u32 %v9867_v61, 5 }
 0x37a   :  { %v1472_v16 = vsel %vm1466_vm4, %v1469_v14, %v1471_v40  ;;  %v1480_v1 = vsel %vm1466_vm4, %v1477_v58, %v1479_v10  ;;  %v13520_v44 = vmov 2475754826   ;;  %v10046_v43 = vshrl.u32 %v1906_v13, 30 }
 0x37b   :  { %v1348_v36 = vshrl.u32 %v13520_v44, %v9911_v42  ;;  %v10049_v12 = vmul.u32.u64.low %v9899_v0, %v1480_v1  ;;  %v10050_v4 = vmul.u32.u64.high %v9899_v0, %v1480_v1, %v10049_v12  ;;  %v13521_v30 = vmov 2131351028  }
 0x37c   :  { %v1351_v41 = vshrl.u32 %v13521_v30, %v9911_v42  ;;  %v10054_v61 = vsel %vm7379_vm9, 0, %v7378_v52  ;;  %v1347_v33 = vshll.u32 %v13519_v28, %v9879_v22  ;;  %v1350_v18 = vshll.u32 %v13520_v44, %v9879_v22 }
 0x37d   :  { %v13522_v49 = vmov 2102212464   ;;  %v1810_v25 = vclz %v7381_v27  ;;  %v1908_v37 = vshll.u32 %v10046_v43, 30  ;;  %v1491_v51 = vadd.s32 1, %v10034_v17 }
 0x37e   :  { %v1354_v21 = vshrl.u32 %v13522_v49, %v9911_v42  ;;  %v1353_v9 = vshll.u32 %v13521_v30, %v9879_v22  ;;  %v1488_v52 = vmul.u32 %v9899_v0, %v1472_v16  ;;  %v1349_v14 = vor.u32 %v1348_v36, %v1347_v33 }
 0x37f   :  { %v1356_v35 = vshll.u32 %v13522_v49, %v9879_v22  ;;  %v1357_v40 = vshrl.u32 %v13483_v47, %v9911_v42  ;;  %v10071_v6 = vsub.s32 %v1905_v46, %v1908_v37  ;;  %vm1490_vm6 = vc.u32 %v10050_v4, %v10033_v31 }
 0x380   :  { %v1352_v58 = vor.u32 %v1351_v41, %v1350_v18  ;;  %v1355_v27 = vor.u32 %v1354_v21, %v1353_v9  ;;  %v1492_v26 = vsel %vm1490_vm6, %v1491_v51, %v10034_v17  ;;  %v1359_v0 = vshll.u32 %v13483_v47, %v9879_v22 }
 0x381   :  { %v1358_v11 = vor.u32 %v1357_v40, %v1356_v35  ;;  %v1360_v13 = vshrl.u32 %v13481_v54, %v9911_v42  ;;  %v1911_v10 = vsub.s32 0, %v10071_v6  ;;  %v1493_v16 = vadd.s32 %v1492_v26, %v1488_v52 }
 0x382   :  { %v13523_v46 = vor.u32 8388608, %v9857_v38  ;;  %v1715_v36 = vsub.s32 4294967266, %v10054_v61  ;;  %v7382_v12 = vadd.s32 4294967294, %v1810_v25  ;;  %vm1362_vm10 = vcmp.lt.s32.totalorder %v10038_v62, 1 }
 0x383   :  { %v1361_v41 = vor.u32 %v1360_v13, %v1359_v0  ;;  %v7385_v17 = vmin.u32 %v1911_v10, %v10071_v6  ;;  %v1494_v33 = vadd.s32 536870912, %v1493_v16  ;;  %vm1365_vm8 = vcmp.lt.s32.totalorder %v10038_v62, 4 }
 0x384   :  { %v1378_v1 = vshll.u32 %v13523_v46, 8  ;;  %v1370_v22 = vsel %vm1362_vm10, %v1349_v14, %v1352_v58  ;;  %vm1364_vm11 = vcmp.lt.s32.totalorder %v10038_v62, 3  ;;  %v1371_v38 = vsel %vm1365_vm8, %v1358_v11, 920167782 }
 0x385   :  { %v1374_v18 = vsel %vm1362_vm10, %v1352_v58, %v1355_v27  ;;  %v1375_v21 = vsel %vm1365_vm8, %v1361_v41, 1326507024  ;;  %v1913_v25 = vclz %v7385_v17  ;;  %v10096_v37 = vshrl.u32 %v1494_v33, 30 }
 0x386   :  { %vm1363_vm12 = vcmp.lt.s32.totalorder %v10038_v62, 2  ;;  %v1372_v51 = vsel %vm1364_vm11, %v1355_v27, %v1371_v38  ;;  %v1716_v9 = vadd.s32 127, %v1715_v36  ;;  %vm7383_vm13 = vcmp.lt.s32.totalorder %v7382_v12, 0 }
 0x387   :  { %v1373_v52 = vsel %vm1363_vm12, %v1370_v22, %v1372_v51  ;;  %v1376_v35 = vsel %vm1364_vm11, %v1358_v11, %v1375_v21  ;;  %v7386_v40 = vadd.s32 4294967294, %v1913_v25  ;;  %v1496_v26 = vshll.u32 %v10096_v37, 30 }
 0x388   :  { %v1367_v0 = vsel %vm1365_vm8, %v1355_v27, 2102212464  ;;  %v1377_v13 = vsel %vm1363_vm12, %v1374_v18, %v1376_v35  ;;  %v10113_v36 = vmul.u32.u64.low %v1378_v1, %v1373_v52  ;;  %v10114_v41 = vmul.u32.u64.high %v1378_v1, %v1373_v52, %v10113_v36 }
 0x389   :  { %v10110_v10 = vmul.u32.u64.low %v1378_v1, %v1377_v13  ;;  %v10111_v46 = vmul.u32.u64.high %v1378_v1, %v1377_v13, %v10110_v10  ;;  %vm7387_vm0 = vcmp.lt.s32.totalorder %v7386_v40, 0  ;;  %v1497_v17 = vsub.s32 %v1493_v16, %v1496_v26 }
 0x38a   :  { %v1346_v11 = vshrl.u32 %v13519_v28, %v9911_v42  ;;  %v1813_v33 = vsel %vm7383_vm13, 0, %v7382_v12  ;;  %v1916_v22 = vsel %vm7387_vm0, 0, %v7386_v40  ;;  %v1711_v38 = vsub.s32 32, %v10054_v61 }
 0x38b   :  { %v1921_v27 = vsub.s32 4294967266, %v1916_v22  ;;  %v1368_v21 = vsel %vm1364_vm11, %v1352_v58, %v1367_v0  ;;  %v1717_v25 = vshll.u32 %v1716_v9, 23  ;;  %v1499_v51 = vsub.s32 0, %v1497_v17 }
 0x38c   :  { %v1366_v18 = vsel %vm1362_vm10, %v1346_v11, %v1349_v14  ;;  %v1695_v52 = vadd.s32 %v9748_v29, %v9756_v55  ;;  %v1818_v16 = vsub.s32 4294967266, %v1813_v33  ;;  %vm1387_vm1 = vc.u32 %v10111_v46, %v10113_v36 }
 0x38d   :  { %v1922_v35 = vadd.s32 127, %v1921_v27  ;;  %v7369_v26 = vmin.u32 %v1499_v51, %v1497_v17  ;;  %v1369_v42 = vsel %vm1363_vm12, %v1366_v18, %v1368_v21  ;;  %v1718_v40 = vor.u32 4788187, %v1717_v25 }
 0x38e   :  { %v1713_v12 = vshrl.u32 %v1695_v52, %v1711_v38  ;;  %v1917_v14 = vsub.s32 32, %v1916_v22  ;;  %v1388_v58 = vadd.s32 1, %v10114_v41  ;;  %v1712_v9 = vshll.u32 %v9937_v2, %v10054_v61 }
 0x38f   :  { %v1501_v13 = vclz %v7369_v26  ;;  %v1819_v0 = vadd.s32 127, %v1818_v16  ;;  %v1385_v29 = vmul.u32 %v1378_v1, %v1369_v42  ;;  %v1901_v55 = vadd.s32 %v9988_v50, %v10001_v53 }
 0x390   :  { %v1923_v10 = vshll.u32 %v1922_v35, 23  ;;  %v1389_v11 = vsel %vm1387_vm1, %v1388_v58, %v10114_v41  ;;  %v1714_v38 = vor.u32 %v1713_v12, %v1712_v9  ;;  %v1814_v27 = vsub.s32 32, %v1813_v33 }
 0x391   :  { %v7370_v62 = vadd.s32 4294967294, %v1501_v13  ;;  %v1390_v18 = vadd.s32 %v1389_v11, %v1385_v29  ;;  %v1719_v21 = vand.u32 2147483647, %v1718_v40  ;;  %v1798_v25 = vadd.s32 %v9842_v39, %v9852_v56 }
 0x392   :  { %v1919_v51 = vshrl.u32 %v1901_v55, %v1917_v14  ;;  %v1820_v52 = vshll.u32 %v1819_v0, 23  ;;  %v1489_v2 = vadd.s32 %v10033_v31, %v10050_v4  ;;  %v1918_v50 = vshll.u32 %v10071_v6, %v1916_v22 }
 0x393   :  { %vm7371_vm2 = vcmp.lt.s32.totalorder %v7370_v62, 0  ;;  %v1391_v1 = vadd.s32 536870912, %v1390_v18  ;;  %v1924_v53 = vor.u32 4788187, %v1923_v10  ;;  %v1721_v35 = vcvt.s32.f32 %v1714_v38 }
 0x394   :  { %v1504_v61 = vsel %vm7371_vm2, 0, %v7370_v62  ;;  %v1816_v26 = vshrl.u32 %v1798_v25, %v1814_v27  ;;  %v1920_v12 = vor.u32 %v1919_v51, %v1918_v50  ;;  %v1815_v13 = vshll.u32 %v9981_v45, %v1813_v33 }
 0x395   :  { %v1505_v16 = vsub.s32 32, %v1504_v61  ;;  %v1509_v41 = vsub.s32 4294967266, %v1504_v61  ;;  %v10141_v42 = vshrl.u32 %v1391_v1, 30  ;;  %v1506_v40 = vshll.u32 %v1497_v17, %v1504_v61 }
 0x396   :  { %v1722_v14 = vmul.f32 %v1721_v35, %v1719_v21  ;;  %v1821_v4 = vor.u32 4788187, %v1820_v52  ;;  %v1925_v58 = vand.u32 2147483647, %v1924_v53  ;;  %v1817_v0 = vor.u32 %v1816_v26, %v1815_v13 }
 0x397   :  { %v1507_v39 = vshrl.u32 %v1489_v2, %v1505_v16  ;;  %v1510_v56 = vadd.s32 127, %v1509_v41  ;;  %v1393_v31 = vshll.u32 %v10141_v42, 30  ;;  %v1927_v29 = vcvt.s32.f32 %v1920_v12 }
 0x398   :  { %v1723_v10 = vxor.u32 2147483648, %v1722_v14  ;;  %v1822_v11 = vand.u32 2147483647, %v1821_v4  ;;  %v1824_v21 = vcvt.s32.f32 %v1817_v0  ;;  %vm1641_vm4 = vcmp.lt.s32.totalorder %v9631_v7, 0 }
 0x399   :  { %v1508_v9 = vor.u32 %v1507_v39, %v1506_v40  ;;  %v1511_v6 = vshll.u32 %v1510_v56, 23  ;;  %v1394_v22 = vsub.s32 %v1390_v18, %v1393_v31  ;;  %v1928_v38 = vmul.f32 %v1927_v29, %v1925_v58 }
 0x39a   :  { %v1724_v33 = vsel %vm1641_vm4, %v1723_v10, %v1722_v14  ;;  %v1825_v52 = vmul.f32 %v1824_v21, %v1822_v11  ;;  %vm1435_vm7 = vcmp.lt.s32.totalorder %v9647_v5, 0  ;;  %v13524_v1 = vand.u32 2147483647, %v9631_v7 }
 0x39b   :  { %v1512_v55 = vor.u32 4788187, %v1511_v6  ;;  %v1396_v62 = vsub.s32 0, %v1394_v22  ;;  %v1515_v27 = vcvt.s32.f32 %v1508_v9  ;;  %v1929_v18 = vxor.u32 2147483648, %v1928_v38 }
 0x39c   :  { %vm10151_vm9 = vcmp.le.f32.partialorder %v13524_v1, 0.7853982  ;;  %v13527_v53 = vand.u32 2147483647, %v9647_v5  ;;  %v1519_v35 = vsub.s32 4, %v10096_v37  ;;  %vm1847_vm10 = vcmp.lt.s32.totalorder %v9787_v57, 0 }
 0x39d   :  { %v1513_v17 = vand.u32 2147483647, %v1512_v55  ;;  %v7365_v25 = vmin.u32 %v1396_v62, %v1394_v22  ;;  %v1727_v26 = vsel %vm10151_vm9, %v9631_v7, %v1724_v33  ;;  %v1826_v40 = vxor.u32 2147483648, %v1825_v52 }
 0x39e   :  { %vm10157_vm6 = vcmp.le.f32.partialorder %v13527_v53, 0.7853982  ;;  %v1930_v39 = vsel %vm1847_vm10, %v1929_v18, %v1928_v38  ;;  %v1386_v14 = vadd.s32 %v10113_v36, %v10111_v46  ;;  %v13530_v4 = vand.u32 2147483647, %v9787_v57 }
 0x39f   :  { %v1516_v51 = vmul.f32 %v1515_v27, %v1513_v17  ;;  %v1398_v45 = vclz %v7365_v25  ;;  %v1520_v9 = vsel %vm1435_vm7, %v1519_v35, %v10096_v37  ;;  %vm1744_vm12 = vcmp.lt.s32.totalorder %v9653_v3, 0 }
 0x3a0   :  { %vm10177_vm11 = vcmp.le.f32.partialorder %v13530_v4, 0.7853982  ;;  %v1827_v36 = vsel %vm1744_vm12, %v1826_v40, %v1825_v52  ;;  %v1522_v55 = vsel %vm10157_vm6, 0, %v1520_v9  ;;  %v13533_v37 = vand.u32 2147483647, %v9653_v3 }
 0x3a1   :  { %v1517_v2 = vxor.u32 2147483648, %v1516_v51  ;;  %v7366_v61 = vadd.s32 4294967294, %v1398_v45  ;;  %v1933_v6 = vsel %vm10177_vm11, %v9787_v57, %v1930_v39  ;;  %v1725_v38 = vsub.s32 4, %v9882_v23 }
 0x3a2   :  { %vm10194_vm13 = vcmp.le.f32.partialorder %v13533_v37, 0.7853982  ;;  %v1526_v27 = vand.u32 3, %v1522_v55  ;;  %vm1332_vm0 = vcmp.lt.s32.totalorder %v9643_v19, 0  ;;  %v1828_v1 = vsub.s32 4, %v9952_v63 }
 0x3a3   :  { %v1518_v41 = vsel %vm1435_vm7, %v1517_v2, %v1516_v51  ;;  %vm7367_vm8 = vcmp.lt.s32.totalorder %v7366_v61, 0  ;;  %v1830_v17 = vsel %vm10194_vm13, %v9653_v3, %v1827_v36  ;;  %v1931_v51 = vsub.s32 4, %v10046_v43 }
 0x3a4   :  { %v1521_v12 = vsel %vm10157_vm6, %v9647_v5, %v1518_v41  ;;  %v1401_v56 = vsel %vm7367_vm8, 0, %v7366_v61  ;;  %v1726_v2 = vsel %vm1641_vm4, %v1725_v38, %v9882_v23  ;;  %vm1531_vm1 = vcmp.eq.s32.totalorder %v1526_v27, 2 }
 0x3a5   :  { %8457 = vcosq.f32 %v1521_v12  ;;  %v1402_v13 = vsub.s32 32, %v1401_v56  ;;  %v1406_v31 = vsub.s32 4294967266, %v1401_v56  ;;  %v1403_v0 = vshll.u32 %v1394_v22, %v1401_v56 }
 0x3a6   :  { %8459 = vsinq.f32 %v1521_v12  ;;  %vm1528_vm2 = vcmp.eq.s32.totalorder %v1526_v27, 0  ;;  %v1932_v35 = vsel %vm1847_vm10, %v1931_v51, %v10046_v43  ;;  %vm1525_vm7 = vweird.f32 %v9647_v5 }
 0x3a7   :  { %8461 = vcosq.f32 %v1727_v26  ;;  %v1404_v29 = vshrl.u32 %v1386_v14, %v1402_v13  ;;  %v1407_v46 = vadd.s32 127, %v1406_v31  ;;  %vm1527_vm6 = vcmp.lt.s32.totalorder %v1526_v27, 2 }
 0x3a8   :  { %8463 = vsinq.f32 %v1727_v26  ;;  %v1728_v23 = vsel %vm10151_vm9, 0, %v1726_v2  ;;  %v13536_v39 = vand.u32 2147483647, %v9643_v19  ;;  %v1416_v43 = vsub.s32 4, %v10141_v42 }
 0x3a9   :  { %v1405_v10 = vor.u32 %v1404_v29, %v1403_v0  ;;  %v1408_v62 = vshll.u32 %v1407_v46, 23  ;;  %8465 = vcosq.f32 %v1933_v6  ;;  %v1314_v5 = vadd.f32 %v9908_v20, %v9627_v24 }
 0x3aa   :  { %8467 = vsinq.f32 %v1933_v6  ;;  %vm10216_vm4 = vcmp.le.f32.partialorder %v13536_v39, 0.7853982  ;;  %v1934_v4 = vsel %vm10177_vm11, 0, %v1932_v35  ;;  %v1829_v6 = vsel %vm1744_vm12, %v1828_v1, %v9952_v63 }
 0x3ab   :  { %v1409_v22 = vor.u32 4788187, %v1408_v62  ;;  %v1412_v21 = vcvt.s32.f32 %v1405_v10  ;;  %8469 = vcosq.f32 %v1830_v17  ;;  %v1732_v29 = vand.u32 3, %v1728_v23 }
 0x3ac   :  { %8471 = vsinq.f32 %v1830_v17  ;;  %v1417_v55 = vsel %vm1332_vm0, %v1416_v43, %v10141_v42  ;;  %v1938_v10 = vand.u32 3, %v1934_v4  ;;  %v1831_v58 = vsel %vm10194_vm13, 0, %v1829_v6 }
 0x3ad   :  { %v1410_v25 = vand.u32 2147483647, %v1409_v22  ;;  %vm1734_vm9 = vcmp.eq.s32.totalorder %v1732_v29, 0  ;;  %vm1737_vm10 = vcmp.eq.s32.totalorder %v1732_v29, 2  ;;  %v1419_v38 = vsel %vm10216_vm4, 0, %v1417_v55  ;;  %v8595_v55 = vld [vmem:[%s13450_s0] sm:$0xff] }
 0x3ae   :  { %vm1940_vm8 = vcmp.eq.s32.totalorder %v1938_v10, 0  ;;  %vm1943_vm11 = vcmp.eq.s32.totalorder %v1938_v10, 2  ;;  %vm1733_vm12 = vcmp.lt.s32.totalorder %v1732_v29, 2  ;;  %vm1939_vm13 = vcmp.lt.s32.totalorder %v1938_v10, 2 }
 0x3af   :  { %v8458_v45 = vpop.eup %8457  ;;  %v1413_v18 = vmul.f32 %v1412_v21, %v1410_v25  ;;  %v1835_v25 = vand.u32 3, %v1831_v58  ;;  %v1316_v39 = vadd.f32 %v9908_v20, %v9617_v48  ;;  %v1960_v48 = vld [vmem:[%s13458_s8] sm:$0xff] }
 0x3b0   :  { %v8460_v33 = vpop.eup %8459  ;;  %v1532_v52 = vxor.u32 2147483648, %v8458_v45 }
 0x3b1   :  { %v8462_v61 = vpop.eup %8461  ;;  %v1529_v53 = vxor.u32 2147483648, %v8460_v33  ;;  %v1414_v41 = vxor.u32 2147483648, %v1413_v18 }
 0x3b2   :  { %v1533_v16 = vsel %vm1531_vm1, %v1532_v52, %v8460_v33  ;;  %v8464_v26 = vpop.eup %8463  ;;  %v1738_v24 = vxor.u32 2147483648, %v8462_v61  ;;  %vm1731_vm1 = vweird.f32 %v9631_v7 }
 0x3b3   :  { %v1530_v12 = vsel %vm1528_vm2, %v8458_v45, %v1529_v53  ;;  %v1415_v14 = vsel %vm1332_vm0, %v1414_v41, %v1413_v18  ;;  %v8466_v13 = vpop.eup %8465  ;;  %v1735_v46 = vxor.u32 2147483648, %v8464_v26  ;;  %v1423_v45 = vand.u32 3, %v1419_v38 }
 0x3b4   :  { %v1534_v40 = vsel %vm1527_vm6, %v1530_v12, %v1533_v16  ;;  %v1418_v50 = vsel %vm10216_vm4, %v9643_v19, %v1415_v14  ;;  %v8468_v9 = vpop.eup %8467  ;;  %v1944_v37 = vxor.u32 2147483648, %v8466_v13  ;;  %v1739_v27 = vsel %vm1737_vm10, %v1738_v24, %v8464_v26 }
 0x3b5   :  { %v1535_v31 = vsel %vm1525_vm7, nan, %v1534_v40  ;;  %8473 = vcosq.f32 %v1418_v50  ;;  %v1941_v62 = vxor.u32 2147483648, %v8468_v9  ;;  %v8470_v22 = vpop.eup %8469  ;;  %v1736_v17 = vsel %vm1734_vm9, %v8462_v61, %v1735_v46 }
 0x3b6   :  { %v1949_v0 = vmul.f32 %v1535_v31, %v9908_v20  ;;  %8475 = vsinq.f32 %v1418_v50  ;;  %v8472_v63 = vpop.eup %8471  ;;  %v1841_v42 = vxor.u32 2147483648, %v8470_v22  ;;  %v1945_v11 = vsel %vm1943_vm11, %v1944_v37, %v8468_v9 }
 0x3b7   :  { %v1942_v21 = vsel %vm1940_vm8, %v8466_v13, %v1941_v62  ;;  %v1838_v51 = vxor.u32 2147483648, %v8472_v63  ;;  %v1740_v33 = vsel %vm1733_vm12, %v1736_v17, %v1739_v27  ;;  %vm1840_vm0 = vcmp.eq.s32.totalorder %v1835_v25, 2  ;;  %v8596_v62 = vld [vmem:[%s13450_s0 + $0x8] sm:$0xff]  ;;  %v10299_v27 = vpop.permute.xlu0 %2213 }
 0x3b8   :  { %v1955_v36 = vsub.f32 %v1314_v5, %v1949_v0  ;;  %v1946_v18 = vsel %vm1939_vm13, %v1942_v21, %v1945_v11  ;;  %vm1837_vm2 = vcmp.eq.s32.totalorder %v1835_v25, 0  ;;  %v1842_v61 = vsel %vm1840_vm0, %v1841_v42, %v8472_v63  ;;  %v8597_v11 = vld [vmem:[%s13450_s0 + $0x10] sm:$0xff] }
 0x3b9   :  { %v1741_v53 = vsel %vm1731_vm1, nan, %v1740_v33  ;;  %v1839_v16 = vsel %vm1837_vm2, %v8470_v22, %v1838_v51  ;;  %vm1428_vm7 = vcmp.eq.s32.totalorder %v1423_v45, 2  ;;  %vm1937_vm6 = vweird.f32 %v9787_v57 }
 0x3ba   :  { %1971 = vmatprep.subr.mxu1 %v1955_v36  ;;  %vm1425_vm4 = vcmp.eq.s32.totalorder %v1423_v45, 0  ;;  %v1947_v26 = vsel %vm1937_vm6, nan, %v1946_v18  ;;  %vm1836_vm9 = vcmp.lt.s32.totalorder %v1835_v25, 2  ;;  %vm1424_vm10 = vcmp.lt.s32.totalorder %v1423_v45, 2 }
 0x3bb   :  { %v1951_v23 = vmul.f32 %v1741_v53, %v9908_v20  ;;  %v1843_v7 = vsel %vm1836_vm9, %v1839_v16, %v1842_v61  ;;  %vm1422_vm8 = vweird.f32 %v9643_v19  ;;  %v1953_v14 = vmul.f32 %v1947_v26, %v9908_v20 }
 0x3bc   :  { %v1313_v57 = vadd.f32 %v9908_v20, %v9620_v32  ;;  %vm1834_vm11 = vweird.f32 %v9653_v3  ;;  %v1318_v5 = vadd.f32 %v9908_v20, %v9763_v8  ;;  %vm1967_vm12 = vcmask 64512  }
 0x3bd   :  { %v1844_v13 = vsel %vm1834_vm11, nan, %v1843_v7  ;;  %v1957_v31 = vsub.f32 %v1316_v39, %v1951_v23  ;;  %v1317_v32 = vadd.f32 %v9908_v20, %v9639_v34  ;;  %v13539_v3 = vmov 0.0  }
 0x3be   :  { %v1959_v50 = vsub.f32 %v1318_v5, %v1953_v14  ;;  %v1952_v4 = vmul.f32 %v1844_v13, %v9908_v20  ;;  %v58_v9 = vlaneseq }
 0x3bf   :  { %v8474_v52 = vpop.eup %8473 }
 0x3c0   :  { %v8476_v2 = vpop.eup %8475  ;;  %v1429_v1 = vxor.u32 2147483648, %v8474_v52  ;;  %v1958_v8 = vsub.f32 %v1317_v32, %v1952_v4  ;;  %v10269_v6 = vshrl.u32 %v58_v9, 7 }
 0x3c1   :  { %v1426_v41 = vxor.u32 2147483648, %v8476_v2 }
 0x3c2   :  { %v1430_v35 = vsel %vm1428_vm7, %v1429_v1, %v8476_v2  ;;  %v60_v34 = vsub.s32 0, %v10269_v6  ;;  %v64_v60 = vsub.s32 1, %v10269_v6  ;;  %v68_v58 = vsub.s32 2, %v10269_v6 }
 0x3c3   :  { %v1427_v12 = vsel %vm1425_vm4, %v8474_v52, %v1426_v41  ;;  %v72_v41 = vsub.s32 3, %v10269_v6 }
 0x3c4   :  { %v1431_v40 = vsel %vm1424_vm10, %v1427_v12, %v1430_v35 }
 0x3c5   :  { %v1432_v56 = vsel %vm1422_vm8, nan, %v1431_v40 }
 0x3c6   :  { %v1948_v43 = vmul.f32 %v1432_v56, %v9908_v20  ;;  %v10275_v20 = vld [vmem:[%s13451_s1] sm:$0x3f]  ;;  %s8648_s1 = smov 83  }
 0x3c7   :  { %v10281_v0 = vrot.slane %v10275_v20, %v60_v34  ;;  %v10285_v24 = vrot.slane %v10275_v20, %v64_v60  ;;  %v10309_v21 = vrot.slane %v10275_v20, %v68_v58  ;;  %v10340_v14 = vrot.slane %v10275_v20, %v72_v41 }
 0x3c8   :  { %v1954_v19 = vsub.f32 %v1313_v57, %v1948_v43  ;;  %v8598_v57 = vld [vmem:[%s13450_s0 + $0x18] sm:$0xff] }
 0x3c9   :  { %13540 = vst [vmem:[#allocation6_spill] sm:$0xff] %v10340_v14 }
 0x3ca   :  { %1972 = vmatpush1.msra.mxu1 %v1954_v19 }
 0x3cb   :  { %7388 = vmatmul.mubr.msk.f32.vlgmr.msra.gmra.mrb[2].mxu1 %vm1967_vm12, %v1960_v48  ;;  %2042 = vmatprep.subr.mxu1 %v1957_v31 }
 0x3cc   :  { %2043 = vmatpush1.msra.mxu1 %v1956_v15  ;;  %2106 = vmatprep.mubr.f32.mxu1 %v13539_v3 }
 0x3cd   :  { %2113 = vmatprep.subr.mxu1 %v1959_v50 }
 0x3cf   :  { %7389 = vmatmul.mubr.msk.f32.vlgmr.msra.gmra.mrb[4].mxu1 %vm1967_vm12, %v1960_v48 }
 0x3d0   :  { %2114 = vmatpush1.msra.mxu1 %v1958_v8  ;;  %2177 = vmatprep.mubr.f32.mxu1 %v13539_v3 }
 0x3d3   :  { %7390 = vmatmul.mubr.msk.f32.vlgmr.msra.gmra.mrb[6].mxu1 %vm1967_vm12, %v1960_v48 }
 0x3d4   :  { %3266 = vmatprep.mubr.f32.mxu1 %v13539_v3 }
 0x49e   :  { %v2037_v15 = vpop.f32.mrb[2].mxu1 }
 0x49f   :  { %v2038_v29 = vadd.f32 %v2037_v15, %v10278_v59  ;;  %v2039_v46 = vpop.f32.mrb[3].mxu1 }
 0x4a0   :  { %v2040_v36 = vadd.f32 %v2039_v46, %v10278_v59 }
 0x4a1   :  { %v2184_v10 = vadd.f32 %v8595_v55, %v2038_v29 }
 0x4a2   :  { %v2185_v37 = vadd.f32 %v8596_v62, %v2040_v36  ;;  %v2108_v22 = vpop.f32.mrb[4].mxu1 }
 0x4a3   :  { %v10296_v63 = vmul.f32 %v2184_v10, %v10281_v0  ;;  %v2109_v38 = vadd.f32 %v2108_v22, %v10278_v59  ;;  %v2110_v17 = vpop.f32.mrb[5].mxu1 }
 0x4a4   :  { %v10302_v25 = vmul.f32 %v2185_v37, %v10285_v24  ;;  %v2111_v35 = vadd.f32 %v2110_v17, %v10278_v59 }
 0x4a5   :  { %v10306_v42 = vmul.f32 %v10299_v27, %v10296_v63  ;;  %v2186_v51 = vadd.f32 %v8597_v11, %v2109_v38 }
 0x4a6   :  { %v10316_v45 = vmul.f32 %v10299_v27, %v10302_v25  ;;  %v10318_v33 = vpop.f32.mrb[6].mxu1  ;;  %v2187_v43 = vadd.f32 %v8598_v57, %v2111_v35 }
 0x4a7   :  { %v2222_v52 = vand.u32 2147483647, %v10306_v42  ;;  %v2225_v18 = vand.u32 2139095040, %v10306_v42  ;;  %v10322_v2 = vpop.f32.mrb[7].mxu1  ;;  %v10327_v16 = vmul.f32 %v2186_v51, %v10309_v21 }
 0x4a8   :  { %v2325_v61 = vand.u32 2147483647, %v10316_v45  ;;  %v2328_v1 = vand.u32 2139095040, %v10316_v45  ;;  %v10347_v9 = vmul.f32 %v2187_v43, %v10340_v14 }
 0x4a9   :  { %v2226_v53 = vshrl.u32 %v2225_v18, 23  ;;  %v2229_v26 = vand.u32 8388607, %v2222_v52  ;;  %v10337_v40 = vmul.f32 %v10299_v27, %v10327_v16 }
 0x4aa   :  { %v2329_v12 = vshrl.u32 %v2328_v1, 23  ;;  %v2332_v23 = vand.u32 8388607, %v2325_v61 }
 0x4ab   :  { %v7393_v7 = vadd.s32 4294967169, %v2226_v53  ;;  %v2230_v13 = vor.u32 8388608, %v2229_v26  ;;  %v2431_v19 = vand.u32 2139095040, %v10337_v40  ;;  %v13480_v29 = vand.u32 2147483647, %v10337_v40 }
 0x4ac   :  { %v7397_v39 = vadd.s32 4294967169, %v2329_v12  ;;  %v2333_v5 = vor.u32 8388608, %v2332_v23 }
 0x4ad   :  { %v2232_v56 = vadd.s32 1, %v7393_v7  ;;  %v2432_v50 = vshrl.u32 %v2431_v19, 23  ;;  %v10349_v34 = vshll.u32 %v2230_v13, 8 }
 0x4ae   :  { %v2335_v31 = vadd.s32 1, %v7397_v39  ;;  %v10353_v15 = vshll.u32 %v2333_v5, 8 }
 0x4af   :  { %vm2233_vm13 = vcmp.gt.s32.totalorder %v2232_v56, 0  ;;  %v10357_v10 = vadd.s32 4294967169, %v2432_v50 }
 0x4b0   :  { %v2234_v48 = vsel %vm2233_vm13, %v2232_v56, 0  ;;  %vm2336_vm0 = vcmp.gt.s32.totalorder %v2335_v31, 0 }
 0x4b1   :  { %v2235_v4 = vshrl.u32 %v2234_v48, 5  ;;  %v2236_v32 = vand.u32 31, %v2234_v48  ;;  %v2337_v8 = vsel %vm2336_vm0, %v2335_v31, 0 }
 0x4b2   :  { %v10351_v60 = vshrl.u32 %v2337_v8, 5  ;;  %v2339_v55 = vand.u32 31, %v2337_v8 }
 0x4b3   :  { %v2237_v46 = vsub.s32 32, %v2236_v32  ;;  %v2239_v36 = vshll.u32 %v13519_v28, %v2236_v32  ;;  %v2242_v58 = vshll.u32 %v13520_v44, %v2236_v32  ;;  %v2245_v62 = vshll.u32 %v13521_v30, %v2236_v32 }
 0x4b4   :  { %v2248_v37 = vshll.u32 %v13522_v49, %v2236_v32  ;;  %v2251_v22 = vshll.u32 %v13483_v47, %v2236_v32  ;;  %vm2254_vm1 = vcmp.lt.s32.totalorder %v2235_v4, 1  ;;  %vm2255_vm2 = vcmp.lt.s32.totalorder %v2235_v4, 2 }
 0x4b5   :  { %v2240_v38 = vshrl.u32 %v13520_v44, %v2237_v46  ;;  %v2243_v17 = vshrl.u32 %v13521_v30, %v2237_v46  ;;  %v2246_v11 = vshrl.u32 %v13522_v49, %v2237_v46  ;;  %v2238_v51 = vshrl.u32 %v13519_v28, %v2237_v46 }
 0x4b6   :  { %v2249_v18 = vshrl.u32 %v13483_v47, %v2237_v46  ;;  %v2252_v1 = vshrl.u32 %v13481_v54, %v2237_v46  ;;  %v2340_v26 = vsub.s32 32, %v2339_v55  ;;  %vm2256_vm7 = vcmp.lt.s32.totalorder %v2235_v4, 3 }
 0x4b7   :  { %v2241_v53 = vor.u32 %v2240_v38, %v2239_v36  ;;  %v2244_v41 = vor.u32 %v2243_v17, %v2242_v58  ;;  %v2247_v35 = vor.u32 %v2246_v11, %v2245_v62  ;;  %vm2257_vm6 = vcmp.lt.s32.totalorder %v2235_v4, 4 }
 0x4b8   :  { %v2250_v12 = vor.u32 %v2249_v18, %v2248_v37  ;;  %v2253_v23 = vor.u32 %v2252_v1, %v2251_v22  ;;  %v2342_v31 = vshll.u32 %v13519_v28, %v2339_v55  ;;  %v2343_v50 = vshrl.u32 %v13520_v44, %v2340_v26 }
 0x4b9   :  { %v2258_v7 = vsel %vm2254_vm1, %v2238_v51, %v2241_v53  ;;  %v2259_v39 = vsel %vm2257_vm6, %v2247_v35, 2102212464  ;;  %v2262_v56 = vsel %vm2254_vm1, %v2241_v53, %v2244_v41  ;;  %v2266_v57 = vsel %vm2254_vm1, %v2244_v41, %v2247_v35 }
 0x4ba   :  { %v2260_v43 = vsel %vm2256_vm7, %v2244_v41, %v2259_v39  ;;  %v2263_v13 = vsel %vm2257_vm6, %v2250_v12, 920167782  ;;  %v2267_v5 = vsel %vm2257_vm6, %v2253_v23, 1326507024  ;;  %v2345_v32 = vshll.u32 %v13520_v44, %v2339_v55 }
 0x4bb   :  { %v2264_v19 = vsel %vm2256_vm7, %v2247_v35, %v2263_v13  ;;  %v2268_v48 = vsel %vm2256_vm7, %v2250_v12, %v2267_v5  ;;  %v2261_v8 = vsel %vm2255_vm2, %v2258_v7, %v2260_v43  ;;  %v2346_v58 = vshrl.u32 %v13521_v30, %v2340_v26 }
 0x4bc   :  { %v2265_v46 = vsel %vm2255_vm2, %v2262_v56, %v2264_v19  ;;  %v2269_v36 = vsel %vm2255_vm2, %v2266_v57, %v2268_v48  ;;  %v2344_v17 = vor.u32 %v2343_v50, %v2342_v31  ;;  %v2348_v51 = vshll.u32 %v13521_v30, %v2339_v55 }
 0x4bd   :  { %v10380_v62 = vmul.u32.u64.low %v10349_v34, %v2269_v36  ;;  %v10381_v37 = vmul.u32.u64.high %v10349_v34, %v2269_v36, %v10380_v62  ;;  %v10384_v22 = vmul.u32.u64.low %v10349_v34, %v2265_v46  ;;  %v10385_v38 = vmul.u32.u64.high %v10349_v34, %v2265_v46, %v10384_v22 }
 0x4be   :  { %v2347_v11 = vor.u32 %v2346_v58, %v2345_v32  ;;  %v2349_v18 = vshrl.u32 %v13522_v49, %v2340_v26  ;;  %v2341_v1 = vshrl.u32 %v13519_v28, %v2340_v26  ;;  %v2351_v4 = vshll.u32 %v13522_v49, %v2339_v55 }
 0x4bf   :  { %v2352_v53 = vshrl.u32 %v13483_v47, %v2340_v26  ;;  %v2355_v41 = vshrl.u32 %v13481_v54, %v2340_v26  ;;  %v2277_v35 = vmul.u32 %v10349_v34, %v2261_v8  ;;  %v2354_v23 = vshll.u32 %v13483_v47, %v2339_v55 }
 0x4c0   :  { %v2350_v12 = vor.u32 %v2349_v18, %v2348_v51  ;;  %vm2357_vm4 = vcmp.lt.s32.totalorder %v10351_v60, 1  ;;  %vm2279_vm9 = vc.u32 %v10381_v37, %v10384_v22  ;;  %v2280_v7 = vadd.s32 1, %v10385_v38 }
 0x4c1   :  { %v2353_v39 = vor.u32 %v2352_v53, %v2351_v4  ;;  %vm2358_vm10 = vcmp.lt.s32.totalorder %v10351_v60, 2  ;;  %v2356_v56 = vor.u32 %v2355_v41, %v2354_v23  ;;  %vm2359_vm8 = vcmp.lt.s32.totalorder %v10351_v60, 3 }
 0x4c2   :  { %vm2360_vm11 = vcmp.lt.s32.totalorder %v10351_v60, 4  ;;  %v2365_v26 = vsel %vm2357_vm4, %v2344_v17, %v2347_v11  ;;  %v2281_v34 = vsel %vm2279_vm9, %v2280_v7, %v10385_v38  ;;  %v2369_v55 = vsel %vm2357_vm4, %v2347_v11, %v2350_v12 }
 0x4c3   :  { %v2362_v57 = vsel %vm2360_vm11, %v2350_v12, 2102212464  ;;  %v2366_v43 = vsel %vm2360_vm11, %v2353_v39, 920167782  ;;  %v2282_v13 = vadd.s32 %v2281_v34, %v2277_v35  ;;  %v2361_v5 = vsel %vm2357_vm4, %v2341_v1, %v2344_v17 }
 0x4c4   :  { %v2367_v31 = vsel %vm2359_vm8, %v2350_v12, %v2366_v43  ;;  %v2370_v19 = vsel %vm2360_vm11, %v2356_v56, 1326507024  ;;  %v2363_v48 = vsel %vm2359_vm8, %v2347_v11, %v2362_v57  ;;  %v2438_v8 = vadd.s32 1, %v10357_v10 }
 0x4c5   :  { %v2368_v50 = vsel %vm2358_vm10, %v2365_v26, %v2367_v31  ;;  %v2371_v32 = vsel %vm2359_vm8, %v2353_v39, %v2370_v19  ;;  %v2283_v46 = vadd.s32 536870912, %v2282_v13  ;;  %v2435_v11 = vand.u32 8388607, %v13480_v29 }
 0x4c6   :  { %v2372_v36 = vsel %vm2358_vm10, %v2369_v55, %v2371_v32  ;;  %v10408_v58 = vmul.u32.u64.low %v10353_v15, %v2368_v50  ;;  %v10409_v62 = vmul.u32.u64.high %v10353_v15, %v2368_v50, %v10408_v58  ;;  %vm2439_vm13 = vcmp.gt.s32.totalorder %v2438_v8, 0 }
 0x4c7   :  { %v10413_v38 = vmul.u32.u64.low %v10353_v15, %v2372_v36  ;;  %v10414_v17 = vmul.u32.u64.high %v10353_v15, %v2372_v36, %v10413_v38  ;;  %v2284_v51 = vshrl.u32 %v2283_v46, 30  ;;  %v2364_v10 = vsel %vm2358_vm10, %v2361_v5, %v2363_v48 }
 0x4c8   :  { %v2440_v18 = vsel %vm2439_vm13, %v2438_v8, 0  ;;  %v76_v4 = vsub.s32 4, %v10269_v6  ;;  %v2383_v41 = vadd.s32 1, %v10409_v62  ;;  %v10424_v35 = vmul.f32 %v10299_v27, %v10347_v9 }
 0x4c9   :  { %v2442_v1 = vand.u32 31, %v2440_v18  ;;  %v2285_v53 = vshll.u32 %v2284_v51, 30  ;;  %v2380_v12 = vmul.u32 %v10353_v15, %v2364_v10  ;;  %vm2382_vm0 = vc.u32 %v10414_v17, %v10408_v58 }
 0x4ca   :  { %v2436_v23 = vor.u32 8388608, %v2435_v11  ;;  %v2384_v39 = vsel %vm2382_vm0, %v2383_v41, %v10409_v62  ;;  %v10431_v26 = vrot.slane %v10275_v20, %v76_v4  ;;  %vm2224_vm1 = vcmp.lt.s32.totalorder %v10306_v42, 0 }
 0x4cb   :  { %v2443_v7 = vsub.s32 32, %v2442_v1  ;;  %v2286_v60 = vsub.s32 %v2282_v13, %v2285_v53  ;;  %v2385_v56 = vadd.s32 %v2384_v39, %v2380_v12  ;;  %v2278_v34 = vadd.s32 %v10384_v22, %v10381_v37 }
 0x4cc   :  { %13541 = vst [vmem:[#allocation7_spill] sm:$0xff] %v10431_v26  ;;  %v2531_v43 = vand.u32 2147483647, %v10424_v35  ;;  %v10437_v5 = vshll.u32 %v2436_v23, 8  ;;  %v2534_v13 = vand.u32 2139095040, %v10424_v35  ;;  %v2441_v19 = vshrl.u32 %v2440_v18, 5 }
 0x4cd   :  { %v2288_v57 = vsub.s32 0, %v2286_v60  ;;  %v2386_v15 = vadd.s32 536870912, %v2385_v56  ;;  %v2452_v55 = vshrl.u32 %v13522_v49, %v2443_v7  ;;  %v2446_v48 = vshrl.u32 %v13520_v44, %v2443_v7 }
 0x4ce   :  { %v2449_v50 = vshrl.u32 %v13521_v30, %v2443_v7  ;;  %v2308_v32 = vsub.s32 4, %v2284_v51  ;;  %v2451_v37 = vshll.u32 %v13521_v30, %v2442_v1  ;;  %v2455_v22 = vshrl.u32 %v13483_v47, %v2443_v7 }
 0x4cf   :  { %v7394_v31 = vmin.u32 %v2288_v57, %v2286_v60  ;;  %v10442_v8 = vshrl.u32 %v2386_v15, 30  ;;  %v2445_v36 = vshll.u32 %v13519_v28, %v2442_v1  ;;  %v2448_v62 = vshll.u32 %v13520_v44, %v2442_v1 }
 0x4d0   :  { %v2454_v38 = vshll.u32 %v13522_v49, %v2442_v1  ;;  %v2453_v10 = vor.u32 %v2452_v55, %v2451_v37  ;;  %v2458_v18 = vshrl.u32 %v13481_v54, %v2443_v7  ;;  %v2535_v4 = vshrl.u32 %v2534_v13, 23 }
 0x4d1   :  { %v2290_v46 = vclz %v7394_v31  ;;  %v2388_v11 = vshll.u32 %v10442_v8, 30  ;;  %v2447_v41 = vor.u32 %v2446_v48, %v2445_v36  ;;  %v2450_v12 = vor.u32 %v2449_v50, %v2448_v62 }
 0x4d2   :  { %v2456_v23 = vor.u32 %v2455_v22, %v2454_v38  ;;  %v10453_v39 = vsel %vm2224_vm1, %v2308_v32, %v2284_v51  ;;  %v2444_v15 = vshrl.u32 %v13519_v28, %v2443_v7  ;;  %v2457_v31 = vshll.u32 %v13483_v47, %v2442_v1 }
 0x4d3   :  { %v7395_v53 = vadd.s32 4294967294, %v2290_v46  ;;  %v10455_v57 = vsub.s32 %v2385_v56, %v2388_v11  ;;  %vm2460_vm7 = vcmp.lt.s32.totalorder %v2441_v19, 1  ;;  %vm2461_vm6 = vcmp.lt.s32.totalorder %v2441_v19, 2 }
 0x4d4   :  { %vm2463_vm4 = vcmp.lt.s32.totalorder %v2441_v19, 4  ;;  %vm10461_vm9 = vcmp.le.f32.partialorder %v2222_v52, 0.7853982  ;;  %v2459_v48 = vor.u32 %v2458_v18, %v2457_v31  ;;  %v2468_v1 = vsel %vm2460_vm7, %v2447_v41, %v2450_v12 }
 0x4d5   :  { %vm7396_vm2 = vcmp.lt.s32.totalorder %v7395_v53, 0  ;;  %v2391_v51 = vsub.s32 0, %v10455_v57  ;;  %v2465_v56 = vsel %vm2463_vm4, %v2453_v10, 2102212464  ;;  %v2469_v32 = vsel %vm2463_vm4, %v2456_v23, 920167782 }
 0x4d6   :  { %v2293_v13 = vsel %vm7396_vm2, 0, %v7395_v53  ;;  %vm2462_vm10 = vcmp.lt.s32.totalorder %v2441_v19, 3  ;;  %v2464_v52 = vsel %vm2460_vm7, %v2444_v15, %v2447_v41  ;;  %v2472_v38 = vsel %vm2460_vm7, %v2450_v12, %v2453_v10 }
 0x4d7   :  { %v2294_v50 = vsub.s32 32, %v2293_v13  ;;  %v2298_v7 = vsub.s32 4294967266, %v2293_v13  ;;  %v2295_v37 = vshll.u32 %v2286_v60, %v2293_v13  ;;  %v7398_v22 = vmin.u32 %v2391_v51, %v10455_v57 }
 0x4d8   :  { %v2470_v62 = vsel %vm2462_vm10, %v2453_v10, %v2469_v32  ;;  %v2466_v18 = vsel %vm2462_vm10, %v2450_v12, %v2465_v56  ;;  %v2473_v31 = vsel %vm2463_vm4, %v2459_v48, 1326507024  ;;  %v7405_v60 = vadd.s32 4294967169, %v2535_v4 }
 0x4d9   :  { %v2296_v46 = vshrl.u32 %v2278_v34, %v2294_v50  ;;  %v2299_v36 = vadd.s32 127, %v2298_v7  ;;  %v2393_v11 = vclz %v7398_v22  ;;  %v2471_v53 = vsel %vm2461_vm6, %v2468_v1, %v2470_v62 }
 0x4da   :  { %v2474_v47 = vsel %vm2462_vm10, %v2456_v23, %v2473_v31  ;;  %v10476_v41 = vmul.u32.u64.low %v10437_v5, %v2471_v53  ;;  %v10477_v34 = vmul.u32.u64.high %v10437_v5, %v2471_v53, %v10476_v41  ;;  %v2467_v10 = vsel %vm2461_vm6, %v2464_v52, %v2466_v18 }
 0x4db   :  { %v2297_v29 = vor.u32 %v2296_v46, %v2295_v37  ;;  %v2300_v54 = vshll.u32 %v2299_v36, 23  ;;  %v7399_v13 = vadd.s32 4294967294, %v2393_v11  ;;  %v2475_v51 = vsel %vm2461_vm6, %v2472_v38, %v2474_v47  ;;  %v10496_v36 = vpop.permute.xlu1 %2202 }
 0x4dc   :  { %v10481_v12 = vmul.u32.u64.low %v10437_v5, %v2475_v51  ;;  %v10482_v56 = vmul.u32.u64.high %v10437_v5, %v2475_v51, %v10481_v12  ;;  %v2381_v48 = vadd.s32 %v10408_v58, %v10414_v17  ;;  %v2538_v4 = vand.u32 8388607, %v2531_v43 }
 0x4dd   :  { %v2301_v15 = vor.u32 4788187, %v2300_v54  ;;  %vm7400_vm8 = vcmp.lt.s32.totalorder %v7399_v13, 0  ;;  %v2541_v23 = vadd.s32 1, %v7405_v60  ;;  %v2304_v50 = vcvt.s32.f32 %v2297_v29 }
 0x4de   :  { %v2311_v54 = vsel %vm10461_vm9, 0, %v10453_v39  ;;  %v2396_v19 = vsel %vm7400_vm8, 0, %v7399_v13  ;;  %v2483_v32 = vmul.u32 %v10437_v5, %v2467_v10  ;;  %v2486_v37 = vadd.s32 1, %v10477_v34 }
 0x4df   :  { %v2302_v47 = vand.u32 2147483647, %v2301_v15  ;;  %v2397_v7 = vsub.s32 32, %v2396_v19  ;;  %v2401_v1 = vsub.s32 4294967266, %v2396_v19  ;;  %v2398_v58 = vshll.u32 %v10455_v57, %v2396_v19 }
 0x4e0   :  { %vm2485_vm11 = vc.u32 %v10482_v56, %v10476_v41  ;;  %vm2542_vm13 = vcmp.gt.s32.totalorder %v2541_v23, 0  ;;  %v2411_v62 = vsub.s32 4, %v10442_v8  ;;  %v10501_v11 = vadd.f32 %v10496_v36, %v10296_v63 }
 0x4e1   :  { %v2305_v22 = vmul.f32 %v2304_v50, %v2302_v47  ;;  %v2399_v17 = vshrl.u32 %v2381_v48, %v2397_v7  ;;  %v2402_v52 = vadd.s32 127, %v2401_v1  ;;  %v2487_v29 = vsel %vm2485_vm11, %v2486_v37, %v10477_v34 }
 0x4e2   :  { %v2543_v46 = vsel %vm2542_vm13, %v2541_v23, 0  ;;  %v2488_v38 = vadd.s32 %v2487_v29, %v2483_v32  ;;  %v80_v53 = vsub.s32 5, %v10269_v6  ;;  %vm2327_vm0 = vcmp.lt.s32.totalorder %v10316_v45, 0  ;;  %v8600_v6 = vld [vmem:[%s13450_s0 + $0x28] sm:$0xff] }
 0x4e3   :  { %v2306_v39 = vxor.u32 2147483648, %v2305_v22  ;;  %v2545_v5 = vand.u32 31, %v2543_v46  ;;  %v2400_v57 = vor.u32 %v2399_v17, %v2398_v58  ;;  %v2403_v18 = vshll.u32 %v2402_v52, 23 }
 0x4e4   :  { %v2489_v60 = vadd.s32 536870912, %v2488_v38  ;;  %v10510_v34 = vand.u32 3, %v2311_v54  ;;  %vm10514_vm2 = vcmp.le.f32.partialorder %v2325_v61, 0.7853982  ;;  %v10521_v12 = vsel %vm2327_vm0, %v2411_v62, %v10442_v8 }
 0x4e5   :  { %v2307_v31 = vsel %vm2224_vm1, %v2306_v39, %v2305_v22  ;;  %v2546_v13 = vsub.s32 32, %v2545_v5  ;;  %v2404_v10 = vor.u32 4788187, %v2403_v18  ;;  %v2539_v23 = vor.u32 8388608, %v2538_v4 }
 0x4e6   :  { %v2310_v51 = vsel %vm10461_vm9, %v10306_v42, %v2307_v31  ;;  %v10523_v48 = vshrl.u32 %v2489_v60, 30  ;;  %v2407_v47 = vcvt.s32.f32 %v2400_v57  ;;  %v2180_v50 = vadd.f32 %v10318_v33, %v10278_v59 }
 0x4e7   :  { %8477 = vcosq.f32 %v2310_v51  ;;  %v2405_v55 = vand.u32 2147483647, %v2404_v10  ;;  %v10528_v61 = vadd.s32 %v10476_v41, %v10482_v56  ;;  %v2549_v19 = vshrl.u32 %v13520_v44, %v2546_v13 }
 0x4e8   :  { %8479 = vsinq.f32 %v2310_v51  ;;  %v2491_v54 = vshll.u32 %v10523_v48, 30  ;;  %v2552_v7 = vshrl.u32 %v13521_v30, %v2546_v13  ;;  %v10533_v1 = vshrl.u32 %v2543_v46, 5  ;;  %v8599_v51 = vld [vmem:[%s13450_s0 + $0x20] sm:$0xff]  ;;  %s8641_s0 = smov 119  }
 0x4e9   :  { %v2408_v8 = vmul.f32 %v2407_v47, %v2405_v55  ;;  %v2555_v4 = vshrl.u32 %v13522_v49, %v2546_v13  ;;  %v13546_v32 = vmov 920167782   ;;  %vm2320_vm1 = vcmp.eq.s32.totalorder %v10510_v34, 2 }
 0x4ea   :  { %v2558_v37 = vshrl.u32 %v13546_v32, %v2546_v13  ;;  %v10538_v22 = vsub.s32 %v2488_v38, %v2491_v54  ;;  %v2548_v33 = vshll.u32 %v13519_v28, %v2545_v5  ;;  %v2551_v41 = vshll.u32 %v13520_v44, %v2545_v5 }
 0x4eb   :  { %v10542_v56 = vshll.u32 %v2539_v23, 8  ;;  %vm2317_vm7 = vcmp.eq.s32.totalorder %v10510_v34, 0  ;;  %v2409_v58 = vxor.u32 2147483648, %v2408_v8  ;;  %v2554_v17 = vshll.u32 %v13521_v30, %v2545_v5 }
 0x4ec   :  { %v2557_v52 = vshll.u32 %v13522_v49, %v2545_v5  ;;  %v13547_v29 = vmov 1326507024   ;;  %vm2316_vm6 = vcmp.lt.s32.totalorder %v10510_v34, 2  ;;  %v2494_v39 = vsub.s32 0, %v10538_v22 }
 0x4ed   :  { %v2561_v46 = vshrl.u32 %v13547_v29, %v2546_v13  ;;  %v2550_v62 = vor.u32 %v2549_v19, %v2548_v33  ;;  %v2553_v38 = vor.u32 %v2552_v7, %v2551_v41  ;;  %v2560_v57 = vshll.u32 %v13546_v32, %v2545_v5 }
 0x4ee   :  { %vm2314_vm4 = vweird.f32 %v10306_v42  ;;  %v2410_v18 = vsel %vm2327_vm0, %v2409_v58, %v2408_v8  ;;  %v2556_v31 = vor.u32 %v2555_v4, %v2554_v17  ;;  %v2559_v60 = vor.u32 %v2558_v37, %v2557_v52 }
 0x4ef   :  { %v2188_v10 = vadd.f32 %v8599_v51, %v2180_v50  ;;  %v2413_v23 = vsel %vm10514_vm2, %v10316_v45, %v2410_v18  ;;  %v7402_v55 = vmin.u32 %v2494_v39, %v10538_v22  ;;  %v2547_v5 = vshrl.u32 %v13519_v28, %v2546_v13 }
 0x4f0   :  { %v2562_v47 = vor.u32 %v2561_v46, %v2560_v57  ;;  %8481 = vcosq.f32 %v2413_v23  ;;  %vm2563_vm9 = vcmp.lt.s32.totalorder %v10533_v1, 1  ;;  %vm2564_vm10 = vcmp.lt.s32.totalorder %v10533_v1, 2 }
 0x4f1   :  { %vm2565_vm8 = vcmp.lt.s32.totalorder %v10533_v1, 3  ;;  %v8478_v54 = vpop.eup %8477  ;;  %8483 = vsinq.f32 %v2413_v23  ;;  %v2496_v19 = vclz %v7402_v55  ;;  %vm2566_vm11 = vcmp.lt.s32.totalorder %v10533_v1, 4 }
 0x4f2   :  { %v2571_v50 = vsel %vm2563_vm9, %v2550_v62, %v2553_v38  ;;  %v8480_v7 = vpop.eup %8479  ;;  %v2321_v8 = vxor.u32 2147483648, %v8478_v54  ;;  %v2567_v4 = vsel %vm2563_vm9, %v2547_v5, %v2550_v62  ;;  %v2572_v37 = vsel %vm2566_vm11, %v2559_v60, 920167782 }
 0x4f3   :  { %v2575_v33 = vsel %vm2563_vm9, %v2553_v38, %v2556_v31  ;;  %v2318_v13 = vxor.u32 2147483648, %v8480_v7  ;;  %v7403_v41 = vadd.s32 4294967294, %v2496_v19  ;;  %v2573_v58 = vsel %vm2565_vm8, %v2556_v31, %v2572_v37 }
 0x4f4   :  { %v2576_v17 = vsel %vm2566_vm11, %v2562_v47, 1326507024  ;;  %v2322_v52 = vsel %vm2320_vm1, %v2321_v8, %v8480_v7  ;;  %v2568_v46 = vsel %vm2566_vm11, %v2556_v31, 2102212464  ;;  %v2574_v39 = vsel %vm2564_vm10, %v2571_v50, %v2573_v58 }
 0x4f5   :  { %v2577_v57 = vsel %vm2565_vm8, %v2559_v60, %v2576_v17  ;;  %v2319_v62 = vsel %vm2317_vm7, %v8478_v54, %v2318_v13  ;;  %vm7404_vm13 = vcmp.lt.s32.totalorder %v7403_v41, 0  ;;  %v10579_v51 = vmul.f32 %v2188_v10, %v10431_v26 }
 0x4f6   :  { %v2578_v18 = vsel %vm2564_vm10, %v2575_v33, %v2577_v57  ;;  %v2323_v23 = vsel %vm2316_vm6, %v2319_v62, %v2322_v52  ;;  %v2499_v31 = vsel %vm7404_vm13, 0, %v7403_v41  ;;  %v2569_v19 = vsel %vm2565_vm8, %v2553_v38, %v2568_v46 }
 0x4f7   :  { %13548 = vst [vmem:[#allocation8_spill] sm:$0xff] %v10579_v51  ;;  %v10584_v55 = vmul.u32.u64.low %v10542_v56, %v2578_v18  ;;  %v10585_v5 = vmul.u32.u64.high %v10542_v56, %v2578_v18, %v10584_v55  ;;  %v2324_v60 = vsel %vm2314_vm4, nan, %v2323_v23  ;;  %v2500_v47 = vsub.s32 32, %v2499_v31 }
 0x4f8   :  { %v2504_v54 = vsub.s32 4294967266, %v2499_v31  ;;  %v2840_v50 = vmul.f32 %v2324_v60, %v10496_v36  ;;  %v10593_v10 = vmul.u32.u64.low %v10542_v56, %v2574_v39  ;;  %v10594_v7 = vmul.u32.u64.high %v10542_v56, %v2574_v39, %v10593_v10 }
 0x4f9   :  { %v2182_v34 = vadd.f32 %v10322_v2, %v10278_v59  ;;  %v2501_v8 = vshll.u32 %v10538_v22, %v2499_v31  ;;  %v2502_v42 = vshrl.u32 %v10528_v61, %v2500_v47  ;;  %v10603_v33 = vmul.f32 %v10299_v27, %v10579_v51 }
 0x4fa   :  { %v2505_v37 = vadd.s32 127, %v2504_v54  ;;  %v8482_v38 = vpop.eup %8481  ;;  %v10606_v13 = vsub.f32 %v10501_v11, %v2840_v50  ;;  %v2414_v41 = vsel %vm10514_vm2, 0, %v10521_v12  ;;  %v2570_v59 = vsel %vm2564_vm10, %v2567_v4, %v2569_v19 }
 0x4fb   :  { %v10616_v2 = vrot.slane %v10275_v20, %v80_v53  ;;  %v8484_v61 = vpop.eup %8483  ;;  %v10620_v22 = vadd.f32 %v10496_v36, %v10302_v25  ;;  %v2503_v58 = vor.u32 %v2502_v42, %v2501_v8  ;;  %vm2588_vm0 = vc.u32 %v10585_v5, %v10593_v10 }
 0x4fc   :  { %v2506_v11 = vshll.u32 %v2505_v37, 23  ;;  %v2514_v15 = vsub.s32 4, %v10523_v48  ;;  %v2589_v12 = vadd.s32 1, %v10594_v7  ;;  %v2637_v1 = vand.u32 2139095040, %v10603_v33  ;;  %2988 = vrot.lane.b32.xlu0 %v10606_v13, %s8640_s27 }
 0x4fd   :  { %13549 = vst [vmem:[#allocation9_spill] sm:$0xff] %v10616_v2  ;;  %v2189_v20 = vadd.f32 %v8600_v6, %v2182_v34  ;;  %v2418_v53 = vand.u32 3, %v2414_v41  ;;  %vm2430_vm2 = vcmp.lt.s32.totalorder %v10337_v40, 0  ;;  %v2586_v17 = vmul.u32 %v10542_v56, %v2570_v59 }
 0x4fe   :  { %v2507_v4 = vor.u32 4788187, %v2506_v11  ;;  %v2421_v52 = vxor.u32 2147483648, %v8484_v61  ;;  %v2424_v46 = vxor.u32 2147483648, %v8482_v38  ;;  %v2590_v39 = vsel %vm2588_vm0, %v2589_v12, %v10594_v7 }
 0x4ff   :  { %v2638_v57 = vshrl.u32 %v2637_v1, 23  ;;  %v2510_v18 = vcvt.s32.f32 %v2503_v58  ;;  %v2591_v23 = vadd.s32 %v2590_v39, %v2586_v17  ;;  %v2634_v31 = vand.u32 2147483647, %v10603_v33 }
 0x500   :  { %v2508_v62 = vand.u32 2147483647, %v2507_v4  ;;  %vm2417_vm1 = vweird.f32 %v10316_v45  ;;  %v2515_v55 = vsel %vm2430_vm2, %v2514_v15, %v10523_v48  ;;  %v10641_v47 = vmul.f32 %v2189_v20, %v10616_v2 }
 0x501   :  { %v7409_v60 = vadd.s32 4294967169, %v2638_v57  ;;  %vm2420_vm7 = vcmp.eq.s32.totalorder %v2418_v53, 0  ;;  %vm2423_vm6 = vcmp.eq.s32.totalorder %v2418_v53, 2  ;;  %v2592_v54 = vadd.s32 536870912, %v2591_v23 }
 0x502   :  { %13550 = vst [vmem:[#allocation10_spill] sm:$0xff] %v10641_v47  ;;  %v2511_v56 = vmul.f32 %v2510_v18, %v2508_v62  ;;  %v2422_v19 = vsel %vm2420_vm7, %v8482_v38, %v2421_v52  ;;  %v2425_v50 = vsel %vm2423_vm6, %v2424_v46, %v8484_v61  ;;  %v13551_v7 = vand.u32 2147483647, %v10337_v40 }
 0x503   :  { %v2644_v34 = vadd.s32 1, %v7409_v60  ;;  %v2593_v37 = vshrl.u32 %v2592_v54, 30  ;;  %v2641_v48 = vand.u32 8388607, %v2634_v31  ;;  %vm2419_vm9 = vcmp.lt.s32.totalorder %v2418_v53, 2 }
 0x504   :  { %vm2429_vm4 = vcmp.le.f32.partialorder %v13551_v7, 0.7853982  ;;  %v2512_v8 = vxor.u32 2147483648, %v2511_v56  ;;  %v10649_v41 = vadd.f32 %v10496_v36, %v10327_v16  ;;  %v10653_v38 = vmul.f32 %v10299_v27, %v10641_v47 }
 0x505   :  { %v2517_v42 = vsel %vm2429_vm4, 0, %v2515_v55  ;;  %vm2645_vm10 = vcmp.gt.s32.totalorder %v2644_v34, 0  ;;  %v2426_v59 = vsel %vm2419_vm9, %v2422_v19, %v2425_v50  ;;  %v2594_v58 = vshll.u32 %v2593_v37, 30 }
 0x506   :  { %v2513_v61 = vsel %vm2430_vm2, %v2512_v8, %v2511_v56  ;;  %v2646_v11 = vsel %vm2645_vm10, %v2644_v34, 0  ;;  %v10658_v12 = vand.u32 3, %v2517_v42  ;;  %vm2533_vm8 = vcmp.lt.s32.totalorder %v10424_v35, 0 }
 0x507   :  { %v2516_v15 = vsel %vm2429_vm4, %v10337_v40, %v2513_v61  ;;  %v2648_v1 = vand.u32 31, %v2646_v11  ;;  %v2587_v6 = vadd.s32 %v10593_v10, %v10585_v5  ;;  %v10663_v20 = vsub.s32 %v2591_v23, %v2594_v58 }
 0x508   :  { %8485 = vcosq.f32 %v2516_v15  ;;  %v2642_v27 = vor.u32 8388608, %v2641_v48  ;;  %v2427_v53 = vsel %vm2417_vm1, nan, %v2426_v59  ;;  %v2740_v17 = vand.u32 2139095040, %v10653_v38 }
 0x509   :  { %8487 = vsinq.f32 %v2516_v15  ;;  %v2649_v4 = vsub.s32 32, %v2648_v1  ;;  %v2597_v52 = vsub.s32 0, %v10663_v20  ;;  %v2617_v46 = vsub.s32 4, %v2593_v37 }
 0x50a   :  { %v2651_v39 = vshll.u32 %v13519_v28, %v2648_v1  ;;  %v2654_v57 = vshll.u32 %v13520_v44, %v2648_v1  ;;  %v2657_v10 = vshll.u32 %v13521_v30, %v2648_v1  ;;  %v2841_v18 = vmul.f32 %v2427_v53, %v10496_v36 }
 0x50b   :  { %v2652_v62 = vshrl.u32 %v13520_v44, %v2649_v4  ;;  %v2655_v5 = vshrl.u32 %v13521_v30, %v2649_v4  ;;  %v2658_v45 = vshrl.u32 %v13522_v49, %v2649_v4  ;;  %v7406_v23 = vmin.u32 %v2597_v52, %v10663_v20 }
 0x50c   :  { %v2647_v55 = vshrl.u32 %v2646_v11, 5  ;;  %v10677_v60 = vshll.u32 %v2642_v27, 8  ;;  %v2660_v50 = vshll.u32 %v13522_v49, %v2648_v1  ;;  %vm2523_vm11 = vcmp.eq.s32.totalorder %v10658_v12, 0 }
 0x50d   :  { %v2653_v56 = vor.u32 %v2652_v62, %v2651_v39  ;;  %v2656_v54 = vor.u32 %v2655_v5, %v2654_v57  ;;  %v2659_v19 = vor.u32 %v2658_v45, %v2657_v10  ;;  %vm2526_vm13 = vcmp.eq.s32.totalorder %v10658_v12, 2 }
 0x50e   :  { %v2599_v7 = vclz %v7406_v23  ;;  %v2661_v34 = vshrl.u32 %v13546_v32, %v2649_v4  ;;  %v2663_v8 = vshll.u32 %v13546_v32, %v2648_v1  ;;  %v2664_v42 = vshrl.u32 %v13547_v29, %v2649_v4 }
 0x50f   :  { %v10687_v48 = vsel %vm2533_vm8, %v2617_v46, %v2593_v37  ;;  %v2650_v59 = vshrl.u32 %v13519_v28, %v2649_v4  ;;  %v2737_v61 = vand.u32 2147483647, %v10653_v38  ;;  %v2741_v58 = vshrl.u32 %v2740_v17, 23 }
 0x510   :  { %v7407_v11 = vadd.s32 4294967294, %v2599_v7  ;;  %v2662_v15 = vor.u32 %v2661_v34, %v2660_v50  ;;  %v2665_v27 = vor.u32 %v2664_v42, %v2663_v8  ;;  %vm2669_vm0 = vcmp.lt.s32.totalorder %v2647_v55, 4 }
 0x511   :  { %vm2666_vm2 = vcmp.lt.s32.totalorder %v2647_v55, 1  ;;  %vm2667_vm1 = vcmp.lt.s32.totalorder %v2647_v55, 2  ;;  %vm2668_vm7 = vcmp.lt.s32.totalorder %v2647_v55, 3  ;;  %v2671_v53 = vsel %vm2669_vm0, %v2659_v19, 2102212464 }
 0x512   :  { %v8486_v1 = vpop.eup %8485  ;;  %vm7408_vm6 = vcmp.lt.s32.totalorder %v7407_v11, 0  ;;  %v2674_v52 = vsel %vm2666_vm2, %v2653_v56, %v2656_v54  ;;  %v2675_v39 = vsel %vm2669_vm0, %v2662_v15, 920167782  ;;  %v2679_v37 = vsel %vm2669_vm0, %v2665_v27, 1326507024 }
 0x513   :  { %v8488_v46 = vpop.eup %8487  ;;  %v2527_v57 = vxor.u32 2147483648, %v8486_v1  ;;  %v2602_v4 = vsel %vm7408_vm6, 0, %v7407_v11  ;;  %v2676_v62 = vsel %vm2668_vm7, %v2659_v19, %v2675_v39  ;;  %v2678_v17 = vsel %vm2666_vm2, %v2656_v54, %v2659_v19 }
 0x514   :  { %vm2520_vm4 = vweird.f32 %v10337_v40  ;;  %v2524_v5 = vxor.u32 2147483648, %v8488_v46  ;;  %v2603_v10 = vsub.s32 32, %v2602_v4  ;;  %v2607_v45 = vsub.s32 4294967266, %v2602_v4 }
 0x515   :  { %v7413_v23 = vadd.s32 4294967169, %v2741_v58  ;;  %v2604_v50 = vshll.u32 %v10663_v20, %v2602_v4  ;;  %v2670_v7 = vsel %vm2666_vm2, %v2650_v59, %v2653_v56  ;;  %v2672_v34 = vsel %vm2668_vm7, %v2656_v54, %v2671_v53 }
 0x516   :  { %v2680_v8 = vsel %vm2668_vm7, %v2662_v15, %v2679_v37  ;;  %v2605_v42 = vshrl.u32 %v2587_v6, %v2603_v10  ;;  %v2608_v11 = vadd.s32 127, %v2607_v45  ;;  %v2677_v27 = vsel %vm2667_vm1, %v2674_v52, %v2676_v62 }
 0x517   :  { %v2681_v19 = vsel %vm2667_vm1, %v2678_v17, %v2680_v8  ;;  %v2525_v39 = vsel %vm2523_vm11, %v8486_v1, %v2524_v5  ;;  %v2528_v58 = vsel %vm2526_vm13, %v2527_v57, %v8488_v46  ;;  %v2673_v59 = vsel %vm2667_vm1, %v2670_v7, %v2672_v34 }
 0x518   :  { %v10706_v20 = vmul.u32.u64.low %v10677_v60, %v2681_v19  ;;  %v10707_v4 = vmul.u32.u64.high %v10677_v60, %v2681_v19, %v10706_v20  ;;  %v2606_v56 = vor.u32 %v2605_v42, %v2604_v50  ;;  %v2609_v54 = vshll.u32 %v2608_v11, 23 }
 0x519   :  { %v2747_v6 = vadd.s32 1, %v7413_v23  ;;  %v10711_v15 = vsub.f32 %v10620_v22, %v2841_v18  ;;  %vm2522_vm9 = vcmp.lt.s32.totalorder %v10658_v12, 2  ;;  %vm10721_vm10 = vcmp.le.f32.partialorder %v2531_v43, 0.7853982 }
 0x51a   :  { %v10715_v53 = vmul.u32.u64.low %v10677_v60, %v2677_v27  ;;  %v10716_v1 = vmul.u32.u64.high %v10677_v60, %v2677_v27, %v10715_v53  ;;  %v2529_v52 = vsel %vm2522_vm9, %v2525_v39, %v2528_v58  ;;  %v2610_v55 = vor.u32 4788187, %v2609_v54 }
 0x51b   :  { %vm2748_vm11 = vcmp.gt.s32.totalorder %v2747_v6, 0  ;;  %v2620_v22 = vsel %vm10721_vm10, 0, %v10687_v48  ;;  %v2689_v12 = vmul.u32 %v10677_v60, %v2673_v59  ;;  %v2744_v18 = vand.u32 8388607, %v2737_v61 }
 0x51c   :  { %v2749_v46 = vsel %vm2748_vm11, %v2747_v6, 0  ;;  %v2611_v57 = vand.u32 2147483647, %v2610_v55  ;;  %v2613_v62 = vcvt.s32.f32 %v2606_v56  ;;  %vm2691_vm13 = vc.u32 %v10707_v4, %v10715_v53 }
 0x51d   :  { %v2751_v43 = vand.u32 31, %v2749_v46  ;;  %v2530_v17 = vsel %vm2520_vm4, nan, %v2529_v52  ;;  %v2692_v5 = vadd.s32 1, %v10716_v1  ;;  %v10738_v10 = vpack.i.bf16 %v10711_v15, %v10606_v13 }
 0x51e   :  { %v2614_v60 = vmul.f32 %v2613_v62, %v2611_v57  ;;  %v2750_v45 = vshrl.u32 %v2749_v46, 5  ;;  %v2745_v62 = vor.u32 8388608, %v2744_v18  ;;  %vm2623_vm11 = vweird.f32 %v10424_v35 }
 0x51f   :  { %v2752_v23 = vsub.s32 32, %v2751_v43  ;;  %v2693_v50 = vsel %vm2691_vm13, %v2692_v5, %v10716_v1  ;;  %v2754_v7 = vshll.u32 %v13519_v28, %v2751_v43  ;;  %v2757_v34 = vshll.u32 %v13520_v44, %v2751_v43  ;;  %8040 = vrot.lane.b32.xlu1 %v10738_v10, %s8638_s20  ;;  %8035 = vrot.lane.b32.xlu0 %v10738_v10, %s8635_s17 }
 0x520   :  { %v2760_v8 = vshll.u32 %v13521_v30, %v2751_v43  ;;  %v2615_v40 = vxor.u32 2147483648, %v2614_v60  ;;  %v2694_v42 = vadd.s32 %v2693_v50, %v2689_v12  ;;  %v2763_v13 = vshll.u32 %v13522_v49, %v2751_v43 }
 0x521   :  { %v2755_v11 = vshrl.u32 %v13520_v44, %v2752_v23  ;;  %v2758_v27 = vshrl.u32 %v13521_v30, %v2752_v23  ;;  %v2761_v19 = vshrl.u32 %v13522_v49, %v2752_v23  ;;  %v2764_v39 = vshrl.u32 %v13546_v32, %v2752_v23 }
 0x522   :  { %v2767_v58 = vshrl.u32 %v13547_v29, %v2752_v23  ;;  %v2616_v20 = vsel %vm2533_vm8, %v2615_v40, %v2614_v60  ;;  %v2695_v56 = vadd.s32 536870912, %v2694_v42  ;;  %v2766_v59 = vshll.u32 %v13546_v32, %v2751_v43 }
 0x523   :  { %v2756_v54 = vor.u32 %v2755_v11, %v2754_v7  ;;  %v2619_v6 = vsel %vm10721_vm10, %v10424_v35, %v2616_v20  ;;  %v2759_v1 = vor.u32 %v2758_v27, %v2757_v34  ;;  %v2762_v52 = vor.u32 %v2761_v19, %v2760_v8  ;;  %8045 = vrot.lane.b32.xlu1 %v10738_v10, %s8641_s0 }
 0x524   :  { %v2765_v55 = vor.u32 %v2764_v39, %v2763_v13  ;;  %v2842_v12 = vmul.f32 %v2530_v17, %v10496_v36  ;;  %8489 = vcosq.f32 %v2619_v6  ;;  %v10763_v46 = vshrl.u32 %v2695_v56, 30 }
 0x525   :  { %v2768_v57 = vor.u32 %v2767_v58, %v2766_v59  ;;  %8491 = vsinq.f32 %v2619_v6  ;;  %v2753_v43 = vshrl.u32 %v13519_v28, %v2752_v23  ;;  %vm2769_vm8 = vcmp.lt.s32.totalorder %v2750_v45, 1 }
 0x526   :  { %v2697_v5 = vshll.u32 %v10763_v46, 30  ;;  %vm2771_vm0 = vcmp.lt.s32.totalorder %v2750_v45, 3  ;;  %vm2772_vm2 = vcmp.lt.s32.totalorder %v2750_v45, 4  ;;  %v2777_v60 = vsel %vm2769_vm8, %v2756_v54, %v2759_v1 }
 0x527   :  { %v2774_v50 = vsel %vm2772_vm2, %v2762_v52, 2102212464  ;;  %v2778_v7 = vsel %vm2772_vm2, %v2765_v55, 920167782  ;;  %v2781_v34 = vsel %vm2769_vm8, %v2759_v1, %v2762_v52  ;;  %v2782_v8 = vsel %vm2772_vm2, %v2768_v57, 1326507024  ;;  %8050 = vrot.lane.b32.xlu1 %v10738_v10, %s8642_s28 }
 0x528   :  { %v10768_v17 = vsub.f32 %v10649_v41, %v2842_v12  ;;  %v2698_v40 = vsub.s32 %v2694_v42, %v2697_v5  ;;  %vm2770_vm1 = vcmp.lt.s32.totalorder %v2750_v45, 2  ;;  %v2779_v11 = vsel %vm2771_vm0, %v2762_v52, %v2778_v7 }
 0x529   :  { %v2773_v18 = vsel %vm2769_vm8, %v2753_v43, %v2756_v54  ;;  %v2780_v13 = vsel %vm2770_vm1, %v2777_v60, %v2779_v11  ;;  %v2783_v23 = vsel %vm2771_vm0, %v2765_v55, %v2782_v8  ;;  %v2785_v27 = vshll.u32 %v2745_v62, 8 }
 0x52a   :  { %v2700_v19 = vsub.s32 0, %v2698_v40  ;;  %v2775_v39 = vsel %vm2771_vm0, %v2759_v1, %v2774_v50  ;;  %v2784_v58 = vsel %vm2770_vm1, %v2781_v34, %v2783_v23  ;;  %v2624_v41 = vand.u32 3, %v2620_v22 }
 0x52b   :  { %v10773_v20 = vmul.u32.u64.low %v2785_v27, %v2784_v58  ;;  %v10774_v56 = vmul.u32.u64.high %v2785_v27, %v2784_v58, %v10773_v20  ;;  %v10776_v59 = vmul.u32.u64.low %v2785_v27, %v2780_v13  ;;  %v10777_v6 = vmul.u32.u64.high %v2785_v27, %v2780_v13, %v10776_v59  ;;  %8055 = vrot.lane.b32.xlu1 %v10738_v10, %s8643_s29 }
 0x52c   :  { %v7410_v42 = vmin.u32 %v2700_v19, %v2698_v40  ;;  %v2776_v45 = vsel %vm2770_vm1, %v2773_v18, %v2775_v39  ;;  %v8064_v54 = vpack.i.bf16 %v13539_v3, %v10768_v17  ;;  %vm2629_vm6 = vcmp.eq.s32.totalorder %v2624_v41, 2 }
 0x52d   :  { %vm2794_vm7 = vc.u32 %v10774_v56, %v10776_v59  ;;  %v2795_v37 = vadd.s32 1, %v10777_v6  ;;  %v2792_v57 = vmul.u32 %v2785_v27, %v2776_v45  ;;  %vm2626_vm4 = vcmp.eq.s32.totalorder %v2624_v41, 0 }
 0x52e   :  { %v8490_v1 = vpop.eup %8489  ;;  %v2702_v52 = vclz %v7410_v42  ;;  %8065 = vrot.lane.b32.xlu0 %v8064_v54, %s8638_s20  ;;  %vm2625_vm9 = vcmp.lt.s32.totalorder %v2624_v41, 2  ;;  %v2690_v8 = vadd.s32 %v10715_v53, %v10707_v4  ;;  %v2208_v13 = vadd.f32 %v10496_v36, %v10347_v9 }
 0x52f   :  { %v8492_v55 = vpop.eup %8491  ;;  %v2630_v12 = vxor.u32 2147483648, %v8490_v1  ;;  %v2796_v43 = vsel %vm2794_vm7, %v2795_v37, %v10777_v6  ;;  %2990 = vrot.lane.b32.xlu1 %v10711_v15, %s8640_s27  ;;  %vm2636_vm13 = vcmp.lt.s32.totalorder %v10603_v33, 0  ;;  %vm10820_vm8 = vcmp.le.f32.partialorder %v2634_v31, 0.7853982 }
 0x530   :  { %v2627_v48 = vxor.u32 2147483648, %v8492_v55  ;;  %v7411_v22 = vadd.s32 4294967294, %v2702_v52  ;;  %v2797_v60 = vadd.s32 %v2796_v43, %v2792_v57 }
 0x531   :  { %v2631_v62 = vsel %vm2629_vm6, %v2630_v12, %v8492_v55  ;;  %vm2726_vm6 = vweird.f32 %v10603_v33 }
 0x532   :  { %v2628_v5 = vsel %vm2626_vm4, %v8490_v1, %v2627_v48  ;;  %vm7412_vm10 = vcmp.lt.s32.totalorder %v7411_v22, 0  ;;  %v2798_v27 = vadd.s32 536870912, %v2797_v60  ;;  %vm2739_vm4 = vcmp.lt.s32.totalorder %v10653_v38, 0 }
 0x533   :  { %v2632_v50 = vsel %vm2625_vm9, %v2628_v5, %v2631_v62  ;;  %v2705_v7 = vsel %vm7412_vm10, 0, %v7411_v22  ;;  %8060 = vrot.lane.b32.xlu1 %v8064_v54, %s8635_s17  ;;  %v2720_v22 = vsub.s32 4, %v10763_v46  ;;  %v2793_v5 = vadd.s32 %v10776_v59, %v10774_v56 }
 0x534   :  { %v2633_v34 = vsel %vm2623_vm11, nan, %v2632_v50  ;;  %v2706_v11 = vsub.s32 32, %v2705_v7  ;;  %v2710_v18 = vsub.s32 4294967266, %v2705_v7  ;;  %v2707_v19 = vshll.u32 %v2698_v40, %v2705_v7 }
 0x535   :  { %v2843_v23 = vmul.f32 %v2633_v34, %v10496_v36  ;;  %v10805_v20 = vshrl.u32 %v2798_v27, 30  ;;  %v2721_v43 = vsel %vm2636_vm13, %v2720_v22, %v10763_v46  ;;  %vm2738_vm9 = vcmp.le.f32.partialorder %v2737_v61, 0.7853982 }
 0x536   :  { %v2708_v39 = vshrl.u32 %v2690_v8, %v2706_v11  ;;  %v2711_v35 = vadd.s32 127, %v2710_v18  ;;  %v2723_v7 = vsel %vm10820_vm8, 0, %v2721_v43 }
 0x537   :  { %v10803_v58 = vsub.f32 %v2208_v13, %v2843_v23  ;;  %v2800_v53 = vshll.u32 %v10805_v20, 30  ;;  %v2727_v23 = vand.u32 3, %v2723_v7 }
 0x538   :  { %v2709_v6 = vor.u32 %v2708_v39, %v2707_v19  ;;  %v2712_v4 = vshll.u32 %v2711_v35, 23 }
 0x539   :  { %v10811_v15 = vpack.i.bf16 %v10803_v58, %v10768_v17  ;;  %v2801_v42 = vsub.s32 %v2797_v60, %v2800_v53  ;;  %vm2732_vm2 = vcmp.eq.s32.totalorder %v2727_v23, 2  ;;  %vm2729_vm1 = vcmp.eq.s32.totalorder %v2727_v23, 0 }
 0x53a   :  { %v2713_v41 = vor.u32 4788187, %v2712_v4  ;;  %v2716_v45 = vcvt.s32.f32 %v2709_v6  ;;  %vm2728_vm7 = vcmp.lt.s32.totalorder %v2727_v23, 2 }
 0x53b   :  { %8070 = vrot.lane.b32.xlu0 %v10811_v15, %s8641_s0  ;;  %v2803_v1 = vsub.s32 0, %v2801_v42 }
 0x53c   :  { %v2714_v40 = vand.u32 2147483647, %v2713_v41 }
 0x53d   :  { %v7414_v55 = vmin.u32 %v2803_v1, %v2801_v42 }
 0x53e   :  { %v2717_v52 = vmul.f32 %v2716_v45, %v2714_v40  ;;  %v2209_v40 = vadd.f32 %v10496_v36, %v10579_v51 }
 0x53f   :  { %8075 = vrot.lane.b32.xlu0 %v10811_v15, %s8642_s28  ;;  %v2805_v12 = vclz %v7414_v55  ;;  %v2823_v55 = vsub.s32 4, %v10805_v20 }
 0x540   :  { %v2718_v54 = vxor.u32 2147483648, %v2717_v52 }
 0x541   :  { %v7415_v62 = vadd.s32 4294967294, %v2805_v12 }
 0x542   :  { %v2719_v48 = vsel %vm2636_vm13, %v2718_v54, %v2717_v52 }
 0x543   :  { %v2722_v57 = vsel %vm10820_vm8, %v10603_v33, %v2719_v48  ;;  %8080 = vrot.lane.b32.xlu0 %v10811_v15, %s8643_s29  ;;  %vm7416_vm0 = vcmp.lt.s32.totalorder %v7415_v62, 0  ;;  %v2824_v33 = vsel %vm2739_vm4, %v2823_v55, %v10805_v20  ;;  %vm2829_vm8 = vweird.f32 %v10653_v38 }
 0x544   :  { %8493 = vcosq.f32 %v2722_v57  ;;  %v2808_v31 = vsel %vm7416_vm0, 0, %v7415_v62  ;;  %v2826_v48 = vsel %vm2738_vm9, 0, %v2824_v33  ;;  %vm3002_vm0 = vcmask 900096  }
 0x545   :  { %8495 = vsinq.f32 %v2722_v57  ;;  %v2809_v60 = vsub.s32 32, %v2808_v31  ;;  %v2813_v50 = vsub.s32 4294967266, %v2808_v31  ;;  %v2810_v34 = vshll.u32 %v2801_v42, %v2808_v31 }
 0x546   :  { %v2830_v22 = vand.u32 3, %v2826_v48 }
 0x547   :  { %v2811_v8 = vshrl.u32 %v2793_v5, %v2809_v60  ;;  %v2814_v11 = vadd.s32 127, %v2813_v50  ;;  %v2210_v50 = vadd.f32 %v10496_v36, %v10641_v47 }
 0x548   :  { %vm2835_vm10 = vcmp.eq.s32.totalorder %v2830_v22, 2  ;;  %vm2832_vm11 = vcmp.eq.s32.totalorder %v2830_v22, 0  ;;  %vm2831_vm13 = vcmp.lt.s32.totalorder %v2830_v22, 2 }
 0x549   :  { %v2812_v18 = vor.u32 %v2811_v8, %v2810_v34  ;;  %v2815_v13 = vshll.u32 %v2814_v11, 23 }
 0x54b   :  { %v2816_v27 = vor.u32 4788187, %v2815_v13  ;;  %v2819_v6 = vcvt.s32.f32 %v2812_v18 }
 0x54d   :  { %v2817_v46 = vand.u32 2147483647, %v2816_v27 }
 0x54e   :  { %v8494_v19 = vpop.eup %8493 }
 0x54f   :  { %v8496_v39 = vpop.eup %8495  ;;  %v2733_v35 = vxor.u32 2147483648, %v8494_v19  ;;  %v2820_v59 = vmul.f32 %v2819_v6, %v2817_v46 }
 0x550   :  { %v2730_v4 = vxor.u32 2147483648, %v8496_v39 }
 0x551   :  { %v2734_v56 = vsel %vm2732_vm2, %v2733_v35, %v8496_v39  ;;  %v2821_v42 = vxor.u32 2147483648, %v2820_v59  ;;  %vm2933_vm2 = vcmask 973824  }
 0x552   :  { %v2731_v53 = vsel %vm2729_vm1, %v8494_v19, %v2730_v4  ;;  %vm2960_vm1 = vcmask 949248  }
 0x553   :  { %v2735_v41 = vsel %vm2728_vm7, %v2731_v53, %v2734_v56  ;;  %v2822_v52 = vsel %vm2739_vm4, %v2821_v42, %v2820_v59  ;;  %vm2981_vm7 = vcmask 924672  }
 0x554   :  { %v2736_v45 = vsel %vm2726_vm6, nan, %v2735_v41  ;;  %v2825_v54 = vsel %vm2738_vm9, %v10653_v38, %v2822_v52 }
 0x555   :  { %v2844_v1 = vmul.f32 %v2736_v45, %v10496_v36  ;;  %8497 = vcosq.f32 %v2825_v54 }
 0x556   :  { %8499 = vsinq.f32 %v2825_v54 }
 0x557   :  { %v2850_v12 = vsub.f32 %v2209_v40, %v2844_v1 }
 0x559   :  { %v8089_v37 = vpack.i.bf16 %v2850_v12, %v10803_v58 }
 0x55b   :  { %8090 = vrot.lane.b32.xlu1 %v8089_v37, %s8638_s20  ;;  %8085 = vrot.lane.b32.xlu0 %v8089_v37, %s8635_s17 }
 0x55f   :  { %v8498_v57 = vpop.eup %8497 }
 0x560   :  { %v8500_v61 = vpop.eup %8499  ;;  %v2836_v62 = vxor.u32 2147483648, %v8498_v57 }
 0x561   :  { %v2833_v43 = vxor.u32 2147483648, %v8500_v61 }
 0x562   :  { %v2837_v31 = vsel %vm2835_vm10, %v2836_v62, %v8500_v61 }
 0x563   :  { %v2834_v5 = vsel %vm2832_vm11, %v8498_v57, %v2833_v43 }
 0x564   :  { %v2838_v20 = vsel %vm2831_vm13, %v2834_v5, %v2837_v31 }
 0x565   :  { %v2839_v60 = vsel %vm2829_vm8, nan, %v2838_v20 }
 0x566   :  { %v2845_v7 = vmul.f32 %v2839_v60, %v10496_v36 }
 0x568   :  { %v2851_v34 = vsub.f32 %v2210_v50, %v2845_v7 }
 0x56a   :  { %v8099_v8 = vpack.i.bf16 %v2851_v34, %v2850_v12 }
 0x56c   :  { %8100 = vrot.lane.b32.xlu1 %v8099_v8, %s8642_s28  ;;  %8095 = vrot.lane.b32.xlu0 %v8099_v8, %s8641_s0 }
 0x56e   :  { %v2989_v36 = vpop.permute.xlu0 %2988 }
 0x570   :  { %2996 = vrot.lane.b32.xlu1 %v2850_v12, %s8640_s27  ;;  %8105 = vrot.lane.b32.xlu0 %v8099_v8, %s8643_s29 }
 0x574   :  { %2893 = vrot.lane.b32.xlu1 %v2851_v34, %s8635_s17  ;;  %2992 = vrot.lane.b32.xlu0 %v10768_v17, %s8640_s27  ;;  %s8644_s17 = smov 9  }
 0x578   :  { %2913 = vrot.lane.b32.xlu1 %v2851_v34, %s8638_s20  ;;  %2994 = vrot.lane.b32.xlu0 %v10803_v58, %s8640_s27  ;;  %s8646_s20 = smov 101  }
 0x57c   :  { %2979 = vrot.lane.b32.xlu1 %v13539_v3, %s8643_s29  ;;  %2958 = vrot.lane.b32.xlu0 %v13539_v3, %s8642_s28 }
 0x580   :  { %3000 = vrot.lane.b32.xlu1 %v13539_v3, %s8640_s27  ;;  %2998 = vrot.lane.b32.xlu0 %v2851_v34, %s8640_s27 }
 0x584   :  { %8115 = vrot.lane.b32.xlu1 %v10811_v15, %s8644_s17  ;;  %8110 = vrot.lane.b32.xlu0 %v10738_v10, %s8644_s17 }
 0x588   :  { %8120 = vrot.lane.b32.xlu1 %v8099_v8, %s8644_s17 }
 0x58c   :  { %3100 = vrot.lane.b32.xlu1 %v2989_v36, %s8644_s17 }
 0x591   :  { %v8041_v38 = vpop.permute.xlu1 %8040  ;;  %v8036_v58 = vpop.permute.xlu0 %8035 }
 0x592   :  { %v8042_v13 = vunpack.i.l.bf16 %v8041_v38  ;;  %v8038_v4 = vunpack.i.h.bf16 %v8036_v58  ;;  %v8037_v56 = vunpack.i.l.bf16 %v8036_v58  ;;  %v8043_v45 = vunpack.i.h.bf16 %v8041_v38 }
 0x594   :  { %v2896_v1 = vsel %vm824_vm15, %v8037_v56, %v8038_v4  ;;  %v2916_v61 = vsel %vm893_vm3, %v8042_v13, %v8043_v45 }
 0x595   :  { %v8046_v17 = vpop.permute.xlu1 %8045 }
 0x596   :  { %v8047_v19 = vunpack.i.l.bf16 %v8046_v17  ;;  %v8048_v52 = vunpack.i.h.bf16 %v8046_v17 }
 0x598   :  { %v2934_v31 = vsel %vm2933_vm2, %v8047_v19, %v8048_v52 }
 0x599   :  { %v8051_v11 = vpop.permute.xlu1 %8050 }
 0x59a   :  { %v8052_v15 = vunpack.i.l.bf16 %v8051_v11  ;;  %v8053_v62 = vunpack.i.h.bf16 %v8051_v11 }
 0x59c   :  { %v2961_v8 = vsel %vm2960_vm1, %v8052_v15, %v8053_v62 }
 0x59d   :  { %v8056_v23 = vpop.permute.xlu1 %8055 }
 0x59e   :  { %v8057_v39 = vunpack.i.l.bf16 %v8056_v23  ;;  %v8058_v50 = vunpack.i.h.bf16 %v8056_v23 }
 0x5a0   :  { %v10875_v18 = vpop.permute.xlu0 %8065  ;;  %v8124_v35 = vpack.i.bf16 %v8057_v39, %v8052_v15  ;;  %v2982_v17 = vsel %vm2981_vm7, %v8057_v39, %v8058_v50 }
 0x5a1   :  { %v8068_v27 = vunpack.i.h.bf16 %v10875_v18  ;;  %v10879_v6 = vpop.permute.xlu1 %2990  ;;  %v8067_v41 = vunpack.i.l.bf16 %v10875_v18 }
 0x5a2   :  { %8125 = vrot.lane.b32.xlu0 %v8124_v35, %s8644_s17  ;;  %v3003_v53 = vsel %vm3002_vm0, %v2989_v36, %v10879_v6 }
 0x5a3   :  { %v2915_v10 = vsel %vm893_vm3, %v8068_v27, %v8042_v13  ;;  %v2917_v22 = vsel %vm893_vm3, %v8043_v45, %v8067_v41 }
 0x5a4   :  { %v8134_v46 = vpack.i.bf16 %v8047_v19, %v2915_v10  ;;  %v8144_v60 = vpack.i.bf16 %v2917_v22, %v2916_v61 }
 0x5a5   :  { %v10883_v59 = vpop.permute.xlu1 %8060 }
 0x5a6   :  { %8135 = vrot.lane.b32.xlu1 %v8134_v46, %s8644_s17  ;;  %v8063_v42 = vunpack.i.h.bf16 %v10883_v59  ;;  %v8062_v40 = vunpack.i.l.bf16 %v10883_v59 }
 0x5a8   :  { %v2897_v54 = vsel %vm824_vm15, %v8038_v4, %v8062_v40  ;;  %v2895_v12 = vsel %vm824_vm15, %v8063_v42, %v8037_v56 }
 0x5a9   :  { %v8129_v37 = vpack.i.bf16 %v2895_v12, %v13539_v3  ;;  %v8139_v48 = vpack.i.bf16 %v2897_v54, %v2896_v1 }
 0x5aa   :  { %3102 = vrot.lane.b32.xlu1 %v3003_v53, %s8644_s17 }
 0x5ab   :  { %8130 = vrot.lane.b32.xlu0 %v8129_v37, %s8644_s17 }
 0x5ad   :  { %v8071_v55 = vpop.permute.xlu0 %8070 }
 0x5ae   :  { %v8072_v33 = vunpack.i.l.bf16 %v8071_v55  ;;  %8140 = vrot.lane.b32.xlu1 %v8139_v48, %s8644_s17  ;;  %v8073_v27 = vunpack.i.h.bf16 %v8071_v55 }
 0x5b0   :  { %v2935_v57 = vsel %vm2933_vm2, %v8048_v52, %v8072_v33  ;;  %v2936_v39 = vsel %vm2933_vm2, %v8072_v33, %v8073_v27 }
 0x5b1   :  { %v8076_v43 = vpop.permute.xlu0 %8075  ;;  %v8149_v20 = vpack.i.bf16 %v2935_v57, %v2934_v31 }
 0x5b2   :  { %v8077_v5 = vunpack.i.l.bf16 %v8076_v43  ;;  %8145 = vrot.lane.b32.xlu1 %v8144_v60, %s8644_s17  ;;  %v8078_v46 = vunpack.i.h.bf16 %v8076_v43 }
 0x5b3   :  { %8150 = vrot.lane.b32.xlu0 %v8149_v20, %s8644_s17 }
 0x5b4   :  { %v2962_v7 = vsel %vm2960_vm1, %v8053_v62, %v8077_v5  ;;  %v2963_v1 = vsel %vm2960_vm1, %v8077_v5, %v8078_v46 }
 0x5b5   :  { %v10908_v34 = vpop.permute.xlu0 %8080  ;;  %v8154_v38 = vpack.i.bf16 %v2962_v7, %v2961_v8 }
 0x5b6   :  { %v8082_v36 = vunpack.i.l.bf16 %v10908_v34 }
 0x5b7   :  { %8155 = vrot.lane.b32.xlu0 %v8154_v38, %s8644_s17 }
 0x5b8   :  { %v2983_v58 = vsel %vm2981_vm7, %v8058_v50, %v8082_v36 }
 0x5b9   :  { %v8159_v11 = vpack.i.bf16 %v2983_v58, %v2982_v17 }
 0x5bb   :  { %8160 = vrot.lane.b32.xlu1 %v8159_v11, %s8644_s17  ;;  %v8083_v11 = vunpack.i.h.bf16 %v10908_v34 }
 0x5bd   :  { %v2984_v18 = vsel %vm2981_vm7, %v8082_v36, %v8083_v11  ;;  %v7449_v36 = vld [vmem:[%s13459_s9 + $0x8] sm:$0xff] }
 0x5cd   :  { %v10918_v13 = vpop.permute.xlu1 %8090  ;;  %v8086_v23 = vpop.permute.xlu0 %8085 }
 0x5ce   :  { %v8087_v52 = vunpack.i.l.bf16 %v8086_v23  ;;  %v8088_v33 = vunpack.i.h.bf16 %v8086_v23  ;;  %v8093_v22 = vunpack.i.h.bf16 %v10918_v13  ;;  %v8092_v57 = vunpack.i.l.bf16 %v10918_v13 }
 0x5d0   :  { %v2898_v61 = vsel %vm824_vm15, %v8062_v40, %v8087_v52  ;;  %v2899_v31 = vsel %vm824_vm15, %v8087_v52, %v8088_v33  ;;  %v2918_v38 = vsel %vm893_vm3, %v8067_v41, %v8092_v57  ;;  %v2919_v17 = vsel %vm893_vm3, %v8092_v57, %v8093_v22 }
 0x5d1   :  { %v8164_v8 = vpack.i.bf16 %v2899_v31, %v2898_v61 }
 0x5de   :  { %v10920_v19 = vpop.permute.xlu1 %8100  ;;  %v8096_v15 = vpop.permute.xlu0 %8095 }
 0x5df   :  { %v8102_v10 = vunpack.i.l.bf16 %v10920_v19  ;;  %v8097_v35 = vunpack.i.l.bf16 %v8096_v15  ;;  %v8098_v37 = vunpack.i.h.bf16 %v8096_v15  ;;  %v8103_v34 = vunpack.i.h.bf16 %v10920_v19  ;;  %v7418_v19 = vld [vmem:[%s13455_s5 + $0x8] sm:$0xff] }
 0x5e1   :  { %v2937_v4 = vsel %vm2933_vm2, %v8073_v27, %v8097_v35  ;;  %v2964_v45 = vsel %vm2960_vm1, %v8078_v46, %v8102_v10  ;;  %v2938_v5 = vsel %vm2933_vm2, %v8097_v35, %v8098_v37  ;;  %v8169_v27 = vpack.i.bf16 %v2919_v17, %v2918_v38 }
 0x5e2   :  { %v10925_v56 = vpop.permute.xlu1 %2996  ;;  %v8106_v53 = vpop.permute.xlu0 %8105  ;;  %v8174_v42 = vpack.i.bf16 %v2937_v4, %v2936_v39  ;;  %v8179_v12 = vpack.i.bf16 %v2964_v45, %v2963_v1  ;;  %v8199_v59 = vpack.i.bf16 %v8098_v37, %v2938_v5 }
 0x5e3   :  { %v8108_v60 = vunpack.i.h.bf16 %v8106_v53  ;;  %v8107_v50 = vunpack.i.l.bf16 %v8106_v53  ;;  %v7422_v53 = vld [vmem:[%s13456_s6 + $0x8] sm:$0xff] }
 0x5e4   :  { %8175 = vrot.lane.b32.xlu1 %v8174_v42, %s8644_s17 }
 0x5e5   :  { %v2986_v13 = vsel %vm2981_vm7, %v8107_v50, %v8108_v60  ;;  %v2985_v15 = vsel %vm2981_vm7, %v8083_v11, %v8107_v50 }
 0x5e6   :  { %v2894_v55 = vpop.permute.xlu1 %2893  ;;  %v2993_v54 = vpop.permute.xlu0 %2992  ;;  %v8184_v39 = vpack.i.bf16 %v2985_v15, %v2984_v18 }
 0x5e7   :  { %v3004_v48 = vsel %vm3002_vm0, %v10879_v6, %v2993_v54  ;;  %v2900_v46 = vsel %vm824_vm15, %v8088_v33, %v2894_v55  ;;  %vm3114_vm15 = vcmask 72704  }
 0x5e8   :  { %8180 = vrot.lane.b32.xlu1 %v8179_v12, %s8644_s17  ;;  %3104 = vrot.lane.b32.xlu0 %v3004_v48, %s8644_s17  ;;  %v8189_v42 = vpack.i.bf16 %v2894_v55, %v2900_v46  ;;  %v2965_v55 = vsel %vm2960_vm1, %v8102_v10, %v8103_v34  ;;  %v7423_v10 = vld [vmem:[%s13457_s7 + $0x8] sm:$0xff] }
 0x5ea   :  { %v2914_v62 = vpop.permute.xlu1 %2913  ;;  %v2995_v43 = vpop.permute.xlu0 %2994 }
 0x5eb   :  { %v3006_v6 = vsel %vm3002_vm0, %v2995_v43, %v10925_v56  ;;  %v3005_v20 = vsel %vm3002_vm0, %v2993_v54, %v2995_v43  ;;  %v2920_v45 = vsel %vm893_vm3, %v8093_v22, %v2914_v62  ;;  %v7454_v54 = vld [vmem:[%s13453_s3 + $0x10] sm:$0xff] }
 0x5ec   :  { %3108 = vrot.lane.b32.xlu1 %v3006_v6, %s8644_s17  ;;  %3106 = vrot.lane.b32.xlu0 %v3005_v20, %s8644_s17  ;;  %v8194_v1 = vpack.i.bf16 %v2914_v62, %v2920_v45 }
 0x5ee   :  { %v2980_v7 = vpop.permute.xlu1 %2979  ;;  %v2959_v40 = vpop.permute.xlu0 %2958 }
 0x5ef   :  { %v2987_v58 = vsel %vm2981_vm7, %v8108_v60, %v2980_v7  ;;  %v2966_v52 = vsel %vm2960_vm1, %v8103_v34, %v2959_v40 }
 0x5f0   :  { %8200 = vrot.lane.b32.xlu1 %v8199_v59, %s8644_s17  ;;  %8165 = vrot.lane.b32.xlu0 %v8164_v8, %s8644_s17  ;;  %v8209_v23 = vpack.i.bf16 %v2987_v58, %v2986_v13  ;;  %v8204_v12 = vpack.i.bf16 %v2966_v52, %v2965_v55 }
 0x5f2   :  { %v2999_v35 = vpop.permute.xlu0 %2998  ;;  %v3001_v41 = vpop.permute.xlu1 %3000 }
 0x5f3   :  { %v3008_v4 = vsel %vm3002_vm0, %v2999_v35, %v3001_v41  ;;  %v3007_v33 = vsel %vm3002_vm0, %v10925_v56, %v2999_v35  ;;  %v7453_v56 = vld [vmem:[%s13452_s2 + $0x10] sm:$0xff] }
 0x5f4   :  { %8210 = vrot.lane.b32.xlu1 %v8209_v23, %s8644_s17  ;;  %8170 = vrot.lane.b32.xlu0 %v8169_v27, %s8644_s17 }
 0x5f6   :  { %v10988_v37 = vpop.permute.xlu1 %8115  ;;  %v11001_v61 = vpop.permute.xlu0 %8110 }
 0x5f7   :  { %v8113_v31 = vunpack.i.h.bf16 %v11001_v61  ;;  %v8112_v5 = vunpack.i.l.bf16 %v11001_v61 }
 0x5f8   :  { %3112 = vrot.lane.b32.xlu1 %v3008_v4, %s8644_s17  ;;  %8185 = vrot.lane.b32.xlu0 %v8184_v39, %s8644_s17 }
 0x5f9   :  { %v3116_v38 = vsel %vm3114_vm15, %v8112_v5, %v8113_v31 }
 0x5fa   :  { %v10996_v48 = vpop.permute.xlu1 %8120 }
 0x5fc   :  { %3432 = vperm.xlu1 %8033, %v7422_v53   ;;  %8190 = vrot.lane.b32.xlu0 %v8189_v42, %s8644_s17 }
 0x5fe   :  { %v3101_v22 = vpop.permute.xlu1 %3100 }
 0x600   :  { %4077 = vperm.xlu1 %8033, %v7449_v36   ;;  %8195 = vrot.lane.b32.xlu0 %v8194_v1, %s8644_s17 }
 0x604   :  { %4314 = vperm.xlu1 %8033, %v7454_v54   ;;  %8205 = vrot.lane.b32.xlu0 %v8204_v12, %s8644_s17 }
 0x608   :  { %3110 = vrot.lane.b32.xlu0 %v3007_v33, %s8644_s17  ;;  %s8645_s17 = smov 74  }
 0x60c   :  { %3013 = vperm.xlu0 %7852, %v7418_v19  }
 0x610   :  { %3421 = vperm.xlu0 %7852, %v7423_v10  }
 0x614   :  { %4325 = vperm.xlu0 %7852, %v7453_v56   ;;  %v8126_v43 = vpop.permute.xlu0 %8125 }
 0x615   :  { %v8128_v54 = vunpack.i.h.bf16 %v8126_v43  ;;  %v8127_v12 = vunpack.i.l.bf16 %v8126_v43 }
 0x618   :  { %v8136_v57 = vpop.permute.xlu1 %8135 }
 0x619   :  { %v8138_v58 = vunpack.i.h.bf16 %v8136_v57  ;;  %v8137_v11 = vunpack.i.l.bf16 %v8136_v57 }
 0x61c   :  { %v3103_v62 = vpop.permute.xlu1 %3102 }
 0x61d   :  { %v8131_v6 = vpop.permute.xlu0 %8130 }
 0x61e   :  { %v8133_v60 = vunpack.i.h.bf16 %v8131_v6  ;;  %v8132_v50 = vunpack.i.l.bf16 %v8131_v6 }
 0x620   :  { %v11005_v20 = vpop.permute.xlu1 %8140  ;;  %v3115_v40 = vsel %vm3114_vm15, %v8132_v50, %v8112_v5 }
 0x621   :  { %v8143_v59 = vunpack.i.h.bf16 %v11005_v20  ;;  %v8142_v7 = vunpack.i.l.bf16 %v11005_v20 }
 0x623   :  { %v3121_v8 = vsel %vm3114_vm15, %v8133_v60, %v8142_v7  ;;  %v3122_v17 = vsel %vm3114_vm15, %v8142_v7, %v8143_v59 }
 0x624   :  { %v7581_v13 = vpack.c.bf16 %v3121_v8, %v3115_v40  ;;  %v11019_v27 = vpop.permute.xlu1 %8145  ;;  %v7579_v15 = vpack.c.bf16 %v3122_v17, %v3116_v38  ;;  %v11048_v40 = vld [vmem:[%s13454_s4 + $0x8] sm:$0xff]  ;;  %v3151_v8 = vsel %vm3114_vm15, %v3101_v22, %v3103_v62 }
 0x625   :  { %v11017_v23 = vpop.permute.xlu0 %8150  ;;  %v8148_v41 = vunpack.i.h.bf16 %v11019_v27  ;;  %v8147_v39 = vunpack.i.l.bf16 %v11019_v27 }
 0x626   :  { %v8153_v35 = vunpack.i.h.bf16 %v11017_v23  ;;  %v8152_v18 = vunpack.i.l.bf16 %v11017_v23  ;;  %7580 = vmatprep.subr.bf16.mxu1 %v7579_v15 }
 0x627   :  { %v3127_v4 = vsel %vm3114_vm15, %v8137_v11, %v8147_v39  ;;  %7582 = vmatpush1.bf16.msra.mxu1 %v7581_v13  ;;  %v3128_v53 = vsel %vm3114_vm15, %v8147_v39, %v8148_v41  ;;  %v8117_v11 = vunpack.i.l.bf16 %v10988_v37 }
 0x628   :  { %v3133_v46 = vsel %vm3114_vm15, %v8138_v58, %v8152_v18  ;;  %v3134_v42 = vsel %vm3114_vm15, %v8152_v18, %v8153_v35  ;;  %v8118_v58 = vunpack.i.h.bf16 %v10988_v37 }
 0x629   :  { %v7585_v45 = vpack.c.bf16 %v3133_v46, %v3127_v4  ;;  %v11029_v34 = vpop.permute.xlu0 %8155  ;;  %v7583_v36 = vpack.c.bf16 %v3134_v42, %v3128_v53  ;;  %v3117_v15 = vsel %vm3114_vm15, %v8113_v31, %v8117_v11 }
 0x62a   :  { %v8158_v1 = vunpack.i.h.bf16 %v11029_v34  ;;  %v8157_v52 = vunpack.i.l.bf16 %v11029_v34  ;;  %v3118_v39 = vsel %vm3114_vm15, %v8117_v11, %v8118_v58 }
 0x62b   :  { %7584 = vmatprep.subr.bf16.mxu1 %v7583_v36 }
 0x62c   :  { %7586 = vmatpush1.bf16.msra.mxu1 %v7585_v45  ;;  %v3139_v10 = vsel %vm3114_vm15, %v8127_v12, %v8157_v52  ;;  %v3140_v57 = vsel %vm3114_vm15, %v8157_v52, %v8158_v1 }
 0x62d   :  { %v8161_v55 = vpop.permute.xlu1 %8160 }
 0x62e   :  { %v8163_v33 = vunpack.i.h.bf16 %v8161_v55  ;;  %v8162_v19 = vunpack.i.l.bf16 %v8161_v55 }
 0x630   :  { %v3145_v56 = vsel %vm3114_vm15, %v8128_v54, %v8162_v19  ;;  %v3146_v5 = vsel %vm3114_vm15, %v8162_v19, %v8163_v33 }
 0x631   :  { %v7589_v6 = vpack.c.bf16 %v3145_v56, %v3139_v10  ;;  %v7587_v60 = vpack.c.bf16 %v3146_v5, %v3140_v57  ;;  %v8123_v57 = vunpack.i.h.bf16 %v10996_v48 }
 0x633   :  { %7588 = vmatprep.subr.bf16.mxu1 %v7587_v60 }
 0x634   :  { %7590 = vmatpush1.bf16.msra.mxu1 %v7589_v6 }
 0x656   :  { %v11039_v50 = vpop.permute.xlu1 %8175 }
 0x657   :  { %v8178_v22 = vunpack.i.h.bf16 %v11039_v50 }
 0x65a   :  { %v11041_v7 = vpop.permute.xlu0 %3104  ;;  %v11056_v17 = vpop.permute.xlu1 %8180 }
 0x65b   :  { %v3152_v43 = vsel %vm3114_vm15, %v3103_v62, %v11041_v7  ;;  %v8177_v62 = vunpack.i.l.bf16 %v11039_v50  ;;  %v8183_v31 = vunpack.i.h.bf16 %v11056_v17  ;;  %v8182_v20 = vunpack.i.l.bf16 %v11056_v17 }
 0x65c   :  { %3214 = vmatprep.subr.mxu1 %v3152_v43 }
 0x65d   :  { %3215 = vmatpush1.msra.mxu1 %v3151_v8  ;;  %v3135_v52 = vsel %vm3114_vm15, %v8153_v35, %v8177_v62  ;;  %v3136_v61 = vsel %vm3114_vm15, %v8177_v62, %v8178_v22  ;;  %v8122_v35 = vunpack.i.l.bf16 %v10996_v48  ;;  %v3141_v6 = vsel %vm3114_vm15, %v8158_v1, %v8182_v20 }
 0x65e   :  { %v11051_v38 = vpop.permute.xlu0 %3106  ;;  %7419 = vmatmul.mubr.msk.f32.vlgmr.msra.gmra.mrb[8].mxu1 %vm13497_vm5, %v11048_v40  ;;  %v11070_v37 = vpop.permute.xlu1 %3108  ;;  %v3142_v60 = vsel %vm3114_vm15, %v8182_v20, %v8183_v31 }
 0x65f   :  { %3408 = vmatprep.mubr.f32.mxu1 %v13539_v3  ;;  %v3119_v48 = vsel %vm3114_vm15, %v8118_v58, %v8122_v35  ;;  %v3154_v1 = vsel %vm3114_vm15, %v11051_v38, %v11070_v37 }
 0x662   :  { %v8166_v13 = vpop.permute.xlu0 %8165  ;;  %v8201_v5 = vpop.permute.xlu1 %8200 }
 0x663   :  { %v8168_v23 = vunpack.i.h.bf16 %v8166_v13  ;;  %v8167_v27 = vunpack.i.l.bf16 %v8166_v13  ;;  %v8202_v62 = vunpack.i.l.bf16 %v8201_v5 }
 0x665   :  { %v3123_v18 = vsel %vm3114_vm15, %v8143_v59, %v8167_v27  ;;  %v3124_v46 = vsel %vm3114_vm15, %v8167_v27, %v8168_v23  ;;  %v8203_v27 = vunpack.i.h.bf16 %v8201_v5 }
 0x666   :  { %v7593_v4 = vpack.c.bf16 %v3123_v18, %v3117_v15  ;;  %v8171_v53 = vpop.permute.xlu0 %8170  ;;  %v7591_v42 = vpack.c.bf16 %v3124_v46, %v3118_v39  ;;  %v8211_v18 = vpop.permute.xlu1 %8210 }
 0x667   :  { %v8173_v45 = vunpack.i.h.bf16 %v8171_v53  ;;  %v8172_v36 = vunpack.i.l.bf16 %v8171_v53 }
 0x668   :  { %7592 = vmatprep.subr.bf16.mxu0 %v7591_v42  ;;  %v3137_v42 = vsel %vm3114_vm15, %v8178_v22, %v8202_v62 }
 0x669   :  { %v3129_v59 = vsel %vm3114_vm15, %v8148_v41, %v8172_v36  ;;  %7594 = vmatpush1.bf16.msra.mxu0 %v7593_v4  ;;  %v3130_v55 = vsel %vm3114_vm15, %v8172_v36, %v8173_v45  ;;  %v3138_v36 = vsel %vm3114_vm15, %v8202_v62, %v8203_v27 }
 0x66a   :  { %v7597_v54 = vpack.c.bf16 %v3135_v52, %v3129_v59  ;;  %v8186_v12 = vpop.permute.xlu0 %8185  ;;  %v7595_v19 = vpack.c.bf16 %v3136_v61, %v3130_v55  ;;  %v8213_v52 = vunpack.i.h.bf16 %v8211_v18  ;;  %v8212_v61 = vunpack.i.l.bf16 %v8211_v18 }
 0x66b   :  { %v8188_v10 = vunpack.i.h.bf16 %v8186_v12  ;;  %v8187_v56 = vunpack.i.l.bf16 %v8186_v12 }
 0x66c   :  { %7596 = vmatprep.subr.bf16.mxu0 %v7595_v19 }
 0x66d   :  { %v3147_v41 = vsel %vm3114_vm15, %v8163_v33, %v8187_v56  ;;  %7598 = vmatpush1.bf16.msra.mxu0 %v7597_v54  ;;  %v3148_v50 = vsel %vm3114_vm15, %v8187_v56, %v8188_v10  ;;  %v3120_v33 = vsel %vm3114_vm15, %v8122_v35, %v8123_v57  ;;  %v3149_v22 = vsel %vm3114_vm15, %v8188_v10, %v8212_v61 }
 0x66e   :  { %v7601_v43 = vpack.c.bf16 %v3147_v41, %v3141_v6  ;;  %v8191_v8 = vpop.permute.xlu0 %8190  ;;  %v7599_v17 = vpack.c.bf16 %v3148_v50, %v3142_v60  ;;  %v3150_v56 = vsel %vm3114_vm15, %v8212_v61, %v8213_v52  ;;  %v3113_v6 = vpop.permute.xlu1 %3112 }
 0x66f   :  { %v8193_v11 = vunpack.i.h.bf16 %v8191_v8  ;;  %v8192_v13 = vunpack.i.l.bf16 %v8191_v8 }
 0x670   :  { %7600 = vmatprep.subr.bf16.mxu0 %v7599_v17 }
 0x671   :  { %v3125_v34 = vsel %vm3114_vm15, %v8168_v23, %v8192_v13  ;;  %7602 = vmatpush1.bf16.msra.mxu0 %v7601_v43  ;;  %v3126_v15 = vsel %vm3114_vm15, %v8192_v13, %v8193_v11  ;;  %v3153_v23 = vsel %vm3114_vm15, %v11041_v7, %v11051_v38 }
 0x672   :  { %v7605_v39 = vpack.c.bf16 %v3125_v34, %v3119_v48  ;;  %v8196_v46 = vpop.permute.xlu0 %8195  ;;  %3285 = vmatprep.subr.mxu0 %v3154_v1  ;;  %v7603_v4 = vpack.c.bf16 %v3126_v15, %v3120_v33 }
 0x673   :  { %v8198_v58 = vunpack.i.h.bf16 %v8196_v46  ;;  %v8197_v53 = vunpack.i.l.bf16 %v8196_v46 }
 0x674   :  { %7604 = vmatprep.subr.bf16.mxu1 %v7603_v4 }
 0x675   :  { %v3131_v20 = vsel %vm3114_vm15, %v8173_v45, %v8197_v53  ;;  %3286 = vmatpush1.msra.mxu0 %v3153_v23  ;;  %7606 = vmatpush1.bf16.msra.mxu1 %v7605_v39  ;;  %v3132_v59 = vsel %vm3114_vm15, %v8197_v53, %v8198_v58 }
 0x676   :  { %v7609_v55 = vpack.c.bf16 %v3137_v42, %v3131_v20  ;;  %v8206_v54 = vpop.permute.xlu0 %8205  ;;  %7420 = vmatmul.mubr.msk.f32.vlgmr.msra.gmra.mrb[4].mxu0 %vm13497_vm5, %v11048_v40  ;;  %v7607_v12 = vpack.c.bf16 %v3138_v36, %v3132_v59 }
 0x677   :  { %v8208_v7 = vunpack.i.h.bf16 %v8206_v54  ;;  %v8207_v38 = vunpack.i.l.bf16 %v8206_v54  ;;  %4147 = vmatprep.mubr.f32.mxu0 %v13539_v3 }
 0x678   :  { %7608 = vmatprep.subr.bf16.mxu1 %v7607_v12 }
 0x679   :  { %v3143_v19 = vsel %vm3114_vm15, %v8183_v31, %v8207_v38  ;;  %7610 = vmatpush1.bf16.msra.mxu1 %v7609_v55  ;;  %v3144_v45 = vsel %vm3114_vm15, %v8207_v38, %v8208_v7 }
 0x67a   :  { %v7613_v57 = vpack.c.bf16 %v3149_v22, %v3143_v19  ;;  %v3111_v35 = vpop.permute.xlu0 %3110  ;;  %v7611_v5 = vpack.c.bf16 %v3150_v56, %v3144_v45 }
 0x67b   :  { %v3156_v41 = vsel %vm3114_vm15, %v3111_v35, %v3113_v6  ;;  %v3155_v60 = vsel %vm3114_vm15, %v11070_v37, %v3111_v35  ;;  %v11118_v8 = vpop.permute.xlu1 %3432 }
 0x67c   :  { %7612 = vmatprep.subr.bf16.mxu1 %v7611_v5 }
 0x67d   :  { %7614 = vmatpush1.bf16.msra.mxu1 %v7613_v57 }
 0x67e   :  { %3356 = vmatprep.subr.mxu1 %v3156_v41 }
 0x681   :  { %3357 = vmatpush1.msra.mxu1 %v3155_v60 }
 0x682   :  { %7421 = vmatmul.mubr.msk.f32.vlgmr.msra.gmra.mrb[10].mxu1 %vm13497_vm5, %v11048_v40 }
 0x683   :  { %5449 = vmatprep.mubr.f32.mxu1 %v13539_v3 }
 0x68b   :  { %v11113_v31 = vpop.permute.xlu0 %3013 }
 0x731   :  { %v3268_v10 = vpop.f32.mrb[8].mxu1 }
 0x732   :  { %v11116_v50 = vadd.f32 %v3268_v10, %v11113_v31  ;;  %v3270_v43 = vpop.f32.mrb[9].mxu1 }
 0x733   :  { %v11121_v17 = vadd.f32 %v3270_v43, %v11113_v31 }
 0x734   :  { %v11125_v37 = vmul.f32 %v11118_v8, %v11116_v50 }
 0x735   :  { %v11129_v40 = vmul.f32 %v11118_v8, %v11121_v17 }
 0x736   :  { %v3441_v11 = vand.u32 2147483647, %v11125_v37  ;;  %v3444_v13 = vand.u32 2139095040, %v11125_v37 }
 0x737   :  { %v13486_v48 = vand.u32 2147483647, %v11129_v40  ;;  %v3547_v27 = vand.u32 2139095040, %v11129_v40 }
 0x738   :  { %v3445_v62 = vshrl.u32 %v3444_v13, 23  ;;  %v3448_v34 = vand.u32 8388607, %v3441_v11 }
 0x739   :  { %v3548_v1 = vshrl.u32 %v3547_v27, 23  ;;  %v3551_v33 = vand.u32 8388607, %v13486_v48 }
 0x73a   :  { %v7424_v15 = vadd.s32 4294967169, %v3445_v62  ;;  %v3449_v46 = vor.u32 8388608, %v3448_v34 }
 0x73b   :  { %v7428_v18 = vadd.s32 4294967169, %v3548_v1  ;;  %v3552_v4 = vor.u32 8388608, %v3551_v33 }
 0x73c   :  { %v3451_v39 = vadd.s32 1, %v7424_v15  ;;  %v11139_v52 = vshll.u32 %v3449_v46, 8 }
 0x73d   :  { %v3554_v58 = vadd.s32 1, %v7428_v18  ;;  %v11141_v61 = vshll.u32 %v3552_v4, 8 }
 0x73e   :  { %vm3452_vm3 = vcmp.gt.s32.totalorder %v3451_v39, 0 }
 0x73f   :  { %v3453_v53 = vsel %vm3452_vm3, %v3451_v39, 0  ;;  %vm3555_vm6 = vcmp.gt.s32.totalorder %v3554_v58, 0 }
 0x740   :  { %v3454_v23 = vshrl.u32 %v3453_v53, 5  ;;  %v3455_v42 = vand.u32 31, %v3453_v53  ;;  %v3556_v36 = vsel %vm3555_vm6, %v3554_v58, 0  ;;  %vm3443_vm6 = vcmp.lt.s32.totalorder %v11125_v37, 0 }
 0x741   :  { %v11144_v55 = vshrl.u32 %v3556_v36, 5  ;;  %v3558_v54 = vand.u32 31, %v3556_v36 }
 0x742   :  { %v3456_v20 = vsub.s32 32, %v3455_v42  ;;  %v3458_v59 = vshll.u32 %v13519_v28, %v3455_v42  ;;  %v3461_v12 = vshll.u32 %v13520_v44, %v3455_v42  ;;  %v3464_v7 = vshll.u32 %v13521_v30, %v3455_v42 }
 0x743   :  { %v3467_v38 = vshll.u32 %v13522_v49, %v3455_v42  ;;  %v3470_v22 = vshll.u32 %v13546_v32, %v3455_v42  ;;  %vm3473_vm4 = vcmp.lt.s32.totalorder %v3454_v23, 1  ;;  %vm3474_vm9 = vcmp.lt.s32.totalorder %v3454_v23, 2 }
 0x744   :  { %v3459_v19 = vshrl.u32 %v13520_v44, %v3456_v20  ;;  %v3462_v45 = vshrl.u32 %v13521_v30, %v3456_v20  ;;  %v3465_v56 = vshrl.u32 %v13522_v49, %v3456_v20  ;;  %v3457_v57 = vshrl.u32 %v13519_v28, %v3456_v20 }
 0x745   :  { %v3468_v35 = vshrl.u32 %v13546_v32, %v3456_v20  ;;  %v3471_v5 = vshrl.u32 %v13547_v29, %v3456_v20  ;;  %v3559_v10 = vsub.s32 32, %v3558_v54  ;;  %vm3475_vm10 = vcmp.lt.s32.totalorder %v3454_v23, 3 }
 0x746   :  { %v3460_v6 = vor.u32 %v3459_v19, %v3458_v59  ;;  %v3463_v41 = vor.u32 %v3462_v45, %v3461_v12  ;;  %v3466_v60 = vor.u32 %v3465_v56, %v3464_v7  ;;  %vm3476_vm11 = vcmp.lt.s32.totalorder %v3454_v23, 4 }
 0x747   :  { %v3469_v43 = vor.u32 %v3468_v35, %v3467_v38  ;;  %v3472_v13 = vor.u32 %v3471_v5, %v3470_v22  ;;  %v3561_v39 = vshll.u32 %v13519_v28, %v3558_v54  ;;  %v3562_v53 = vshrl.u32 %v13520_v44, %v3559_v10 }
 0x748   :  { %v3477_v27 = vsel %vm3473_vm4, %v3457_v57, %v3460_v6  ;;  %v3478_v62 = vsel %vm3476_vm11, %v3466_v60, 2102212464  ;;  %v3481_v34 = vsel %vm3473_vm4, %v3460_v6, %v3463_v41  ;;  %v3485_v1 = vsel %vm3473_vm4, %v3463_v41, %v3466_v60 }
 0x749   :  { %v3479_v33 = vsel %vm3475_vm10, %v3463_v41, %v3478_v62  ;;  %v3482_v15 = vsel %vm3476_vm11, %v3469_v43, 920167782  ;;  %v3486_v18 = vsel %vm3476_vm11, %v3472_v13, 1326507024  ;;  %v3339_v46 = vpop.f32.mrb[4].mxu0  ;;  %v3564_v42 = vshll.u32 %v13520_v44, %v3558_v54 }
 0x74a   :  { %v3483_v4 = vsel %vm3475_vm10, %v3466_v60, %v3482_v15  ;;  %v3487_v58 = vsel %vm3475_vm10, %v3469_v43, %v3486_v18  ;;  %v3341_v36 = vpop.f32.mrb[5].mxu0  ;;  %v3480_v20 = vsel %vm3474_vm9, %v3477_v27, %v3479_v33  ;;  %v3565_v7 = vshrl.u32 %v13521_v30, %v3559_v10 }
 0x74b   :  { %v3484_v59 = vsel %vm3474_vm9, %v3481_v34, %v3483_v4  ;;  %v3488_v12 = vsel %vm3474_vm9, %v3485_v1, %v3487_v58  ;;  %v3563_v56 = vor.u32 %v3562_v53, %v3561_v39  ;;  %v3567_v35 = vshll.u32 %v13521_v30, %v3558_v54 }
 0x74c   :  { %v11167_v38 = vmul.u32.u64.low %v11139_v52, %v3488_v12  ;;  %v11168_v22 = vmul.u32.u64.high %v11139_v52, %v3488_v12, %v11167_v38  ;;  %v11171_v19 = vmul.u32.u64.low %v11139_v52, %v3484_v59  ;;  %v11172_v45 = vmul.u32.u64.high %v11139_v52, %v3484_v59, %v11171_v19 }
 0x74d   :  { %v3566_v57 = vor.u32 %v3565_v7, %v3564_v42  ;;  %v3568_v5 = vshrl.u32 %v13522_v49, %v3559_v10  ;;  %v3560_v23 = vshrl.u32 %v13519_v28, %v3559_v10  ;;  %v3570_v6 = vshll.u32 %v13522_v49, %v3558_v54 }
 0x74e   :  { %v3571_v41 = vshrl.u32 %v13546_v32, %v3559_v10  ;;  %v3574_v60 = vshrl.u32 %v13547_v29, %v3559_v10  ;;  %v3496_v43 = vmul.u32 %v11139_v52, %v3480_v20  ;;  %v3573_v27 = vshll.u32 %v13546_v32, %v3558_v54 }
 0x74f   :  { %v3569_v13 = vor.u32 %v3568_v5, %v3567_v35  ;;  %vm3576_vm13 = vcmp.lt.s32.totalorder %v11144_v55, 1  ;;  %vm3498_vm8 = vc.u32 %v11168_v22, %v11171_v19  ;;  %v3499_v62 = vadd.s32 1, %v11172_v45 }
 0x750   :  { %v3572_v34 = vor.u32 %v3571_v41, %v3570_v6  ;;  %vm3577_vm1 = vcmp.lt.s32.totalorder %v11144_v55, 2  ;;  %v3575_v1 = vor.u32 %v3574_v60, %v3573_v27  ;;  %vm3578_vm7 = vcmp.lt.s32.totalorder %v11144_v55, 3 }
 0x751   :  { %vm3579_vm15 = vcmp.lt.s32.totalorder %v11144_v55, 4  ;;  %v3584_v10 = vsel %vm3576_vm13, %v3563_v56, %v3566_v57  ;;  %v3500_v52 = vsel %vm3498_vm8, %v3499_v62, %v11172_v45  ;;  %v3588_v15 = vsel %vm3576_vm13, %v3566_v57, %v3569_v13 }
 0x752   :  { %v3581_v33 = vsel %vm3579_vm15, %v3569_v13, 2102212464  ;;  %v3585_v54 = vsel %vm3579_vm15, %v3572_v34, 920167782  ;;  %v3501_v18 = vadd.s32 %v3500_v52, %v3496_v43  ;;  %v3580_v39 = vsel %vm3576_vm13, %v3560_v23, %v3563_v56 }
 0x753   :  { %v3586_v4 = vsel %vm3578_vm7, %v3569_v13, %v3585_v54  ;;  %v3589_v58 = vsel %vm3579_vm15, %v3575_v1, 1326507024  ;;  %v3582_v53 = vsel %vm3578_vm7, %v3566_v57, %v3581_v33  ;;  %v11194_v59 = vadd.f32 %v3339_v46, %v11113_v31 }
 0x754   :  { %v3587_v42 = vsel %vm3577_vm1, %v3584_v10, %v3586_v4  ;;  %v3590_v20 = vsel %vm3578_vm7, %v3572_v34, %v3589_v58  ;;  %v3502_v12 = vadd.s32 536870912, %v3501_v18  ;;  %v3583_v46 = vsel %vm3577_vm1, %v3580_v39, %v3582_v53 }
 0x755   :  { %v3591_v7 = vsel %vm3577_vm1, %v3588_v15, %v3590_v20  ;;  %v11199_v38 = vmul.u32.u64.low %v11141_v61, %v3587_v42  ;;  %v11200_v45 = vmul.u32.u64.high %v11141_v61, %v3587_v42, %v11199_v38  ;;  %v3410_v35 = vpop.f32.mrb[10].mxu1  ;;  %v11212_v6 = vmul.f32 %v11118_v8, %v11194_v59 }
 0x756   :  { %v11203_v56 = vmul.u32.u64.low %v11141_v61, %v3591_v7  ;;  %v11204_v5 = vmul.u32.u64.high %v11141_v61, %v3591_v7, %v11203_v56  ;;  %v11206_v57 = vpop.f32.mrb[11].mxu1  ;;  %v3503_v23 = vshrl.u32 %v3502_v12, 30  ;;  %v3599_v13 = vmul.u32 %v11141_v61, %v3583_v46 }
 0x757   :  { %v3602_v60 = vadd.s32 1, %v11200_v45  ;;  %v13485_v43 = vand.u32 2147483647, %v11212_v6  ;;  %v3650_v27 = vand.u32 2139095040, %v11212_v6  ;;  %v11220_v62 = vadd.f32 %v3341_v36, %v11113_v31 }
 0x758   :  { %v3504_v41 = vshll.u32 %v3503_v23, 30  ;;  %vm3601_vm3 = vc.u32 %v11204_v5, %v11199_v38  ;;  %v3527_v34 = vsub.s32 4, %v3503_v23  ;;  %vm11236_vm4 = vcmp.le.f32.partialorder %v3441_v11, 0.7853982 }
 0x759   :  { %v3603_v1 = vsel %vm3601_vm3, %v3602_v60, %v11200_v45  ;;  %v3651_v52 = vshrl.u32 %v3650_v27, 23  ;;  %v3654_v54 = vand.u32 8388607, %v13485_v43  ;;  %v11228_v39 = vmul.f32 %v11118_v8, %v11220_v62 }
 0x75a   :  { %v3505_v55 = vsub.s32 %v3501_v18, %v3504_v41  ;;  %v3604_v10 = vadd.s32 %v3603_v1, %v3599_v13  ;;  %v3528_v18 = vsel %vm3443_vm6, %v3527_v34, %v3503_v23  ;;  %v3497_v56 = vadd.s32 %v11171_v19, %v11168_v22 }
 0x75b   :  { %v7432_v15 = vadd.s32 4294967169, %v3651_v52  ;;  %v3655_v20 = vor.u32 8388608, %v3654_v54  ;;  %v3753_v12 = vand.u32 2139095040, %v11228_v39  ;;  %v3530_v7 = vsel %vm11236_vm4, 0, %v3528_v18 }
 0x75c   :  { %v3507_v33 = vsub.s32 0, %v3505_v55  ;;  %v3605_v61 = vadd.s32 536870912, %v3604_v10  ;;  %v3600_v11 = vadd.s32 %v11199_v38, %v11204_v5  ;;  %v11250_v27 = vadd.f32 %v3410_v35, %v11113_v31 }
 0x75d   :  { %v3657_v58 = vadd.s32 1, %v7432_v15  ;;  %v3754_v41 = vshrl.u32 %v3753_v12, 23  ;;  %v11252_v34 = vand.u32 3, %v3530_v7  ;;  %v11254_v1 = vshll.u32 %v3655_v20, 8 }
 0x75e   :  { %v7425_v36 = vmin.u32 %v3507_v33, %v3505_v55  ;;  %v11232_v4 = vshrl.u32 %v3605_v61, 30  ;;  %vm3546_vm3 = vcmp.lt.s32.totalorder %v11129_v40, 0 }
 0x75f   :  { %vm3658_vm9 = vcmp.gt.s32.totalorder %v3657_v58, 0  ;;  %v7436_v61 = vadd.s32 4294967169, %v3754_v41 }
 0x760   :  { %v3509_v42 = vclz %v7425_v36  ;;  %v3607_v45 = vshll.u32 %v11232_v4, 30  ;;  %v3659_v46 = vsel %vm3658_vm9, %v3657_v58, 0  ;;  %vm3535_vm9 = vcmp.lt.s32.totalorder %v11252_v34, 2 }
 0x761   :  { %v3661_v13 = vand.u32 31, %v3659_v46  ;;  %v11258_v19 = vshrl.u32 %v3659_v46, 5 }
 0x762   :  { %v7426_v23 = vadd.s32 4294967294, %v3509_v42  ;;  %v11247_v60 = vsub.s32 %v3604_v10, %v3607_v45 }
 0x763   :  { %v3662_v54 = vsub.s32 32, %v3661_v13  ;;  %v3664_v10 = vshll.u32 %v13519_v28, %v3661_v13  ;;  %v3667_v18 = vshll.u32 %v13520_v44, %v3661_v13  ;;  %v3670_v46 = vshll.u32 %v13521_v30, %v3661_v13 }
 0x764   :  { %vm7427_vm10 = vcmp.lt.s32.totalorder %v7426_v23, 0  ;;  %v3610_v22 = vsub.s32 0, %v11247_v60  ;;  %vm3679_vm11 = vcmp.lt.s32.totalorder %v11258_v19, 1  ;;  %vm3680_vm8 = vcmp.lt.s32.totalorder %v11258_v19, 2 }
 0x765   :  { %v3512_v33 = vsel %vm7427_vm10, 0, %v7426_v23  ;;  %v3665_v36 = vshrl.u32 %v13520_v44, %v3662_v54  ;;  %v3668_v20 = vshrl.u32 %v13521_v30, %v3662_v54  ;;  %v3671_v12 = vshrl.u32 %v13522_v49, %v3662_v54 }
 0x766   :  { %v3513_v38 = vsub.s32 32, %v3512_v33  ;;  %v3517_v5 = vsub.s32 4294967266, %v3512_v33  ;;  %v3514_v35 = vshll.u32 %v3505_v55, %v3512_v33  ;;  %v7429_v15 = vmin.u32 %v3610_v22, %v11247_v60 }
 0x767   :  { %v3663_v45 = vshrl.u32 %v13519_v28, %v3662_v54  ;;  %v3666_v23 = vor.u32 %v3665_v36, %v3664_v10  ;;  %v3673_v33 = vshll.u32 %v13522_v49, %v3661_v13  ;;  %v3674_v22 = vshrl.u32 %v13546_v32, %v3662_v54 }
 0x768   :  { %v3515_v58 = vshrl.u32 %v3497_v56, %v3513_v38  ;;  %v3518_v42 = vadd.s32 127, %v3517_v5  ;;  %v3612_v7 = vclz %v7429_v15  ;;  %v3672_v48 = vor.u32 %v3671_v12, %v3670_v46 }
 0x769   :  { %v3676_v56 = vshll.u32 %v13546_v32, %v3661_v13  ;;  %v3677_v38 = vshrl.u32 %v13547_v29, %v3662_v54  ;;  %v3669_v52 = vor.u32 %v3668_v20, %v3667_v18  ;;  %v3675_v15 = vor.u32 %v3674_v22, %v3673_v33 }
 0x76a   :  { %v3516_v41 = vor.u32 %v3515_v58, %v3514_v35  ;;  %v3519_v55 = vshll.u32 %v3518_v42, 23  ;;  %v7430_v43 = vadd.s32 4294967294, %v3612_v7  ;;  %vm3681_vm1 = vcmp.lt.s32.totalorder %v11258_v19, 3 }
 0x76b   :  { %v3678_v36 = vor.u32 %v3677_v38, %v3676_v56  ;;  %vm3682_vm7 = vcmp.lt.s32.totalorder %v11258_v19, 4  ;;  %v3683_v54 = vsel %vm3679_vm11, %v3663_v45, %v3666_v23  ;;  %v3687_v7 = vsel %vm3679_vm11, %v3666_v23, %v3669_v52 }
 0x76c   :  { %v3520_v5 = vor.u32 4788187, %v3519_v55  ;;  %v3523_v10 = vcvt.s32.f32 %v3516_v41  ;;  %vm7431_vm13 = vcmp.lt.s32.totalorder %v7430_v43, 0  ;;  %v3684_v18 = vsel %vm3682_vm7, %v3672_v48, 2102212464 }
 0x76d   :  { %v3615_v58 = vsel %vm7431_vm13, 0, %v7430_v43  ;;  %v3688_v43 = vsel %vm3682_vm7, %v3675_v15, 920167782  ;;  %v3691_v45 = vsel %vm3679_vm11, %v3669_v52, %v3672_v48  ;;  %v3685_v22 = vsel %vm3681_vm1, %v3669_v52, %v3684_v18 }
 0x76e   :  { %v3521_v35 = vand.u32 2147483647, %v3520_v5  ;;  %v3616_v42 = vsub.s32 32, %v3615_v58  ;;  %v3620_v13 = vsub.s32 4294967266, %v3615_v58  ;;  %v3617_v12 = vshll.u32 %v11247_v60, %v3615_v58 }
 0x76f   :  { %v3689_v55 = vsel %vm3681_vm1, %v3672_v48, %v3688_v43  ;;  %v3692_v23 = vsel %vm3682_vm7, %v3678_v36, 1326507024  ;;  %v3760_v5 = vadd.s32 1, %v7436_v61  ;;  %v11317_v43 = vpop.permute.xlu0 %3421  ;;  %vm3533_vm10 = vweird.f32 %v11125_v37 }
 0x770   :  { %v3524_v20 = vmul.f32 %v3523_v10, %v3521_v35  ;;  %v3618_v46 = vshrl.u32 %v3600_v11, %v3616_v42  ;;  %v3621_v41 = vadd.s32 127, %v3620_v13  ;;  %v3690_v60 = vsel %vm3680_vm8, %v3687_v7, %v3689_v55 }
 0x771   :  { %v3693_v11 = vsel %vm3681_vm1, %v3675_v15, %v3692_v23  ;;  %v11302_v52 = vmul.u32.u64.low %v11254_v1, %v3690_v60  ;;  %v11303_v35 = vmul.u32.u64.high %v11254_v1, %v3690_v60, %v11302_v52  ;;  %v13558_v42 = vand.u32 2147483647, %v11228_v39 }
 0x772   :  { %v3525_v33 = vxor.u32 2147483648, %v3524_v20  ;;  %v3619_v56 = vor.u32 %v3618_v46, %v3617_v12  ;;  %v3622_v38 = vshll.u32 %v3621_v41, 23  ;;  %v3694_v48 = vsel %vm3680_vm8, %v3691_v45, %v3693_v11 }
 0x773   :  { %v3757_v15 = vand.u32 8388607, %v13558_v42  ;;  %vm3761_vm15 = vcmp.gt.s32.totalorder %v3760_v5, 0  ;;  %v11312_v61 = vmul.u32.u64.low %v11254_v1, %v3694_v48  ;;  %v11313_v13 = vmul.u32.u64.high %v11254_v1, %v3694_v48, %v11312_v61 }
 0x774   :  { %v3526_v10 = vsel %vm3443_vm6, %v3525_v33, %v3524_v20  ;;  %v3623_v58 = vor.u32 4788187, %v3622_v38  ;;  %v3762_v18 = vsel %vm3761_vm15, %v3760_v5, 0  ;;  %v3686_v12 = vsel %vm3680_vm8, %v3683_v54, %v3685_v22 }
 0x775   :  { %v3529_v36 = vsel %vm11236_vm4, %v11125_v37, %v3526_v10  ;;  %v3764_v7 = vand.u32 31, %v3762_v18  ;;  %v3626_v53 = vcvt.s32.f32 %v3619_v56  ;;  %v3705_v46 = vadd.s32 1, %v11303_v35 }
 0x776   :  { %8501 = vcosq.f32 %v3529_v36  ;;  %v3624_v20 = vand.u32 2147483647, %v3623_v58  ;;  %v11322_v41 = vadd.f32 %v11317_v43, %v11116_v50  ;;  %v3702_v33 = vmul.u32 %v11254_v1, %v3686_v12 }
 0x777   :  { %8503 = vsinq.f32 %v3529_v36  ;;  %v3765_v55 = vsub.s32 32, %v3764_v7  ;;  %vm3704_vm6 = vc.u32 %v11313_v13, %v11302_v52  ;;  %vm3536_vm4 = vcmp.eq.s32.totalorder %v11252_v34, 0 }
 0x778   :  { %v3627_v45 = vmul.f32 %v3626_v53, %v3624_v20  ;;  %v3706_v19 = vsel %vm3704_vm6, %v3705_v46, %v11303_v35  ;;  %v3758_v54 = vor.u32 8388608, %v3757_v15  ;;  %v11333_v50 = vmul.f32 %v11118_v8, %v11250_v27 }
 0x779   :  { %v3768_v22 = vshrl.u32 %v13520_v44, %v3765_v55  ;;  %v3707_v60 = vadd.s32 %v3706_v19, %v3702_v33  ;;  %v3767_v23 = vshll.u32 %v13519_v28, %v3764_v7  ;;  %v3771_v1 = vshrl.u32 %v13521_v30, %v3765_v55 }
 0x77a   :  { %v3777_v56 = vshrl.u32 %v13546_v32, %v3765_v55  ;;  %v3770_v38 = vshll.u32 %v13520_v44, %v3764_v7  ;;  %v3774_v11 = vshrl.u32 %v13522_v49, %v3765_v55  ;;  %v3776_v5 = vshll.u32 %v13522_v49, %v3764_v7 }
 0x77b   :  { %v3780_v10 = vshrl.u32 %v13547_v29, %v3765_v55  ;;  %v3628_v48 = vxor.u32 2147483648, %v3627_v45  ;;  %v3708_v35 = vadd.s32 536870912, %v3707_v60  ;;  %v3763_v36 = vshrl.u32 %v3762_v18, 5 }
 0x77c   :  { %v3773_v58 = vshll.u32 %v13521_v30, %v3764_v7  ;;  %v3769_v42 = vor.u32 %v3768_v22, %v3767_v23  ;;  %v3772_v15 = vor.u32 %v3771_v1, %v3770_v38  ;;  %v3778_v61 = vor.u32 %v3777_v56, %v3776_v5 }
 0x77d   :  { %v3779_v20 = vshll.u32 %v13546_v32, %v3764_v7  ;;  %vm3539_vm11 = vcmp.eq.s32.totalorder %v11252_v34, 2  ;;  %v11347_v53 = vshrl.u32 %v3708_v35, 30  ;;  %v3798_v46 = vshll.u32 %v3758_v54, 8 }
 0x77e   :  { %v3856_v33 = vand.u32 2139095040, %v11333_v50  ;;  %v3766_v26 = vshrl.u32 %v13519_v28, %v3765_v55  ;;  %v3775_v18 = vor.u32 %v3774_v11, %v3773_v58  ;;  %vm3782_vm13 = vcmp.lt.s32.totalorder %v3763_v36, 1 }
 0x77f   :  { %v3781_v47 = vor.u32 %v3780_v10, %v3779_v20  ;;  %v3710_v22 = vshll.u32 %v11347_v53, 30  ;;  %vm3785_vm8 = vcmp.lt.s32.totalorder %v3763_v36, 4  ;;  %v3629_v23 = vsel %vm3546_vm3, %v3628_v48, %v3627_v45 }
 0x780   :  { %v8502_v12 = vpop.eup %8501  ;;  %v3790_v1 = vsel %vm3782_vm13, %v3769_v42, %v3772_v15  ;;  %v3791_v54 = vsel %vm3785_vm8, %v3778_v61, 920167782  ;;  %vm3783_vm1 = vcmp.lt.s32.totalorder %v3763_v36, 2  ;;  %vm3784_vm7 = vcmp.lt.s32.totalorder %v3763_v36, 3 }
 0x781   :  { %v8504_v19 = vpop.eup %8503  ;;  %v3540_v2 = vxor.u32 2147483648, %v8502_v12  ;;  %v3711_v38 = vsub.s32 %v3707_v60, %v3710_v22  ;;  %v3787_v11 = vsel %vm3785_vm8, %v3775_v18, 2102212464  ;;  %v3792_v5 = vsel %vm3784_vm7, %v3775_v18, %v3791_v54 }
 0x782   :  { %v3537_v51 = vxor.u32 2147483648, %v8504_v19  ;;  %v3795_v10 = vsel %vm3785_vm8, %v3781_v47, 1326507024  ;;  %v3793_v45 = vsel %vm3783_vm1, %v3790_v1, %v3792_v5  ;;  %v3794_v48 = vsel %vm3782_vm13, %v3772_v15, %v3775_v18 }
 0x783   :  { %v3541_v7 = vsel %vm3539_vm11, %v3540_v2, %v8504_v19  ;;  %v3713_v35 = vsub.s32 0, %v3711_v38  ;;  %v11366_v60 = vmul.u32.u64.low %v3798_v46, %v3793_v45  ;;  %v11367_v20 = vmul.u32.u64.high %v3798_v46, %v3793_v45, %v11366_v60 }
 0x784   :  { %v3538_v56 = vsel %vm3536_vm4, %v8502_v12, %v3537_v51  ;;  %v3796_v51 = vsel %vm3784_vm7, %v3778_v61, %v3795_v10  ;;  %v3786_v12 = vsel %vm3782_vm13, %v3766_v26, %v3769_v42  ;;  %v3788_v47 = vsel %vm3784_vm7, %v3772_v15, %v3787_v11 }
 0x785   :  { %v3542_v55 = vsel %vm3535_vm9, %v3538_v56, %v3541_v7  ;;  %v7433_v34 = vmin.u32 %v3713_v35, %v3711_v38  ;;  %v13559_v19 = vand.u32 2147483647, %v11129_v40  ;;  %v3797_v18 = vsel %vm3783_vm1, %v3794_v48, %v3796_v51 }
 0x786   :  { %v3543_v2 = vsel %vm3533_vm10, nan, %v3542_v55  ;;  %v3857_v61 = vshrl.u32 %v3856_v33, 23  ;;  %v11383_v54 = vmul.u32.u64.low %v3798_v46, %v3797_v18  ;;  %v11384_v26 = vmul.u32.u64.high %v3798_v46, %v3797_v18, %v11383_v54 }
 0x787   :  { %v11364_v58 = vmul.f32 %v3543_v2, %v11317_v43  ;;  %vm11375_vm15 = vcmp.le.f32.partialorder %v13559_v19, 0.7853982  ;;  %v3715_v1 = vclz %v7433_v34  ;;  %v3789_v42 = vsel %vm3783_vm1, %v3786_v12, %v3788_v47 }
 0x788   :  { %v3632_v7 = vsel %vm11375_vm15, %v11129_v40, %v3629_v23  ;;  %v3808_v15 = vadd.s32 1, %v11367_v20  ;;  %v13492_v56 = vand.u32 2147483647, %v11333_v50  ;;  %v7440_v55 = vadd.s32 4294967169, %v3857_v61 }
 0x789   :  { %v7434_v11 = vadd.s32 4294967294, %v3715_v1  ;;  %v11391_v5 = vadd.f32 %v11206_v57, %v11113_v31  ;;  %8505 = vcosq.f32 %v3632_v7  ;;  %v3703_v33 = vadd.s32 %v11302_v52, %v11313_v13 }
 0x78a   :  { %v3863_v23 = vadd.s32 1, %v7440_v55  ;;  %v3733_v10 = vsub.s32 4, %v11347_v53  ;;  %v3805_v36 = vmul.u32 %v3798_v46, %v3789_v42  ;;  %vm3807_vm4 = vc.u32 %v11384_v26, %v11366_v60 }
 0x78b   :  { %vm7435_vm6 = vcmp.lt.s32.totalorder %v7434_v11, 0  ;;  %v3809_v35 = vsel %vm3807_vm4, %v3808_v15, %v11367_v20  ;;  %v11401_v45 = vand.u32 8388607, %v13492_v56  ;;  %v11405_v52 = vmul.f32 %v11118_v8, %v11391_v5 }
 0x78c   :  { %v3718_v2 = vsel %vm7435_vm6, 0, %v7434_v11  ;;  %vm3864_vm9 = vcmp.gt.s32.totalorder %v3863_v23, 0  ;;  %v3810_v48 = vadd.s32 %v3809_v35, %v3805_v36  ;;  %8507 = vsinq.f32 %v3632_v7 }
 0x78d   :  { %v3719_v31 = vsub.s32 32, %v3718_v2  ;;  %v3723_v57 = vsub.s32 4294967266, %v3718_v2  ;;  %vm3649_vm10 = vcmp.lt.s32.totalorder %v11212_v6, 0  ;;  %v3865_v13 = vsel %vm3864_vm9, %v3863_v23, 0 }
 0x78e   :  { %v3720_v46 = vshll.u32 %v3711_v38, %v3718_v2  ;;  %v3811_v20 = vadd.s32 536870912, %v3810_v48  ;;  %v11411_v12 = vsel %vm3649_vm10, %v3733_v10, %v11347_v53  ;;  %v3861_v47 = vor.u32 8388608, %v11401_v45 }
 0x78f   :  { %v3721_v51 = vshrl.u32 %v3703_v33, %v3719_v31  ;;  %v3724_v34 = vadd.s32 127, %v3723_v57  ;;  %v3867_v19 = vand.u32 31, %v3865_v13  ;;  %v3959_v1 = vand.u32 2139095040, %v11405_v52 }
 0x790   :  { %v11415_v7 = vshrl.u32 %v3811_v20, 30  ;;  %v11418_v38 = vshrl.u32 %v3865_v13, 5  ;;  %v13562_v45 = vand.u32 2147483647, %v11212_v6 }
 0x791   :  { %v3722_v8 = vor.u32 %v3721_v51, %v3720_v46  ;;  %v3725_v61 = vshll.u32 %v3724_v34, 23  ;;  %v3868_v54 = vsub.s32 32, %v3867_v19  ;;  %v3870_v42 = vshll.u32 %v13519_v28, %v3867_v19 }
 0x792   :  { %v3873_v15 = vshll.u32 %v13520_v44, %v3867_v19  ;;  %v3813_v11 = vshll.u32 %v11415_v7, 30  ;;  %v3876_v33 = vshll.u32 %v13521_v30, %v3867_v19  ;;  %v3879_v35 = vshll.u32 %v13522_v49, %v3867_v19 }
 0x793   :  { %v3726_v53 = vor.u32 4788187, %v3725_v61  ;;  %v3729_v55 = vcvt.s32.f32 %v3722_v8  ;;  %v11424_v23 = vpop.eup %8505  ;;  %v3871_v10 = vshrl.u32 %v13520_v44, %v3868_v54  ;;  %v3874_v36 = vshrl.u32 %v13521_v30, %v3868_v54 }
 0x794   :  { %v3877_v2 = vshrl.u32 %v13522_v49, %v3868_v54  ;;  %vm11432_vm11 = vcmp.le.f32.partialorder %v13562_v45, 0.7853982  ;;  %v11436_v13 = vsub.s32 %v3810_v48, %v3813_v11  ;;  %v3880_v46 = vshrl.u32 %v13546_v32, %v3868_v54 }
 0x795   :  { %v3727_v57 = vand.u32 2147483647, %v3726_v53  ;;  %v3882_v51 = vshll.u32 %v13546_v32, %v3867_v19  ;;  %v3872_v34 = vor.u32 %v3871_v10, %v3870_v42  ;;  %v3875_v20 = vor.u32 %v3874_v36, %v3873_v15 }
 0x796   :  { %v3878_v8 = vor.u32 %v3877_v2, %v3876_v33  ;;  %v3883_v61 = vshrl.u32 %v13547_v29, %v3868_v54  ;;  %v3816_v37 = vsub.s32 0, %v11436_v13  ;;  %v3881_v18 = vor.u32 %v3880_v46, %v3879_v35  ;;  %v11442_v14 = vpop.eup %8507 }
 0x797   :  { %v3730_v56 = vmul.f32 %v3729_v55, %v3727_v57  ;;  %v3960_v45 = vshrl.u32 %v3959_v1, 23  ;;  %v3869_v53 = vshrl.u32 %v13519_v28, %v3868_v54  ;;  %vm3885_vm13 = vcmp.lt.s32.totalorder %v11418_v38, 1 }
 0x798   :  { %v3884_v48 = vor.u32 %v3883_v61, %v3882_v51  ;;  %vm3886_vm8 = vcmp.lt.s32.totalorder %v11418_v38, 2  ;;  %v7437_v42 = vmin.u32 %v3816_v37, %v11436_v13  ;;  %vm3888_vm1 = vcmp.lt.s32.totalorder %v11418_v38, 4 }
 0x799   :  { %v3731_v19 = vxor.u32 2147483648, %v3730_v56  ;;  %v3893_v15 = vsel %vm3885_vm13, %v3872_v34, %v3875_v20  ;;  %vm3887_vm7 = vcmp.lt.s32.totalorder %v11418_v38, 3  ;;  %v3894_v1 = vsel %vm3888_vm1, %v3881_v18, 920167782 }
 0x79a   :  { %v3897_v55 = vsel %vm3885_vm13, %v3875_v20, %v3878_v8  ;;  %v3898_v54 = vsel %vm3888_vm1, %v3884_v48, 1326507024  ;;  %v3818_v33 = vclz %v7437_v42  ;;  %v3890_v10 = vsel %vm3888_vm1, %v3878_v8, 2102212464 }
 0x79b   :  { %v3732_v11 = vsel %vm3649_vm10, %v3731_v19, %v3730_v56  ;;  %v3895_v37 = vsel %vm3887_vm7, %v3878_v8, %v3894_v1  ;;  %v3899_v2 = vsel %vm3887_vm7, %v3881_v18, %v3898_v54  ;;  %v3901_v35 = vshll.u32 %v3861_v47, 8 }
 0x79c   :  { %v3896_v36 = vsel %vm3886_vm8, %v3893_v15, %v3895_v37  ;;  %v13495_v57 = vand.u32 2147483647, %v11405_v52  ;;  %v7438_v46 = vadd.s32 4294967294, %v3818_v33  ;;  %v3889_v51 = vsel %vm3885_vm13, %v3869_v53, %v3872_v34 }
 0x79d   :  { %v3900_v56 = vsel %vm3886_vm8, %v3897_v55, %v3899_v2  ;;  %v7444_v61 = vadd.s32 4294967169, %v3960_v45  ;;  %v3735_v8 = vsel %vm11432_vm11, %v11212_v6, %v3732_v11  ;;  %v3891_v48 = vsel %vm3887_vm7, %v3875_v20, %v3890_v10 }
 0x79e   :  { %v11472_v19 = vmul.u32.u64.low %v3901_v35, %v3900_v56  ;;  %v11473_v18 = vmul.u32.u64.high %v3901_v35, %v3900_v56, %v11472_v19  ;;  %vm7439_vm6 = vcmp.lt.s32.totalorder %v7438_v46, 0  ;;  %v3736_v45 = vsel %vm11432_vm11, 0, %v11411_v12 }
 0x79f   :  { %v11475_v47 = vmul.u32.u64.low %v3901_v35, %v3896_v36  ;;  %v11476_v42 = vmul.u32.u64.high %v3901_v35, %v3896_v36, %v11475_v47  ;;  %v3966_v34 = vadd.s32 1, %v7444_v61  ;;  %v3806_v53 = vadd.s32 %v11366_v60, %v11384_v26 }
 0x7a0   :  { %v3821_v15 = vsel %vm7439_vm6, 0, %v7438_v46  ;;  %v3963_v20 = vand.u32 8388607, %v13495_v57  ;;  %v3892_v54 = vsel %vm3886_vm8, %v3889_v51, %v3891_v48  ;;  %8509 = vcosq.f32 %v3735_v8 }
 0x7a1   :  { %v3822_v1 = vsub.s32 32, %v3821_v15  ;;  %v3826_v55 = vsub.s32 4294967266, %v3821_v15  ;;  %vm3967_vm4 = vcmp.gt.s32.totalorder %v3966_v34, 0  ;;  %vm3910_vm9 = vc.u32 %v11473_v18, %v11475_v47 }
 0x7a2   :  { %v3968_v11 = vsel %vm3967_vm4, %v3966_v34, 0  ;;  %v13565_v12 = vsub.s32 4, %v11232_v4  ;;  %v3823_v26 = vshll.u32 %v11436_v13, %v3821_v15  ;;  %v3911_v10 = vadd.s32 1, %v11476_v42 }
 0x7a3   :  { %v3824_v31 = vshrl.u32 %v3806_v53, %v3822_v1  ;;  %v3827_v33 = vadd.s32 127, %v3826_v55  ;;  %8511 = vsinq.f32 %v3735_v8  ;;  %v3908_v38 = vmul.u32 %v3901_v35, %v3892_v54 }
 0x7a4   :  { %v3631_v60 = vsel %vm3546_vm3, %v13565_v12, %v11232_v4  ;;  %v3964_v37 = vor.u32 8388608, %v3963_v20  ;;  %v3970_v36 = vand.u32 31, %v3968_v11  ;;  %v3912_v51 = vsel %vm3910_vm9, %v3911_v10, %v11476_v42 }
 0x7a5   :  { %v3825_v2 = vor.u32 %v3824_v31, %v3823_v26  ;;  %v3828_v46 = vshll.u32 %v3827_v33, 23  ;;  %v3633_v56 = vsel %vm11375_vm15, 0, %v3631_v60  ;;  %v3913_v61 = vadd.s32 %v3912_v51, %v3908_v38 }
 0x7a6   :  { %v3971_v48 = vsub.s32 32, %v3970_v36  ;;  %v11502_v4 = vadd.f32 %v11317_v43, %v11121_v17  ;;  %v13566_v13 = vand.u32 2147483647, %v11228_v39  ;;  %vm3752_vm10 = vcmp.lt.s32.totalorder %v11228_v39, 0 }
 0x7a7   :  { %v3829_v35 = vor.u32 4788187, %v3828_v46  ;;  %v11511_v19 = vand.u32 3, %v3736_v45  ;;  %v3914_v42 = vadd.s32 536870912, %v3913_v61  ;;  %v11513_v22 = vand.u32 3, %v3633_v56 }
 0x7a8   :  { %vm11506_vm3 = vcmp.le.f32.partialorder %v13566_v13, 0.7853982  ;;  %v3640_v34 = vxor.u32 2147483648, %v11442_v14  ;;  %v3832_v15 = vcvt.s32.f32 %v3825_v2  ;;  %v11516_v17 = vshll.u32 %v3964_v37, 8 }
 0x7a9   :  { %v3830_v53 = vand.u32 2147483647, %v3829_v35  ;;  %v11519_v1 = vshrl.u32 %v3914_v42, 30  ;;  %v3974_v55 = vshrl.u32 %v13520_v44, %v3971_v48  ;;  %v3977_v54 = vshrl.u32 %v13521_v30, %v3971_v48 }
 0x7aa   :  { %v3969_v60 = vshrl.u32 %v3968_v11, 5  ;;  %v3980_v26 = vshrl.u32 %v13522_v49, %v3971_v48  ;;  %v3983_v31 = vshrl.u32 %v13546_v32, %v3971_v48  ;;  %v8510_v33 = vpop.eup %8509  ;;  %v3973_v38 = vshll.u32 %v13519_v28, %v3970_v36 }
 0x7ab   :  { %v3833_v12 = vmul.f32 %v3832_v15, %v3830_v53  ;;  %v3916_v10 = vshll.u32 %v11519_v1, 30  ;;  %v3976_v37 = vshll.u32 %v13520_v44, %v3970_v36  ;;  %vm3639_vm15 = vcmp.eq.s32.totalorder %v11513_v22, 0 }
 0x7ac   :  { %v3979_v46 = vshll.u32 %v13521_v30, %v3970_v36  ;;  %v3982_v51 = vshll.u32 %v13522_v49, %v3970_v36  ;;  %v3986_v11 = vshrl.u32 %v13547_v29, %v3971_v48  ;;  %vm3745_vm11 = vcmp.eq.s32.totalorder %v11511_v19, 2 }
 0x7ad   :  { %v3834_v2 = vxor.u32 2147483648, %v3833_v12  ;;  %v8512_v56 = vpop.eup %8511  ;;  %v11534_v13 = vsub.s32 %v3913_v61, %v3916_v10  ;;  %v3975_v35 = vor.u32 %v3974_v55, %v3973_v38  ;;  %v3978_v42 = vor.u32 %v3977_v54, %v3976_v37 }
 0x7ae   :  { %v3985_v53 = vshll.u32 %v13546_v32, %v3970_v36  ;;  %vm3642_vm13 = vcmp.eq.s32.totalorder %v11513_v22, 2  ;;  %v3981_v57 = vor.u32 %v3980_v26, %v3979_v46  ;;  %v3984_v45 = vor.u32 %v3983_v31, %v3982_v51 }
 0x7af   :  { %v3835_v15 = vsel %vm3752_vm10, %v3834_v2, %v3833_v12  ;;  %vm3988_vm8 = vcmp.lt.s32.totalorder %v3969_v60, 1  ;;  %vm3638_vm1 = vcmp.lt.s32.totalorder %v11513_v22, 2  ;;  %vm3742_vm7 = vcmp.eq.s32.totalorder %v11511_v19, 0 }
 0x7b0   :  { %v3746_v20 = vxor.u32 2147483648, %v8510_v33  ;;  %v3838_v61 = vsel %vm11506_vm3, %v11228_v39, %v3835_v15  ;;  %v3919_v55 = vsub.s32 0, %v11534_v13  ;;  %v3987_v36 = vor.u32 %v3986_v11, %v3985_v53 }
 0x7b1   :  { %vm3636_vm6 = vweird.f32 %v11129_v40  ;;  %v3743_v54 = vxor.u32 2147483648, %v8512_v56  ;;  %8513 = vcosq.f32 %v3838_v61  ;;  %v3972_v12 = vshrl.u32 %v13519_v28, %v3971_v48 }
 0x7b2   :  { %vm3989_vm4 = vcmp.lt.s32.totalorder %v3969_v60, 2  ;;  %8515 = vsinq.f32 %v3838_v61  ;;  %v7441_v26 = vmin.u32 %v3919_v55, %v11534_v13  ;;  %vm3991_vm9 = vcmp.lt.s32.totalorder %v3969_v60, 4 }
 0x7b3   :  { %v3996_v31 = vsel %vm3988_vm8, %v3975_v35, %v3978_v42  ;;  %vm3741_vm14 = vcmp.lt.s32.totalorder %v11511_v19, 2  ;;  %vm3990_vm5 = vcmp.lt.s32.totalorder %v3969_v60, 3  ;;  %v3993_v10 = vsel %vm3991_vm9, %v3981_v57, 2102212464 }
 0x7b4   :  { %v3997_v38 = vsel %vm3991_vm9, %v3984_v45, 920167782  ;;  %v4000_v37 = vsel %vm3988_vm8, %v3978_v42, %v3981_v57  ;;  %v3921_v2 = vclz %v7441_v26  ;;  %v3992_v46 = vsel %vm3988_vm8, %v3972_v12, %v3975_v35 }
 0x7b5   :  { %v3998_v51 = vsel %vm3990_vm5, %v3981_v57, %v3997_v38  ;;  %v4001_v11 = vsel %vm3991_vm9, %v3987_v36, 1326507024  ;;  %v3994_v48 = vsel %vm3990_vm5, %v3978_v42, %v3993_v10  ;;  %v3641_v61 = vsel %vm3639_vm15, %v11424_v23, %v3640_v34 }
 0x7b6   :  { %v3999_v53 = vsel %vm3989_vm4, %v3996_v31, %v3998_v51  ;;  %v4002_v15 = vsel %vm3990_vm5, %v3984_v45, %v4001_v11  ;;  %v7442_v55 = vadd.s32 4294967294, %v3921_v2  ;;  %v3747_v57 = vsel %vm3745_vm11, %v3746_v20, %v8512_v56  ;;  %v11603_v11 = vld [vmem:[%s13458_s8 + $0x8] sm:$0xff] }
 0x7b7   :  { %v4003_v29 = vsel %vm3989_vm4, %v4000_v37, %v4002_v15  ;;  %v11559_v32 = vmul.u32.u64.low %v11516_v17, %v3999_v53  ;;  %v11560_v49 = vmul.u32.u64.high %v11516_v17, %v3999_v53, %v11559_v32  ;;  %v13569_v45 = vxor.u32 2147483648, %v11424_v23 }
 0x7b8   :  { %v11566_v35 = vmul.u32.u64.low %v11516_v17, %v4003_v29  ;;  %v11567_v42 = vmul.u32.u64.high %v11516_v17, %v4003_v29, %v11566_v35  ;;  %vm7443_vm5 = vcmp.lt.s32.totalorder %v7442_v55, 0  ;;  %v3995_v36 = vsel %vm3989_vm4, %v3992_v46, %v3994_v48 }
 0x7b9   :  { %v3644_v34 = vsel %vm3642_vm13, %v13569_v45, %v11442_v14  ;;  %v13570_v26 = vsub.s32 4, %v11415_v7  ;;  %v3744_v29 = vsel %vm3742_vm7, %v8510_v33, %v3743_v54  ;;  %v3924_v56 = vsel %vm7443_vm5, 0, %v7442_v55 }
 0x7ba   :  { %v3645_v12 = vsel %vm3638_vm1, %v3641_v61, %v3644_v34  ;;  %v3909_v22 = vadd.s32 %v11475_v47, %v11473_v18  ;;  %v3925_v60 = vsub.s32 32, %v3924_v56  ;;  %v3929_v31 = vsub.s32 4294967266, %v3924_v56 }
 0x7bb   :  { %v3837_v20 = vsel %vm3752_vm10, %v13570_v26, %v11415_v7  ;;  %v3646_v23 = vsel %vm3636_vm6, nan, %v3645_v12  ;;  %v4014_v10 = vadd.s32 1, %v11560_v49  ;;  %v8514_v38 = vpop.eup %8513  ;;  %v4011_v7 = vmul.u32 %v11516_v17, %v3995_v36 }
 0x7bc   :  { %v3839_v14 = vsel %vm11506_vm3, 0, %v3837_v20  ;;  %vm4013_vm10 = vc.u32 %v11567_v42, %v11559_v32  ;;  %v4060_v33 = vmul.f32 %v3646_v23, %v11317_v43  ;;  %v8516_v54 = vpop.eup %8515  ;;  %v3748_v8 = vsel %vm3741_vm14, %v3744_v29, %v3747_v57 }
 0x7bd   :  { %v3843_v40 = vand.u32 3, %v3839_v14  ;;  %v3930_v37 = vadd.s32 127, %v3929_v31  ;;  %v4015_v18 = vsel %vm4013_vm10, %v4014_v10, %v11560_v49  ;;  %v3849_v47 = vxor.u32 2147483648, %v8514_v38 }
 0x7be   :  { %vm3739_vm3 = vweird.f32 %v11212_v6  ;;  %v4016_v2 = vadd.s32 %v4015_v18, %v4011_v7  ;;  %v4066_v46 = vsub.f32 %v11502_v4, %v4060_v33  ;;  %v3927_v17 = vshrl.u32 %v3909_v22, %v3925_v60 }
 0x7bf   :  { %v3931_v51 = vshll.u32 %v3930_v37, 23  ;;  %v3846_v48 = vxor.u32 2147483648, %v8516_v54  ;;  %vm3848_vm15 = vcmp.eq.s32.totalorder %v3843_v40, 2  ;;  %v3749_v19 = vsel %vm3739_vm3, nan, %v3748_v8 }
 0x7c0   :  { %v4017_v53 = vadd.s32 536870912, %v4016_v2  ;;  %4083 = vmatprep.subr.mxu0 %v4066_v46  ;;  %vm3845_vm14 = vcmp.eq.s32.totalorder %v3843_v40, 0  ;;  %v3850_v49 = vsel %vm3848_vm15, %v3849_v47, %v8516_v54  ;;  %v3926_v15 = vshll.u32 %v11534_v13, %v3924_v56 }
 0x7c1   :  { %v3932_v6 = vor.u32 4788187, %v3931_v51  ;;  %v13571_v4 = vsub.f32 %v11322_v41, %v11364_v58  ;;  %vm3844_vm11 = vcmp.lt.s32.totalorder %v3843_v40, 2  ;;  %v3847_v61 = vsel %vm3845_vm14, %v8514_v38, %v3846_v48 }
 0x7c2   :  { %v4018_v55 = vshrl.u32 %v4017_v53, 30  ;;  %vm3842_vm13 = vweird.f32 %v11228_v39  ;;  %v3851_v57 = vsel %vm3844_vm11, %v3847_v61, %v3850_v49  ;;  %v4061_v35 = vmul.f32 %v3749_v19, %v11317_v43 }
 0x7c3   :  { %4084 = vmatpush1.msra.mxu0 %v13571_v4  ;;  %v3928_v45 = vor.u32 %v3927_v17, %v3926_v15  ;;  %v3852_v34 = vsel %vm3842_vm13, nan, %v3851_v57  ;;  %v3427_v13 = vadd.f32 %v11317_v43, %v11220_v62  ;;  %v3426_v36 = vadd.f32 %v11317_v43, %v11194_v59 }
 0x7c4   :  { %7450 = vmatmul.mubr.msk.f32.vlgmr.msra.gmra.mrb[6].mxu0 %vm1967_vm12, %v11603_v11  ;;  %v4019_v41 = vshll.u32 %v4018_v55, 30  ;;  %v4062_v58 = vmul.f32 %v3852_v34, %v11317_v43  ;;  %v3933_v12 = vand.u32 2147483647, %v3932_v6  ;;  %vm3855_vm8 = vcmp.lt.s32.totalorder %v11333_v50, 0 }
 0x7c5   :  { %4218 = vmatprep.mubr.f32.mxu0 %v13539_v3  ;;  %v4067_v39 = vsub.f32 %v3426_v36, %v4061_v35  ;;  %v3935_v29 = vcvt.s32.f32 %v3928_v45  ;;  %v4012_v10 = vadd.s32 %v11559_v32, %v11567_v42  ;;  %v13572_v33 = vand.u32 2147483647, %v11333_v50 }
 0x7c6   :  { %v4020_v26 = vsub.s32 %v4016_v2, %v4019_v41  ;;  %v4068_v20 = vsub.f32 %v3427_v13, %v4062_v58  ;;  %v3939_v42 = vsub.s32 4, %v11519_v1  ;;  %vm3958_vm6 = vcmp.lt.s32.totalorder %v11405_v52, 0 }
 0x7c7   :  { %v3936_v23 = vmul.f32 %v3935_v29, %v3933_v12  ;;  %vm11629_vm7 = vcmp.le.f32.partialorder %v13572_v33, 0.7853982  ;;  %v13575_v53 = vand.u32 2147483647, %v11405_v52  ;;  %v4042_v6 = vsub.s32 4, %v4018_v55 }
 0x7c8   :  { %v4022_v56 = vsub.s32 0, %v4020_v26  ;;  %4154 = vmatprep.subr.mxu0 %v4068_v20  ;;  %v3940_v48 = vsel %vm3855_vm8, %v3939_v42, %v11519_v1  ;;  %vm3945_vm3 = vweird.f32 %v11333_v50  ;;  %vm4048_vm13 = vweird.f32 %v11405_v52 }
 0x7c9   :  { %4155 = vmatpush1.msra.mxu0 %v4067_v39  ;;  %v3937_v22 = vxor.u32 2147483648, %v3936_v23  ;;  %vm11643_vm4 = vcmp.le.f32.partialorder %v13575_v53, 0.7853982  ;;  %v3942_v61 = vsel %vm11629_vm7, 0, %v3940_v48  ;;  %v4043_v45 = vsel %vm3958_vm6, %v4042_v6, %v4018_v55 }
 0x7ca   :  { %v7445_v14 = vmin.u32 %v4022_v56, %v4020_v26  ;;  %7451 = vmatmul.mubr.msk.f32.vlgmr.msra.gmra.mrb[8].mxu0 %vm1967_vm12, %v11603_v11  ;;  %v3946_v35 = vand.u32 3, %v3942_v61  ;;  %v4045_v41 = vsel %vm11643_vm4, 0, %v4043_v45 }
 0x7cb   :  { %4289 = vmatprep.mubr.f32.mxu0 %v13539_v3  ;;  %v3938_v59 = vsel %vm3855_vm8, %v3937_v22, %v3936_v23  ;;  %v4049_v12 = vand.u32 3, %v4045_v41 }
 0x7cc   :  { %v4024_v62 = vclz %v7445_v14  ;;  %v3941_v54 = vsel %vm11629_vm7, %v11333_v50, %v3938_v59  ;;  %vm3948_vm9 = vcmp.eq.s32.totalorder %v3946_v35, 0  ;;  %vm3951_vm5 = vcmp.eq.s32.totalorder %v3946_v35, 2 }
 0x7cd   :  { %8517 = vcosq.f32 %v3941_v54  ;;  %vm3947_vm10 = vcmp.lt.s32.totalorder %v3946_v35, 2  ;;  %vm4054_vm15 = vcmp.eq.s32.totalorder %v4049_v12, 2  ;;  %vm4051_vm14 = vcmp.eq.s32.totalorder %v4049_v12, 0 }
 0x7ce   :  { %v7446_v60 = vadd.s32 4294967294, %v4024_v62  ;;  %8519 = vsinq.f32 %v3941_v54  ;;  %vm4050_vm11 = vcmp.lt.s32.totalorder %v4049_v12, 2  ;;  %v3429_v59 = vadd.f32 %v11317_v43, %v11391_v5 }
 0x7cf   :  { %v3428_v50 = vadd.f32 %v11317_v43, %v11250_v27 }
 0x7d0   :  { %vm7447_vm1 = vcmp.lt.s32.totalorder %v7446_v60, 0 }
 0x7d1   :  { %v4027_v31 = vsel %vm7447_vm1, 0, %v7446_v60 }
 0x7d2   :  { %v4028_v38 = vsub.s32 32, %v4027_v31  ;;  %v4032_v7 = vsub.s32 4294967266, %v4027_v31  ;;  %v4029_v8 = vshll.u32 %v4020_v26, %v4027_v31 }
 0x7d4   :  { %v4030_v37 = vshrl.u32 %v4012_v10, %v4028_v38  ;;  %v4033_v18 = vadd.s32 127, %v4032_v7 }
 0x7d6   :  { %v4031_v47 = vor.u32 %v4030_v37, %v4029_v8  ;;  %v4034_v2 = vshll.u32 %v4033_v18, 23  ;;  %v11674_v8 = vpop.permute.xlu0 %4325 }
 0x7d7   :  { %v8518_v4 = vpop.eup %8517 }
 0x7d8   :  { %v4035_v32 = vor.u32 4788187, %v4034_v2  ;;  %v4038_v17 = vcvt.s32.f32 %v4031_v47  ;;  %v8520_v1 = vpop.eup %8519  ;;  %v3952_v13 = vxor.u32 2147483648, %v8518_v4 }
 0x7d9   :  { %v3949_v34 = vxor.u32 2147483648, %v8520_v1 }
 0x7da   :  { %v4036_v46 = vand.u32 2147483647, %v4035_v32  ;;  %v3953_v36 = vsel %vm3951_vm5, %v3952_v13, %v8520_v1 }
 0x7db   :  { %v3950_v58 = vsel %vm3948_vm9, %v8518_v4, %v3949_v34 }
 0x7dc   :  { %v4039_v51 = vmul.f32 %v4038_v17, %v4036_v46  ;;  %v3954_v20 = vsel %vm3947_vm10, %v3950_v58, %v3953_v36 }
 0x7dd   :  { %v3955_v55 = vsel %vm3945_vm3, nan, %v3954_v20 }
 0x7de   :  { %v4040_v19 = vxor.u32 2147483648, %v4039_v51  ;;  %v4063_v22 = vmul.f32 %v3955_v55, %v11317_v43 }
 0x7e0   :  { %v4041_v15 = vsel %vm3958_vm6, %v4040_v19, %v4039_v51  ;;  %v4069_v38 = vsub.f32 %v3428_v50, %v4063_v22  ;;  %v13581_v22 = vmov 920167782  }
 0x7e1   :  { %v4044_v57 = vsel %vm11643_vm4, %v11405_v52, %v4041_v15  ;;  %v11665_v52 = vpop.permute.xlu1 %4077 }
 0x7e2   :  { %8521 = vcosq.f32 %v4044_v57 }
 0x7e3   :  { %8523 = vsinq.f32 %v4044_v57 }
 0x7ec   :  { %v8522_v26 = vpop.eup %8521 }
 0x7ed   :  { %v8524_v39 = vpop.eup %8523  ;;  %v4055_v29 = vxor.u32 2147483648, %v8522_v26 }
 0x7ee   :  { %v4052_v56 = vxor.u32 2147483648, %v8524_v39 }
 0x7ef   :  { %v4056_v23 = vsel %vm4054_vm15, %v4055_v29, %v8524_v39 }
 0x7f0   :  { %v4053_v14 = vsel %vm4051_vm14, %v8522_v26, %v4052_v56  ;;  %v13578_v26 = vld [vmem:[#allocation6_spill] sm:$0xff] }
 0x7f1   :  { %v4057_v62 = vsel %vm4050_vm11, %v4053_v14, %v4056_v23  ;;  %v13580_v14 = vmov 2102212464  }
 0x7f2   :  { %v4058_v60 = vsel %vm4048_vm13, nan, %v4057_v62 }
 0x7f3   :  { %v4064_v31 = vmul.f32 %v4058_v60, %v11317_v43 }
 0x7f5   :  { %v4070_v10 = vsub.f32 %v3429_v59, %v4064_v31 }
 0x7f7   :  { %4225 = vmatprep.subr.mxu0 %v4070_v10 }
 0x7f8   :  { %4226 = vmatpush1.msra.mxu0 %v4069_v38 }
 0x7f9   :  { %7452 = vmatmul.mubr.msk.f32.vlgmr.msra.gmra.mrb[10].mxu0 %vm1967_vm12, %v11603_v11 }
 0x7fa   :  { %5378 = vmatprep.mubr.f32.mxu0 %v13539_v3 }
 0x897   :  { %v4149_v7 = vpop.f32.mrb[6].mxu0 }
 0x898   :  { %v4150_v33 = vadd.f32 %v4149_v7, %v11665_v52  ;;  %v4151_v5 = vpop.f32.mrb[7].mxu0  ;;  %v13582_v7 = vmov 1326507024  }
 0x899   :  { %v4152_v40 = vadd.f32 %v4151_v5, %v11665_v52 }
 0x89a   :  { %v4296_v54 = vadd.f32 %v4150_v33, %v10296_v63 }
 0x89b   :  { %v4297_v27 = vadd.f32 %v4152_v40, %v10302_v25 }
 0x89c   :  { %v11672_v43 = vmul.f32 %v4296_v54, %v10281_v0 }
 0x89d   :  { %v11677_v11 = vmul.f32 %v4297_v27, %v10285_v24  ;;  %v4220_v47 = vpop.f32.mrb[8].mxu0 }
 0x89e   :  { %v11681_v37 = vmul.f32 %v11674_v8, %v11672_v43  ;;  %v4222_v2 = vpop.f32.mrb[9].mxu0  ;;  %v4221_v51 = vadd.f32 %v4220_v47, %v11665_v52 }
 0x89f   :  { %v11685_v18 = vmul.f32 %v11674_v8, %v11677_v11  ;;  %v4223_v53 = vadd.f32 %v4222_v2, %v11665_v52 }
 0x8a0   :  { %v4334_v63 = vand.u32 2147483647, %v11681_v37  ;;  %v4337_v25 = vand.u32 2139095040, %v11681_v37  ;;  %v4298_v15 = vadd.f32 %v4221_v51, %v10327_v16 }
 0x8a1   :  { %v4437_v32 = vand.u32 2147483647, %v11685_v18  ;;  %v4440_v42 = vand.u32 2139095040, %v11685_v18  ;;  %v4299_v45 = vadd.f32 %v4223_v53, %v10347_v9 }
 0x8a2   :  { %v4338_v46 = vshrl.u32 %v4337_v25, 23  ;;  %v4341_v17 = vand.u32 8388607, %v4334_v63  ;;  %v11699_v35 = vmul.f32 %v4298_v15, %v10309_v21 }
 0x8a3   :  { %v4441_v48 = vshrl.u32 %v4440_v42, 23  ;;  %v4444_v19 = vand.u32 8388607, %v4437_v32  ;;  %v11711_v20 = vmul.f32 %v4299_v45, %v13578_v26 }
 0x8a4   :  { %v7455_v49 = vadd.s32 4294967169, %v4338_v46  ;;  %v4342_v4 = vor.u32 8388608, %v4341_v17  ;;  %v11708_v16 = vmul.f32 %v11674_v8, %v11699_v35 }
 0x8a5   :  { %v7459_v6 = vadd.s32 4294967169, %v4441_v48  ;;  %v4445_v57 = vor.u32 8388608, %v4444_v19  ;;  %13579 = vst [vmem:[#allocation11_spill] sm:$0xff] %v11711_v20 }
 0x8a6   :  { %v4344_v61 = vadd.s32 1, %v7455_v49  ;;  %v11702_v36 = vshll.u32 %v4342_v4, 8 }
 0x8a7   :  { %v4447_v1 = vadd.s32 1, %v7459_v6  ;;  %v11704_v12 = vshll.u32 %v4445_v57, 8 }
 0x8a8   :  { %vm4345_vm8 = vcmp.gt.s32.totalorder %v4344_v61, 0 }
 0x8a9   :  { %v4346_v34 = vsel %vm4345_vm8, %v4344_v61, 0  ;;  %vm4448_vm1 = vcmp.gt.s32.totalorder %v4447_v1, 0  ;;  %vm4336_vm8 = vcmp.lt.s32.totalorder %v11681_v37, 0 }
 0x8aa   :  { %v4347_v13 = vshrl.u32 %v4346_v34, 5  ;;  %v4348_v41 = vand.u32 31, %v4346_v34  ;;  %v4449_v58 = vsel %vm4448_vm1, %v4447_v1, 0 }
 0x8ab   :  { %v11714_v29 = vshrl.u32 %v4449_v58, 5  ;;  %v4451_v56 = vand.u32 31, %v4449_v58 }
 0x8ac   :  { %v4349_v39 = vsub.s32 32, %v4348_v41  ;;  %v4351_v9 = vshll.u32 %v13519_v28, %v4348_v41  ;;  %v4354_v55 = vshll.u32 %v13520_v44, %v4348_v41  ;;  %v4357_v23 = vshll.u32 %v13521_v30, %v4348_v41 }
 0x8ad   :  { %v4360_v62 = vshll.u32 %v13580_v14, %v4348_v41  ;;  %v4363_v60 = vshll.u32 %v13581_v22, %v4348_v41  ;;  %vm4366_vm7 = vcmp.lt.s32.totalorder %v4347_v13, 1  ;;  %vm4367_vm6 = vcmp.lt.s32.totalorder %v4347_v13, 2 }
 0x8ae   :  { %v4352_v59 = vshrl.u32 %v13520_v44, %v4349_v39  ;;  %v4355_v31 = vshrl.u32 %v13521_v30, %v4349_v39  ;;  %v4358_v50 = vshrl.u32 %v13580_v14, %v4349_v39  ;;  %v4350_v10 = vshrl.u32 %v13519_v28, %v4349_v39 }
 0x8af   :  { %v4361_v38 = vshrl.u32 %v13581_v22, %v4349_v39  ;;  %v4364_v33 = vshrl.u32 %v13582_v7, %v4349_v39  ;;  %v4452_v27 = vsub.s32 32, %v4451_v56  ;;  %vm4368_vm4 = vcmp.lt.s32.totalorder %v4347_v13, 3 }
 0x8b0   :  { %v4353_v5 = vor.u32 %v4352_v59, %v4351_v9  ;;  %v4356_v40 = vor.u32 %v4355_v31, %v4354_v55  ;;  %v4359_v54 = vor.u32 %v4358_v50, %v4357_v23  ;;  %vm4369_vm9 = vcmp.lt.s32.totalorder %v4347_v13, 4 }
 0x8b1   :  { %v4362_v47 = vor.u32 %v4361_v38, %v4360_v62  ;;  %v4365_v25 = vor.u32 %v4364_v33, %v4363_v60  ;;  %v4454_v53 = vshll.u32 %v13519_v28, %v4451_v56  ;;  %v4455_v6 = vshrl.u32 %v13520_v44, %v4452_v27 }
 0x8b2   :  { %v4370_v2 = vsel %vm4366_vm7, %v4350_v10, %v4353_v5  ;;  %v4371_v42 = vsel %vm4369_vm9, %v4359_v54, 2102212464  ;;  %v4374_v46 = vsel %vm4366_vm7, %v4353_v5, %v4356_v40  ;;  %v4378_v17 = vsel %vm4366_vm7, %v4356_v40, %v4359_v54 }
 0x8b3   :  { %v4372_v51 = vsel %vm4368_vm4, %v4356_v40, %v4371_v42  ;;  %v4375_v48 = vsel %vm4369_vm9, %v4362_v47, 920167782  ;;  %v4379_v19 = vsel %vm4369_vm9, %v4365_v25, 1326507024  ;;  %v4457_v4 = vshll.u32 %v13520_v44, %v4451_v56 }
 0x8b4   :  { %v4376_v49 = vsel %vm4368_vm4, %v4359_v54, %v4375_v48  ;;  %v4380_v15 = vsel %vm4368_vm4, %v4362_v47, %v4379_v19  ;;  %v4373_v61 = vsel %vm4367_vm6, %v4370_v2, %v4372_v51  ;;  %v4458_v45 = vshrl.u32 %v13521_v30, %v4452_v27 }
 0x8b5   :  { %v4377_v57 = vsel %vm4367_vm6, %v4374_v46, %v4376_v49  ;;  %v4381_v1 = vsel %vm4367_vm6, %v4378_v17, %v4380_v15  ;;  %v4456_v9 = vor.u32 %v4455_v6, %v4454_v53  ;;  %v4460_v23 = vshll.u32 %v13521_v30, %v4451_v56 }
 0x8b6   :  { %v11737_v34 = vmul.u32.u64.low %v11702_v36, %v4381_v1  ;;  %v11738_v41 = vmul.u32.u64.high %v11702_v36, %v4381_v1, %v11737_v34  ;;  %v11741_v58 = vmul.u32.u64.low %v11702_v36, %v4377_v57  ;;  %v11742_v39 = vmul.u32.u64.high %v11702_v36, %v4377_v57, %v11741_v58 }
 0x8b7   :  { %v4459_v55 = vor.u32 %v4458_v45, %v4457_v4  ;;  %v4461_v62 = vshrl.u32 %v13580_v14, %v4452_v27  ;;  %v4463_v13 = vshll.u32 %v13580_v14, %v4451_v56  ;;  %v4464_v60 = vshrl.u32 %v13581_v22, %v4452_v27 }
 0x8b8   :  { %v4467_v59 = vshrl.u32 %v13582_v7, %v4452_v27  ;;  %v4543_v31 = vand.u32 2139095040, %v11708_v16  ;;  %v4389_v50 = vmul.u32 %v11702_v36, %v4373_v61  ;;  %v4453_v10 = vshrl.u32 %v13519_v28, %v4452_v27 }
 0x8b9   :  { %v4462_v38 = vor.u32 %v4461_v62, %v4460_v23  ;;  %v4466_v33 = vshll.u32 %v13581_v22, %v4451_v56  ;;  %vm4391_vm5 = vc.u32 %v11738_v41, %v11741_v58  ;;  %v4392_v5 = vadd.s32 1, %v11742_v39 }
 0x8ba   :  { %v4465_v40 = vor.u32 %v4464_v60, %v4463_v13  ;;  %vm4469_vm10 = vcmp.lt.s32.totalorder %v11714_v29, 1  ;;  %vm4471_vm3 = vcmp.lt.s32.totalorder %v11714_v29, 3  ;;  %vm4472_vm15 = vcmp.lt.s32.totalorder %v11714_v29, 4 }
 0x8bb   :  { %v4468_v54 = vor.u32 %v4467_v59, %v4466_v33  ;;  %v4477_v47 = vsel %vm4469_vm10, %v4456_v9, %v4459_v55  ;;  %v4393_v36 = vsel %vm4391_vm5, %v4392_v5, %v11742_v39  ;;  %v4474_v27 = vsel %vm4472_vm15, %v4462_v38, 2102212464  ;;  %v11785_v33 = vpop.permute.xlu1 %4314 }
 0x8bc   :  { %v4478_v25 = vsel %vm4472_vm15, %v4465_v40, 920167782  ;;  %v4481_v2 = vsel %vm4469_vm10, %v4459_v55, %v4462_v38  ;;  %v4394_v56 = vadd.s32 %v4393_v36, %v4389_v50  ;;  %vm4470_vm14 = vcmp.lt.s32.totalorder %v11714_v29, 2 }
 0x8bd   :  { %v4479_v42 = vsel %vm4471_vm3, %v4462_v38, %v4478_v25  ;;  %v4482_v46 = vsel %vm4472_vm15, %v4468_v54, 1326507024  ;;  %v4473_v17 = vsel %vm4469_vm10, %v4453_v10, %v4456_v9  ;;  %v4475_v51 = vsel %vm4471_vm3, %v4459_v55, %v4474_v27 }
 0x8be   :  { %v4480_v48 = vsel %vm4470_vm14, %v4477_v47, %v4479_v42  ;;  %v4483_v19 = vsel %vm4471_vm3, %v4465_v40, %v4482_v46  ;;  %v4395_v53 = vadd.s32 536870912, %v4394_v56  ;;  %v13501_v57 = vand.u32 2147483647, %v11708_v16 }
 0x8bf   :  { %v4484_v49 = vsel %vm4470_vm14, %v4481_v2, %v4483_v19  ;;  %v11763_v15 = vmul.u32.u64.low %v11704_v12, %v4480_v48  ;;  %v11764_v6 = vmul.u32.u64.high %v11704_v12, %v4480_v48, %v11763_v15  ;;  %v4544_v1 = vshrl.u32 %v4543_v31, 23 }
 0x8c0   :  { %v11767_v4 = vmul.u32.u64.low %v11704_v12, %v4484_v49  ;;  %v11768_v61 = vmul.u32.u64.high %v11704_v12, %v4484_v49, %v11767_v4  ;;  %v4396_v29 = vshrl.u32 %v4395_v53, 30  ;;  %v4476_v45 = vsel %vm4470_vm14, %v4473_v17, %v4475_v51 }
 0x8c1   :  { %v11773_v34 = vmul.f32 %v11674_v8, %v11711_v20  ;;  %v7463_v39 = vadd.s32 4294967169, %v4544_v1  ;;  %v4495_v55 = vadd.s32 1, %v11764_v6  ;;  %v4492_v23 = vmul.u32 %v11704_v12, %v4476_v45 }
 0x8c2   :  { %v4397_v9 = vshll.u32 %v4396_v29, 30  ;;  %vm4494_vm11 = vc.u32 %v11768_v61, %v11763_v15  ;;  %v4547_v62 = vand.u32 8388607, %v13501_v57  ;;  %v4420_v12 = vsub.s32 4, %v4396_v29 }
 0x8c3   :  { %v4550_v13 = vadd.s32 1, %v7463_v39  ;;  %v4496_v59 = vsel %vm4494_vm11, %v4495_v55, %v11764_v6  ;;  %v4646_v31 = vand.u32 2139095040, %v11773_v34  ;;  %v11789_v47 = vadd.f32 %v11785_v33, %v11672_v43 }
 0x8c4   :  { %v11780_v60 = vsub.s32 %v4394_v56, %v4397_v9  ;;  %v4497_v50 = vadd.s32 %v4496_v59, %v4492_v23  ;;  %v4548_v40 = vor.u32 8388608, %v4547_v62  ;;  %v11795_v25 = vadd.f32 %v11785_v33, %v11677_v11 }
 0x8c5   :  { %vm4551_vm13 = vcmp.gt.s32.totalorder %v4550_v13, 0  ;;  %v4647_v27 = vshrl.u32 %v4646_v31, 23  ;;  %v4390_v42 = vadd.s32 %v11741_v58, %v11738_v41  ;;  %v11802_v17 = vadd.s32 %v11763_v15, %v11768_v61 }
 0x8c6   :  { %v4400_v10 = vsub.s32 0, %v11780_v60  ;;  %v4552_v38 = vsel %vm4551_vm13, %v4550_v13, 0  ;;  %v4498_v5 = vadd.s32 536870912, %v4497_v50  ;;  %v4643_v51 = vand.u32 2147483647, %v11773_v34 }
 0x8c7   :  { %v4554_v54 = vand.u32 31, %v4552_v38  ;;  %v11807_v48 = vsel %vm4336_vm8, %v4420_v12, %v4396_v29  ;;  %v11810_v53 = vshrl.u32 %v4552_v38, 5  ;;  %v11812_v49 = vshll.u32 %v4548_v40, 8 }
 0x8c8   :  { %v7456_v36 = vmin.u32 %v4400_v10, %v11780_v60  ;;  %v11797_v2 = vshrl.u32 %v4498_v5, 30  ;;  %v7467_v58 = vadd.s32 4294967169, %v4647_v27  ;;  %vm11837_vm7 = vcmp.le.f32.partialorder %v4334_v63, 0.7853982 }
 0x8c9   :  { %v4555_v56 = vsub.s32 32, %v4554_v54  ;;  %v4557_v4 = vshll.u32 %v13519_v28, %v4554_v54  ;;  %v4560_v39 = vshll.u32 %v13520_v44, %v4554_v54  ;;  %v4563_v9 = vshll.u32 %v13521_v30, %v4554_v54 }
 0x8ca   :  { %v4402_v46 = vclz %v7456_v36  ;;  %v4500_v19 = vshll.u32 %v11797_v2, 30  ;;  %v4566_v55 = vshll.u32 %v13580_v14, %v4554_v54  ;;  %v4569_v59 = vshll.u32 %v13581_v22, %v4554_v54 }
 0x8cb   :  { %v4564_v41 = vshrl.u32 %v13580_v14, %v4555_v56  ;;  %v4558_v61 = vshrl.u32 %v13520_v44, %v4555_v56  ;;  %v4561_v1 = vshrl.u32 %v13521_v30, %v4555_v56  ;;  %v4567_v29 = vshrl.u32 %v13581_v22, %v4555_v56 }
 0x8cc   :  { %v7457_v6 = vadd.s32 4294967294, %v4402_v46  ;;  %v11816_v15 = vsub.s32 %v4497_v50, %v4500_v19  ;;  %v11821_v45 = vpop.f32.mrb[10].mxu0  ;;  %v4570_v31 = vshrl.u32 %v13582_v7, %v4555_v56  ;;  %v4523_v38 = vsub.s32 4, %v11797_v2 }
 0x8cd   :  { %v11826_v23 = vpop.f32.mrb[11].mxu0  ;;  %v4565_v12 = vor.u32 %v4564_v41, %v4563_v9  ;;  %v4559_v40 = vor.u32 %v4558_v61, %v4557_v4  ;;  %v4562_v36 = vor.u32 %v4561_v1, %v4560_v39  ;;  %v4568_v27 = vor.u32 %v4567_v29, %v4566_v55 }
 0x8ce   :  { %vm7458_vm1 = vcmp.lt.s32.totalorder %v7457_v6, 0  ;;  %v4503_v13 = vsub.s32 0, %v11816_v15  ;;  %v4556_v57 = vshrl.u32 %v13519_v28, %v4555_v56  ;;  %vm4439_vm6 = vcmp.lt.s32.totalorder %v11685_v18, 0 }
 0x8cf   :  { %v4405_v62 = vsel %vm7458_vm1, 0, %v7457_v6  ;;  %v4571_v9 = vor.u32 %v4570_v31, %v4569_v59  ;;  %vm4572_vm4 = vcmp.lt.s32.totalorder %v11810_v53, 1  ;;  %vm4575_vm9 = vcmp.lt.s32.totalorder %v11810_v53, 4 }
 0x8d0   :  { %v4406_v50 = vsub.s32 32, %v4405_v62  ;;  %v4410_v10 = vsub.s32 4294967266, %v4405_v62  ;;  %v7460_v5 = vmin.u32 %v4503_v13, %v11816_v15  ;;  %v4407_v46 = vshll.u32 %v11780_v60, %v4405_v62 }
 0x8d1   :  { %vm4573_vm5 = vcmp.lt.s32.totalorder %v11810_v53, 2  ;;  %v4577_v56 = vsel %vm4575_vm9, %v4565_v12, 2102212464  ;;  %vm4574_vm10 = vcmp.lt.s32.totalorder %v11810_v53, 3  ;;  %v4580_v63 = vsel %vm4572_vm4, %v4559_v40, %v4562_v36 }
 0x8d2   :  { %v4408_v19 = vshrl.u32 %v4390_v42, %v4406_v50  ;;  %v4411_v6 = vadd.s32 127, %v4410_v10  ;;  %v4505_v41 = vclz %v7460_v5  ;;  %v4581_v61 = vsel %vm4575_vm9, %v4568_v27, 920167782 }
 0x8d3   :  { %v4576_v29 = vsel %vm4572_vm4, %v4556_v57, %v4559_v40  ;;  %v4582_v39 = vsel %vm4574_vm10, %v4565_v12, %v4581_v61  ;;  %v4584_v55 = vsel %vm4572_vm4, %v4562_v36, %v4565_v12  ;;  %v4578_v13 = vsel %vm4574_vm10, %v4562_v36, %v4577_v56 }
 0x8d4   :  { %v4409_v4 = vor.u32 %v4408_v19, %v4407_v46  ;;  %v4412_v60 = vshll.u32 %v4411_v6, 23  ;;  %v7461_v42 = vadd.s32 4294967294, %v4505_v41  ;;  %v4585_v59 = vsel %vm4575_vm9, %v4571_v9, 1326507024 }
 0x8d5   :  { %v4583_v10 = vsel %vm4573_vm5, %v4580_v63, %v4582_v39  ;;  %v4586_v5 = vsel %vm4574_vm10, %v4568_v27, %v4585_v59  ;;  %v4653_v41 = vadd.s32 1, %v7467_v58  ;;  %vm11879_vm14 = vcmp.le.f32.partialorder %v4437_v32, 0.7853982 }
 0x8d6   :  { %v4413_v1 = vor.u32 4788187, %v4412_v60  ;;  %v4416_v62 = vcvt.s32.f32 %v4409_v4  ;;  %vm7462_vm3 = vcmp.lt.s32.totalorder %v7461_v42, 0  ;;  %v4587_v57 = vsel %vm4573_vm5, %v4584_v55, %v4586_v5 }
 0x8d7   :  { %v4508_v50 = vsel %vm7462_vm3, 0, %v7461_v42  ;;  %v11858_v40 = vmul.u32.u64.low %v11812_v49, %v4587_v57  ;;  %v11859_v36 = vmul.u32.u64.high %v11812_v49, %v4587_v57, %v11858_v40  ;;  %v4524_v42 = vsel %vm4439_vm6, %v4523_v38, %v11797_v2 }
 0x8d8   :  { %v4414_v31 = vand.u32 2147483647, %v4413_v1  ;;  %v4509_v46 = vsub.s32 32, %v4508_v50  ;;  %v4510_v19 = vshll.u32 %v11816_v15, %v4508_v50  ;;  %v4513_v6 = vsub.s32 4294967266, %v4508_v50 }
 0x8d9   :  { %v11863_v60 = vmul.u32.u64.low %v11812_v49, %v4583_v10  ;;  %v11864_v56 = vmul.u32.u64.high %v11812_v49, %v4583_v10, %v11863_v60  ;;  %v4423_v15 = vsel %vm11837_vm7, 0, %v11807_v48  ;;  %vm4654_vm15 = vcmp.gt.s32.totalorder %v4653_v41, 0 }
 0x8da   :  { %v4417_v12 = vmul.f32 %v4416_v62, %v4414_v31  ;;  %v4511_v9 = vshrl.u32 %v11802_v17, %v4509_v46  ;;  %v4514_v4 = vadd.s32 127, %v4513_v6  ;;  %v4579_v17 = vsel %vm4573_vm5, %v4576_v29, %v4578_v13 }
 0x8db   :  { %v4655_v61 = vsel %vm4654_vm15, %v4653_v41, 0  ;;  %vm4597_vm11 = vc.u32 %v11859_v36, %v11863_v60  ;;  %v4650_v2 = vand.u32 8388607, %v4643_v51  ;;  %v4526_v38 = vsel %vm11879_vm14, 0, %v4524_v42 }
 0x8dc   :  { %v4418_v27 = vxor.u32 2147483648, %v4417_v12  ;;  %v4512_v63 = vor.u32 %v4511_v9, %v4510_v19  ;;  %v4515_v58 = vshll.u32 %v4514_v4, 23  ;;  %v4598_v29 = vadd.s32 1, %v11864_v56 }
 0x8dd   :  { %v11893_v32 = vand.u32 3, %v4423_v15  ;;  %v4595_v55 = vmul.u32 %v11812_v49, %v4579_v17  ;;  %v4657_v62 = vand.u32 31, %v4655_v61  ;;  %v11897_v50 = vand.u32 3, %v4526_v38 }
 0x8de   :  { %v4419_v1 = vsel %vm4336_vm8, %v4418_v27, %v4417_v12  ;;  %v4516_v53 = vor.u32 4788187, %v4515_v58  ;;  %v4519_v59 = vcvt.s32.f32 %v4512_v63  ;;  %v4599_v31 = vsel %vm4597_vm11, %v4598_v29, %v11864_v56 }
 0x8df   :  { %v4422_v48 = vsel %vm11837_vm7, %v11681_v37, %v4419_v1  ;;  %v4600_v54 = vadd.s32 %v4599_v31, %v4595_v55  ;;  %v4651_v10 = vor.u32 8388608, %v4650_v2  ;;  %v4658_v5 = vsub.s32 32, %v4657_v62 }
 0x8e0   :  { %8525 = vcosq.f32 %v4422_v48  ;;  %v4517_v13 = vand.u32 2147483647, %v4516_v53  ;;  %v11899_v19 = vshrl.u32 %v4655_v61, 5  ;;  %v4660_v6 = vshll.u32 %v13519_v28, %v4657_v62 }
 0x8e1   :  { %8527 = vsinq.f32 %v4422_v48  ;;  %v4666_v57 = vshll.u32 %v13521_v30, %v4657_v62  ;;  %vm4432_vm13 = vcmp.eq.s32.totalorder %v11893_v32, 2  ;;  %v4601_v49 = vadd.s32 536870912, %v4600_v54 }
 0x8e2   :  { %v4520_v46 = vmul.f32 %v4519_v59, %v4517_v13  ;;  %v4661_v12 = vshrl.u32 %v13520_v44, %v4658_v5  ;;  %v4664_v40 = vshrl.u32 %v13521_v30, %v4658_v5  ;;  %v4669_v41 = vshll.u32 %v13580_v14, %v4657_v62 }
 0x8e3   :  { %vm4429_vm8 = vcmp.eq.s32.totalorder %v11893_v32, 0  ;;  %v4667_v4 = vshrl.u32 %v13580_v14, %v4658_v5  ;;  %v4670_v56 = vshrl.u32 %v13581_v22, %v4658_v5  ;;  %v4673_v27 = vshrl.u32 %v13582_v7, %v4658_v5 }
 0x8e4   :  { %v4521_v9 = vxor.u32 2147483648, %v4520_v46  ;;  %vm4428_vm1 = vcmp.lt.s32.totalorder %v11893_v32, 2  ;;  %v11912_v15 = vshrl.u32 %v4601_v49, 30  ;;  %v4663_v42 = vshll.u32 %v13520_v44, %v4657_v62 }
 0x8e5   :  { %v4672_v63 = vshll.u32 %v13581_v22, %v4657_v62  ;;  %v11916_v58 = vshll.u32 %v4651_v10, 8  ;;  %vm4426_vm7 = vweird.f32 %v11681_v37  ;;  %v4662_v61 = vor.u32 %v4661_v12, %v4660_v6 }
 0x8e6   :  { %v4522_v17 = vsel %vm4439_vm6, %v4521_v9, %v4520_v46  ;;  %v4668_v1 = vor.u32 %v4667_v4, %v4666_v57  ;;  %v4671_v2 = vor.u32 %v4670_v56, %v4669_v41  ;;  %v4603_v53 = vshll.u32 %v11912_v15, 30 }
 0x8e7   :  { %v4525_v48 = vsel %vm11879_vm14, %v11685_v18, %v4522_v17  ;;  %v4665_v38 = vor.u32 %v4664_v40, %v4663_v42  ;;  %vm4678_vm4 = vcmp.lt.s32.totalorder %v11899_v19, 4  ;;  %v4674_v29 = vor.u32 %v4673_v27, %v4672_v63  ;;  %v13587_v42 = vld [vmem:[#allocation8_spill] sm:$0xff] }
 0x8e8   :  { %8529 = vcosq.f32 %v4525_v48  ;;  %v4684_v55 = vsel %vm4678_vm4, %v4671_v2, 920167782  ;;  %v4292_v62 = vadd.f32 %v11821_v45, %v11665_v52  ;;  %v11930_v59 = vsub.s32 %v4600_v54, %v4603_v53 }
 0x8e9   :  { %8531 = vsinq.f32 %v4525_v48  ;;  %vm4675_vm6 = vcmp.lt.s32.totalorder %v11899_v19, 1  ;;  %v4294_v39 = vadd.f32 %v11826_v23, %v11665_v52  ;;  %v4659_v46 = vshrl.u32 %v13519_v28, %v4658_v5  ;;  %v13588_v48 = vld [vmem:[#allocation10_spill] sm:$0xff] }
 0x8ea   :  { %v8526_v13 = vpop.eup %8525  ;;  %vm4677_vm9 = vcmp.lt.s32.totalorder %v11899_v19, 3  ;;  %v4680_v6 = vsel %vm4678_vm4, %v4668_v1, 2102212464  ;;  %v4606_v45 = vsub.s32 0, %v11930_v59  ;;  %v4683_v54 = vsel %vm4675_vm6, %v4662_v61, %v4665_v38 }
 0x8eb   :  { %v8528_v31 = vpop.eup %8527  ;;  %v4433_v10 = vxor.u32 2147483648, %v8526_v13  ;;  %v4685_v49 = vsel %vm4677_vm9, %v4668_v1, %v4684_v55  ;;  %vm4676_vm5 = vcmp.lt.s32.totalorder %v11899_v19, 2  ;;  %v4687_v23 = vsel %vm4675_vm6, %v4665_v38, %v4668_v1 }
 0x8ec   :  { %v4430_v57 = vxor.u32 2147483648, %v8528_v31  ;;  %v4688_v5 = vsel %vm4678_vm4, %v4674_v29, 1326507024  ;;  %v7464_v40 = vmin.u32 %v4606_v45, %v11930_v59  ;;  %v4679_v41 = vsel %vm4675_vm6, %v4659_v46, %v4662_v61 }
 0x8ed   :  { %v4434_v52 = vsel %vm4432_vm13, %v4433_v10, %v8528_v31  ;;  %v4681_v9 = vsel %vm4677_vm9, %v4665_v38, %v4680_v6  ;;  %v4686_v56 = vsel %vm4676_vm5, %v4683_v54, %v4685_v49  ;;  %v4689_v27 = vsel %vm4677_vm9, %v4671_v2, %v4688_v5  ;;  %v13589_v2 = vld [vmem:[#allocation7_spill] sm:$0xff]  ;;  %v13591_v49 = vld [vmem:[#allocation9_spill] sm:$0xff] }
 0x8ee   :  { %v4431_v12 = vsel %vm4429_vm8, %v8526_v13, %v4430_v57  ;;  %v4300_v63 = vadd.f32 %v4292_v62, %v13587_v42  ;;  %vm4529_vm10 = vweird.f32 %v11685_v18  ;;  %v4608_v61 = vclz %v7464_v40 }
 0x8ef   :  { %v4435_v4 = vsel %vm4428_vm1, %v4431_v12, %v4434_v52  ;;  %v4690_v1 = vsel %vm4676_vm5, %v4687_v23, %v4689_v27  ;;  %v4301_v32 = vadd.f32 %v4294_v39, %v13588_v48  ;;  %v4682_v37 = vsel %vm4676_vm5, %v4679_v41, %v4681_v9 }
 0x8f0   :  { %v4436_v17 = vsel %vm4426_vm7, nan, %v4435_v4  ;;  %v11973_v38 = vmul.u32.u64.low %v11916_v58, %v4690_v1  ;;  %v11974_v29 = vmul.u32.u64.high %v11916_v58, %v4690_v1, %v11973_v38  ;;  %v11977_v55 = vmul.f32 %v4300_v63, %v13589_v2 }
 0x8f1   :  { %v4952_v53 = vmul.f32 %v4436_v17, %v11785_v33  ;;  %v7465_v62 = vadd.s32 4294967294, %v4608_v61  ;;  %v11982_v13 = vmul.u32.u64.low %v11916_v58, %v4686_v56  ;;  %v11983_v31 = vmul.u32.u64.high %v11916_v58, %v4686_v56, %v11982_v13 }
 0x8f2   :  { %13590 = vst [vmem:[#allocation8_spill] sm:$0xff] %v11977_v55  ;;  %v8530_v10 = vpop.eup %8529  ;;  %vm4531_vm3 = vcmp.lt.s32.totalorder %v11897_v50, 2  ;;  %vm4532_vm15 = vcmp.eq.s32.totalorder %v11897_v50, 0  ;;  %v11991_v46 = vmul.f32 %v11674_v8, %v11977_v55  ;;  %vm4535_vm14 = vcmp.eq.s32.totalorder %v11897_v50, 2 }
 0x8f3   :  { %v4958_v39 = vsub.f32 %v11789_v47, %v4952_v53  ;;  %v8532_v6 = vpop.eup %8531  ;;  %v4536_v19 = vxor.u32 2147483648, %v8530_v10  ;;  %v4596_v57 = vadd.s32 %v11863_v60, %v11859_v36  ;;  %vm7466_vm11 = vcmp.lt.s32.totalorder %v7465_v62, 0 }
 0x8f4   :  { %v4533_v45 = vxor.u32 2147483648, %v8532_v6  ;;  %v4611_v54 = vsel %vm7466_vm11, 0, %v7465_v62  ;;  %v4698_v47 = vmul.u32 %v11916_v58, %v4682_v37  ;;  %v11998_v52 = vmul.f32 %v4301_v32, %v13591_v49 }
 0x8f5   :  { %5100 = vrot.lane.b32.xlu0 %v4958_v39, %s8645_s17  ;;  %v4537_v23 = vsel %vm4535_vm14, %v4536_v19, %v8532_v6  ;;  %v4612_v5 = vsub.s32 32, %v4611_v54  ;;  %v4616_v12 = vsub.s32 4294967266, %v4611_v54  ;;  %vm4700_vm13 = vc.u32 %v11974_v29, %v11982_v13 }
 0x8f6   :  { %v4534_v36 = vsel %vm4532_vm15, %v8530_v10, %v4533_v45  ;;  %v4613_v60 = vshll.u32 %v11930_v59, %v4611_v54  ;;  %v4701_v40 = vadd.s32 1, %v11983_v31  ;;  %v4746_v58 = vand.u32 2147483647, %v11991_v46 }
 0x8f7   :  { %v4538_v41 = vsel %vm4531_vm3, %v4534_v36, %v4537_v23  ;;  %v4614_v9 = vshrl.u32 %v4596_v57, %v4612_v5  ;;  %v4617_v4 = vadd.s32 127, %v4616_v12  ;;  %v4749_v56 = vand.u32 2139095040, %v11991_v46 }
 0x8f8   :  { %v4539_v27 = vsel %vm4529_vm10, nan, %v4538_v41  ;;  %v4626_v42 = vsub.s32 4, %v11912_v15  ;;  %v4702_v63 = vsel %vm4700_vm13, %v4701_v40, %v11983_v31  ;;  %v12017_v59 = vmul.f32 %v11674_v8, %v11998_v52 }
 0x8f9   :  { %v4953_v17 = vmul.f32 %v4539_v27, %v11785_v33  ;;  %v4615_v61 = vor.u32 %v4614_v9, %v4613_v60  ;;  %v4618_v50 = vshll.u32 %v4617_v4, 23  ;;  %v4703_v1 = vadd.s32 %v4702_v63, %v4698_v47 }
 0x8fa   :  { %vm4542_vm8 = vcmp.lt.s32.totalorder %v11708_v16, 0  ;;  %v4750_v48 = vshrl.u32 %v4749_v56, 23  ;;  %v4753_v38 = vand.u32 8388607, %v4746_v58  ;;  %v4852_v6 = vand.u32 2139095040, %v12017_v59 }
 0x8fb   :  { %v4959_v32 = vsub.f32 %v11795_v25, %v4953_v17  ;;  %v4619_v18 = vor.u32 4788187, %v4618_v50  ;;  %v4704_v53 = vadd.s32 536870912, %v4703_v1  ;;  %v4627_v8 = vsel %vm4542_vm8, %v4626_v42, %v11912_v15 }
 0x8fc   :  { %v7471_v62 = vadd.s32 4294967169, %v4750_v48  ;;  %v4622_v31 = vcvt.s32.f32 %v4615_v61  ;;  %v13592_v25 = vand.u32 2147483647, %v11708_v16  ;;  %v4754_v49 = vor.u32 8388608, %v4753_v38 }
 0x8fd   :  { %v4620_v37 = vand.u32 2147483647, %v4619_v18  ;;  %v12027_v10 = vshrl.u32 %v4704_v53, 30  ;;  %5102 = vrot.lane.b32.xlu1 %v4959_v32, %s8645_s17  ;;  %v12037_v45 = vpack.i.bf16 %v4959_v32, %v4958_v39  ;;  %v12044_v23 = vadd.f32 %v11785_v33, %v11699_v35 }
 0x8fe   :  { %vm12033_vm1 = vcmp.le.f32.partialorder %v13592_v25, 0.7853982  ;;  %v4756_v57 = vadd.s32 1, %v7471_v62  ;;  %v4853_v36 = vshrl.u32 %v4852_v6, 23  ;;  %v4699_v40 = vadd.s32 %v11982_v13, %v11974_v29 }
 0x8ff   :  { %v4623_v54 = vmul.f32 %v4622_v31, %v4620_v37  ;;  %v4629_v15 = vsel %vm12033_vm1, 0, %v4627_v8  ;;  %v4706_v47 = vshll.u32 %v12027_v10, 30  ;;  %8215 = vrot.lane.b32.xlu0 %v12037_v45, %s8641_s0  ;;  %v12057_v56 = vshll.u32 %v4754_v49, 8 }
 0x900   :  { %vm4757_vm7 = vcmp.gt.s32.totalorder %v4756_v57, 0  ;;  %v12050_v60 = vand.u32 3, %v4629_v15  ;;  %v4849_v27 = vand.u32 2147483647, %v12017_v59  ;;  %v7475_v17 = vadd.s32 4294967169, %v4853_v36 }
 0x901   :  { %v4624_v5 = vxor.u32 2147483648, %v4623_v54  ;;  %v12048_v12 = vsub.s32 %v4703_v1, %v4706_v47  ;;  %v4758_v39 = vsel %vm4757_vm7, %v4756_v57, 0  ;;  %vm4632_vm11 = vweird.f32 %v11708_v16 }
 0x902   :  { %v4760_v41 = vand.u32 31, %v4758_v39  ;;  %v12066_v13 = vshrl.u32 %v4758_v39, 5  ;;  %vm4638_vm4 = vcmp.eq.s32.totalorder %v12050_v60, 2  ;;  %vm4635_vm6 = vcmp.eq.s32.totalorder %v12050_v60, 0 }
 0x903   :  { %v4625_v9 = vsel %vm4542_vm8, %v4624_v5, %v4623_v54  ;;  %v4709_v4 = vsub.s32 0, %v12048_v12  ;;  %8220 = vrot.lane.b32.xlu0 %v12037_v45, %s8640_s27  ;;  %vm4634_vm10 = vcmp.lt.s32.totalorder %v12050_v60, 2  ;;  %vm4645_vm8 = vcmp.lt.s32.totalorder %v11773_v34, 0 }
 0x904   :  { %v4628_v42 = vsel %vm12033_vm1, %v11708_v16, %v4625_v9  ;;  %v4761_v63 = vsub.s32 32, %v4760_v41  ;;  %v4763_v61 = vshll.u32 %v13519_v28, %v4760_v41  ;;  %v4766_v1 = vshll.u32 %v13520_v44, %v4760_v41 }
 0x905   :  { %8533 = vcosq.f32 %v4628_v42  ;;  %v7468_v29 = vmin.u32 %v4709_v4, %v12048_v12  ;;  %v4769_v18 = vshll.u32 %v13521_v30, %v4760_v41  ;;  %v4772_v8 = vshll.u32 %v13580_v14, %v4760_v41 }
 0x906   :  { %8535 = vsinq.f32 %v4628_v42  ;;  %v4764_v50 = vshrl.u32 %v13520_v44, %v4761_v63  ;;  %v4767_v32 = vshrl.u32 %v13521_v30, %v4761_v63  ;;  %v4770_v53 = vshrl.u32 %v13580_v14, %v4761_v63 }
 0x907   :  { %v4711_v48 = vclz %v7468_v29  ;;  %v4773_v62 = vshrl.u32 %v13581_v22, %v4761_v63  ;;  %v4775_v37 = vshll.u32 %v13581_v22, %v4760_v41  ;;  %8225 = vrot.lane.b32.xlu0 %v12037_v45, %s8646_s20  ;;  %v4776_v19 = vshrl.u32 %v13582_v7, %v4761_v63 }
 0x908   :  { %v4765_v38 = vor.u32 %v4764_v50, %v4763_v61  ;;  %v4768_v6 = vor.u32 %v4767_v32, %v4766_v1  ;;  %v4771_v25 = vor.u32 %v4770_v53, %v4769_v18  ;;  %v4762_v57 = vshrl.u32 %v13519_v28, %v4761_v63 }
 0x909   :  { %v7469_v31 = vadd.s32 4294967294, %v4711_v48  ;;  %v4774_v54 = vor.u32 %v4773_v62, %v4772_v8  ;;  %vm4778_vm9 = vcmp.lt.s32.totalorder %v12066_v13, 1  ;;  %vm4779_vm5 = vcmp.lt.s32.totalorder %v12066_v13, 2 }
 0x90a   :  { %v4777_v15 = vor.u32 %v4776_v19, %v4775_v37  ;;  %vm4780_vm15 = vcmp.lt.s32.totalorder %v12066_v13, 3  ;;  %vm4781_vm14 = vcmp.lt.s32.totalorder %v12066_v13, 4  ;;  %v4786_v5 = vsel %vm4778_vm9, %v4765_v38, %v4768_v6 }
 0x90b   :  { %vm7470_vm3 = vcmp.lt.s32.totalorder %v7469_v31, 0  ;;  %v4783_v49 = vsel %vm4781_vm14, %v4771_v25, 2102212464  ;;  %v4787_v39 = vsel %vm4781_vm14, %v4774_v54, 920167782  ;;  %8230 = vrot.lane.b32.xlu0 %v12037_v45, %s8647_s30  ;;  %v4782_v4 = vsel %vm4778_vm9, %v4762_v57, %v4765_v38 }
 0x90c   :  { %v4714_v47 = vsel %vm7470_vm3, 0, %v7469_v31  ;;  %v4784_v42 = vsel %vm4780_vm15, %v4768_v6, %v4783_v49  ;;  %v4788_v63 = vsel %vm4780_vm15, %v4771_v25, %v4787_v39  ;;  %v4790_v29 = vsel %vm4778_vm9, %v4768_v6, %v4771_v25 }
 0x90d   :  { %v4715_v36 = vsub.s32 32, %v4714_v47  ;;  %v4716_v41 = vshll.u32 %v12048_v12, %v4714_v47  ;;  %v4719_v9 = vsub.s32 4294967266, %v4714_v47  ;;  %v4791_v61 = vsel %vm4781_vm14, %v4777_v15, 1326507024 }
 0x90e   :  { %v4789_v12 = vsel %vm4779_vm5, %v4786_v5, %v4788_v63  ;;  %v4792_v32 = vsel %vm4780_vm15, %v4774_v54, %v4791_v61  ;;  %v12115_v6 = vand.u32 8388607, %v4849_v27  ;;  %v4859_v54 = vadd.s32 1, %v7475_v17 }
 0x90f   :  { %v8534_v50 = vpop.eup %8533  ;;  %v4717_v1 = vshrl.u32 %v4699_v40, %v4715_v36  ;;  %v4720_v48 = vadd.s32 127, %v4719_v9  ;;  %v4793_v38 = vsel %vm4779_vm5, %v4790_v29, %v4792_v32  ;;  %v4785_v49 = vsel %vm4779_vm5, %v4782_v4, %v4784_v42  ;;  %8235 = vrot.lane.b32.xlu0 %v12037_v45, %s8648_s1 }
 0x910   :  { %v8536_v18 = vpop.eup %8535  ;;  %v4639_v53 = vxor.u32 2147483648, %v8534_v50  ;;  %v12109_v8 = vmul.u32.u64.low %v12057_v56, %v4789_v12  ;;  %v12110_v62 = vmul.u32.u64.high %v12057_v56, %v4789_v12, %v12109_v8  ;;  %vm4860_vm13 = vcmp.gt.s32.totalorder %v4859_v54, 0 }
 0x911   :  { %v4636_v37 = vxor.u32 2147483648, %v8536_v18  ;;  %v4718_v31 = vor.u32 %v4717_v1, %v4716_v41  ;;  %v4721_v40 = vshll.u32 %v4720_v48, 23  ;;  %v4861_v63 = vsel %vm4860_vm13, %v4859_v54, 0 }
 0x912   :  { %v4640_v25 = vsel %vm4638_vm4, %v4639_v53, %v8536_v18  ;;  %v12120_v19 = vmul.u32.u64.low %v12057_v56, %v4793_v38  ;;  %v12121_v57 = vmul.u32.u64.high %v12057_v56, %v4793_v38, %v12120_v19  ;;  %v4804_v39 = vadd.s32 1, %v12110_v62 }
 0x913   :  { %v4637_v15 = vsel %vm4635_vm6, %v8534_v50, %v4636_v37  ;;  %v4722_v47 = vor.u32 4788187, %v4721_v40  ;;  %v4725_v9 = vcvt.s32.f32 %v4718_v31  ;;  %v4801_v60 = vmul.u32 %v12057_v56, %v4785_v49 }
 0x914   :  { %v4641_v5 = vsel %vm4634_vm10, %v4637_v15, %v4640_v25  ;;  %vm4803_vm1 = vc.u32 %v12121_v57, %v12109_v8  ;;  %vm12141_vm7 = vcmp.le.f32.partialorder %v4643_v51, 0.7853982  ;;  %v4863_v42 = vand.u32 31, %v4861_v63 }
 0x915   :  { %v4642_v36 = vsel %vm4632_vm11, nan, %v4641_v5  ;;  %v4723_v41 = vand.u32 2147483647, %v4722_v47  ;;  %v4805_v4 = vsel %vm4803_vm1, %v4804_v39, %v12110_v62  ;;  %v4729_v61 = vsub.s32 4, %v12027_v10 }
 0x916   :  { %v4954_v17 = vmul.f32 %v4642_v36, %v11785_v33  ;;  %v4806_v50 = vadd.s32 %v4805_v4, %v4801_v60  ;;  %v4857_v56 = vor.u32 8388608, %v12115_v6  ;;  %v12151_v48 = vshrl.u32 %v4861_v63, 5 }
 0x917   :  { %v4726_v13 = vmul.f32 %v4725_v9, %v4723_v41  ;;  %v4864_v12 = vsub.s32 32, %v4863_v42  ;;  %v4866_v51 = vshll.u32 %v13519_v28, %v4863_v42  ;;  %v4869_v18 = vshll.u32 %v13520_v44, %v4863_v42 }
 0x918   :  { %v12147_v29 = vsub.f32 %v12044_v23, %v4954_v17  ;;  %v4807_v32 = vadd.s32 536870912, %v4806_v50  ;;  %v4872_v53 = vshll.u32 %v13521_v30, %v4863_v42  ;;  %v4875_v38 = vshll.u32 %v13580_v14, %v4863_v42 }
 0x919   :  { %v4727_v1 = vxor.u32 2147483648, %v4726_v13  ;;  %v4867_v62 = vshrl.u32 %v13520_v44, %v4864_v12  ;;  %v4870_v37 = vshrl.u32 %v13521_v30, %v4864_v12  ;;  %v4878_v31 = vshll.u32 %v13581_v22, %v4863_v42 }
 0x91a   :  { %5104 = vrot.lane.b32.xlu0 %v12147_v29, %s8645_s17  ;;  %v12167_v6 = vshrl.u32 %v4807_v32, 30  ;;  %v4873_v25 = vshrl.u32 %v13580_v14, %v4864_v12  ;;  %v4876_v19 = vshrl.u32 %v13581_v22, %v4864_v12  ;;  %v4879_v47 = vshrl.u32 %v13582_v7, %v4864_v12 }
 0x91b   :  { %v4728_v23 = vsel %vm4645_vm8, %v4727_v1, %v4726_v13  ;;  %v4868_v54 = vor.u32 %v4867_v62, %v4866_v51  ;;  %v4871_v15 = vor.u32 %v4870_v37, %v4869_v18  ;;  %v4730_v49 = vsel %vm4645_vm8, %v4729_v61, %v12027_v10 }
 0x91c   :  { %v4731_v40 = vsel %vm12141_vm7, %v11773_v34, %v4728_v23  ;;  %v4809_v5 = vshll.u32 %v12167_v6, 30  ;;  %v4874_v39 = vor.u32 %v4873_v25, %v4872_v53  ;;  %v4877_v36 = vor.u32 %v4876_v19, %v4875_v38 }
 0x91d   :  { %8537 = vcosq.f32 %v4731_v40  ;;  %v4880_v41 = vor.u32 %v4879_v47, %v4878_v31  ;;  %vm4881_vm4 = vcmp.lt.s32.totalorder %v12151_v48, 1  ;;  %vm4884_vm6 = vcmp.lt.s32.totalorder %v12151_v48, 4 }
 0x91e   :  { %8539 = vsinq.f32 %v4731_v40  ;;  %v4810_v9 = vsub.s32 %v4806_v50, %v4809_v5  ;;  %v4732_v63 = vsel %vm12141_vm7, 0, %v4730_v49  ;;  %vm4883_vm9 = vcmp.lt.s32.totalorder %v12151_v48, 3 }
 0x91f   :  { %v4889_v17 = vsel %vm4881_vm4, %v4868_v54, %v4871_v15  ;;  %v4890_v10 = vsel %vm4884_vm6, %v4877_v36, 920167782  ;;  %vm4882_vm5 = vcmp.lt.s32.totalorder %v12151_v48, 2  ;;  %v4897_v4 = vshll.u32 %v4857_v56, 8 }
 0x920   :  { %v4812_v60 = vsub.s32 0, %v4810_v9  ;;  %v4891_v13 = vsel %vm4883_vm9, %v4874_v39, %v4890_v10  ;;  %v4886_v42 = vsel %vm4884_vm6, %v4874_v39, 2102212464  ;;  %v4893_v16 = vsel %vm4881_vm4, %v4871_v15, %v4874_v39 }
 0x921   :  { %v4892_v61 = vsel %vm4882_vm5, %v4889_v17, %v4891_v13  ;;  %v4894_v50 = vsel %vm4884_vm6, %v4880_v41, 1326507024  ;;  %v4736_v1 = vand.u32 3, %v4732_v63  ;;  %v4865_v32 = vshrl.u32 %v13519_v28, %v4864_v12 }
 0x922   :  { %v7472_v51 = vmin.u32 %v4812_v60, %v4810_v9  ;;  %v4895_v18 = vsel %vm4883_vm9, %v4877_v36, %v4894_v50  ;;  %v12193_v53 = vmul.u32.u64.low %v4897_v4, %v4892_v61  ;;  %v12194_v38 = vmul.u32.u64.high %v4897_v4, %v4892_v61, %v12193_v53 }
 0x923   :  { %v8239_v56 = vpack.i.bf16 %v13539_v3, %v12147_v29  ;;  %v4885_v62 = vsel %vm4881_vm4, %v4865_v32, %v4868_v54  ;;  %v4887_v37 = vsel %vm4883_vm9, %v4871_v15, %v4886_v42  ;;  %v4896_v12 = vsel %vm4882_vm5, %v4893_v16, %v4895_v18 }
 0x924   :  { %v4814_v23 = vclz %v7472_v51  ;;  %v12205_v40 = vmul.u32.u64.low %v4897_v4, %v4896_v12  ;;  %v12206_v25 = vmul.u32.u64.high %v4897_v4, %v4896_v12, %v12205_v40  ;;  %vm4735_vm10 = vweird.f32 %v11773_v34 }
 0x925   :  { %8240 = vrot.lane.b32.xlu1 %v8239_v56, %s8641_s0  ;;  %vm4741_vm3 = vcmp.eq.s32.totalorder %v4736_v1, 2  ;;  %v4888_v54 = vsel %vm4882_vm5, %v4885_v62, %v4887_v37  ;;  %v4907_v15 = vadd.s32 1, %v12194_v38  ;;  %vm4737_vm15 = vcmp.lt.s32.totalorder %v4736_v1, 2 }
 0x926   :  { %v7473_v49 = vadd.s32 4294967294, %v4814_v23  ;;  %vm4738_vm14 = vcmp.eq.s32.totalorder %v4736_v1, 0  ;;  %v4802_v41 = vadd.s32 %v12109_v8, %v12121_v57  ;;  %vm4906_vm13 = vc.u32 %v12206_v25, %v12193_v53 }
 0x927   :  { %v8538_v31 = vpop.eup %8537  ;;  %v4904_v60 = vmul.u32 %v4897_v4, %v4888_v54  ;;  %v4320_v13 = vadd.f32 %v11785_v33, %v11711_v20  ;;  %v4908_v16 = vsel %vm4906_vm13, %v4907_v15, %v12194_v38  ;;  %vm12239_vm8 = vcmp.le.f32.partialorder %v4746_v58, 0.7853982 }
 0x928   :  { %v8540_v19 = vpop.eup %8539  ;;  %v4742_v47 = vxor.u32 2147483648, %v8538_v31  ;;  %vm7474_vm11 = vcmp.lt.s32.totalorder %v7473_v49, 0  ;;  %vm4748_vm1 = vcmp.lt.s32.totalorder %v11991_v46, 0  ;;  %vm4838_vm5 = vweird.f32 %v11991_v46 }
 0x929   :  { %v4739_v5 = vxor.u32 2147483648, %v8540_v19  ;;  %v4817_v63 = vsel %vm7474_vm11, 0, %v7473_v49  ;;  %8245 = vrot.lane.b32.xlu1 %v8239_v56, %s8640_s27  ;;  %v4909_v1 = vadd.s32 %v4908_v16, %v4904_v60  ;;  %vm4941_vm13 = vweird.f32 %v12017_v59 }
 0x92a   :  { %v4743_v39 = vsel %vm4741_vm3, %v4742_v47, %v8540_v19  ;;  %v4818_v10 = vsub.s32 32, %v4817_v63  ;;  %v4822_v48 = vsub.s32 4294967266, %v4817_v63  ;;  %v4819_v61 = vshll.u32 %v4810_v9, %v4817_v63 }
 0x92b   :  { %v4740_v36 = vsel %vm4738_vm14, %v8538_v31, %v4739_v5  ;;  %v4910_v56 = vadd.s32 536870912, %v4909_v1  ;;  %v4832_v47 = vsub.s32 4, %v12167_v6  ;;  %vm4850_vm3 = vcmp.le.f32.partialorder %v4849_v27, 0.7853982 }
 0x92c   :  { %v4744_v17 = vsel %vm4737_vm15, %v4740_v36, %v4743_v39  ;;  %v4820_v57 = vshrl.u32 %v4802_v41, %v4818_v10  ;;  %v4823_v50 = vadd.s32 127, %v4822_v48  ;;  %v4905_v41 = vadd.s32 %v12193_v53, %v12206_v25 }
 0x92d   :  { %v4745_v42 = vsel %vm4735_vm10, nan, %v4744_v17  ;;  %v12226_v23 = vshrl.u32 %v4910_v56, 30  ;;  %v4833_v58 = vsel %vm4748_vm1, %v4832_v47, %v12167_v6  ;;  %vm4851_vm10 = vcmp.lt.s32.totalorder %v12017_v59, 0 }
 0x92e   :  { %v4955_v8 = vmul.f32 %v4745_v42, %v11785_v33  ;;  %v4821_v32 = vor.u32 %v4820_v57, %v4819_v61  ;;  %v4824_v18 = vshll.u32 %v4823_v50, 23  ;;  %v4835_v39 = vsel %vm12239_vm8, 0, %v4833_v58 }
 0x92f   :  { %v4912_v38 = vshll.u32 %v12226_v23, 30  ;;  %v4839_v10 = vand.u32 3, %v4835_v39 }
 0x930   :  { %v12224_v51 = vsub.f32 %v4320_v13, %v4955_v8  ;;  %v4825_v4 = vor.u32 4788187, %v4824_v18  ;;  %v4828_v62 = vcvt.s32.f32 %v4821_v32 }
 0x931   :  { %v4913_v12 = vsub.s32 %v4909_v1, %v4912_v38  ;;  %vm4844_vm4 = vcmp.eq.s32.totalorder %v4839_v10, 2  ;;  %vm4841_vm6 = vcmp.eq.s32.totalorder %v4839_v10, 0  ;;  %vm4840_vm9 = vcmp.lt.s32.totalorder %v4839_v10, 2 }
 0x932   :  { %v12230_v34 = vpack.i.bf16 %v12224_v51, %v12147_v29  ;;  %v4826_v9 = vand.u32 2147483647, %v4825_v4 }
 0x933   :  { %v4915_v40 = vsub.s32 0, %v4913_v12 }
 0x934   :  { %8250 = vrot.lane.b32.xlu1 %v12230_v34, %s8646_s20  ;;  %v4829_v37 = vmul.f32 %v4828_v62, %v4826_v9  ;;  %v4321_v9 = vadd.f32 %v11785_v33, %v11977_v55 }
 0x935   :  { %v7476_v49 = vmin.u32 %v4915_v40, %v4913_v12 }
 0x936   :  { %v4830_v31 = vxor.u32 2147483648, %v4829_v37 }
 0x937   :  { %v4917_v54 = vclz %v7476_v49 }
 0x938   :  { %8255 = vrot.lane.b32.xlu1 %v12230_v34, %s8647_s30  ;;  %v4831_v29 = vsel %vm4748_vm1, %v4830_v31, %v4829_v37  ;;  %v4935_v31 = vsub.s32 4, %v12226_v23  ;;  %vm5045_vm1 = vcmask 826368  }
 0x939   :  { %v4834_v5 = vsel %vm12239_vm8, %v11991_v46, %v4831_v29  ;;  %v7477_v15 = vadd.s32 4294967294, %v4917_v54  ;;  %vm5114_vm8 = vcmask 605184  }
 0x93a   :  { %8541 = vcosq.f32 %v4834_v5  ;;  %v4936_v19 = vsel %vm4851_vm10, %v4935_v31, %v12226_v23  ;;  %v4322_v23 = vadd.f32 %v11785_v33, %v11998_v52 }
 0x93b   :  { %8543 = vsinq.f32 %v4834_v5  ;;  %vm7478_vm7 = vcmp.lt.s32.totalorder %v7477_v15, 0  ;;  %v4938_v29 = vsel %vm4850_vm3, 0, %v4936_v19 }
 0x93c   :  { %8260 = vrot.lane.b32.xlu1 %v12230_v34, %s8648_s1  ;;  %v4920_v36 = vsel %vm7478_vm7, 0, %v7477_v15  ;;  %v4942_v47 = vand.u32 3, %v4938_v29  ;;  %vm5072_vm7 = vcmask 752640  }
 0x93d   :  { %v4921_v63 = vsub.s32 32, %v4920_v36  ;;  %v4925_v17 = vsub.s32 4294967266, %v4920_v36  ;;  %v4922_v48 = vshll.u32 %v4913_v12, %v4920_v36 }
 0x93e   :  { %vm4947_vm15 = vcmp.eq.s32.totalorder %v4942_v47, 2  ;;  %vm4944_vm14 = vcmp.eq.s32.totalorder %v4942_v47, 0  ;;  %vm4943_vm11 = vcmp.lt.s32.totalorder %v4942_v47, 2 }
 0x93f   :  { %v4923_v60 = vshrl.u32 %v4905_v41, %v4921_v63  ;;  %v4926_v13 = vadd.s32 127, %v4925_v17 }
 0x941   :  { %v4924_v61 = vor.u32 %v4923_v60, %v4922_v48  ;;  %v4927_v16 = vshll.u32 %v4926_v13, 23 }
 0x943   :  { %v4928_v50 = vor.u32 4788187, %v4927_v16  ;;  %v4931_v53 = vcvt.s32.f32 %v4924_v61 }
 0x944   :  { %v8542_v42 = vpop.eup %8541 }
 0x945   :  { %v8544_v8 = vpop.eup %8543  ;;  %v4845_v6 = vxor.u32 2147483648, %v8542_v42  ;;  %v4929_v18 = vand.u32 2147483647, %v4928_v50 }
 0x946   :  { %v4842_v57 = vxor.u32 2147483648, %v8544_v8 }
 0x947   :  { %v4846_v1 = vsel %vm4844_vm4, %v4845_v6, %v8544_v8  ;;  %v4932_v4 = vmul.f32 %v4931_v53, %v4929_v18  ;;  %vm5093_vm4 = vcmask 678912  }
 0x948   :  { %v4843_v32 = vsel %vm4841_vm6, %v8542_v42, %v4842_v57 }
 0x949   :  { %v4847_v25 = vsel %vm4840_vm9, %v4843_v32, %v4846_v1  ;;  %v4933_v38 = vxor.u32 2147483648, %v4932_v4 }
 0x94a   :  { %v4848_v56 = vsel %vm4838_vm5, nan, %v4847_v25 }
 0x94b   :  { %v4956_v62 = vmul.f32 %v4848_v56, %v11785_v33  ;;  %v4934_v12 = vsel %vm4851_vm10, %v4933_v38, %v4932_v4 }
 0x94c   :  { %v4937_v46 = vsel %vm4850_vm3, %v12017_v59, %v4934_v12 }
 0x94d   :  { %v4962_v37 = vsub.f32 %v4321_v9, %v4956_v62  ;;  %8545 = vcosq.f32 %v4937_v46 }
 0x94e   :  { %8547 = vsinq.f32 %v4937_v46 }
 0x94f   :  { %v8264_v40 = vpack.i.bf16 %v4962_v37, %v12224_v51 }
 0x951   :  { %8265 = vrot.lane.b32.xlu0 %v8264_v40, %s8641_s0 }
 0x955   :  { %8270 = vrot.lane.b32.xlu0 %v8264_v40, %s8640_s27 }
 0x957   :  { %v8546_v49 = vpop.eup %8545 }
 0x958   :  { %v8548_v5 = vpop.eup %8547  ;;  %v4948_v27 = vxor.u32 2147483648, %v8546_v49 }
 0x959   :  { %v4945_v54 = vxor.u32 2147483648, %v8548_v5 }
 0x95a   :  { %v4949_v58 = vsel %vm4947_vm15, %v4948_v27, %v8548_v5 }
 0x95b   :  { %v4946_v15 = vsel %vm4944_vm14, %v8546_v49, %v4945_v54 }
 0x95c   :  { %v4950_v39 = vsel %vm4943_vm11, %v4946_v15, %v4949_v58 }
 0x95d   :  { %v4951_v36 = vsel %vm4941_vm13, nan, %v4950_v39 }
 0x95e   :  { %v4957_v41 = vmul.f32 %v4951_v36, %v11785_v33 }
 0x960   :  { %v4963_v63 = vsub.f32 %v4322_v23, %v4957_v41 }
 0x962   :  { %5005 = vrot.lane.b32.xlu1 %v4963_v63, %s8641_s0  ;;  %v8279_v17 = vpack.i.bf16 %v4963_v63, %v4962_v37  ;;  %s8649_s0 = smov 27  }
 0x964   :  { %8280 = vrot.lane.b32.xlu0 %v8279_v17, %s8647_s30 }
 0x966   :  { %8275 = vrot.lane.b32.xlu1 %v8279_v17, %s8646_s20 }
 0x967   :  { %v5101_v10 = vpop.permute.xlu0 %5100 }
 0x968   :  { %5070 = vrot.lane.b32.xlu0 %v13539_v3, %s8647_s30 }
 0x96a   :  { %5025 = vrot.lane.b32.xlu1 %v4963_v63, %s8640_s27 }
 0x96c   :  { %5106 = vrot.lane.b32.xlu0 %v12224_v51, %s8645_s17 }
 0x96e   :  { %8285 = vrot.lane.b32.xlu1 %v8279_v17, %s8648_s1 }
 0x970   :  { %5110 = vrot.lane.b32.xlu0 %v4963_v63, %s8645_s17 }
 0x971   :  { %v8216_v52 = vpop.permute.xlu0 %8215 }
 0x972   :  { %5091 = vrot.lane.b32.xlu1 %v13539_v3, %s8648_s1  ;;  %v8217_v16 = vunpack.i.l.bf16 %v8216_v52  ;;  %v8218_v56 = vunpack.i.h.bf16 %v8216_v52 }
 0x974   :  { %8290 = vrot.lane.b32.xlu0 %v12037_v45, %s8649_s0  ;;  %v5103_v45 = vpop.permute.xlu1 %5102  ;;  %v5008_v31 = vsel %vm2933_vm2, %v8217_v16, %v8218_v56 }
 0x975   :  { %v8221_v33 = vpop.permute.xlu0 %8220  ;;  %v5115_v9 = vsel %vm5114_vm8, %v5101_v10, %v5103_v45 }
 0x976   :  { %5108 = vrot.lane.b32.xlu1 %v4962_v37, %s8645_s17  ;;  %v8223_v46 = vunpack.i.h.bf16 %v8221_v33 }
 0x979   :  { %v8226_v59 = vpop.permute.xlu0 %8225 }
 0x97a   :  { %5112 = vrot.lane.b32.xlu1 %v13539_v3, %s8645_s17  ;;  %v8227_v32 = vunpack.i.l.bf16 %v8226_v59  ;;  %v8228_v4 = vunpack.i.h.bf16 %v8226_v59 }
 0x97c   :  { %v5046_v40 = vsel %vm5045_vm1, %v8227_v32, %v8228_v4 }
 0x97d   :  { %v8231_v51 = vpop.permute.xlu0 %8230 }
 0x97e   :  { %8295 = vrot.lane.b32.xlu1 %v12230_v34, %s8649_s0  ;;  %v8232_v60 = vunpack.i.l.bf16 %v8231_v51  ;;  %v8222_v34 = vunpack.i.l.bf16 %v8221_v33  ;;  %v8233_v19 = vunpack.i.h.bf16 %v8231_v51 }
 0x980   :  { %v5028_v58 = vsel %vm3002_vm0, %v8222_v34, %v8223_v46  ;;  %v5073_v15 = vsel %vm5072_vm7, %v8232_v60, %v8233_v19 }
 0x981   :  { %v8236_v48 = vpop.permute.xlu0 %8235 }
 0x982   :  { %8300 = vrot.lane.b32.xlu1 %v8279_v17, %s8649_s0  ;;  %v8237_v13 = vunpack.i.l.bf16 %v8236_v48  ;;  %v8238_v39 = vunpack.i.h.bf16 %v8236_v48 }
 0x984   :  { %v8304_v42 = vpack.i.bf16 %v8237_v13, %v8232_v60  ;;  %v5094_v52 = vsel %vm5093_vm4, %v8237_v13, %v8238_v39 }
 0x986   :  { %5212 = vrot.lane.b32.xlu1 %v5101_v10, %s8649_s0  ;;  %8305 = vrot.lane.b32.xlu0 %v8304_v42, %s8649_s0 }
 0x98c   :  { %v12312_v10 = vpop.permute.xlu0 %5104 }
 0x98d   :  { %v5116_v51 = vsel %vm5114_vm8, %v5103_v45, %v12312_v10 }
 0x997   :  { %v8241_v61 = vpop.permute.xlu1 %8240 }
 0x998   :  { %v8243_v8 = vunpack.i.h.bf16 %v8241_v61  ;;  %v8242_v25 = vunpack.i.l.bf16 %v8241_v61 }
 0x99a   :  { %v5007_v6 = vsel %vm2933_vm2, %v8243_v8, %v8217_v16  ;;  %v5009_v62 = vsel %vm2933_vm2, %v8218_v56, %v8242_v25 }
 0x99b   :  { %v8309_v57 = vpack.i.bf16 %v5007_v6, %v13539_v3  ;;  %v8246_v50 = vpop.permute.xlu1 %8245  ;;  %v8319_v29 = vpack.i.bf16 %v5009_v62, %v5008_v31 }
 0x99c   :  { %v8248_v1 = vunpack.i.h.bf16 %v8246_v50  ;;  %v8247_v38 = vunpack.i.l.bf16 %v8246_v50 }
 0x99d   :  { %8310 = vrot.lane.b32.xlu0 %v8309_v57, %s8649_s0 }
 0x99e   :  { %v5027_v18 = vsel %vm3002_vm0, %v8248_v1, %v8222_v34  ;;  %v5029_v49 = vsel %vm3002_vm0, %v8223_v46, %v8247_v38 }
 0x99f   :  { %v8314_v53 = vpack.i.bf16 %v8227_v32, %v5027_v18  ;;  %v8324_v36 = vpack.i.bf16 %v5029_v49, %v5028_v58 }
 0x9a1   :  { %8315 = vrot.lane.b32.xlu1 %v8314_v53, %s8649_s0 }
 0x9a5   :  { %5214 = vrot.lane.b32.xlu1 %v5115_v9, %s8649_s0 }
 0x9a6   :  { %v8251_v37 = vpop.permute.xlu1 %8250 }
 0x9a7   :  { %v8252_v12 = vunpack.i.l.bf16 %v8251_v37  ;;  %v8253_v18 = vunpack.i.h.bf16 %v8251_v37 }
 0x9a9   :  { %v5047_v47 = vsel %vm5045_vm1, %v8228_v4, %v8252_v12  ;;  %8320 = vrot.lane.b32.xlu1 %v8319_v29, %s8649_s0  ;;  %v5048_v4 = vsel %vm5045_vm1, %v8252_v12, %v8253_v18 }
 0x9aa   :  { %v8329_v5 = vpack.i.bf16 %v5047_v47, %v5046_v40  ;;  %v8256_v27 = vpop.permute.xlu1 %8255 }
 0x9ab   :  { %v8257_v54 = vunpack.i.l.bf16 %v8256_v27  ;;  %v8258_v9 = vunpack.i.h.bf16 %v8256_v27 }
 0x9ac   :  { %8330 = vrot.lane.b32.xlu0 %v8329_v5, %s8649_s0 }
 0x9ad   :  { %v5074_v23 = vsel %vm5072_vm7, %v8233_v19, %v8257_v54  ;;  %8325 = vrot.lane.b32.xlu1 %v8324_v36, %s8649_s0  ;;  %v5075_v40 = vsel %vm5072_vm7, %v8257_v54, %v8258_v9 }
 0x9ae   :  { %v8334_v41 = vpack.i.bf16 %v5074_v23, %v5073_v15  ;;  %v8261_v63 = vpop.permute.xlu1 %8260 }
 0x9af   :  { %v8262_v17 = vunpack.i.l.bf16 %v8261_v63  ;;  %v8263_v19 = vunpack.i.h.bf16 %v8261_v63 }
 0x9b0   :  { %8335 = vrot.lane.b32.xlu0 %v8334_v41, %s8649_s0 }
 0x9b1   :  { %v5095_v33 = vsel %vm5093_vm4, %v8238_v39, %v8262_v17  ;;  %v5096_v12 = vsel %vm5093_vm4, %v8262_v17, %v8263_v19 }
 0x9b2   :  { %v8339_v59 = vpack.i.bf16 %v5095_v33, %v5094_v52 }
 0x9b4   :  { %5216 = vrot.lane.b32.xlu0 %v5116_v51, %s8649_s0  ;;  %8340 = vrot.lane.b32.xlu1 %v8339_v59, %s8649_s0 }
 0x9c3   :  { %v8266_v48 = vpop.permute.xlu0 %8265 }
 0x9c4   :  { %v8268_v60 = vunpack.i.h.bf16 %v8266_v48  ;;  %v8267_v42 = vunpack.i.l.bf16 %v8266_v48 }
 0x9c6   :  { %v5010_v61 = vsel %vm2933_vm2, %v8242_v25, %v8267_v42  ;;  %v5011_v16 = vsel %vm2933_vm2, %v8267_v42, %v8268_v60 }
 0x9c7   :  { %v8344_v8 = vpack.i.bf16 %v5011_v16, %v5010_v61  ;;  %v8271_v6 = vpop.permute.xlu0 %8270 }
 0x9c8   :  { %v8273_v13 = vunpack.i.h.bf16 %v8271_v6  ;;  %v8272_v57 = vunpack.i.l.bf16 %v8271_v6 }
 0x9c9   :  { %8345 = vrot.lane.b32.xlu0 %v8344_v8, %s8649_s0 }
 0x9ca   :  { %v5030_v50 = vsel %vm3002_vm0, %v8247_v38, %v8272_v57  ;;  %v5031_v45 = vsel %vm3002_vm0, %v8272_v57, %v8273_v13 }
 0x9cb   :  { %v8349_v34 = vpack.i.bf16 %v5031_v45, %v5030_v50 }
 0x9cd   :  { %8350 = vrot.lane.b32.xlu1 %v8349_v34, %s8649_s0  ;;  %v7480_v34 = vld [vmem:[%s13455_s5 + $0x10] sm:$0xff] }
 0x9d4   :  { %v5006_v1 = vpop.permute.xlu1 %5005 }
 0x9d5   :  { %v5012_v37 = vsel %vm2933_vm2, %v8268_v60, %v5006_v1  ;;  %vm13599_vm2 = vcmask 457728  }
 0x9d6   :  { %v8281_v32 = vpop.permute.xlu0 %8280  ;;  %v8369_v58 = vpack.i.bf16 %v5006_v1, %v5012_v37  ;;  %v7511_v1 = vld [vmem:[%s13459_s9 + $0x10] sm:$0xff]  ;;  %vm13600_vm6 = vmmov %vm13599_vm2 }
 0x9d7   :  { %v8282_v25 = vunpack.i.l.bf16 %v8281_v32  ;;  %v8283_v41 = vunpack.i.h.bf16 %v8281_v32  ;;  %v7485_v32 = vld [vmem:[%s13457_s7 + $0x10] sm:$0xff]  ;;  %vm13601_vm9 = vmmov %vm13599_vm2 }
 0x9d8   :  { %v8276_v53 = vpop.permute.xlu1 %8275 }
 0x9d9   :  { %v8277_v56 = vunpack.i.l.bf16 %v8276_v53  ;;  %v5076_v38 = vsel %vm5072_vm7, %v8258_v9, %v8282_v25  ;;  %v8278_v49 = vunpack.i.h.bf16 %v8276_v53  ;;  %v5077_v51 = vsel %vm5072_vm7, %v8282_v25, %v8283_v41  ;;  %v6420_v53 = vld [vmem:[%s13460_s10] sm:$0xff] }
 0x9da   :  { %v8359_v29 = vpack.i.bf16 %v5076_v38, %v5075_v40  ;;  %v5071_v54 = vpop.permute.xlu0 %5070 }
 0x9db   :  { %v5049_v62 = vsel %vm5045_vm1, %v8253_v18, %v8277_v56  ;;  %v5050_v39 = vsel %vm5045_vm1, %v8277_v56, %v8278_v49  ;;  %v5078_v17 = vsel %vm5072_vm7, %v8283_v41, %v5071_v54  ;;  %v6421_v18 = vld [vmem:[%s13461_s11] sm:$0xff] }
 0x9dc   :  { %v8354_v31 = vpack.i.bf16 %v5049_v62, %v5048_v4  ;;  %v5026_v46 = vpop.permute.xlu1 %5025  ;;  %v8379_v52 = vpack.i.bf16 %v8278_v49, %v5050_v39  ;;  %v8384_v60 = vpack.i.bf16 %v5078_v17, %v5077_v51 }
 0x9dd   :  { %v5032_v36 = vsel %vm3002_vm0, %v8273_v13, %v5026_v46  ;;  %vm5226_vm0 = vcmask 220160  }
 0x9de   :  { %8355 = vrot.lane.b32.xlu0 %v8354_v31, %s8649_s0  ;;  %v8374_v33 = vpack.i.bf16 %v5026_v46, %v5032_v36  ;;  %v5107_v16 = vpop.permute.xlu0 %5106 }
 0x9df   :  { %v5117_v8 = vsel %vm5114_vm8, %v12312_v10, %v5107_v16  ;;  %v7484_v10 = vld [vmem:[%s13456_s6 + $0x10] sm:$0xff] }
 0x9e0   :  { %v8286_v47 = vpop.permute.xlu1 %8285 }
 0x9e1   :  { %v8287_v5 = vunpack.i.l.bf16 %v8286_v47  ;;  %v8288_v63 = vunpack.i.h.bf16 %v8286_v47 }
 0x9e2   :  { %8360 = vrot.lane.b32.xlu0 %v8359_v29, %s8649_s0  ;;  %v5111_v57 = vpop.permute.xlu0 %5110 }
 0x9e3   :  { %v5097_v27 = vsel %vm5093_vm4, %v8263_v19, %v8287_v5  ;;  %v5098_v48 = vsel %vm5093_vm4, %v8287_v5, %v8288_v63 }
 0x9e4   :  { %v8364_v15 = vpack.i.bf16 %v5097_v27, %v5096_v12  ;;  %v5092_v23 = vpop.permute.xlu1 %5091 }
 0x9e5   :  { %v5099_v59 = vsel %vm5093_vm4, %v8288_v63, %v5092_v23 }
 0x9e6   :  { %8365 = vrot.lane.b32.xlu1 %v8364_v15, %s8649_s0  ;;  %8370 = vrot.lane.b32.xlu0 %v8369_v58, %s8649_s0  ;;  %v8389_v42 = vpack.i.bf16 %v5099_v59, %v5098_v48  ;;  %v12379_v4 = vpop.permute.xlu0 %8290 }
 0x9e7   :  { %v8293_v40 = vunpack.i.h.bf16 %v12379_v4  ;;  %v8292_v19 = vunpack.i.l.bf16 %v12379_v4 }
 0x9e8   :  { %v5109_v61 = vpop.permute.xlu1 %5108 }
 0x9e9   :  { %v5118_v6 = vsel %vm5114_vm8, %v5107_v16, %v5109_v61  ;;  %v5119_v50 = vsel %vm5114_vm8, %v5109_v61, %v5111_v57  ;;  %v5228_v58 = vsel %vm5226_vm0, %v8292_v19, %v8293_v40 }
 0x9ea   :  { %8380 = vrot.lane.b32.xlu1 %v8379_v52, %s8649_s0  ;;  %8375 = vrot.lane.b32.xlu0 %v8374_v33, %s8649_s0 }
 0x9ec   :  { %v5113_v13 = vpop.permute.xlu1 %5112 }
 0x9ed   :  { %v5120_v45 = vsel %vm5114_vm8, %v5111_v57, %v5113_v13 }
 0x9ee   :  { %8390 = vrot.lane.b32.xlu1 %v8389_v42, %s8649_s0  ;;  %8385 = vrot.lane.b32.xlu0 %v8384_v60, %s8649_s0 }
 0x9f0   :  { %v12375_v25 = vpop.permute.xlu1 %8295 }
 0x9f2   :  { %5220 = vrot.lane.b32.xlu1 %v5118_v6, %s8649_s0  ;;  %5218 = vrot.lane.b32.xlu0 %v5117_v8, %s8649_s0 }
 0x9f4   :  { %v12377_v56 = vpop.permute.xlu1 %8300 }
 0x9f6   :  { %5224 = vrot.lane.b32.xlu1 %v5120_v45, %s8649_s0  ;;  %5222 = vrot.lane.b32.xlu0 %v5119_v50, %s8649_s0 }
 0x9f8   :  { %v5213_v9 = vpop.permute.xlu1 %5212  ;;  %v8306_v62 = vpop.permute.xlu0 %8305 }
 0x9f9   :  { %v8308_v50 = vunpack.i.h.bf16 %v8306_v62  ;;  %v8307_v45 = vunpack.i.l.bf16 %v8306_v62 }
 0x9fa   :  { %5544 = vperm.xlu1 %8033, %v7484_v10   ;;  %5125 = vperm.xlu0 %7852, %v7480_v34  }
 0x9fe   :  { %6189 = vperm.xlu1 %8033, %v7511_v1   ;;  %5533 = vperm.xlu0 %7852, %v7485_v32  }
 0xa02   :  { %6424 = vperm.xlu1 %8033, %v6421_v18   ;;  %6435 = vperm.xlu0 %7852, %v6420_v53  }
 0xa0f   :  { %v8311_v46 = vpop.permute.xlu0 %8310 }
 0xa10   :  { %v8312_v29 = vunpack.i.l.bf16 %v8311_v46  ;;  %v8313_v37 = vunpack.i.h.bf16 %v8311_v46 }
 0xa12   :  { %v5227_v27 = vsel %vm5226_vm0, %v8312_v29, %v8292_v19  ;;  %v12420_v19 = vld [vmem:[%s13454_s4 + $0x10] sm:$0xff] }
 0xa13   :  { %v8316_v31 = vpop.permute.xlu1 %8315 }
 0xa14   :  { %v8318_v52 = vunpack.i.h.bf16 %v8316_v31  ;;  %v8317_v33 = vunpack.i.l.bf16 %v8316_v31 }
 0xa17   :  { %v5215_v38 = vpop.permute.xlu1 %5214 }
 0xa18   :  { %v5263_v29 = vsel %vm5226_vm0, %v5213_v9, %v5215_v38 }
 0xa1b   :  { %v8321_v47 = vpop.permute.xlu1 %8320 }
 0xa1c   :  { %v8323_v5 = vunpack.i.h.bf16 %v8321_v47  ;;  %v8322_v12 = vunpack.i.l.bf16 %v8321_v47  ;;  %v8298_v47 = vunpack.i.h.bf16 %v12375_v25 }
 0xa1e   :  { %v12383_v49 = vpop.permute.xlu0 %8330  ;;  %v5233_v36 = vsel %vm5226_vm0, %v8313_v37, %v8322_v12  ;;  %v5234_v54 = vsel %vm5226_vm0, %v8322_v12, %v8323_v5  ;;  %v8297_v37 = vunpack.i.l.bf16 %v12375_v25 }
 0xa1f   :  { %v8333_v15 = vunpack.i.h.bf16 %v12383_v49  ;;  %v8332_v39 = vunpack.i.l.bf16 %v12383_v49  ;;  %v7617_v23 = vpack.c.bf16 %v5233_v36, %v5227_v27  ;;  %v8326_v41 = vpop.permute.xlu1 %8325  ;;  %v7615_v63 = vpack.c.bf16 %v5234_v54, %v5228_v58 }
 0xa20   :  { %v8328_v59 = vunpack.i.h.bf16 %v8326_v41  ;;  %v8327_v51 = vunpack.i.l.bf16 %v8326_v41  ;;  %v5230_v54 = vsel %vm5226_vm0, %v8297_v37, %v8298_v47 }
 0xa21   :  { %7616 = vmatprep.subr.bf16.mxu0 %v7615_v63  ;;  %v5245_v48 = vsel %vm5226_vm0, %v8318_v52, %v8332_v39  ;;  %v5246_v61 = vsel %vm5226_vm0, %v8332_v39, %v8333_v15  ;;  %v5229_v39 = vsel %vm5226_vm0, %v8293_v40, %v8297_v37 }
 0xa22   :  { %v12391_v17 = vpop.permute.xlu0 %8335  ;;  %v5239_v60 = vsel %vm5226_vm0, %v8317_v33, %v8327_v51  ;;  %7618 = vmatpush1.bf16.msra.mxu0 %v7617_v23  ;;  %v5240_v42 = vsel %vm5226_vm0, %v8327_v51, %v8328_v59 }
 0xa23   :  { %v8338_v16 = vunpack.i.h.bf16 %v12391_v17  ;;  %v8337_v8 = vunpack.i.l.bf16 %v12391_v17  ;;  %v7621_v6 = vpack.c.bf16 %v5245_v48, %v5239_v60  ;;  %v7619_v13 = vpack.c.bf16 %v5246_v61, %v5240_v42 }
 0xa25   :  { %7620 = vmatprep.subr.bf16.mxu0 %v7619_v13  ;;  %v5251_v1 = vsel %vm5226_vm0, %v8307_v45, %v8337_v8  ;;  %v5252_v18 = vsel %vm5226_vm0, %v8337_v8, %v8338_v16  ;;  %v8302_v13 = vunpack.i.l.bf16 %v12377_v56 }
 0xa26   :  { %v12401_v57 = vpop.permute.xlu1 %8340  ;;  %7622 = vmatpush1.bf16.msra.mxu0 %v7621_v6  ;;  %v12413_v4 = vpop.permute.xlu0 %5216  ;;  %v8303_v6 = vunpack.i.h.bf16 %v12377_v56 }
 0xa27   :  { %v8343_v10 = vunpack.i.h.bf16 %v12401_v57  ;;  %v8342_v34 = vunpack.i.l.bf16 %v12401_v57  ;;  %v5264_v46 = vsel %vm5226_vm0, %v5215_v38, %v12413_v4 }
 0xa28   :  { %v5232_v56 = vsel %vm5226_vm0, %v8302_v13, %v8303_v6 }
 0xa29   :  { %v5257_v32 = vsel %vm5226_vm0, %v8308_v50, %v8342_v34  ;;  %v5258_v53 = vsel %vm5226_vm0, %v8342_v34, %v8343_v10 }
 0xa2a   :  { %v7625_v62 = vpack.c.bf16 %v5257_v32, %v5251_v1  ;;  %v7623_v31 = vpack.c.bf16 %v5258_v53, %v5252_v18 }
 0xa2c   :  { %7624 = vmatprep.subr.bf16.mxu0 %v7623_v31 }
 0xa2d   :  { %7626 = vmatpush1.bf16.msra.mxu0 %v7625_v62 }
 0xa2e   :  { %5326 = vmatprep.subr.mxu0 %v5264_v46 }
 0xa31   :  { %5327 = vmatpush1.msra.mxu0 %v5263_v29 }
 0xa32   :  { %7481 = vmatmul.mubr.msk.f32.vlgmr.msra.gmra.mrb[12].mxu0 %vm13599_vm2, %v12420_v19 }
 0xa33   :  { %5520 = vmatprep.mubr.f32.mxu0 %v13539_v3 }
 0xa3b   :  { %v8346_v12 = vpop.permute.xlu0 %8345 }
 0xa3c   :  { %v8348_v27 = vunpack.i.h.bf16 %v8346_v12  ;;  %v8347_v58 = vunpack.i.l.bf16 %v8346_v12 }
 0xa3e   :  { %v5235_v36 = vsel %vm5226_vm0, %v8323_v5, %v8347_v58  ;;  %v5236_v9 = vsel %vm5226_vm0, %v8347_v58, %v8348_v27 }
 0xa3f   :  { %v7629_v38 = vpack.c.bf16 %v5235_v36, %v5229_v39  ;;  %v7627_v23 = vpack.c.bf16 %v5236_v9, %v5230_v54  ;;  %v8351_v41 = vpop.permute.xlu1 %8350 }
 0xa40   :  { %v8353_v63 = vunpack.i.h.bf16 %v8351_v41  ;;  %v8352_v52 = vunpack.i.l.bf16 %v8351_v41 }
 0xa41   :  { %7628 = vmatprep.subr.bf16.mxu1 %v7627_v23 }
 0xa42   :  { %7630 = vmatpush1.bf16.msra.mxu1 %v7629_v38  ;;  %v5241_v25 = vsel %vm5226_vm0, %v8328_v59, %v8352_v52  ;;  %v5242_v40 = vsel %vm5226_vm0, %v8352_v52, %v8353_v63 }
 0xa50   :  { %v8356_v33 = vpop.permute.xlu0 %8355 }
 0xa51   :  { %v8358_v51 = vunpack.i.h.bf16 %v8356_v33  ;;  %v8357_v48 = vunpack.i.l.bf16 %v8356_v33 }
 0xa53   :  { %v5247_v5 = vsel %vm5226_vm0, %v8333_v15, %v8357_v48  ;;  %v5248_v60 = vsel %vm5226_vm0, %v8357_v48, %v8358_v51  ;;  %v5231_v15 = vsel %vm5226_vm0, %v8298_v47, %v8302_v13 }
 0xa54   :  { %v7633_v42 = vpack.c.bf16 %v5247_v5, %v5241_v25  ;;  %v8361_v61 = vpop.permute.xlu0 %8360  ;;  %v7631_v8 = vpack.c.bf16 %v5248_v60, %v5242_v40 }
 0xa55   :  { %v8363_v50 = vunpack.i.h.bf16 %v8361_v61  ;;  %v8362_v45 = vunpack.i.l.bf16 %v8361_v61 }
 0xa56   :  { %7632 = vmatprep.subr.bf16.mxu1 %v7631_v8 }
 0xa57   :  { %7634 = vmatpush1.bf16.msra.mxu1 %v7633_v42  ;;  %v5253_v53 = vsel %vm5226_vm0, %v8338_v16, %v8362_v45  ;;  %v5254_v62 = vsel %vm5226_vm0, %v8362_v45, %v8363_v50 }
 0xa58   :  { %v8366_v59 = vpop.permute.xlu1 %8365  ;;  %v8371_v34 = vpop.permute.xlu0 %8370 }
 0xa59   :  { %v8368_v1 = vunpack.i.h.bf16 %v8366_v59  ;;  %v8367_v32 = vunpack.i.l.bf16 %v8366_v59  ;;  %v8373_v49 = vunpack.i.h.bf16 %v8371_v34  ;;  %v8372_v18 = vunpack.i.l.bf16 %v8371_v34 }
 0xa5b   :  { %v5259_v31 = vsel %vm5226_vm0, %v8343_v10, %v8367_v32  ;;  %v5237_v46 = vsel %vm5226_vm0, %v8348_v27, %v8372_v18  ;;  %v5260_v29 = vsel %vm5226_vm0, %v8367_v32, %v8368_v1  ;;  %v5238_v37 = vsel %vm5226_vm0, %v8372_v18, %v8373_v49 }
 0xa5c   :  { %v7637_v12 = vpack.c.bf16 %v5259_v31, %v5253_v53  ;;  %v7641_v47 = vpack.c.bf16 %v5237_v46, %v5231_v15  ;;  %v8381_v58 = vpop.permute.xlu1 %8380  ;;  %v8376_v17 = vpop.permute.xlu0 %8375  ;;  %v7635_v39 = vpack.c.bf16 %v5260_v29, %v5254_v62  ;;  %v7639_v16 = vpack.c.bf16 %v5238_v37, %v5232_v56 }
 0xa5d   :  { %v8383_v36 = vunpack.i.h.bf16 %v8381_v58  ;;  %v8382_v54 = vunpack.i.l.bf16 %v8381_v58  ;;  %v8378_v9 = vunpack.i.h.bf16 %v8376_v17  ;;  %v8377_v38 = vunpack.i.l.bf16 %v8376_v17 }
 0xa5e   :  { %7636 = vmatprep.subr.bf16.mxu1 %v7635_v39  ;;  %7640 = vmatprep.subr.bf16.mxu0 %v7639_v16 }
 0xa5f   :  { %v5249_v57 = vsel %vm5226_vm0, %v8358_v51, %v8382_v54  ;;  %v5243_v10 = vsel %vm5226_vm0, %v8353_v63, %v8377_v38  ;;  %7638 = vmatpush1.bf16.msra.mxu1 %v7637_v12  ;;  %7642 = vmatpush1.bf16.msra.mxu0 %v7641_v47  ;;  %v5244_v27 = vsel %vm5226_vm0, %v8377_v38, %v8378_v9 }
 0xa60   :  { %v7645_v23 = vpack.c.bf16 %v5249_v57, %v5243_v10  ;;  %v8391_v41 = vpop.permute.xlu1 %8390  ;;  %v8386_v52 = vpop.permute.xlu0 %8385  ;;  %v5250_v33 = vsel %vm5226_vm0, %v8382_v54, %v8383_v36 }
 0xa61   :  { %v8393_v25 = vunpack.i.h.bf16 %v8391_v41  ;;  %v8392_v48 = vunpack.i.l.bf16 %v8391_v41  ;;  %v8388_v40 = vunpack.i.h.bf16 %v8386_v52  ;;  %v8387_v5 = vunpack.i.l.bf16 %v8386_v52 }
 0xa62   :  { %v7643_v60 = vpack.c.bf16 %v5250_v33, %v5244_v27 }
 0xa63   :  { %v5261_v42 = vsel %vm5226_vm0, %v8368_v1, %v8392_v48  ;;  %v5255_v51 = vsel %vm5226_vm0, %v8363_v50, %v8387_v5  ;;  %v5256_v63 = vsel %vm5226_vm0, %v8387_v5, %v8388_v40  ;;  %v5262_v61 = vsel %vm5226_vm0, %v8392_v48, %v8393_v25 }
 0xa64   :  { %7644 = vmatprep.subr.bf16.mxu0 %v7643_v60  ;;  %v5221_v8 = vpop.permute.xlu1 %5220  ;;  %v5219_v6 = vpop.permute.xlu0 %5218  ;;  %v7647_v13 = vpack.c.bf16 %v5262_v61, %v5256_v63  ;;  %v7649_v45 = vpack.c.bf16 %v5261_v42, %v5255_v51 }
 0xa65   :  { %7646 = vmatpush1.bf16.msra.mxu0 %v7645_v23  ;;  %v5265_v59 = vsel %vm5226_vm0, %v12413_v4, %v5219_v6  ;;  %v5266_v34 = vsel %vm5226_vm0, %v5219_v6, %v5221_v8 }
 0xa66   :  { %5397 = vmatprep.subr.mxu1 %v5266_v34  ;;  %7648 = vmatprep.subr.bf16.mxu0 %v7647_v13 }
 0xa67   :  { %5398 = vmatpush1.msra.mxu1 %v5265_v59 }
 0xa68   :  { %v5225_v1 = vpop.permute.xlu1 %5224  ;;  %v5223_v50 = vpop.permute.xlu0 %5222  ;;  %7482 = vmatmul.mubr.msk.f32.vlgmr.msra.gmra.mrb[12].mxu1 %vm13600_vm6, %v12420_v19 }
 0xa69   :  { %7650 = vmatpush1.bf16.msra.mxu0 %v7649_v45  ;;  %v5268_v32 = vsel %vm5226_vm0, %v5223_v50, %v5225_v1  ;;  %6259 = vmatprep.mubr.f32.mxu1 %v13539_v3  ;;  %v5267_v49 = vsel %vm5226_vm0, %v5221_v8, %v5223_v50 }
 0xa6a   :  { %5468 = vmatprep.subr.mxu0 %v5268_v32 }
 0xa6d   :  { %5469 = vmatpush1.msra.mxu0 %v5267_v49 }
 0xa6e   :  { %7483 = vmatmul.mubr.msk.f32.vlgmr.msra.gmra.mrb[14].mxu0 %vm13601_vm9, %v12420_v19 }
 0xa6f   :  { %7300 = vmatprep.mubr.f32.mxu0 %v13539_v3 }
 0xa79   :  { %v12471_v4 = vpop.permute.xlu0 %5125  ;;  %v12476_v62 = vpop.permute.xlu1 %5544 }
 0xb05   :  { %v5380_v18 = vpop.f32.mrb[12].mxu0 }
 0xb06   :  { %v12474_v15 = vadd.f32 %v5380_v18, %v12471_v4  ;;  %v5382_v53 = vpop.f32.mrb[13].mxu0 }
 0xb07   :  { %v12479_v56 = vadd.f32 %v5382_v53, %v12471_v4 }
 0xb08   :  { %v12483_v31 = vmul.f32 %v12476_v62, %v12474_v15 }
 0xb09   :  { %v12487_v19 = vmul.f32 %v12476_v62, %v12479_v56 }
 0xb0a   :  { %v5553_v46 = vand.u32 2147483647, %v12483_v31  ;;  %v5556_v29 = vand.u32 2139095040, %v12483_v31  ;;  %vm5555_vm9 = vcmp.lt.s32.totalorder %v12483_v31, 0 }
 0xb0b   :  { %v5659_v37 = vand.u32 2139095040, %v12487_v19  ;;  %v5656_v58 = vand.u32 2147483647, %v12487_v19 }
 0xb0c   :  { %v5557_v12 = vshrl.u32 %v5556_v29, 23  ;;  %v5560_v47 = vand.u32 8388607, %v5553_v46 }
 0xb0d   :  { %v5660_v17 = vshrl.u32 %v5659_v37, 23  ;;  %v5663_v9 = vand.u32 8388607, %v5656_v58 }
 0xb0e   :  { %v7486_v39 = vadd.s32 4294967169, %v5557_v12  ;;  %v5561_v54 = vor.u32 8388608, %v5560_v47 }
 0xb0f   :  { %v7490_v16 = vadd.s32 4294967169, %v5660_v17  ;;  %v5664_v52 = vor.u32 8388608, %v5663_v9 }
 0xb10   :  { %v5563_v36 = vadd.s32 1, %v7486_v39  ;;  %v12497_v41 = vshll.u32 %v5561_v54, 8 }
 0xb11   :  { %v5666_v38 = vadd.s32 1, %v7490_v16 }
 0xb12   :  { %vm5564_vm5 = vcmp.gt.s32.totalorder %v5563_v36, 0 }
 0xb13   :  { %v5565_v57 = vsel %vm5564_vm5, %v5563_v36, 0  ;;  %vm5667_vm10 = vcmp.gt.s32.totalorder %v5666_v38, 0  ;;  %vm5554_vm5 = vcmp.le.f32.partialorder %v5553_v46, 0.7853982 }
 0xb14   :  { %v5566_v10 = vshrl.u32 %v5565_v57, 5  ;;  %v5567_v27 = vand.u32 31, %v5565_v57  ;;  %v5668_v23 = vsel %vm5667_vm10, %v5666_v38, 0 }
 0xb15   :  { %v12500_v48 = vshrl.u32 %v5668_v23, 5  ;;  %v5670_v40 = vand.u32 31, %v5668_v23 }
 0xb16   :  { %v5568_v33 = vsub.s32 32, %v5567_v27  ;;  %v5570_v25 = vshll.u32 %v13519_v28, %v5567_v27  ;;  %v5573_v5 = vshll.u32 %v13520_v44, %v5567_v27  ;;  %v5576_v60 = vshll.u32 %v13521_v30, %v5567_v27 }
 0xb17   :  { %v5579_v42 = vshll.u32 %v13580_v14, %v5567_v27  ;;  %v5582_v51 = vshll.u32 %v13581_v22, %v5567_v27  ;;  %vm5585_vm3 = vcmp.lt.s32.totalorder %v5566_v10, 1  ;;  %vm5586_vm15 = vcmp.lt.s32.totalorder %v5566_v10, 2 }
 0xb18   :  { %v5571_v63 = vshrl.u32 %v13520_v44, %v5568_v33  ;;  %v5574_v61 = vshrl.u32 %v13521_v30, %v5568_v33  ;;  %v5577_v8 = vshrl.u32 %v13580_v14, %v5568_v33  ;;  %v5569_v6 = vshrl.u32 %v13519_v28, %v5568_v33 }
 0xb19   :  { %v5580_v13 = vshrl.u32 %v13581_v22, %v5568_v33  ;;  %v5583_v45 = vshrl.u32 %v13582_v7, %v5568_v33  ;;  %v5671_v50 = vsub.s32 32, %v5670_v40  ;;  %vm5587_vm14 = vcmp.lt.s32.totalorder %v5566_v10, 3 }
 0xb1a   :  { %v5572_v59 = vor.u32 %v5571_v63, %v5570_v25  ;;  %v5575_v34 = vor.u32 %v5574_v61, %v5573_v5  ;;  %v5578_v1 = vor.u32 %v5577_v8, %v5576_v60  ;;  %vm5588_vm11 = vcmp.lt.s32.totalorder %v5566_v10, 4 }
 0xb1b   :  { %v5581_v32 = vor.u32 %v5580_v13, %v5579_v42  ;;  %v5584_v49 = vor.u32 %v5583_v45, %v5582_v51  ;;  %v5673_v39 = vshll.u32 %v13519_v28, %v5670_v40  ;;  %v5674_v54 = vshrl.u32 %v13520_v44, %v5671_v50 }
 0xb1c   :  { %v5589_v18 = vsel %vm5585_vm3, %v5569_v6, %v5572_v59  ;;  %v5590_v53 = vsel %vm5588_vm11, %v5578_v1, 2102212464  ;;  %v5593_v29 = vsel %vm5585_vm3, %v5572_v59, %v5575_v34  ;;  %v5597_v37 = vsel %vm5585_vm3, %v5575_v34, %v5578_v1 }
 0xb1d   :  { %v5591_v12 = vsel %vm5587_vm14, %v5575_v34, %v5590_v53  ;;  %v5594_v47 = vsel %vm5588_vm11, %v5581_v32, 920167782  ;;  %v5598_v17 = vsel %vm5588_vm11, %v5584_v49, 1326507024  ;;  %v5676_v9 = vshll.u32 %v13520_v44, %v5670_v40 }
 0xb1e   :  { %v5595_v16 = vsel %vm5587_vm14, %v5578_v1, %v5594_v47  ;;  %v5599_v36 = vsel %vm5587_vm14, %v5581_v32, %v5598_v17  ;;  %v5592_v38 = vsel %vm5586_vm15, %v5589_v18, %v5591_v12  ;;  %v5677_v23 = vshrl.u32 %v13521_v30, %v5671_v50 }
 0xb1f   :  { %v5596_v57 = vsel %vm5586_vm15, %v5593_v29, %v5595_v16  ;;  %v5600_v27 = vsel %vm5586_vm15, %v5597_v37, %v5599_v36  ;;  %v5675_v42 = vor.u32 %v5674_v54, %v5673_v39  ;;  %v5679_v63 = vshll.u32 %v13521_v30, %v5670_v40 }
 0xb20   :  { %v12523_v33 = vmul.u32.u64.low %v12497_v41, %v5600_v27  ;;  %v12524_v25 = vmul.u32.u64.high %v12497_v41, %v5600_v27, %v12523_v33  ;;  %v12527_v5 = vmul.u32.u64.low %v12497_v41, %v5596_v57  ;;  %v12528_v60 = vmul.u32.u64.high %v12497_v41, %v5596_v57, %v12527_v5 }
 0xb21   :  { %v5678_v51 = vor.u32 %v5677_v23, %v5676_v9  ;;  %v5680_v61 = vshrl.u32 %v13580_v14, %v5671_v50  ;;  %v5682_v8 = vshll.u32 %v13580_v14, %v5670_v40  ;;  %v5683_v10 = vshrl.u32 %v13581_v22, %v5671_v50 }
 0xb22   :  { %v5686_v6 = vshrl.u32 %v13582_v7, %v5671_v50  ;;  %v5704_v13 = vshll.u32 %v5664_v52, 8  ;;  %v5608_v45 = vmul.u32 %v12497_v41, %v5592_v38  ;;  %v5672_v59 = vshrl.u32 %v13519_v28, %v5671_v50 }
 0xb23   :  { %v5681_v34 = vor.u32 %v5680_v61, %v5679_v63  ;;  %v5685_v1 = vshll.u32 %v13581_v22, %v5670_v40  ;;  %vm5610_vm13 = vc.u32 %v12524_v25, %v12527_v5  ;;  %v5611_v32 = vadd.s32 1, %v12528_v60 }
 0xb24   :  { %v5684_v49 = vor.u32 %v5683_v10, %v5682_v8  ;;  %vm5688_vm8 = vcmp.lt.s32.totalorder %v12500_v48, 1  ;;  %vm5690_vm1 = vcmp.lt.s32.totalorder %v12500_v48, 3  ;;  %vm5691_vm7 = vcmp.lt.s32.totalorder %v12500_v48, 4 }
 0xb25   :  { %v5687_v18 = vor.u32 %v5686_v6, %v5685_v1  ;;  %v5696_v52 = vsel %vm5688_vm8, %v5675_v42, %v5678_v51  ;;  %v5612_v41 = vsel %vm5610_vm13, %v5611_v32, %v12528_v60  ;;  %v5693_v53 = vsel %vm5691_vm7, %v5681_v34, 2102212464 }
 0xb26   :  { %v5697_v50 = vsel %vm5691_vm7, %v5684_v49, 920167782  ;;  %v5700_v29 = vsel %vm5688_vm8, %v5678_v51, %v5681_v34  ;;  %v5613_v37 = vadd.s32 %v5612_v41, %v5608_v45  ;;  %vm5689_vm4 = vcmp.lt.s32.totalorder %v12500_v48, 2 }
 0xb27   :  { %v5698_v40 = vsel %vm5690_vm1, %v5681_v34, %v5697_v50  ;;  %v5701_v12 = vsel %vm5691_vm7, %v5687_v18, 1326507024  ;;  %v5692_v47 = vsel %vm5688_vm8, %v5672_v59, %v5675_v42  ;;  %v5694_v17 = vsel %vm5690_vm1, %v5678_v51, %v5693_v53 }
 0xb28   :  { %v5699_v39 = vsel %vm5689_vm4, %v5696_v52, %v5698_v40  ;;  %v5702_v16 = vsel %vm5690_vm1, %v5684_v49, %v5701_v12  ;;  %v5614_v36 = vadd.s32 536870912, %v5613_v37  ;;  %v5695_v33 = vsel %vm5689_vm4, %v5692_v47, %v5694_v17 }
 0xb29   :  { %v5703_v54 = vsel %vm5689_vm4, %v5700_v29, %v5702_v16  ;;  %v12545_v9 = vmul.u32.u64.low %v5704_v13, %v5699_v39  ;;  %v12546_v38 = vmul.u32.u64.high %v5704_v13, %v5699_v39, %v12545_v9  ;;  %v5711_v48 = vmul.u32 %v5704_v13, %v5695_v33 }
 0xb2a   :  { %v12548_v57 = vmul.u32.u64.low %v5704_v13, %v5703_v54  ;;  %v12549_v27 = vmul.u32.u64.high %v5704_v13, %v5703_v54, %v12548_v57  ;;  %v5615_v23 = vshrl.u32 %v5614_v36, 30  ;;  %v5609_v13 = vadd.s32 %v12527_v5, %v12524_v25 }
 0xb2b   :  { %v5714_v63 = vadd.s32 1, %v12546_v38  ;;  %vm5658_vm15 = vcmp.lt.s32.totalorder %v12487_v19, 0  ;;  %vm12613_vm13 = vcmp.le.f32.partialorder %v5656_v58, 0.7853982  ;;  %vm5645_vm8 = vweird.f32 %v12483_v31 }
 0xb2c   :  { %v5616_v60 = vshll.u32 %v5615_v23, 30  ;;  %vm5713_vm0 = vc.u32 %v12549_v27, %v12545_v9  ;;  %v5639_v36 = vsub.s32 4, %v5615_v23 }
 0xb2d   :  { %v5715_v51 = vsel %vm5713_vm0, %v5714_v63, %v12546_v38  ;;  %v5712_v63 = vadd.s32 %v12545_v9, %v12549_v27 }
 0xb2e   :  { %v5617_v42 = vsub.s32 %v5613_v37, %v5616_v60  ;;  %v5716_v61 = vadd.s32 %v5715_v51, %v5711_v48 }
 0xb30   :  { %v5619_v8 = vsub.s32 0, %v5617_v42  ;;  %v5717_v10 = vadd.s32 536870912, %v5716_v61 }
 0xb32   :  { %v7487_v6 = vmin.u32 %v5619_v8, %v5617_v42  ;;  %v12554_v45 = vshrl.u32 %v5717_v10, 30 }
 0xb34   :  { %v5621_v59 = vclz %v7487_v6  ;;  %v5719_v34 = vshll.u32 %v12554_v45, 30 }
 0xb36   :  { %v7488_v1 = vadd.s32 4294967294, %v5621_v59  ;;  %v5720_v32 = vsub.s32 %v5716_v61, %v5719_v34  ;;  %v5640_v61 = vsel %vm5555_vm9, %v5639_v36, %v5615_v23 }
 0xb38   :  { %vm7489_vm2 = vcmp.lt.s32.totalorder %v7488_v1, 0  ;;  %v5722_v18 = vsub.s32 0, %v5720_v32 }
 0xb39   :  { %v5624_v49 = vsel %vm7489_vm2, 0, %v7488_v1 }
 0xb3a   :  { %v5625_v52 = vsub.s32 32, %v5624_v49  ;;  %v5629_v41 = vsub.s32 4294967266, %v5624_v49  ;;  %v7491_v53 = vmin.u32 %v5722_v18, %v5720_v32  ;;  %v5626_v50 = vshll.u32 %v5617_v42, %v5624_v49 }
 0xb3b   :  { %v5451_v39 = vpop.f32.mrb[12].mxu1  ;;  %v5642_v18 = vsel %vm5554_vm5, 0, %v5640_v61 }
 0xb3c   :  { %v5627_v29 = vshrl.u32 %v5609_v13, %v5625_v52  ;;  %v5630_v37 = vadd.s32 127, %v5629_v41  ;;  %v5724_v40 = vclz %v7491_v53  ;;  %v12559_v54 = vadd.f32 %v5451_v39, %v12471_v4  ;;  %v5453_v38 = vpop.f32.mrb[13].mxu1 }
 0xb3d   :  { %v12562_v25 = vadd.f32 %v5453_v38, %v12471_v4 }
 0xb3e   :  { %v5628_v12 = vor.u32 %v5627_v29, %v5626_v50  ;;  %v5631_v47 = vshll.u32 %v5630_v37, 23  ;;  %v7492_v17 = vadd.s32 4294967294, %v5724_v40  ;;  %v12566_v60 = vmul.f32 %v12476_v62, %v12559_v54 }
 0xb3f   :  { %v12576_v1 = vmul.f32 %v12476_v62, %v12562_v25  ;;  %v12589_v40 = vand.u32 3, %v5642_v18 }
 0xb40   :  { %v5632_v16 = vor.u32 4788187, %v5631_v47  ;;  %vm7493_vm6 = vcmp.lt.s32.totalorder %v7492_v17, 0  ;;  %v5635_v57 = vcvt.s32.f32 %v5628_v12  ;;  %v13503_v8 = vand.u32 2147483647, %v12566_v60 }
 0xb41   :  { %v5727_v33 = vsel %vm7493_vm6, 0, %v7492_v17  ;;  %v5762_v10 = vand.u32 2139095040, %v12566_v60  ;;  %v5522_v49 = vpop.f32.mrb[14].mxu0  ;;  %v13502_v50 = vand.u32 2147483647, %v12576_v1  ;;  %v5865_v29 = vand.u32 2139095040, %v12576_v1 }
 0xb42   :  { %v5633_v5 = vand.u32 2147483647, %v5632_v16  ;;  %v5728_v48 = vsub.s32 32, %v5727_v33  ;;  %v5732_v42 = vsub.s32 4294967266, %v5727_v33  ;;  %v5729_v6 = vshll.u32 %v5720_v32, %v5727_v33  ;;  %v12582_v41 = vpop.f32.mrb[15].mxu0 }
 0xb43   :  { %v5763_v27 = vshrl.u32 %v5762_v10, 23  ;;  %v5766_v52 = vand.u32 8388607, %v13503_v8  ;;  %v5866_v47 = vshrl.u32 %v5865_v29, 23  ;;  %v12593_v38 = vand.u32 8388607, %v13502_v50 }
 0xb44   :  { %v5636_v51 = vmul.f32 %v5635_v57, %v5633_v5  ;;  %v5730_v59 = vshrl.u32 %v5712_v63, %v5728_v48  ;;  %v5733_v34 = vadd.s32 127, %v5732_v42  ;;  %v12596_v5 = vadd.f32 %v5522_v49, %v12471_v4  ;;  %v12598_v57 = vpop.permute.xlu0 %5533 }
 0xb45   :  { %v7494_v53 = vadd.s32 4294967169, %v5763_v27  ;;  %v5767_v16 = vor.u32 8388608, %v5766_v52  ;;  %v7498_v36 = vadd.s32 4294967169, %v5866_v47  ;;  %v12602_v48 = vadd.f32 %v12598_v57, %v12474_v15 }
 0xb46   :  { %v5637_v9 = vxor.u32 2147483648, %v5636_v51  ;;  %v5731_v13 = vor.u32 %v5730_v59, %v5729_v6  ;;  %v5734_v23 = vshll.u32 %v5733_v34, 23  ;;  %vm5651_vm3 = vcmp.eq.s32.totalorder %v12589_v40, 2 }
 0xb47   :  { %v5769_v12 = vadd.s32 1, %v7494_v53  ;;  %vm5648_vm14 = vcmp.eq.s32.totalorder %v12589_v40, 0  ;;  %v12607_v10 = vshll.u32 %v5767_v16, 8  ;;  %v5742_v6 = vsub.s32 4, %v12554_v45 }
 0xb48   :  { %v5638_v32 = vsel %vm5555_vm9, %v5637_v9, %v5636_v51  ;;  %v5735_v37 = vor.u32 4788187, %v5734_v23  ;;  %v5738_v39 = vcvt.s32.f32 %v5731_v13  ;;  %vm5647_vm11 = vcmp.lt.s32.totalorder %v12589_v40, 2 }
 0xb49   :  { %v5641_v46 = vsel %vm5554_vm5, %v12483_v31, %v5638_v32  ;;  %vm5770_vm10 = vcmp.gt.s32.totalorder %v5769_v12, 0  ;;  %v5870_v34 = vor.u32 8388608, %v12593_v38  ;;  %v5872_v49 = vadd.s32 1, %v7498_v36 }
 0xb4a   :  { %8549 = vcosq.f32 %v5641_v46  ;;  %v5736_v17 = vand.u32 2147483647, %v5735_v37  ;;  %v5771_v63 = vsel %vm5770_vm10, %v5769_v12, 0  ;;  %v12620_v9 = vmul.f32 %v12476_v62, %v12596_v5 }
 0xb4b   :  { %8551 = vsinq.f32 %v5641_v46  ;;  %v5773_v42 = vand.u32 31, %v5771_v63  ;;  %v5772_v61 = vshrl.u32 %v5771_v63, 5  ;;  %vm5873_vm2 = vcmp.gt.s32.totalorder %v5872_v49, 0 }
 0xb4c   :  { %v5739_v33 = vmul.f32 %v5738_v39, %v5736_v17  ;;  %v5874_v31 = vsel %vm5873_vm2, %v5872_v49, 0  ;;  %v12684_v49 = vshll.u32 %v5870_v34, 8 }
 0xb4d   :  { %v5774_v59 = vsub.s32 32, %v5773_v42  ;;  %v5776_v18 = vshll.u32 %v13519_v28, %v5773_v42  ;;  %v5779_v58 = vshll.u32 %v13520_v44, %v5773_v42  ;;  %v5782_v13 = vshll.u32 %v13521_v30, %v5773_v42 }
 0xb4e   :  { %v5740_v51 = vxor.u32 2147483648, %v5739_v33  ;;  %v5785_v32 = vshll.u32 %v13580_v14, %v5773_v42  ;;  %v5788_v53 = vshll.u32 %v13581_v22, %v5773_v42  ;;  %vm5791_vm1 = vcmp.lt.s32.totalorder %v5772_v61, 1 }
 0xb4f   :  { %v5777_v23 = vshrl.u32 %v13520_v44, %v5774_v59  ;;  %v5780_v52 = vshrl.u32 %v13521_v30, %v5774_v59  ;;  %v5783_v29 = vshrl.u32 %v13580_v14, %v5774_v59  ;;  %v5786_v46 = vshrl.u32 %v13581_v22, %v5774_v59 }
 0xb50   :  { %v5741_v27 = vsel %vm5658_vm15, %v5740_v51, %v5739_v33  ;;  %v5789_v37 = vshrl.u32 %v13582_v7, %v5774_v59  ;;  %v5775_v47 = vshrl.u32 %v13519_v28, %v5774_v59  ;;  %vm5792_vm7 = vcmp.lt.s32.totalorder %v5772_v61, 2 }
 0xb51   :  { %v5778_v17 = vor.u32 %v5777_v23, %v5776_v18  ;;  %v5781_v39 = vor.u32 %v5780_v52, %v5779_v58  ;;  %v5784_v38 = vor.u32 %v5783_v29, %v5782_v13  ;;  %v5787_v33 = vor.u32 %v5786_v46, %v5785_v32 }
 0xb52   :  { %v5790_v63 = vor.u32 %v5789_v37, %v5788_v53  ;;  %vm5793_vm4 = vcmp.lt.s32.totalorder %v5772_v61, 3  ;;  %vm5794_vm0 = vcmp.lt.s32.totalorder %v5772_v61, 4  ;;  %v12650_v32 = vsel %vm12613_vm13, %v12487_v19, %v5741_v27 }
 0xb53   :  { %v5795_v42 = vsel %vm5791_vm1, %v5775_v47, %v5778_v17  ;;  %v5796_v8 = vsel %vm5794_vm0, %v5784_v38, 2102212464  ;;  %v5799_v2 = vsel %vm5791_vm1, %v5778_v17, %v5781_v39  ;;  %v5800_v59 = vsel %vm5794_vm0, %v5787_v33, 920167782 }
 0xb54   :  { %v8550_v12 = vpop.eup %8549  ;;  %v5797_v58 = vsel %vm5793_vm4, %v5781_v39, %v5796_v8  ;;  %v5801_v13 = vsel %vm5793_vm4, %v5784_v38, %v5800_v59  ;;  %v5803_v23 = vsel %vm5791_vm1, %v5781_v39, %v5784_v38  ;;  %v5804_v29 = vsel %vm5794_vm0, %v5790_v63, 1326507024 }
 0xb55   :  { %v8552_v16 = vpop.eup %8551  ;;  %v5652_v36 = vxor.u32 2147483648, %v8550_v12  ;;  %v5802_v53 = vsel %vm5792_vm7, %v5799_v2, %v5801_v13  ;;  %v5805_v8 = vsel %vm5793_vm4, %v5787_v33, %v5804_v29  ;;  %v5798_v40 = vsel %vm5792_vm7, %v5795_v42, %v5797_v58 }
 0xb56   :  { %v5649_v51 = vxor.u32 2147483648, %v8552_v16  ;;  %v5806_v27 = vsel %vm5792_vm7, %v5803_v23, %v5805_v8  ;;  %v5876_v39 = vand.u32 31, %v5874_v31  ;;  %8553 = vsinq.f32 %v12650_v32 }
 0xb57   :  { %v5653_v50 = vsel %vm5651_vm3, %v5652_v36, %v8552_v16  ;;  %v12667_v2 = vmul.u32.u64.low %v12607_v10, %v5806_v27  ;;  %v12668_v47 = vmul.u32.u64.high %v12607_v10, %v5806_v27, %v12667_v2  ;;  %v12674_v16 = vadd.f32 %v12582_v41, %v12471_v4 }
 0xb58   :  { %v5650_v18 = vsel %vm5648_vm14, %v8550_v12, %v5649_v51  ;;  %v12657_v37 = vmul.u32.u64.low %v12607_v10, %v5802_v53  ;;  %v12658_v12 = vmul.u32.u64.high %v12607_v10, %v5802_v53, %v12657_v37  ;;  %v12679_v36 = vsel %vm5658_vm15, %v5742_v6, %v12554_v45 }
 0xb59   :  { %v5654_v52 = vsel %vm5647_vm11, %v5650_v18, %v5653_v50  ;;  %v5814_v61 = vmul.u32 %v12607_v10, %v5798_v40  ;;  %v5875_v33 = vshrl.u32 %v5874_v31, 5  ;;  %v5877_v63 = vsub.s32 32, %v5876_v39 }
 0xb5a   :  { %v5655_v46 = vsel %vm5645_vm8, nan, %v5654_v52  ;;  %v5817_v38 = vadd.s32 1, %v12658_v12  ;;  %v5879_v51 = vshll.u32 %v13519_v28, %v5876_v39  ;;  %v13504_v4 = vand.u32 2147483647, %v12620_v9 }
 0xb5b   :  { %v12662_v50 = vmul.f32 %v5655_v46, %v12598_v57  ;;  %vm5816_vm6 = vc.u32 %v12668_v47, %v12657_v37  ;;  %v5882_v45 = vshll.u32 %v13520_v44, %v5876_v39  ;;  %v5885_v41 = vshll.u32 %v13521_v30, %v5876_v39 }
 0xb5c   :  { %v5888_v6 = vshll.u32 %v13580_v14, %v5876_v39  ;;  %v5818_v10 = vsel %vm5816_vm6, %v5817_v38, %v12658_v12  ;;  %v5880_v34 = vshrl.u32 %v13520_v44, %v5877_v63  ;;  %v5883_v42 = vshrl.u32 %v13521_v30, %v5877_v63 }
 0xb5d   :  { %v5891_v59 = vshll.u32 %v13581_v22, %v5876_v39  ;;  %v5819_v18 = vadd.s32 %v5818_v10, %v5814_v61  ;;  %v5886_v58 = vshrl.u32 %v13580_v14, %v5877_v63  ;;  %v5889_v13 = vshrl.u32 %v13581_v22, %v5877_v63 }
 0xb5e   :  { %v5892_v23 = vshrl.u32 %v13582_v7, %v5877_v63  ;;  %v5881_v52 = vor.u32 %v5880_v34, %v5879_v51  ;;  %v5884_v53 = vor.u32 %v5883_v42, %v5882_v45  ;;  %vm5894_vm9 = vcmp.lt.s32.totalorder %v5875_v33, 1 }
 0xb5f   :  { %v5968_v29 = vand.u32 2139095040, %v12620_v9  ;;  %v5820_v46 = vadd.s32 536870912, %v5819_v18  ;;  %v5887_v8 = vor.u32 %v5886_v58, %v5885_v41  ;;  %v5890_v12 = vor.u32 %v5889_v13, %v5888_v6 }
 0xb60   :  { %v5893_v40 = vor.u32 %v5892_v23, %v5891_v59  ;;  %v5878_v27 = vshrl.u32 %v13519_v28, %v5877_v63  ;;  %vm5895_vm5 = vcmp.lt.s32.totalorder %v5875_v33, 2  ;;  %vm5897_vm10 = vcmp.lt.s32.totalorder %v5875_v33, 4  ;;  %v12704_v34 = vpop.eup %8553 }
 0xb61   :  { %v5902_v2 = vsel %vm5894_vm9, %v5881_v52, %v5884_v53  ;;  %v5821_v31 = vshrl.u32 %v5820_v46, 30  ;;  %vm5896_vm3 = vcmp.lt.s32.totalorder %v5875_v33, 3  ;;  %v5899_v39 = vsel %vm5897_vm10, %v5887_v8, 2102212464 }
 0xb62   :  { %v5903_v61 = vsel %vm5897_vm10, %v5890_v12, 920167782  ;;  %v5906_v51 = vsel %vm5894_vm9, %v5884_v53, %v5887_v8  ;;  %v5907_v45 = vsel %vm5897_vm10, %v5893_v40, 1326507024  ;;  %v5969_v10 = vshrl.u32 %v5968_v29, 23 }
 0xb63   :  { %v5904_v38 = vsel %vm5896_vm3, %v5887_v8, %v5903_v61  ;;  %v5822_v41 = vshll.u32 %v5821_v31, 30  ;;  %v5898_v6 = vsel %vm5894_vm9, %v5878_v27, %v5881_v52  ;;  %v5972_v42 = vand.u32 8388607, %v13504_v4 }
 0xb64   :  { %v5905_v63 = vsel %vm5895_vm5, %v5902_v2, %v5904_v38  ;;  %v5900_v59 = vsel %vm5896_vm3, %v5884_v53, %v5899_v39  ;;  %v5908_v58 = vsel %vm5896_vm3, %v5890_v12, %v5907_v45  ;;  %v7502_v8 = vadd.s32 4294967169, %v5969_v10 }
 0xb65   :  { %v12711_v13 = vmul.u32.u64.low %v12684_v49, %v5905_v63  ;;  %v12712_v23 = vmul.u32.u64.high %v12684_v49, %v5905_v63, %v12711_v13  ;;  %v12715_v46 = vsub.s32 %v5819_v18, %v5822_v41  ;;  %v5909_v29 = vsel %vm5895_vm5, %v5906_v51, %v5908_v58 }
 0xb66   :  { %v12719_v40 = vmul.u32.u64.low %v12684_v49, %v5909_v29  ;;  %v12720_v52 = vmul.u32.u64.high %v12684_v49, %v5909_v29, %v12719_v40  ;;  %v12724_v27 = vmul.f32 %v12476_v62, %v12674_v16  ;;  %v5745_v53 = vsel %vm12613_vm13, 0, %v12679_v36 }
 0xb67   :  { %8555 = vcosq.f32 %v12650_v32  ;;  %v5825_v18 = vsub.s32 0, %v12715_v46  ;;  %v5901_v12 = vsel %vm5895_vm5, %v5898_v6, %v5900_v59  ;;  %v5975_v2 = vadd.s32 1, %v7502_v8 }
 0xb68   :  { %v5845_v39 = vsub.s32 4, %v5821_v31  ;;  %v5920_v61 = vadd.s32 1, %v12712_v23  ;;  %v5973_v38 = vor.u32 8388608, %v5972_v42  ;;  %vm5761_vm15 = vcmp.lt.s32.totalorder %v12566_v60, 0 }
 0xb69   :  { %v7495_v62 = vmin.u32 %v5825_v18, %v12715_v46  ;;  %v12735_v51 = vand.u32 3, %v5745_v53  ;;  %v5815_v15 = vadd.s32 %v12657_v37, %v12668_v47  ;;  %v5917_v32 = vmul.u32 %v12684_v49, %v5901_v12 }
 0xb6a   :  { %vm5919_vm14 = vc.u32 %v12720_v52, %v12711_v13  ;;  %vm5976_vm11 = vcmp.gt.s32.totalorder %v5975_v2, 0  ;;  %v6071_v10 = vand.u32 2139095040, %v12724_v27  ;;  %v12746_v41 = vsel %vm5761_vm15, %v5845_v39, %v5821_v31 }
 0xb6b   :  { %v5827_v36 = vclz %v7495_v62  ;;  %v5921_v33 = vsel %vm5919_vm14, %v5920_v61, %v12712_v23  ;;  %v5977_v45 = vsel %vm5976_vm11, %v5975_v2, 0  ;;  %v12748_v42 = vshll.u32 %v5973_v38, 8 }
 0xb6c   :  { %v5922_v6 = vadd.s32 %v5921_v33, %v5917_v32  ;;  %v5979_v63 = vand.u32 31, %v5977_v45  ;;  %v12750_v47 = vshrl.u32 %v5977_v45, 5  ;;  %v6072_v59 = vshrl.u32 %v6071_v10, 23 }
 0xb6d   :  { %v7496_v37 = vadd.s32 4294967294, %v5827_v36  ;;  %v13604_v8 = vand.u32 2147483647, %v12566_v60  ;;  %vm5751_vm0 = vcmp.eq.s32.totalorder %v12735_v51, 0  ;;  %vm5750_vm6 = vcmp.lt.s32.totalorder %v12735_v51, 2 }
 0xb6e   :  { %v5923_v58 = vadd.s32 536870912, %v5922_v6  ;;  %v5980_v29 = vsub.s32 32, %v5979_v63  ;;  %v5982_v23 = vshll.u32 %v13519_v28, %v5979_v63  ;;  %v5985_v31 = vshll.u32 %v13520_v44, %v5979_v63 }
 0xb6f   :  { %vm7497_vm13 = vcmp.lt.s32.totalorder %v7496_v37, 0  ;;  %v5988_v40 = vshll.u32 %v13521_v30, %v5979_v63  ;;  %v5991_v53 = vshll.u32 %v13580_v14, %v5979_v63  ;;  %v5994_v39 = vshll.u32 %v13581_v22, %v5979_v63 }
 0xb70   :  { %v5830_v18 = vsel %vm7497_vm13, 0, %v7496_v37  ;;  %v12758_v12 = vshrl.u32 %v5923_v58, 30  ;;  %v5983_v2 = vshrl.u32 %v13520_v44, %v5980_v29  ;;  %v5986_v36 = vshrl.u32 %v13521_v30, %v5980_v29 }
 0xb71   :  { %v12762_v61 = vpop.eup %8555  ;;  %v5831_v38 = vsub.s32 32, %v5830_v18  ;;  %v5832_v62 = vshll.u32 %v12715_v46, %v5830_v18  ;;  %v5835_v32 = vsub.s32 4294967266, %v5830_v18  ;;  %v5989_v10 = vshrl.u32 %v13580_v14, %v5980_v29 }
 0xb72   :  { %v5925_v33 = vshll.u32 %v12758_v12, 30  ;;  %v5984_v45 = vor.u32 %v5983_v2, %v5982_v23  ;;  %v5992_v37 = vshrl.u32 %v13581_v22, %v5980_v29  ;;  %v5987_v17 = vor.u32 %v5986_v36, %v5985_v31 }
 0xb73   :  { %v5833_v58 = vshrl.u32 %v5815_v15, %v5831_v38  ;;  %v5836_v4 = vadd.s32 127, %v5835_v32  ;;  %v5995_v63 = vshrl.u32 %v13582_v7, %v5980_v29  ;;  %vm12772_vm8 = vcmp.le.f32.partialorder %v13604_v8, 0.7853982 }
 0xb74   :  { %v12776_v46 = vsub.s32 %v5922_v6, %v5925_v33  ;;  %v5990_v18 = vor.u32 %v5989_v10, %v5988_v40  ;;  %v5993_v55 = vor.u32 %v5992_v37, %v5991_v53  ;;  %v5755_v23 = vxor.u32 2147483648, %v12762_v61 }
 0xb75   :  { %v5834_v2 = vor.u32 %v5833_v58, %v5832_v62  ;;  %v5837_v26 = vshll.u32 %v5836_v4, 23  ;;  %v5981_v15 = vshrl.u32 %v13519_v28, %v5980_v29  ;;  %v5996_v38 = vor.u32 %v5995_v63, %v5994_v39 }
 0xb76   :  { %v5928_v31 = vsub.s32 0, %v12776_v46  ;;  %vm5997_vm1 = vcmp.lt.s32.totalorder %v12750_v47, 1  ;;  %vm5998_vm7 = vcmp.lt.s32.totalorder %v12750_v47, 2  ;;  %vm6000_vm4 = vcmp.lt.s32.totalorder %v12750_v47, 4 }
 0xb77   :  { %v5838_v6 = vor.u32 4788187, %v5837_v26  ;;  %vm5999_vm2 = vcmp.lt.s32.totalorder %v12750_v47, 3  ;;  %v6002_v8 = vsel %vm6000_vm4, %v5990_v18, 2102212464  ;;  %v6005_v40 = vsel %vm5997_vm1, %v5984_v45, %v5987_v17 }
 0xb78   :  { %v7499_v4 = vmin.u32 %v5928_v31, %v12776_v46  ;;  %v6001_v53 = vsel %vm5997_vm1, %v5981_v15, %v5984_v45  ;;  %v6006_v29 = vsel %vm6000_vm4, %v5993_v55, 920167782  ;;  %v6009_v39 = vsel %vm5997_vm1, %v5987_v17, %v5990_v18 }
 0xb79   :  { %v5839_v62 = vand.u32 2147483647, %v5838_v6  ;;  %v5841_v32 = vcvt.s32.f32 %v5834_v2  ;;  %v6007_v36 = vsel %vm5999_vm2, %v5990_v18, %v6006_v29  ;;  %v6010_v33 = vsel %vm6000_vm4, %v5996_v38, 1326507024 }
 0xb7a   :  { %v5930_v10 = vclz %v7499_v4  ;;  %v6003_v37 = vsel %vm5999_vm2, %v5987_v17, %v6002_v8  ;;  %v6008_v58 = vsel %vm5998_vm7, %v6005_v40, %v6007_v36  ;;  %v6011_v63 = vsel %vm5999_vm2, %v5993_v55, %v6010_v33 }
 0xb7b   :  { %v5842_v26 = vmul.f32 %v5841_v32, %v5839_v62  ;;  %v6012_v20 = vsel %vm5998_vm7, %v6009_v39, %v6011_v63  ;;  %v12793_v45 = vmul.u32.u64.low %v12748_v42, %v6008_v58  ;;  %v12794_v15 = vmul.u32.u64.high %v12748_v42, %v6008_v58, %v12793_v45 }
 0xb7c   :  { %v7500_v2 = vadd.s32 4294967294, %v5930_v10  ;;  %v12798_v18 = vmul.u32.u64.low %v12748_v42, %v6012_v20  ;;  %v12799_v38 = vmul.u32.u64.high %v12748_v42, %v6012_v20, %v12798_v18  ;;  %v7506_v17 = vadd.s32 4294967169, %v6072_v59 }
 0xb7d   :  { %v5843_v31 = vxor.u32 2147483648, %v5842_v26  ;;  %v5848_v55 = vsel %vm12772_vm8, 0, %v12746_v41  ;;  %v5918_v6 = vadd.s32 %v12711_v13, %v12720_v52  ;;  %vm5754_vm9 = vcmp.eq.s32.totalorder %v12735_v51, 2 }
 0xb7e   :  { %vm7501_vm5 = vcmp.lt.s32.totalorder %v7500_v2, 0  ;;  %v6004_v8 = vsel %vm5998_vm7, %v6001_v53, %v6003_v37  ;;  %v13607_v40 = vand.u32 2147483647, %v12724_v27  ;;  %v6078_v20 = vadd.s32 1, %v7506_v17 }
 0xb7f   :  { %v5844_v59 = vsel %vm5761_vm15, %v5843_v31, %v5842_v26  ;;  %v5933_v29 = vsel %vm7501_vm5, 0, %v7500_v2  ;;  %v6023_v39 = vadd.s32 1, %v12794_v15  ;;  %v13608_v41 = vxor.u32 2147483648, %v12704_v34 }
 0xb80   :  { %v6075_v4 = vand.u32 8388607, %v13607_v40  ;;  %v5847_v52 = vsel %vm12772_vm8, %v12566_v60, %v5844_v59  ;;  %v5934_v47 = vsub.s32 32, %v5933_v29  ;;  %v5938_v53 = vsub.s32 4294967266, %v5933_v29 }
 0xb81   :  { %v5753_v13 = vsel %vm5751_vm0, %v12762_v61, %v13608_v41  ;;  %v5756_v62 = vsel %vm5754_vm9, %v5755_v23, %v12704_v34  ;;  %8557 = vcosq.f32 %v5847_v52  ;;  %v6020_v32 = vmul.u32 %v12748_v42, %v6004_v8 }
 0xb82   :  { %vm6022_vm10 = vc.u32 %v12799_v38, %v12793_v45  ;;  %vm6079_vm3 = vcmp.gt.s32.totalorder %v6078_v20, 0  ;;  %v5935_v36 = vshll.u32 %v12776_v46, %v5933_v29  ;;  %v5936_v33 = vshrl.u32 %v5918_v6, %v5934_v47 }
 0xb83   :  { %v5939_v10 = vadd.s32 127, %v5938_v53  ;;  %v6024_v61 = vsel %vm6022_vm10, %v6023_v39, %v12794_v15  ;;  %8559 = vsinq.f32 %v5847_v52  ;;  %v6080_v37 = vsel %vm6079_vm3, %v6078_v20, 0 }
 0xb84   :  { %v6025_v49 = vadd.s32 %v6024_v61, %v6020_v32  ;;  %v5757_v58 = vsel %vm5750_vm6, %v5753_v13, %v5756_v62  ;;  %v5937_v34 = vor.u32 %v5936_v33, %v5935_v36  ;;  %v6082_v63 = vand.u32 31, %v6080_v37 }
 0xb85   :  { %v5940_v23 = vshll.u32 %v5939_v10, 23  ;;  %v5948_v42 = vsub.s32 4, %v12758_v12  ;;  %v12831_v26 = vand.u32 3, %v5848_v55  ;;  %v6076_v18 = vor.u32 8388608, %v6075_v4 }
 0xb86   :  { %v6026_v2 = vadd.s32 536870912, %v6025_v49  ;;  %v6083_v17 = vsub.s32 32, %v6082_v63  ;;  %vm5748_vm15 = vweird.f32 %v12487_v19  ;;  %v12836_v15 = vadd.f32 %v12598_v57, %v12479_v56 }
 0xb87   :  { %v5941_v46 = vor.u32 4788187, %v5940_v23  ;;  %vm5864_vm14 = vcmp.lt.s32.totalorder %v12576_v1, 0  ;;  %v5758_v31 = vsel %vm5748_vm15, nan, %v5757_v58  ;;  %v13609_v6 = vand.u32 2147483647, %v12576_v1 }
 0xb88   :  { %v12839_v51 = vshrl.u32 %v6026_v2, 30  ;;  %v5944_v40 = vcvt.s32.f32 %v5937_v34  ;;  %v12850_v19 = vsel %vm5864_vm14, %v5948_v42, %v12758_v12  ;;  %vm5857_vm13 = vcmp.eq.s32.totalorder %v12831_v26, 2 }
 0xb89   :  { %vm12843_vm11 = vcmp.le.f32.partialorder %v13609_v6, 0.7853982  ;;  %v5942_v8 = vand.u32 2147483647, %v5941_v46  ;;  %v12854_v4 = vshrl.u32 %v6080_v37, 5  ;;  %v12856_v20 = vshll.u32 %v6076_v18, 8 }
 0xb8a   :  { %v6028_v56 = vshll.u32 %v12839_v51, 30  ;;  %v6086_v29 = vshrl.u32 %v13520_v44, %v6083_v17  ;;  %v6089_v39 = vshrl.u32 %v13521_v30, %v6083_v17  ;;  %v12861_v41 = vmul.f32 %v5758_v31, %v12598_v57 }
 0xb8b   :  { %v5945_v59 = vmul.f32 %v5944_v40, %v5942_v8  ;;  %v8558_v13 = vpop.eup %8557  ;;  %vm5854_vm8 = vcmp.eq.s32.totalorder %v12831_v26, 0  ;;  %v6092_v52 = vshrl.u32 %v13580_v14, %v6083_v17  ;;  %v6095_v47 = vshrl.u32 %v13581_v22, %v6083_v17 }
 0xb8c   :  { %v12864_v12 = vsub.s32 %v6025_v49, %v6028_v56  ;;  %v5951_v53 = vsel %vm12843_vm11, 0, %v12850_v19  ;;  %v6085_v32 = vshll.u32 %v13519_v28, %v6082_v63  ;;  %v6088_v36 = vshll.u32 %v13520_v44, %v6082_v63 }
 0xb8d   :  { %v5946_v62 = vxor.u32 2147483648, %v5945_v59  ;;  %v6098_v33 = vshrl.u32 %v13582_v7, %v6083_v17  ;;  %v8560_v10 = vpop.eup %8559  ;;  %v5858_v61 = vxor.u32 2147483648, %v8558_v13  ;;  %v6091_v37 = vshll.u32 %v13521_v30, %v6082_v63 }
 0xb8e   :  { %v6031_v49 = vsub.s32 0, %v12864_v12  ;;  %v6094_v58 = vshll.u32 %v13580_v14, %v6082_v63  ;;  %vm5853_vm1 = vcmp.lt.s32.totalorder %v12831_v26, 2  ;;  %v6087_v23 = vor.u32 %v6086_v29, %v6085_v32 }
 0xb8f   :  { %v5947_v34 = vsel %vm5864_vm14, %v5946_v62, %v5945_v59  ;;  %v6090_v42 = vor.u32 %v6089_v39, %v6088_v36  ;;  %v6097_v2 = vshll.u32 %v13581_v22, %v6082_v63  ;;  %v6093_v31 = vor.u32 %v6092_v52, %v6091_v37 }
 0xb90   :  { %v5950_v18 = vsel %vm12843_vm11, %v12576_v1, %v5947_v34  ;;  %v7503_v46 = vmin.u32 %v6031_v49, %v12864_v12  ;;  %v6096_v6 = vor.u32 %v6095_v47, %v6094_v58  ;;  %v5855_v8 = vxor.u32 2147483648, %v8560_v10 }
 0xb91   :  { %8561 = vcosq.f32 %v5950_v18  ;;  %v6084_v40 = vshrl.u32 %v13519_v28, %v6083_v17  ;;  %v6099_v19 = vor.u32 %v6098_v33, %v6097_v2  ;;  %v5859_v56 = vsel %vm5857_vm13, %v5858_v61, %v8560_v10 }
 0xb92   :  { %8563 = vsinq.f32 %v5950_v18  ;;  %v6033_v59 = vclz %v7503_v46  ;;  %vm6100_vm7 = vcmp.lt.s32.totalorder %v12854_v4, 1  ;;  %vm6101_vm4 = vcmp.lt.s32.totalorder %v12854_v4, 2 }
 0xb93   :  { %vm6102_vm0 = vcmp.lt.s32.totalorder %v12854_v4, 3  ;;  %vm6103_vm2 = vcmp.lt.s32.totalorder %v12854_v4, 4  ;;  %v6108_v63 = vsel %vm6100_vm7, %v6087_v23, %v6090_v42  ;;  %v6112_v52 = vsel %vm6100_vm7, %v6090_v42, %v6093_v31 }
 0xb94   :  { %v7504_v55 = vadd.s32 4294967294, %v6033_v59  ;;  %v6105_v29 = vsel %vm6103_vm2, %v6093_v31, 2102212464  ;;  %v6109_v39 = vsel %vm6103_vm2, %v6096_v6, 920167782  ;;  %v5856_v17 = vsel %vm5854_vm8, %v8558_v13, %v5855_v8 }
 0xb95   :  { %v6104_v47 = vsel %vm6100_vm7, %v6084_v40, %v6087_v23  ;;  %v6110_v62 = vsel %vm6102_vm0, %v6093_v31, %v6109_v39  ;;  %v6113_v32 = vsel %vm6103_vm2, %v6099_v19, 1326507024  ;;  %v6106_v36 = vsel %vm6102_vm0, %v6090_v42, %v6105_v29 }
 0xb96   :  { %vm7505_vm6 = vcmp.lt.s32.totalorder %v7504_v55, 0  ;;  %v6111_v33 = vsel %vm6101_vm4, %v6108_v63, %v6110_v62  ;;  %v6114_v10 = vsel %vm6102_vm0, %v6096_v6, %v6113_v32  ;;  %v5860_v13 = vsel %vm5853_vm1, %v5856_v17, %v5859_v56  ;;  %v12916_v6 = vld [vmem:[%s13458_s8 + $0x10] sm:$0xff]  ;;  %s8650_s8 = smov 1  }
 0xb97   :  { %v6036_v61 = vsel %vm7505_vm6, 0, %v7504_v55  ;;  %v6115_v49 = vsel %vm6101_vm4, %v6112_v52, %v6114_v10  ;;  %v12899_v37 = vmul.u32.u64.low %v12856_v20, %v6111_v33  ;;  %v12900_v58 = vmul.u32.u64.high %v12856_v20, %v6111_v33, %v12899_v37 }
 0xb98   :  { %v6041_v34 = vsub.s32 4294967266, %v6036_v61  ;;  %v12906_v23 = vmul.u32.u64.low %v12856_v20, %v6115_v49  ;;  %v12907_v42 = vmul.u32.u64.high %v12856_v20, %v6115_v49, %v12906_v23  ;;  %v6178_v2 = vsub.f32 %v12836_v15, %v12861_v41 }
 0xb99   :  { %v5955_v18 = vand.u32 3, %v5951_v53  ;;  %v6107_v31 = vsel %vm6101_vm4, %v6104_v47, %v6106_v36  ;;  %vm5851_vm9 = vweird.f32 %v12566_v60  ;;  %v6126_v8 = vadd.s32 1, %v12900_v58 }
 0xb9a   :  { %v6042_v46 = vadd.s32 127, %v6041_v34  ;;  %6195 = vmatprep.subr.mxu1 %v6178_v2  ;;  %v5861_v19 = vsel %vm5851_vm9, nan, %v5860_v13  ;;  %v6021_v15 = vadd.s32 %v12793_v45, %v12799_v38  ;;  %v6037_v41 = vsub.s32 32, %v6036_v61 }
 0xb9b   :  { %v8562_v26 = vpop.eup %8561  ;;  %v13612_v4 = vsub.f32 %v12602_v48, %v12662_v50  ;;  %v6123_v56 = vmul.u32 %v12856_v20, %v6107_v31  ;;  %vm6125_vm5 = vc.u32 %v12907_v42, %v12899_v37  ;;  %vm5960_vm10 = vcmp.eq.s32.totalorder %v5955_v18, 2 }
 0xb9c   :  { %v8564_v40 = vpop.eup %8563  ;;  %v5961_v53 = vxor.u32 2147483648, %v8562_v26  ;;  %v6043_v59 = vshll.u32 %v6042_v46, 23  ;;  %v6127_v63 = vsel %vm6125_vm5, %v6126_v8, %v12900_v58  ;;  %vm5957_vm3 = vcmp.eq.s32.totalorder %v5955_v18, 0 }
 0xb9d   :  { %6196 = vmatpush1.msra.mxu1 %v13612_v4  ;;  %v5958_v60 = vxor.u32 2147483648, %v8564_v40  ;;  %v6128_v48 = vadd.s32 %v6127_v63, %v6123_v56  ;;  %vm5956_vm15 = vcmp.lt.s32.totalorder %v5955_v18, 2  ;;  %v6039_v38 = vshrl.u32 %v6021_v15, %v6037_v41 }
 0xb9e   :  { %7512 = vmatmul.mubr.msk.f32.vlgmr.msra.gmra.mrb[14].mxu1 %vm1967_vm12, %v12916_v6  ;;  %v5962_v45 = vsel %vm5960_vm10, %v5961_v53, %v8564_v40  ;;  %vm5954_vm14 = vweird.f32 %v12576_v1  ;;  %v6173_v55 = vmul.f32 %v5861_v19, %v12598_v57  ;;  %v5539_v52 = vadd.f32 %v12598_v57, %v12562_v25 }
 0xb9f   :  { %6330 = vmatprep.mubr.f32.mxu1 %v13539_v3  ;;  %v5959_v50 = vsel %vm5957_vm3, %v8562_v26, %v5958_v60  ;;  %v6129_v29 = vadd.s32 536870912, %v6128_v48  ;;  %v6038_v17 = vshll.u32 %v12864_v12, %v6036_v61  ;;  %v6044_v47 = vor.u32 4788187, %v6043_v59 }
 0xba0   :  { %v5963_v20 = vsel %vm5956_vm15, %v5959_v50, %v5962_v45  ;;  %v5538_v32 = vadd.f32 %v12598_v57, %v12559_v54  ;;  %vm5967_vm11 = vcmp.lt.s32.totalorder %v12620_v9, 0  ;;  %v6124_v31 = vadd.s32 %v12899_v37, %v12907_v42 }
 0xba1   :  { %v5964_v39 = vsel %vm5954_vm14, nan, %v5963_v20  ;;  %v6130_v36 = vshrl.u32 %v6129_v29, 30  ;;  %v6040_v33 = vor.u32 %v6039_v38, %v6038_v17  ;;  %v6045_v58 = vand.u32 2147483647, %v6044_v47 }
 0xba2   :  { %v6174_v62 = vmul.f32 %v5964_v39, %v12598_v57  ;;  %v6179_v1 = vsub.f32 %v5538_v32, %v6173_v55  ;;  %v13613_v40 = vand.u32 2147483647, %v12620_v9  ;;  %v6051_v42 = vsub.s32 4, %v12839_v51 }
 0xba3   :  { %v6131_v49 = vshll.u32 %v6130_v36, 30  ;;  %v6047_v34 = vcvt.s32.f32 %v6040_v33  ;;  %vm6070_vm1 = vcmp.lt.s32.totalorder %v12724_v27, 0  ;;  %v13616_v38 = vand.u32 2147483647, %v12724_v27 }
 0xba4   :  { %v6180_v10 = vsub.f32 %v5539_v52, %v6174_v62  ;;  %vm12950_vm8 = vcmp.le.f32.partialorder %v13613_v40, 0.7853982  ;;  %v6154_v29 = vsub.s32 4, %v6130_v36  ;;  %vm6057_vm6 = vweird.f32 %v12620_v9 }
 0xba5   :  { %v6132_v13 = vsub.s32 %v6128_v48, %v6131_v49  ;;  %v6048_v12 = vmul.f32 %v6047_v34, %v6045_v58  ;;  %v6052_v48 = vsel %vm5967_vm11, %v6051_v42, %v12839_v51  ;;  %vm12964_vm7 = vcmp.le.f32.partialorder %v13616_v38, 0.7853982 }
 0xba6   :  { %6266 = vmatprep.subr.mxu1 %v6180_v10  ;;  %v6054_v52 = vsel %vm12950_vm8, 0, %v6052_v48  ;;  %v6155_v62 = vsel %vm6070_vm1, %v6154_v29, %v6130_v36  ;;  %vm6160_vm3 = vweird.f32 %v12724_v27 }
 0xba7   :  { %6267 = vmatpush1.msra.mxu1 %v6179_v1  ;;  %v6134_v25 = vsub.s32 0, %v6132_v13  ;;  %v6049_v54 = vxor.u32 2147483648, %v6048_v12  ;;  %v6058_v47 = vand.u32 3, %v6054_v52  ;;  %v6157_v10 = vsel %vm12964_vm7, 0, %v6155_v62 }
 0xba8   :  { %7513 = vmatmul.mubr.msk.f32.vlgmr.msra.gmra.mrb[16].mxu1 %vm1967_vm12, %v12916_v6  ;;  %v6161_v58 = vand.u32 3, %v6157_v10 }
 0xba9   :  { %6401 = vmatprep.mubr.f32.mxu1 %v13539_v3  ;;  %v7507_v61 = vmin.u32 %v6134_v25, %v6132_v13  ;;  %v6050_v18 = vsel %vm5967_vm11, %v6049_v54, %v6048_v12  ;;  %vm6060_vm4 = vcmp.eq.s32.totalorder %v6058_v47, 0  ;;  %vm6063_vm0 = vcmp.eq.s32.totalorder %v6058_v47, 2 }
 0xbaa   :  { %v6053_v15 = vsel %vm12950_vm8, %v12620_v9, %v6050_v18  ;;  %vm6059_vm2 = vcmp.lt.s32.totalorder %v6058_v47, 2  ;;  %vm6166_vm9 = vcmp.eq.s32.totalorder %v6161_v58, 2  ;;  %vm6163_vm5 = vcmp.eq.s32.totalorder %v6161_v58, 0 }
 0xbab   :  { %v6136_v23 = vclz %v7507_v61  ;;  %8565 = vcosq.f32 %v6053_v15  ;;  %vm6162_vm10 = vcmp.lt.s32.totalorder %v6161_v58, 2  ;;  %v5540_v9 = vadd.f32 %v12598_v57, %v12596_v5  ;;  %v13619_v58 = vld [vmem:[#allocation11_spill] sm:$0xff] }
 0xbac   :  { %8567 = vsinq.f32 %v6053_v15 }
 0xbad   :  { %v7508_v2 = vadd.s32 4294967294, %v6136_v23 }
 0xbaf   :  { %vm7509_vm13 = vcmp.lt.s32.totalorder %v7508_v2, 0 }
 0xbb0   :  { %v6139_v46 = vsel %vm7509_vm13, 0, %v7508_v2 }
 0xbb1   :  { %v6140_v26 = vsub.s32 32, %v6139_v46  ;;  %v6144_v8 = vsub.s32 4294967266, %v6139_v46  ;;  %v6141_v41 = vshll.u32 %v6132_v13, %v6139_v46 }
 0xbb3   :  { %v6142_v4 = vshrl.u32 %v6124_v31, %v6140_v26  ;;  %v6145_v53 = vadd.s32 127, %v6144_v8  ;;  %v5541_v31 = vadd.f32 %v12598_v57, %v12674_v16 }
 0xbb5   :  { %v6143_v56 = vor.u32 %v6142_v4, %v6141_v41  ;;  %v6146_v60 = vshll.u32 %v6145_v53, 23  ;;  %v8566_v39 = vpop.eup %8565  ;;  %v12995_v53 = vpop.permute.xlu0 %6435 }
 0xbb6   :  { %v8568_v51 = vpop.eup %8567  ;;  %v6064_v33 = vxor.u32 2147483648, %v8566_v39 }
 0xbb7   :  { %v6147_v37 = vor.u32 4788187, %v6146_v60  ;;  %v6150_v63 = vcvt.s32.f32 %v6143_v56  ;;  %v6061_v32 = vxor.u32 2147483648, %v8568_v51 }
 0xbb8   :  { %v6065_v49 = vsel %vm6063_vm0, %v6064_v33, %v8568_v51 }
 0xbb9   :  { %v6148_v59 = vand.u32 2147483647, %v6147_v37  ;;  %v6062_v1 = vsel %vm6060_vm4, %v8566_v39, %v6061_v32 }
 0xbba   :  { %v6066_v34 = vsel %vm6059_vm2, %v6062_v1, %v6065_v49 }
 0xbbb   :  { %v6151_v45 = vmul.f32 %v6150_v63, %v6148_v59  ;;  %v6067_v36 = vsel %vm6057_vm6, nan, %v6066_v34 }
 0xbbc   :  { %v6175_v18 = vmul.f32 %v6067_v36, %v12598_v57 }
 0xbbd   :  { %v6152_v50 = vxor.u32 2147483648, %v6151_v45 }
 0xbbe   :  { %v6181_v40 = vsub.f32 %v5540_v9, %v6175_v18 }
 0xbbf   :  { %v6153_v55 = vsel %vm6070_vm1, %v6152_v50, %v6151_v45 }
 0xbc0   :  { %v6156_v17 = vsel %vm12964_vm7, %v12724_v27, %v6153_v55  ;;  %v12986_v27 = vpop.permute.xlu1 %6189 }
 0xbc1   :  { %8569 = vcosq.f32 %v6156_v17 }
 0xbc2   :  { %8571 = vsinq.f32 %v6156_v17 }
 0xbcb   :  { %v8570_v13 = vpop.eup %8569 }
 0xbcc   :  { %v8572_v25 = vpop.eup %8571  ;;  %v6167_v12 = vxor.u32 2147483648, %v8570_v13 }
 0xbcd   :  { %v6164_v61 = vxor.u32 2147483648, %v8572_v25 }
 0xbce   :  { %v6168_v23 = vsel %vm6166_vm9, %v6167_v12, %v8572_v25 }
 0xbcf   :  { %v6165_v54 = vsel %vm6163_vm5, %v8570_v13, %v6164_v61 }
 0xbd0   :  { %v6169_v2 = vsel %vm6162_vm10, %v6165_v54, %v6168_v23 }
 0xbd1   :  { %v6170_v46 = vsel %vm6160_vm3, nan, %v6169_v2 }
 0xbd2   :  { %v6176_v26 = vmul.f32 %v6170_v46, %v12598_v57 }
 0xbd4   :  { %v6182_v8 = vsub.f32 %v5541_v31, %v6176_v26 }
 0xbd6   :  { %6337 = vmatprep.subr.mxu1 %v6182_v8 }
 0xbd7   :  { %6338 = vmatpush1.msra.mxu1 %v6181_v40 }
 0xbd8   :  { %7514 = vmatmul.mubr.msk.f32.vlgmr.msra.gmra.mrb[18].mxu1 %vm1967_vm12, %v12916_v6 }
 0xbd9   :  { %7223 = vmatprep.mubr.f32.mxu1 %v13539_v3 }
 0xc71   :  { %v6261_v19 = vpop.f32.mrb[14].mxu1 }
 0xc72   :  { %v6262_v15 = vadd.f32 %v6261_v19, %v12986_v27  ;;  %v6263_v16 = vpop.f32.mrb[15].mxu1 }
 0xc73   :  { %v6264_v41 = vadd.f32 %v6263_v16, %v12986_v27 }
 0xc74   :  { %v6408_v4 = vadd.f32 %v6262_v15, %v11672_v43 }
 0xc75   :  { %v6409_v5 = vadd.f32 %v6264_v41, %v11677_v11 }
 0xc76   :  { %v12993_v57 = vmul.f32 %v6408_v4, %v10281_v0 }
 0xc77   :  { %v12998_v6 = vmul.f32 %v6409_v5, %v10285_v24 }
 0xc78   :  { %v13002_v56 = vmul.f32 %v12995_v53, %v12993_v57 }
 0xc79   :  { %v13006_v60 = vmul.f32 %v12995_v53, %v12998_v6 }
 0xc7a   :  { %v6444_v43 = vand.u32 2147483647, %v13002_v56  ;;  %v6447_v11 = vand.u32 2139095040, %v13002_v56  ;;  %vm6446_vm10 = vcmp.lt.s32.totalorder %v13002_v56, 0 }
 0xc7b   :  { %v6547_v0 = vand.u32 2147483647, %v13006_v60  ;;  %v6550_v37 = vand.u32 2139095040, %v13006_v60  ;;  %v6332_v59 = vpop.f32.mrb[16].mxu1 }
 0xc7c   :  { %v6448_v42 = vshrl.u32 %v6447_v11, 23  ;;  %v6451_v24 = vand.u32 8388607, %v6444_v43  ;;  %v6333_v48 = vadd.f32 %v6332_v59, %v12986_v27  ;;  %v6334_v50 = vpop.f32.mrb[17].mxu1 }
 0xc7d   :  { %v6551_v63 = vshrl.u32 %v6550_v37, 23  ;;  %v6554_v45 = vand.u32 8388607, %v6547_v0  ;;  %v6335_v51 = vadd.f32 %v6334_v50, %v12986_v27 }
 0xc7e   :  { %v7515_v38 = vadd.s32 4294967169, %v6448_v42  ;;  %v6452_v55 = vor.u32 8388608, %v6451_v24  ;;  %v6410_v17 = vadd.f32 %v6333_v48, %v11699_v35 }
 0xc7f   :  { %v7519_v20 = vadd.s32 4294967169, %v6551_v63  ;;  %v6555_v39 = vor.u32 8388608, %v6554_v45  ;;  %v13027_v13 = vadd.f32 %v6335_v51, %v13619_v58 }
 0xc80   :  { %v6454_v29 = vadd.s32 1, %v7515_v38  ;;  %v13019_v10 = vshll.u32 %v6452_v55, 8  ;;  %v13024_v49 = vmul.f32 %v6410_v17, %v10309_v21 }
 0xc81   :  { %v6557_v52 = vadd.s32 1, %v7519_v20  ;;  %v13021_v1 = vshll.u32 %v6555_v39, 8 }
 0xc82   :  { %vm6455_vm12 = vcmp.gt.s32.totalorder %v6454_v29, 0 }
 0xc83   :  { %v6456_v47 = vsel %vm6455_vm12, %v6454_v29, 0  ;;  %vm6558_vm15 = vcmp.gt.s32.totalorder %v6557_v52, 0 }
 0xc84   :  { %v6457_v62 = vshrl.u32 %v6456_v47, 5  ;;  %v6458_v32 = vand.u32 31, %v6456_v47  ;;  %v6559_v33 = vsel %vm6558_vm15, %v6557_v52, 0 }
 0xc85   :  { %v13030_v25 = vshrl.u32 %v6559_v33, 5  ;;  %v6561_v12 = vand.u32 31, %v6559_v33 }
 0xc86   :  { %v6459_v34 = vsub.s32 32, %v6458_v32  ;;  %v6461_v35 = vshll.u32 %v13519_v28, %v6458_v32  ;;  %v6464_v61 = vshll.u32 %v13520_v44, %v6458_v32  ;;  %v6467_v36 = vshll.u32 %v13521_v30, %v6458_v32 }
 0xc87   :  { %v6470_v23 = vshll.u32 %v13580_v14, %v6458_v32  ;;  %v6473_v54 = vshll.u32 %v13581_v22, %v6458_v32  ;;  %vm6476_vm14 = vcmp.lt.s32.totalorder %v6457_v62, 1  ;;  %vm6477_vm11 = vcmp.lt.s32.totalorder %v6457_v62, 2 }
 0xc88   :  { %v6462_v21 = vshrl.u32 %v13520_v44, %v6459_v34  ;;  %v6465_v2 = vshrl.u32 %v13521_v30, %v6459_v34  ;;  %v6468_v18 = vshrl.u32 %v13580_v14, %v6459_v34  ;;  %v6460_v46 = vshrl.u32 %v13519_v28, %v6459_v34 }
 0xc89   :  { %v6471_v31 = vshrl.u32 %v13581_v22, %v6459_v34  ;;  %v6474_v26 = vshrl.u32 %v13582_v7, %v6459_v34  ;;  %v6562_v19 = vsub.s32 32, %v6561_v12  ;;  %vm6478_vm13 = vcmp.lt.s32.totalorder %v6457_v62, 3 }
 0xc8a   :  { %v6463_v9 = vor.u32 %v6462_v21, %v6461_v35  ;;  %v6466_v8 = vor.u32 %v6465_v2, %v6464_v61  ;;  %v6469_v40 = vor.u32 %v6468_v18, %v6467_v36  ;;  %vm6479_vm8 = vcmp.lt.s32.totalorder %v6457_v62, 4 }
 0xc8b   :  { %v6472_v15 = vor.u32 %v6471_v31, %v6470_v23  ;;  %v6475_v16 = vor.u32 %v6474_v26, %v6473_v54  ;;  %v6564_v59 = vshll.u32 %v13519_v28, %v6561_v12  ;;  %v6565_v48 = vshrl.u32 %v13520_v44, %v6562_v19 }
 0xc8c   :  { %v6480_v41 = vsel %vm6476_vm14, %v6460_v46, %v6463_v9  ;;  %v6481_v4 = vsel %vm6479_vm8, %v6469_v40, 2102212464  ;;  %v6484_v5 = vsel %vm6476_vm14, %v6463_v9, %v6466_v8  ;;  %v6488_v11 = vsel %vm6476_vm14, %v6466_v8, %v6469_v40 }
 0xc8d   :  { %v6482_v37 = vsel %vm6478_vm13, %v6466_v8, %v6481_v4  ;;  %v6485_v42 = vsel %vm6479_vm8, %v6472_v15, 920167782  ;;  %v6489_v24 = vsel %vm6479_vm8, %v6475_v16, 1326507024  ;;  %v6567_v50 = vshll.u32 %v13520_v44, %v6561_v12 }
 0xc8e   :  { %v6486_v63 = vsel %vm6478_vm13, %v6469_v40, %v6485_v42  ;;  %v6490_v45 = vsel %vm6478_vm13, %v6472_v15, %v6489_v24  ;;  %v6483_v38 = vsel %vm6477_vm11, %v6480_v41, %v6482_v37  ;;  %v6568_v29 = vshrl.u32 %v13521_v30, %v6562_v19 }
 0xc8f   :  { %v6487_v20 = vsel %vm6477_vm11, %v6484_v5, %v6486_v63  ;;  %v6491_v55 = vsel %vm6477_vm11, %v6488_v11, %v6490_v45  ;;  %v6566_v47 = vor.u32 %v6565_v48, %v6564_v59  ;;  %v6570_v33 = vshll.u32 %v13521_v30, %v6561_v12  ;;  %v13620_v48 = vld [vmem:[#allocation6_spill] sm:$0xff] }
 0xc90   :  { %v13053_v39 = vmul.u32.u64.low %v13019_v10, %v6491_v55  ;;  %v13054_v52 = vmul.u32.u64.high %v13019_v10, %v6491_v55, %v13053_v39  ;;  %v13057_v17 = vmul.u32.u64.low %v13019_v10, %v6487_v20  ;;  %v13058_v51 = vmul.u32.u64.high %v13019_v10, %v6487_v20, %v13057_v17 }
 0xc91   :  { %v6569_v32 = vor.u32 %v6568_v29, %v6567_v50  ;;  %v6571_v58 = vshrl.u32 %v13580_v14, %v6562_v19  ;;  %v6573_v62 = vshll.u32 %v13580_v14, %v6561_v12  ;;  %v6574_v34 = vshrl.u32 %v13581_v22, %v6562_v19 }
 0xc92   :  { %v6577_v35 = vshrl.u32 %v13582_v7, %v6562_v19  ;;  %v13068_v61 = vmul.f32 %v12995_v53, %v13024_v49  ;;  %v6499_v36 = vmul.u32 %v13019_v10, %v6483_v38  ;;  %v6563_v23 = vshrl.u32 %v13519_v28, %v6562_v19 }
 0xc93   :  { %v6572_v54 = vor.u32 %v6571_v58, %v6570_v33  ;;  %v6576_v21 = vshll.u32 %v13581_v22, %v6561_v12  ;;  %vm6501_vm1 = vc.u32 %v13054_v52, %v13057_v17  ;;  %v6502_v2 = vadd.s32 1, %v13058_v51 }
 0xc94   :  { %v6575_v18 = vor.u32 %v6574_v34, %v6573_v62  ;;  %vm6579_vm7 = vcmp.lt.s32.totalorder %v13030_v25, 1  ;;  %vm6581_vm4 = vcmp.lt.s32.totalorder %v13030_v25, 3  ;;  %vm6582_vm0 = vcmp.lt.s32.totalorder %v13030_v25, 4 }
 0xc95   :  { %v6578_v46 = vor.u32 %v6577_v35, %v6576_v21  ;;  %v6587_v31 = vsel %vm6579_vm7, %v6566_v47, %v6569_v32  ;;  %v6503_v10 = vsel %vm6501_vm1, %v6502_v2, %v13058_v51  ;;  %v6584_v26 = vsel %vm6582_vm0, %v6572_v54, 2102212464 }
 0xc96   :  { %v6588_v9 = vsel %vm6582_vm0, %v6575_v18, 920167782  ;;  %v6591_v8 = vsel %vm6579_vm7, %v6569_v32, %v6572_v54  ;;  %v6504_v12 = vadd.s32 %v6503_v10, %v6499_v36  ;;  %vm6580_vm2 = vcmp.lt.s32.totalorder %v13030_v25, 2 }
 0xc97   :  { %v6589_v40 = vsel %vm6581_vm4, %v6572_v54, %v6588_v9  ;;  %v6592_v19 = vsel %vm6582_vm0, %v6578_v46, 1326507024  ;;  %v6583_v15 = vsel %vm6579_vm7, %v6563_v23, %v6566_v47  ;;  %v6585_v16 = vsel %vm6581_vm4, %v6569_v32, %v6584_v26 }
 0xc98   :  { %v6590_v41 = vsel %vm6580_vm2, %v6587_v31, %v6589_v40  ;;  %v6593_v4 = vsel %vm6581_vm4, %v6575_v18, %v6592_v19  ;;  %v6505_v5 = vadd.s32 536870912, %v6504_v12  ;;  %v6653_v63 = vand.u32 2139095040, %v13068_v61 }
 0xc99   :  { %v6594_v11 = vsel %vm6580_vm2, %v6591_v8, %v6593_v4  ;;  %v13082_v37 = vmul.u32.u64.low %v13021_v1, %v6590_v41  ;;  %v13083_v42 = vmul.u32.u64.high %v13021_v1, %v6590_v41, %v13082_v37  ;;  %v6586_v25 = vsel %vm6580_vm2, %v6583_v15, %v6585_v16 }
 0xc9a   :  { %v13086_v24 = vmul.u32.u64.low %v13021_v1, %v6594_v11  ;;  %v13087_v59 = vmul.u32.u64.high %v13021_v1, %v6594_v11, %v13086_v24  ;;  %v13090_v45 = vshrl.u32 %v6505_v5, 30  ;;  %v13094_v50 = vmul.f32 %v13027_v13, %v13620_v48 }
 0xc9b   :  { %v6654_v38 = vshrl.u32 %v6653_v63, 23  ;;  %v6605_v55 = vadd.s32 1, %v13083_v42  ;;  %v6650_v29 = vand.u32 2147483647, %v13068_v61  ;;  %v6602_v39 = vmul.u32 %v13021_v1, %v6586_v25 }
 0xc9c   :  { %v6507_v20 = vshll.u32 %v13090_v45, 30  ;;  %vm6604_vm6 = vc.u32 %v13087_v59, %v13082_v37  ;;  %v13104_v33 = vmul.f32 %v12995_v53, %v13094_v50  ;;  %v6500_v10 = vadd.s32 %v13057_v17, %v13054_v52 }
 0xc9d   :  { %v7523_v51 = vadd.s32 4294967169, %v6654_v38  ;;  %v6606_v32 = vsel %vm6604_vm6, %v6605_v55, %v13083_v42  ;;  %v6657_v34 = vand.u32 8388607, %v6650_v29  ;;  %v6603_v8 = vadd.s32 %v13082_v37, %v13087_v59 }
 0xc9e   :  { %v6508_v47 = vsub.s32 %v6504_v12, %v6507_v20  ;;  %v6607_v13 = vadd.s32 %v6606_v32, %v6602_v39  ;;  %v6756_v23 = vand.u32 2139095040, %v13104_v33  ;;  %v6753_v19 = vand.u32 2147483647, %v13104_v33 }
 0xc9f   :  { %v6660_v58 = vadd.s32 1, %v7523_v51  ;;  %v6658_v18 = vor.u32 8388608, %v6657_v34  ;;  %vm13142_vm11 = vcmp.le.f32.partialorder %v6444_v43, 0.7853982  ;;  %vm6549_vm7 = vcmp.lt.s32.totalorder %v13006_v60, 0 }
 0xca0   :  { %v6510_v62 = vsub.s32 0, %v6508_v47  ;;  %v6608_v35 = vadd.s32 536870912, %v6607_v13  ;;  %v6757_v9 = vshrl.u32 %v6756_v23, 23  ;;  %vm13211_vm4 = vcmp.le.f32.partialorder %v6547_v0, 0.7853982 }
 0xca1   :  { %vm6661_vm9 = vcmp.gt.s32.totalorder %v6660_v58, 0  ;;  %v13122_v41 = vshll.u32 %v6658_v18, 8 }
 0xca2   :  { %v7516_v36 = vmin.u32 %v6510_v62, %v6508_v47  ;;  %v6662_v1 = vsel %vm6661_vm9, %v6660_v58, 0  ;;  %v13109_v54 = vshrl.u32 %v6608_v35, 30  ;;  %v7527_v24 = vadd.s32 4294967169, %v6757_v9 }
 0xca3   :  { %v6664_v21 = vand.u32 31, %v6662_v1  ;;  %v13119_v15 = vshrl.u32 %v6662_v1, 5 }
 0xca4   :  { %v6512_v2 = vclz %v7516_v36  ;;  %v6610_v46 = vshll.u32 %v13109_v54, 30 }
 0xca5   :  { %v6665_v31 = vsub.s32 32, %v6664_v21  ;;  %v6667_v16 = vshll.u32 %v13519_v28, %v6664_v21  ;;  %v6670_v42 = vshll.u32 %v13520_v44, %v6664_v21  ;;  %v6673_v25 = vshll.u32 %v13521_v30, %v6664_v21 }
 0xca6   :  { %v7517_v26 = vadd.s32 4294967294, %v6512_v2  ;;  %v13115_v12 = vsub.s32 %v6607_v13, %v6610_v46  ;;  %v6676_v48 = vshll.u32 %v13580_v14, %v6664_v21  ;;  %v6679_v1 = vshll.u32 %v13581_v22, %v6664_v21 }
 0xca7   :  { %v6668_v40 = vshrl.u32 %v13520_v44, %v6665_v31  ;;  %v6671_v17 = vshrl.u32 %v13521_v30, %v6665_v31  ;;  %v6674_v5 = vshrl.u32 %v13580_v14, %v6665_v31  ;;  %v6677_v39 = vshrl.u32 %v13581_v22, %v6665_v31 }
 0xca8   :  { %vm7518_vm5 = vcmp.lt.s32.totalorder %v7517_v26, 0  ;;  %v6613_v52 = vsub.s32 0, %v13115_v12  ;;  %v6680_v58 = vshrl.u32 %v13582_v7, %v6665_v31  ;;  %vm6682_vm3 = vcmp.lt.s32.totalorder %v13119_v15, 1 }
 0xca9   :  { %v6515_v4 = vsel %vm7518_vm5, 0, %v7517_v26  ;;  %v6669_v63 = vor.u32 %v6668_v40, %v6667_v16  ;;  %v6672_v32 = vor.u32 %v6671_v17, %v6670_v42  ;;  %v6675_v13 = vor.u32 %v6674_v5, %v6673_v25 }
 0xcaa   :  { %v6516_v11 = vsub.s32 32, %v6515_v4  ;;  %v6520_v37 = vsub.s32 4294967266, %v6515_v4  ;;  %v7520_v59 = vmin.u32 %v6613_v52, %v13115_v12  ;;  %v6517_v38 = vshll.u32 %v6508_v47, %v6515_v4 }
 0xcab   :  { %v6403_v62 = vpop.f32.mrb[18].mxu1  ;;  %v6678_v36 = vor.u32 %v6677_v39, %v6676_v48  ;;  %v6666_v47 = vshrl.u32 %v13519_v28, %v6665_v31  ;;  %vm6683_vm12 = vcmp.lt.s32.totalorder %v13119_v15, 2  ;;  %v6681_v46 = vor.u32 %v6680_v58, %v6679_v1 }
 0xcac   :  { %v6518_v20 = vshrl.u32 %v6500_v10, %v6516_v11  ;;  %v6521_v55 = vadd.s32 127, %v6520_v37  ;;  %v6615_v51 = vclz %v7520_v59  ;;  %v6405_v23 = vpop.f32.mrb[19].mxu1  ;;  %vm6684_vm15 = vcmp.lt.s32.totalorder %v13119_v15, 3 }
 0xcad   :  { %vm6685_vm14 = vcmp.lt.s32.totalorder %v13119_v15, 4  ;;  %v6690_v10 = vsel %vm6682_vm3, %v6669_v63, %v6672_v32  ;;  %v6686_v17 = vsel %vm6682_vm3, %v6666_v47, %v6669_v63  ;;  %v6694_v42 = vsel %vm6682_vm3, %v6672_v32, %v6675_v13 }
 0xcae   :  { %v6519_v34 = vor.u32 %v6518_v20, %v6517_v38  ;;  %v6522_v35 = vshll.u32 %v6521_v55, 23  ;;  %v7521_v2 = vadd.s32 4294967294, %v6615_v51  ;;  %v6687_v31 = vsel %vm6685_vm14, %v6675_v13, 2102212464 }
 0xcaf   :  { %v6691_v26 = vsel %vm6685_vm14, %v6678_v36, 920167782  ;;  %v6688_v37 = vsel %vm6684_vm15, %v6672_v32, %v6687_v31  ;;  %v6695_v59 = vsel %vm6685_vm14, %v6681_v46, 1326507024  ;;  %v6763_v20 = vadd.s32 1, %v7527_v24 }
 0xcb0   :  { %v6523_v18 = vor.u32 4788187, %v6522_v35  ;;  %vm7522_vm13 = vcmp.lt.s32.totalorder %v7521_v2, 0  ;;  %v6526_v40 = vcvt.s32.f32 %v6519_v34  ;;  %v6692_v4 = vsel %vm6684_vm15, %v6675_v13, %v6691_v26 }
 0xcb1   :  { %v6618_v16 = vsel %vm7522_vm13, 0, %v7521_v2  ;;  %v6693_v5 = vsel %vm6683_vm12, %v6690_v10, %v6692_v4  ;;  %v6696_v38 = vsel %vm6684_vm15, %v6678_v36, %v6695_v59  ;;  %v6689_v24 = vsel %vm6683_vm12, %v6686_v17, %v6688_v37 }
 0xcb2   :  { %v6524_v9 = vand.u32 2147483647, %v6523_v18  ;;  %v6619_v43 = vsub.s32 32, %v6618_v16  ;;  %v6623_v52 = vsub.s32 4294967266, %v6618_v16  ;;  %v6697_v55 = vsel %vm6683_vm12, %v6694_v42, %v6696_v38 }
 0xcb3   :  { %v13169_v39 = vmul.u32.u64.low %v13122_v41, %v6693_v5  ;;  %v13170_v51 = vmul.u32.u64.high %v13122_v41, %v6693_v5, %v13169_v39  ;;  %v6620_v32 = vshll.u32 %v13115_v12, %v6618_v16  ;;  %v6760_v35 = vand.u32 8388607, %v6753_v19 }
 0xcb4   :  { %v6527_v11 = vmul.f32 %v6526_v40, %v6524_v9  ;;  %v6621_v25 = vshrl.u32 %v6603_v8, %v6619_v43  ;;  %v6624_v48 = vadd.s32 127, %v6623_v52  ;;  %vm6764_vm8 = vcmp.gt.s32.totalorder %v6763_v20, 0 }
 0xcb5   :  { %v13175_v58 = vmul.u32.u64.low %v13122_v41, %v6697_v55  ;;  %v13176_v8 = vmul.u32.u64.high %v13122_v41, %v6697_v55, %v13175_v58  ;;  %v6765_v23 = vsel %vm6764_vm8, %v6763_v20, 0  ;;  %v6708_v2 = vadd.s32 1, %v13170_v51 }
 0xcb6   :  { %v6528_v63 = vxor.u32 2147483648, %v6527_v11  ;;  %v6625_v13 = vshll.u32 %v6624_v48, 23  ;;  %v6622_v36 = vor.u32 %v6621_v25, %v6620_v32  ;;  %v6767_v47 = vand.u32 31, %v6765_v23 }
 0xcb7   :  { %v6705_v18 = vmul.u32 %v13122_v41, %v6689_v24  ;;  %vm6707_vm1 = vc.u32 %v13176_v8, %v13169_v39  ;;  %v6761_v46 = vor.u32 8388608, %v6760_v35  ;;  %v6404_v10 = vadd.f32 %v6403_v62, %v12986_v27  ;;  %v13625_v24 = vld [vmem:[#allocation8_spill] sm:$0xff] }
 0xcb8   :  { %v6529_v34 = vsel %vm6446_vm10, %v6528_v63, %v6527_v11  ;;  %v6626_v1 = vor.u32 4788187, %v6625_v13  ;;  %v6709_v15 = vsel %vm6707_vm1, %v6708_v2, %v13170_v51  ;;  %v6768_v31 = vsub.s32 32, %v6767_v47 }
 0xcb9   :  { %v13187_v12 = vsel %vm13142_vm11, %v13002_v56, %v6529_v34  ;;  %v6629_v9 = vcvt.s32.f32 %v6622_v36  ;;  %v6710_v40 = vadd.s32 %v6709_v15, %v6705_v18  ;;  %v6770_v16 = vshll.u32 %v13519_v28, %v6767_v47 }
 0xcba   :  { %v6627_v26 = vand.u32 2147483647, %v6626_v1  ;;  %v6771_v4 = vshrl.u32 %v13520_v44, %v6768_v31  ;;  %v6773_v43 = vshll.u32 %v13520_v44, %v6767_v47  ;;  %v6774_v41 = vshrl.u32 %v13521_v30, %v6768_v31 }
 0xcbb   :  { %v6777_v52 = vshrl.u32 %v13580_v14, %v6768_v31  ;;  %v6711_v17 = vadd.s32 536870912, %v6710_v40  ;;  %v6766_v5 = vshrl.u32 %v6765_v23, 5  ;;  %v6779_v11 = vshll.u32 %v13580_v14, %v6767_v47 }
 0xcbc   :  { %v6780_v37 = vshrl.u32 %v13581_v22, %v6768_v31  ;;  %v6772_v27 = vor.u32 %v6771_v4, %v6770_v16  ;;  %v6775_v62 = vor.u32 %v6774_v41, %v6773_v43  ;;  %v6776_v42 = vshll.u32 %v13521_v30, %v6767_v47 }
 0xcbd   :  { %v6783_v59 = vshrl.u32 %v13582_v7, %v6768_v31  ;;  %v6630_v25 = vmul.f32 %v6629_v9, %v6627_v26  ;;  %v13204_v48 = vshrl.u32 %v6711_v17, 30  ;;  %v6782_v20 = vshll.u32 %v13581_v22, %v6767_v47 }
 0xcbe   :  { %v6781_v38 = vor.u32 %v6780_v37, %v6779_v11  ;;  %v6778_v63 = vor.u32 %v6777_v52, %v6776_v42  ;;  %v6530_v55 = vsub.s32 4, %v13090_v45  ;;  %vm6785_vm0 = vcmp.lt.s32.totalorder %v6766_v5, 1  ;;  %v13626_v11 = vld [vmem:[#allocation7_spill] sm:$0xff] }
 0xcbf   :  { %v6713_v32 = vshll.u32 %v13204_v48, 30  ;;  %v6784_v13 = vor.u32 %v6783_v59, %v6782_v20  ;;  %v6801_v58 = vshll.u32 %v6761_v46, 8  ;;  %vm6788_vm2 = vcmp.lt.s32.totalorder %v6766_v5, 4 }
 0xcc0   :  { %v6793_v34 = vsel %vm6785_vm0, %v6772_v27, %v6775_v62  ;;  %v6412_v35 = vadd.f32 %v6404_v10, %v13625_v24  ;;  %8573 = vcosq.f32 %v13187_v12  ;;  %v6631_v36 = vxor.u32 2147483648, %v6630_v25 }
 0xcc1   :  { %v13219_v1 = vsub.s32 %v6710_v40, %v6713_v32  ;;  %vm6787_vm6 = vcmp.lt.s32.totalorder %v6766_v5, 3  ;;  %v6794_v0 = vsel %vm6788_vm2, %v6781_v38, 920167782  ;;  %v6769_v23 = vshrl.u32 %v13519_v28, %v6768_v31 }
 0xcc2   :  { %vm6786_vm9 = vcmp.lt.s32.totalorder %v6766_v5, 2  ;;  %v6790_v2 = vsel %vm6788_vm2, %v6778_v63, 2102212464  ;;  %v6795_v47 = vsel %vm6787_vm6, %v6778_v63, %v6794_v0  ;;  %v6797_v46 = vsel %vm6785_vm0, %v6775_v62, %v6778_v63 }
 0xcc3   :  { %v6716_v18 = vsub.s32 0, %v13219_v1  ;;  %v6796_v15 = vsel %vm6786_vm9, %v6793_v34, %v6795_v47  ;;  %v6798_v10 = vsel %vm6788_vm2, %v6784_v13, 1326507024  ;;  %v6531_v31 = vsel %vm6446_vm10, %v6530_v55, %v13090_v45 }
 0xcc4   :  { %v6799_v26 = vsel %vm6787_vm6, %v6781_v38, %v6798_v10  ;;  %v13227_v9 = vmul.u32.u64.low %v6801_v58, %v6796_v15  ;;  %v13228_v40 = vmul.u32.u64.high %v6801_v58, %v6796_v15, %v13227_v9  ;;  %v6632_v16 = vsel %vm6549_vm7, %v6631_v36, %v6630_v25 }
 0xcc5   :  { %v6633_v4 = vsub.s32 4, %v13109_v54  ;;  %v7524_v43 = vmin.u32 %v6716_v18, %v13219_v1  ;;  %v6789_v41 = vsel %vm6785_vm0, %v6769_v23, %v6772_v27  ;;  %v6791_v52 = vsel %vm6787_vm6, %v6775_v62, %v6790_v2 }
 0xcc6   :  { %v6800_v17 = vsel %vm6786_vm9, %v6797_v46, %v6799_v26  ;;  %v13242_v37 = vmul.f32 %v6412_v35, %v13626_v11  ;;  %8575 = vsinq.f32 %v13187_v12  ;;  %v6533_v25 = vsel %vm13142_vm11, 0, %v6531_v31 }
 0xcc7   :  { %v6718_v42 = vclz %v7524_v43  ;;  %v13245_v45 = vmul.u32.u64.low %v6801_v58, %v6800_v17  ;;  %v13246_v59 = vmul.u32.u64.high %v6801_v58, %v6800_v17, %v13245_v45  ;;  %v6635_v27 = vsel %vm13211_vm4, %v13006_v60, %v6632_v16 }
 0xcc8   :  { %v6811_v62 = vadd.s32 1, %v13228_v40  ;;  %v13256_v38 = vmul.f32 %v12995_v53, %v13242_v37  ;;  %v6792_v12 = vsel %vm6786_vm9, %v6789_v41, %v6791_v52  ;;  %v6634_v55 = vsel %vm6549_vm7, %v6633_v4, %v13109_v54 }
 0xcc9   :  { %v7525_v20 = vadd.s32 4294967294, %v6718_v42  ;;  %vm6652_vm5 = vcmp.lt.s32.totalorder %v13068_v61, 0  ;;  %v6537_v32 = vand.u32 3, %v6533_v25  ;;  %8577 = vcosq.f32 %v6635_v27 }
 0xcca   :  { %v8574_v63 = vpop.eup %8573  ;;  %v6859_v21 = vand.u32 2139095040, %v13256_v38  ;;  %v6736_v13 = vsub.s32 4, %v13204_v48  ;;  %vm6810_vm3 = vc.u32 %v13246_v59, %v13227_v9  ;;  %8579 = vsinq.f32 %v6635_v27 }
 0xccb   :  { %vm7526_vm10 = vcmp.lt.s32.totalorder %v7525_v20, 0  ;;  %v6808_v5 = vmul.u32 %v6801_v58, %v6792_v12  ;;  %v6812_v34 = vsel %vm6810_vm3, %v6811_v62, %v13228_v40  ;;  %vm6536_vm12 = vweird.f32 %v13002_v56  ;;  %v13295_v12 = vpop.permute.xlu1 %6424 }
 0xccc   :  { %v6721_v53 = vsel %vm7526_vm10, 0, %v7525_v20  ;;  %v6706_v54 = vadd.s32 %v13169_v39, %v13176_v8  ;;  %v6543_v36 = vxor.u32 2147483648, %v8574_v63  ;;  %v6636_v0 = vsel %vm13211_vm4, 0, %v6634_v55 }
 0xccd   :  { %v6722_v24 = vsub.s32 32, %v6721_v53  ;;  %v6726_v35 = vsub.s32 4294967266, %v6721_v53  ;;  %vm13275_vm15 = vcmp.le.f32.partialorder %v6650_v29, 0.7853982  ;;  %v6813_v58 = vadd.s32 %v6812_v34, %v6808_v5 }
 0xcce   :  { %v6860_v2 = vshrl.u32 %v6859_v21, 23  ;;  %v6723_v47 = vshll.u32 %v13219_v1, %v6721_v53  ;;  %v6737_v39 = vsel %vm6652_vm5, %v6736_v13, %v13204_v48  ;;  %v6856_v51 = vand.u32 2147483647, %v13256_v38 }
 0xccf   :  { %v6724_v18 = vshrl.u32 %v6706_v54, %v6722_v24  ;;  %v6727_v15 = vadd.s32 127, %v6726_v35  ;;  %v6814_v46 = vadd.s32 536870912, %v6813_v58  ;;  %vm6542_vm14 = vcmp.eq.s32.totalorder %v6537_v32, 2 }
 0xcd0   :  { %v8576_v8 = vpop.eup %8575  ;;  %v7531_v10 = vadd.s32 4294967169, %v6860_v2  ;;  %v13284_v16 = vand.u32 3, %v6636_v0  ;;  %vm6539_vm11 = vcmp.eq.s32.totalorder %v6537_v32, 0  ;;  %v6739_v48 = vsel %vm13275_vm15, 0, %v6737_v39 }
 0xcd1   :  { %v6725_v29 = vor.u32 %v6724_v18, %v6723_v47  ;;  %v6728_v26 = vshll.u32 %v6727_v15, 23  ;;  %v6540_v40 = vxor.u32 2147483648, %v8576_v8  ;;  %v6544_v31 = vsel %vm6542_vm14, %v6543_v36, %v8576_v8 }
 0xcd2   :  { %v13286_v4 = vshrl.u32 %v6814_v46, 30  ;;  %v6866_v1 = vadd.s32 1, %v7531_v10  ;;  %vm6538_vm13 = vcmp.lt.s32.totalorder %v6537_v32, 2  ;;  %v6863_v17 = vand.u32 8388607, %v6856_v51 }
 0xcd3   :  { %v6729_v43 = vor.u32 4788187, %v6728_v26  ;;  %v6541_v41 = vsel %vm6539_vm11, %v8574_v63, %v6540_v40  ;;  %v8578_v42 = vpop.eup %8577  ;;  %v6732_v25 = vcvt.s32.f32 %v6725_v29  ;;  %v13301_v21 = vadd.f32 %v13295_v12, %v12993_v57 }
 0xcd4   :  { %v6816_v52 = vshll.u32 %v13286_v4, 30  ;;  %vm6867_vm8 = vcmp.gt.s32.totalorder %v6866_v1, 0  ;;  %v6545_v11 = vsel %vm6538_vm13, %v6541_v41, %v6544_v31  ;;  %v8580_v20 = vpop.eup %8579  ;;  %vm6642_vm1 = vcmp.eq.s32.totalorder %v13284_v16, 0 }
 0xcd5   :  { %v6730_v45 = vand.u32 2147483647, %v6729_v43  ;;  %v6868_v27 = vsel %vm6867_vm8, %v6866_v1, 0  ;;  %v6546_v62 = vsel %vm6536_vm12, nan, %v6545_v11  ;;  %vm6645_vm7 = vcmp.eq.s32.totalorder %v13284_v16, 2 }
 0xcd6   :  { %v13297_v55 = vsub.s32 %v6813_v58, %v6816_v52  ;;  %v6870_v63 = vand.u32 31, %v6868_v27  ;;  %v6646_v13 = vxor.u32 2147483648, %v8578_v42  ;;  %v13305_v53 = vand.u32 3, %v6739_v48 }
 0xcd7   :  { %v6733_v32 = vmul.f32 %v6732_v25, %v6730_v45  ;;  %v6643_v34 = vxor.u32 2147483648, %v8580_v20  ;;  %v6864_v24 = vor.u32 8388608, %v6863_v17  ;;  %v6869_v35 = vshrl.u32 %v6868_v27, 5 }
 0xcd8   :  { %v6819_v56 = vsub.s32 0, %v13297_v55  ;;  %v6871_v5 = vsub.s32 32, %v6870_v63  ;;  %v6873_v57 = vshll.u32 %v13519_v28, %v6870_v63  ;;  %v6876_v0 = vshll.u32 %v13520_v44, %v6870_v63 }
 0xcd9   :  { %v6734_v54 = vxor.u32 2147483648, %v6733_v32  ;;  %v6879_v58 = vshll.u32 %v13521_v30, %v6870_v63  ;;  %v6882_v15 = vshll.u32 %v13580_v14, %v6870_v63  ;;  %v6647_v29 = vsel %vm6645_vm7, %v6646_v13, %v8580_v20 }
 0xcda   :  { %v7528_v36 = vmin.u32 %v6819_v56, %v13297_v55  ;;  %v6874_v47 = vshrl.u32 %v13520_v44, %v6871_v5  ;;  %v6877_v18 = vshrl.u32 %v13521_v30, %v6871_v5  ;;  %v6880_v46 = vshrl.u32 %v13580_v14, %v6871_v5 }
 0xcdb   :  { %v6735_v2 = vsel %vm6652_vm5, %v6734_v54, %v6733_v32  ;;  %v6883_v10 = vshrl.u32 %v13581_v22, %v6871_v5  ;;  %v6644_v1 = vsel %vm6642_vm1, %v8578_v42, %v6643_v34  ;;  %v6885_v23 = vshll.u32 %v13581_v22, %v6870_v63 }
 0xcdc   :  { %v6738_v39 = vsel %vm13275_vm15, %v13068_v61, %v6735_v2  ;;  %v6821_v8 = vclz %v7528_v36  ;;  %v6875_v26 = vor.u32 %v6874_v47, %v6873_v57  ;;  %v6878_v40 = vor.u32 %v6877_v18, %v6876_v0 }
 0xcdd   :  { %8581 = vcosq.f32 %v6738_v39  ;;  %v6881_v30 = vor.u32 %v6880_v46, %v6879_v58  ;;  %v6884_v31 = vor.u32 %v6883_v10, %v6882_v15  ;;  %v6886_v43 = vshrl.u32 %v13582_v7, %v6871_v5 }
 0xcde   :  { %8583 = vsinq.f32 %v6738_v39  ;;  %v7529_v44 = vadd.s32 4294967294, %v6821_v8  ;;  %vm6888_vm4 = vcmp.lt.s32.totalorder %v6869_v35, 1  ;;  %vm6891_vm2 = vcmp.lt.s32.totalorder %v6869_v35, 4 }
 0xcdf   :  { %v6896_v14 = vsel %vm6888_vm4, %v6875_v26, %v6878_v40  ;;  %v6904_v48 = vshll.u32 %v6864_v24, 8  ;;  %v6887_v52 = vor.u32 %v6886_v43, %v6885_v23  ;;  %v6893_v17 = vsel %vm6891_vm2, %v6881_v30, 2102212464 }
 0xce0   :  { %vm7530_vm0 = vcmp.lt.s32.totalorder %v7529_v44, 0  ;;  %v6897_v11 = vsel %vm6891_vm2, %v6884_v31, 920167782  ;;  %v6872_v25 = vshrl.u32 %v13519_v28, %v6871_v5  ;;  %vm6890_vm6 = vcmp.lt.s32.totalorder %v6869_v35, 3 }
 0xce1   :  { %v6824_v41 = vsel %vm7530_vm0, 0, %v7529_v44  ;;  %v13331_v42 = vmul.f32 %v6546_v62, %v13295_v12  ;;  %vm6889_vm9 = vcmp.lt.s32.totalorder %v6869_v35, 2  ;;  %v6898_v22 = vsel %vm6890_vm6, %v6881_v30, %v6897_v11 }
 0xce2   :  { %v6829_v45 = vsub.s32 4294967266, %v6824_v41  ;;  %v6900_v7 = vsel %vm6888_vm4, %v6878_v40, %v6881_v30  ;;  %v6901_v27 = vsel %vm6891_vm2, %v6887_v52, 1326507024  ;;  %v6892_v20 = vsel %vm6888_vm4, %v6872_v25, %v6875_v26 }
 0xce3   :  { %v6894_v63 = vsel %vm6890_vm6, %v6878_v40, %v6893_v17  ;;  %v6899_v32 = vsel %vm6889_vm9, %v6896_v14, %v6898_v22  ;;  %v6902_v13 = vsel %vm6890_vm6, %v6884_v31, %v6901_v27  ;;  %vm6641_vm5 = vcmp.lt.s32.totalorder %v13284_v16, 2 }
 0xce4   :  { %v6903_v56 = vsel %vm6889_vm9, %v6900_v7, %v6902_v13  ;;  %v13338_v28 = vmul.u32.u64.low %v6904_v48, %v6899_v32  ;;  %v13339_v5 = vmul.u32.u64.high %v6904_v48, %v6899_v32, %v13338_v28  ;;  %v6648_v62 = vsel %vm6641_vm5, %v6644_v1, %v6647_v29 }
 0xce5   :  { %v6830_v34 = vadd.s32 127, %v6829_v45  ;;  %v13341_v54 = vmul.u32.u64.low %v6904_v48, %v6903_v56  ;;  %v13342_v24 = vmul.u32.u64.high %v6904_v48, %v6903_v56, %v13341_v54  ;;  %vm6639_vm10 = vweird.f32 %v13006_v60 }
 0xce6   :  { %v6895_v57 = vsel %vm6889_vm9, %v6892_v20, %v6894_v63  ;;  %v7068_v0 = vsub.f32 %v13301_v21, %v13331_v42  ;;  %vm6745_vm3 = vcmp.eq.s32.totalorder %v13305_v53, 0  ;;  %vm6748_vm12 = vcmp.eq.s32.totalorder %v13305_v53, 2  ;;  %v7102_v63 = vld [vmem:[%s13463_s13] sm:$0xff] }
 0xce7   :  { %v8582_v36 = vpop.eup %8581  ;;  %v6825_v2 = vsub.s32 32, %v6824_v41  ;;  %v6649_v47 = vsel %vm6639_vm10, nan, %v6648_v62  ;;  %v6809_v15 = vadd.s32 %v13227_v9, %v13246_v59  ;;  %v6914_v39 = vadd.s32 1, %v13339_v5 }
 0xce8   :  { %v8584_v58 = vpop.eup %8583  ;;  %v6749_v16 = vxor.u32 2147483648, %v8582_v36  ;;  %v6831_v35 = vshll.u32 %v6830_v34, 23  ;;  %v6911_v8 = vmul.u32 %v6904_v48, %v6895_v57  ;;  %vm6913_vm15 = vc.u32 %v13342_v24, %v13338_v28 }
 0xce9   :  { %v6746_v18 = vxor.u32 2147483648, %v8584_v58  ;;  %vm6742_vm14 = vweird.f32 %v13068_v61  ;;  %vm6744_vm11 = vcmp.lt.s32.totalorder %v13305_v53, 2  ;;  %v6915_v10 = vsel %vm6913_vm15, %v6914_v39, %v13339_v5 }
 0xcea   :  { %v6750_v60 = vsel %vm6748_vm12, %v6749_v16, %v8584_v58  ;;  %v7063_v29 = vmul.f32 %v6649_v47, %v13295_v12  ;;  %v6827_v40 = vshrl.u32 %v6809_v15, %v6825_v2  ;;  %v6916_v44 = vadd.s32 %v6915_v10, %v6911_v8 }
 0xceb   :  { %v6747_v46 = vsel %vm6745_vm3, %v8582_v36, %v6746_v18  ;;  %v6428_v9 = vadd.f32 %v13295_v12, %v12998_v6  ;;  %v6429_v59 = vadd.f32 %v13295_v12, %v13024_v49  ;;  %v6826_v61 = vshll.u32 %v13297_v55, %v6824_v41 }
 0xcec   :  { %v6751_v26 = vsel %vm6744_vm11, %v6747_v46, %v6750_v60  ;;  %v6832_v53 = vor.u32 4788187, %v6831_v35  ;;  %v6917_v1 = vadd.s32 536870912, %v6916_v44  ;;  %vm6755_vm13 = vcmp.lt.s32.totalorder %v13104_v33, 0 }
 0xced   :  { %v6752_v30 = vsel %vm6742_vm14, nan, %v6751_v26  ;;  %v7069_v23 = vsub.f32 %v6428_v9, %v7063_v29  ;;  %v6828_v14 = vor.u32 %v6827_v40, %v6826_v61  ;;  %vm13371_vm1 = vcmp.le.f32.partialorder %v6753_v19, 0.7853982 }
 0xcee   :  { %v7064_v31 = vmul.f32 %v6752_v30, %v13295_v12  ;;  %v6918_v48 = vshrl.u32 %v6917_v1, 30  ;;  %v6833_v52 = vand.u32 2147483647, %v6832_v53  ;;  %v6912_v32 = vadd.s32 %v13338_v28, %v13342_v24 }
 0xcef   :  { %v6835_v45 = vcvt.s32.f32 %v6828_v14  ;;  %v6839_v19 = vsub.s32 4, %v13286_v4  ;;  %vm6858_vm7 = vcmp.lt.s32.totalorder %v13256_v38, 0  ;;  %vm13388_vm4 = vcmp.le.f32.partialorder %v6856_v51, 0.7853982 }
 0xcf0   :  { %v7070_v43 = vsub.f32 %v6429_v59, %v7064_v31  ;;  %v6919_v17 = vshll.u32 %v6918_v48, 30  ;;  %v6942_v35 = vsub.s32 4, %v6918_v48  ;;  %vm6845_vm9 = vweird.f32 %v13104_v33 }
 0xcf1   :  { %v6836_v6 = vmul.f32 %v6835_v45, %v6833_v52  ;;  %v6840_v28 = vsel %vm6755_vm13, %v6839_v19, %v13286_v4  ;;  %vm6948_vm12 = vweird.f32 %v13256_v38  ;;  %vm13633_vm15 = vcmask 1039360  }
 0xcf2   :  { %v8394_v11 = vpack.i.bf16 %v7070_v43, %v7069_v23  ;;  %v6920_v25 = vsub.s32 %v6916_v44, %v6919_v17  ;;  %v6842_v15 = vsel %vm13371_vm1, 0, %v6840_v28  ;;  %v6943_v26 = vsel %vm6858_vm7, %v6942_v35, %v6918_v48  ;;  %vm13634_vm14 = vmmov %vm13633_vm15 }
 0xcf3   :  { %v6837_v55 = vxor.u32 2147483648, %v6836_v6  ;;  %v6846_v46 = vand.u32 3, %v6842_v15  ;;  %v6945_v51 = vsel %vm13388_vm4, 0, %v6943_v26  ;;  %v6430_v17 = vadd.f32 %v13295_v12, %v13094_v50  ;;  %vm13635_vm11 = vmmov %vm13634_vm14 }
 0xcf4   :  { %8395 = vrot.lane.b32.xlu0 %v8394_v11, %s8634_s16  ;;  %v6922_v49 = vsub.s32 0, %v6920_v25  ;;  %v6949_v9 = vand.u32 3, %v6945_v51  ;;  %v7081_v51 = vld [vmem:[%s13462_s12 + $0x8] sm:$0xff] }
 0xcf5   :  { %v6838_v27 = vsel %vm6755_vm13, %v6837_v55, %v6836_v6  ;;  %vm6848_vm0 = vcmp.eq.s32.totalorder %v6846_v46, 0  ;;  %vm6851_vm2 = vcmp.eq.s32.totalorder %v6846_v46, 2  ;;  %vm6847_vm6 = vcmp.lt.s32.totalorder %v6846_v46, 2 }
 0xcf6   :  { %v7532_v22 = vmin.u32 %v6922_v49, %v6920_v25  ;;  %v6841_v5 = vsel %vm13371_vm1, %v13104_v33, %v6838_v27  ;;  %vm6954_vm5 = vcmp.eq.s32.totalorder %v6949_v9, 2  ;;  %vm6951_vm10 = vcmp.eq.s32.totalorder %v6949_v9, 0 }
 0xcf7   :  { %8585 = vcosq.f32 %v6841_v5  ;;  %vm6950_vm3 = vcmp.lt.s32.totalorder %v6949_v9, 2  ;;  %v6431_v33 = vadd.f32 %v13295_v12, %v13242_v37  ;;  %vm7135_vm13 = vcmask 7168  }
 0xcf8   :  { %8405 = vrot.lane.b32.xlu0 %v8394_v11, %s8650_s8  ;;  %v6924_v41 = vclz %v7532_v22  ;;  %8587 = vsinq.f32 %v6841_v5 }
 0xcfa   :  { %v7533_v7 = vadd.s32 4294967294, %v6924_v41 }
 0xcfc   :  { %vm7534_vm8 = vcmp.lt.s32.totalorder %v7533_v7, 0 }
 0xcfd   :  { %v6927_v20 = vsel %vm7534_vm8, 0, %v7533_v7  ;;  %vm7152_vm8 = vcmask 130048  }
 0xcfe   :  { %v6928_v13 = vsub.s32 32, %v6927_v20  ;;  %v6932_v56 = vsub.s32 4294967266, %v6927_v20  ;;  %v6929_v62 = vshll.u32 %v6920_v25, %v6927_v20 }
 0xd00   :  { %v6930_v34 = vshrl.u32 %v6912_v32, %v6928_v13  ;;  %v6933_v54 = vadd.s32 127, %v6932_v56  ;;  %v7103_v13 = vld [vmem:[%s13463_s13 + $0x8] sm:$0xff] }
 0xd01   :  { %v8586_v18 = vpop.eup %8585 }
 0xd02   :  { %v6931_v36 = vor.u32 %v6930_v34, %v6929_v62  ;;  %v6934_v57 = vshll.u32 %v6933_v54, 23  ;;  %v8588_v8 = vpop.eup %8587  ;;  %v6852_v29 = vxor.u32 2147483648, %v8586_v18 }
 0xd03   :  { %v6849_v10 = vxor.u32 2147483648, %v8588_v8 }
 0xd04   :  { %v6935_v58 = vor.u32 4788187, %v6934_v57  ;;  %v6938_v2 = vcvt.s32.f32 %v6931_v36  ;;  %v6853_v44 = vsel %vm6851_vm2, %v6852_v29, %v8588_v8  ;;  %v7080_v29 = vld [vmem:[%s13462_s12] sm:$0xff]  ;;  %s8651_s12 = smov [#allocation3]  }
 0xd05   :  { %v6850_v40 = vsel %vm6848_vm0, %v8586_v18, %v6849_v10  ;;  %s7326_s20 = sshll.u32 %s8651_s12, 4  ;;  %s7327_s20 = int_to_ptr.vmem [resolvable:$true] %s7326_s20 }
 0xd06   :  { %v6936_v16 = vand.u32 2147483647, %v6935_v58  ;;  %v6854_v59 = vsel %vm6847_vm6, %v6850_v40, %v6853_v44  ;;  %s8601_s30 = scalar_lea.vmem %s7327_s20, 1024  ;;  %p8606_p1 = scmp.lt.s32.totalorder %s7327_s20, %s7327_s20 }
 0xd07   :  { %v6855_v53 = vsel %vm6845_vm9, nan, %v6854_v59  ;;  %p8602_p0 = scmp.ne.s32.totalorder %s7327_s20, %s8601_s30  ;;  %p8607_p2 = scmp.lt.s32.totalorder %s8601_s30, %s8601_s30 }
 0xd08   :  { %v6939_v47 = vmul.f32 %v6938_v2, %v6936_v16  ;;  %v7065_v14 = vmul.f32 %v6855_v53, %v13295_v12 }
 0xd09   :  { %p8608_p3 = por %p8607_p2, %p8606_p1 }
 0xd0a   :  { %v6940_v24 = vxor.u32 2147483648, %v6939_v47  ;;  %v7071_v45 = vsub.f32 %v6430_v17, %v7065_v14 }
 0xd0b   :  { %p8609_p4 = pnand %p8608_p3, %p8602_p0 }
 0xd0c   :  { %v6941_v60 = vsel %vm6858_vm7, %v6940_v24, %v6939_v47 }
 0xd0d   :  { %v6944_v4 = vsel %vm13388_vm4, %v13256_v38, %v6941_v60 }
 0xd0e   :  { %8589 = vcosq.f32 %v6944_v4 }
 0xd0f   :  { %8591 = vsinq.f32 %v6944_v4 }
 0xd18   :  { %v8590_v30 = vpop.eup %8589 }
 0xd19   :  { %v8592_v31 = vpop.eup %8591  ;;  %v6955_v61 = vxor.u32 2147483648, %v8590_v30 }
 0xd1a   :  { %v6952_v1 = vxor.u32 2147483648, %v8592_v31 }
 0xd1b   :  { %v6956_v23 = vsel %vm6954_vm5, %v6955_v61, %v8592_v31 }
 0xd1c   :  { %v6953_v43 = vsel %vm6951_vm10, %v8590_v30, %v6952_v1 }
 0xd1d   :  { %v6957_v48 = vsel %vm6950_vm3, %v6953_v43, %v6956_v23 }
 0xd1e   :  { %v6958_v52 = vsel %vm6948_vm12, nan, %v6957_v48 }
 0xd1f   :  { %v7066_v11 = vmul.f32 %v6958_v52, %v13295_v12 }
 0xd21   :  { %v7072_v25 = vsub.f32 %v6431_v33, %v7066_v11 }
 0xd23   :  { %v8399_v6 = vpack.i.bf16 %v7072_v25, %v7071_v45 }
 0xd25   :  { %8400 = vrot.lane.b32.xlu1 %v8399_v6, %s8634_s16 }
 0xd29   :  { %8410 = vrot.lane.b32.xlu1 %v8399_v6, %s8650_s8 }
 0xd66   :  { %v8396_v49 = vpop.permute.xlu0 %8395 }
 0xd67   :  { %v8398_v22 = vunpack.i.h.bf16 %v8396_v49  ;;  %v8397_v38 = vunpack.i.l.bf16 %v8396_v49 }
 0xd69   :  { %v7099_v50 = vsel %vm13633_vm15, %v8397_v38, %v8398_v22  ;;  %v8424_v32 = vpack.i.bf16 %v8397_v38, %v7068_v0 }
 0xd6a   :  { %v8406_v56 = vpop.permute.xlu0 %8405 }
 0xd6b   :  { %v8408_v62 = vunpack.i.h.bf16 %v8406_v56  ;;  %v8407_v34 = vunpack.i.l.bf16 %v8406_v56 }
 0xd6d   :  { %v7137_v2 = vsel %vm7135_vm13, %v8407_v34, %v8408_v62 }
 0xd97   :  { %v8401_v55 = vpop.permute.xlu1 %8400 }
 0xd98   :  { %v8403_v41 = vunpack.i.h.bf16 %v8401_v55  ;;  %v8402_v7 = vunpack.i.l.bf16 %v8401_v55 }
 0xd9a   :  { %v7101_v27 = vsel %vm13634_vm14, %v8402_v7, %v8403_v41  ;;  %v7100_v37 = vsel %vm13635_vm11, %v8398_v22, %v8402_v7 }
 0xd9b   :  { %v8419_v12 = vpack.i.bf16 %v8403_v41, %v7101_v27  ;;  %v8414_v20 = vpack.i.bf16 %v7100_v37, %v7099_v50  ;;  %v8411_v5 = vpop.permute.xlu1 %8410 }
 0xd9c   :  { %v8412_v54 = vunpack.i.l.bf16 %v8411_v5  ;;  %v8413_v36 = vunpack.i.h.bf16 %v8411_v5 }
 0xd9d   :  { %8420 = vrot.lane.b32.xlu1 %v8419_v12, %s8650_s8  ;;  %8415 = vrot.lane.b32.xlu0 %v8414_v20, %s8650_s8 }
 0xd9e   :  { %v7138_v16 = vsel %vm7135_vm13, %v8408_v62, %v8412_v54  ;;  %v7139_v24 = vsel %vm7135_vm13, %v8412_v54, %v8413_v36 }
 0xda1   :  { %7106 = vperm.xlu1 %8033, %v7102_v63   ;;  %8425 = vrot.lane.b32.xlu0 %v8424_v32, %s8650_s8 }
 0xda5   :  { %7111 = vperm.xlu0 %7852, %v7103_v13  }
 0xe0f   :  { %v8421_v57 = vpop.permute.xlu1 %8420  ;;  %v8416_v58 = vpop.permute.xlu0 %8415 }
 0xe10   :  { %v8423_v19 = vunpack.i.h.bf16 %v8421_v57  ;;  %v8422_v21 = vunpack.i.l.bf16 %v8421_v57  ;;  %v8418_v42 = vunpack.i.h.bf16 %v8416_v58  ;;  %v8417_v0 = vunpack.i.l.bf16 %v8416_v58 }
 0xe12   :  { %v7142_v47 = vsel %vm7135_vm13, %v8418_v42, %v8422_v21  ;;  %v7141_v28 = vsel %vm7135_vm13, %v8417_v0, %v8418_v42  ;;  %v7143_v18 = vsel %vm7135_vm13, %v8422_v21, %v8423_v19 }
 0xe13   :  { %v7657_v15 = vpack.c.bf16 %v7142_v47, %v7138_v16  ;;  %v8426_v39 = vpop.permute.xlu0 %8425  ;;  %v7651_v60 = vpack.c.bf16 %v7141_v28, %v7137_v2  ;;  %v7655_v35 = vpack.c.bf16 %v7143_v18, %v7139_v24 }
 0xe14   :  { %v8428_v8 = vunpack.i.h.bf16 %v8426_v39  ;;  %v8427_v4 = vunpack.i.l.bf16 %v8426_v39 }
 0xe15   :  { %7652 = vmatprep.subr.bf16.mxu1 %v7651_v60  ;;  %7656 = vmatprep.subr.bf16.mxu0 %v7655_v35 }
 0xe16   :  { %v7140_v46 = vsel %vm7135_vm13, %v8428_v8, %v8417_v0  ;;  %v7136_v10 = vsel %vm7135_vm13, %v8427_v4, %v8407_v34  ;;  %7658 = vmatpush1.bf16.msra.mxu0 %v7657_v15 }
 0xe17   :  { %v7653_v26 = vpack.c.bf16 %v7140_v46, %v7136_v10 }
 0xe19   :  { %7654 = vmatpush1.bf16.msra.mxu1 %v7653_v26  ;;  %7541 = vmatmul.mubr.msk.f32.vlgmr.msra.gmra.mrb[16].mxu0 %vm7152_vm8, %v7080_v29 }
 0xe1a   :  { %7306 = vmatprep.mubr.f32.mxu0 %v13539_v3 }
 0xe1c   :  { %7539 = vmatmul.mubr.msk.f32.vlgmr.msra.gmra.mrb[20].mxu1 %vm7152_vm8, %v7080_v29 }
 0xe1d   :  { %7542 = vmatmul.mubr.msk.f32.gmra.mrb[18].mxu0 %vm7152_vm8, %v7081_v51  ;;  %7229 = vmatprep.mubr.f32.mxu1 %v13539_v3 }
 0xe20   :  { %7540 = vmatmul.mubr.msk.f32.gmra.mrb[22].mxu1 %vm7152_vm8, %v7081_v51  ;;  %v7107_v40 = vpop.permute.xlu1 %7106 }
 0xe24   :  { %v7112_v31 = vpop.permute.xlu0 %7111 }
 0xeec   :  { %v7302_v44 = vpop.f32.mrb[16].mxu0 }
 0xeed   :  { %v7303_v9 = vadd.f32 %v7302_v44, %v7107_v40  ;;  %v7304_v59 = vpop.f32.mrb[17].mxu0 }
 0xeee   :  { %v7305_v30 = vadd.f32 %v7304_v59, %v7107_v40 }
 0xeef   :  { %7315 = vst [vmem:[#allocation3 + $0x10] sm:$0xff] %v7303_v9  ;;  %v7225_v61 = vpop.f32.mrb[20].mxu1 }
 0xef0   :  { %7316 = vst [vmem:[#allocation3 + $0x18] sm:$0xff] %v7305_v30  ;;  %v7226_v53 = vadd.f32 %v7225_v61, %v7107_v40  ;;  %v7227_v1 = vpop.f32.mrb[21].mxu1  ;;  %v7308_v23 = vpop.f32.mrb[18].mxu0 }
 0xef1   :  { %v7228_v43 = vadd.f32 %v7227_v1, %v7107_v40  ;;  %v7309_v14 = vadd.f32 %v7308_v23, %v7112_v31  ;;  %v7310_v48 = vpop.f32.mrb[19].mxu0 }
 0xef2   :  { %7313 = vst [vmem:[#allocation3] sm:$0xff] %v7226_v53  ;;  %v7311_v52 = vadd.f32 %v7310_v48, %v7112_v31 }
 0xef3   :  { %7314 = vst [vmem:[#allocation3 + $0x8] sm:$0xff] %v7228_v43  ;;  %7319 = vst [vmem:[#allocation3 + $0x30] sm:$0xff] %v7309_v14  ;;  %v7231_v3 = vpop.f32.mrb[22].mxu1 }
 0xef4   :  { %7320 = vst [vmem:[#allocation3 + $0x38] sm:$0xff] %v7311_v52  ;;  %v7232_v17 = vadd.f32 %v7231_v3, %v7112_v31  ;;  %v7233_v33 = vpop.f32.mrb[23].mxu1 }
 0xef5   :  { %v7234_v11 = vadd.f32 %v7233_v33, %v7112_v31 }
 0xef6   :  { %7317 = vst [vmem:[#allocation3 + $0x20] sm:$0xff] %v7232_v17 }
 0xef7   :  { %7318 = vst [vmem:[#allocation3 + $0x28] sm:$0xff] %v7234_v11 }
 0xef8   :  { %8612 = shalt.err (!%p8609_p4)
}
 0xef9   :  { %s8613_s27 = scalar_lea.hbm %s13464_s14, 1024 }
 0xefa   :  { %p8614_p5 = scmp.ne.s32.totalorder %s13464_s14, %s8613_s27  ;;  %p8617_p6 = scmp.lt.u32.totalorder %s8613_s27, %s13464_s14 }
 0xefc   :  { %p8619_p7 = pnand %p8617_p6, %p8614_p5 }
 0xefe   :  { %8622 = shalt.err (!%p8619_p7)
}
 0xeff   :  { %s8652_s22 = smov 512   ;;  %s8653_s23 = smov 32  }
 0xf00   :  { %7332 = dma.vmem_to_hbm [thread:$0]  %s7327_s20, 1024, %s13464_s14, [#allocation4], %s8652_s22, %s8652_s22, %s8653_s23  }
 0xf01   :  { %8623 = dma.done.wait [#allocation4], 1024  }
 0xf02   :  { %8624 = vsyncadd [#allocation4], 4294966272 }
 0xf03   :  { %7336 = vsyncpa [#allocation4], 1 }

</bundles_post_ra>
